<compile_context>
chip_gen: v7x
topology: tpu7x:2x2x1
jax: 0.10.0
libtpu: 0.0.40
codegen_flags: <defaults>
</compile_context>

<pallas_src>
import functools

import jax
import jax.numpy as jnp
from jax.experimental import pallas as pl
from jax.experimental.pallas import tpu as pltpu


# Flipped to False at runtime if this jax build rejects pl.Buffered(1) on a
# pallas_call BlockSpec (we then fall back to default double buffering).
_SINGLE_BUFFER_CONSTS = True


def _round_up(n, m):
    return ((n + m - 1) // m) * m


def _pad2d(a, rows, cols, dtype=None):
    out = jnp.pad(a, ((0, rows - a.shape[0]), (0, cols - a.shape[1])))
    return out.astype(dtype) if dtype is not None else out


def _default_batch_tile(batch):
    """Generation-aware batch tile.

    v7x (2 TensorCores/chip): even number of grid steps so both cores get
    work, with tiles as fat as possible (<= 512 rows) so the MXU M dimension
    is >= 256 for larger batches.
    v5e/v6e (1 TensorCore): fewest grid steps wins — each step carries
    ~0.35 us of fixed pipeline overhead while per-tile compute here is <1 us,
    so collapse to a single step (up to 1024 rows; VMEM use stays ~2 MiB).
    """
    try:
        kind = jax.devices()[0].device_kind.lower()
    except Exception:  # pragma: no cover - defensive
        kind = ""
    dual_core = ("v7" in kind) or ("7x" in kind)
    if dual_core and batch > 8:
        return min(_round_up(pl.cdiv(batch, 2), 8), 512)
    return min(_round_up(batch, 8), 1024)


def _vae_kernel(*refs, training, hidden_pad):
    if training:
        (x_ref, eps_ref,
         w1_ref, b1_ref, w2_ref, b2_ref,
         w3_ref, b3_ref, w4_ref, b4_ref,
         recon_ref, mulv_ref) = refs
    else:
        (x_ref,
         w1_ref, b1_ref, w2_ref, b2_ref,
         w3_ref, b3_ref, w4_ref, b4_ref,
         recon_ref, mulv_ref) = refs
        eps_ref = None

    # encode: h1 = relu(x @ W1 + b1)        (bf16 operands, f32 accumulation)
    h1 = jnp.dot(x_ref[...], w1_ref[...],
                 preferred_element_type=jnp.float32) + b1_ref[...]
    h1 = jnp.maximum(h1, 0.0).astype(jnp.bfloat16)

    # fused mu/logvar head: one lane-dense (tile, 2*hidden_pad) matmul + store
    mulv = jnp.dot(h1, w2_ref[...],
                   preferred_element_type=jnp.float32) + b2_ref[...]
    mulv_ref[...] = mulv.astype(mulv_ref.dtype)

    mu = mulv[:, :hidden_pad]
    if training:
        # reparameterize: z = mu + eps * exp(0.5 * logvar)
        logvar = mulv[:, hidden_pad:]
        z = mu + eps_ref[...].astype(jnp.float32) * jnp.exp(0.5 * logvar)
    else:
        # eval mode: torch uses eps = 0  =>  z = mu (exp / mul skipped statically)
        z = mu
    z = z.astype(jnp.bfloat16)

    # decode: h3 = relu(z @ W3 + b3); recon = sigmoid(h3 @ W4 + b4)
    h3 = jnp.dot(z, w3_ref[...],
                 preferred_element_type=jnp.float32) + b3_ref[...]
    h3 = jnp.maximum(h3, 0.0).astype(jnp.bfloat16)

    logits = jnp.dot(h3, w4_ref[...],
                     preferred_element_type=jnp.float32) + b4_ref[...]
    # sigmoid via a single EUP tanh: robust for very negative logits
    # (no exp(-x) -> inf intermediate) and halves EUP pressure.
    recon = 0.5 * jnp.tanh(0.5 * logits) + 0.5
    recon_ref[...] = recon.astype(recon_ref.dtype)


def prepare_params(params):
    """One-time weight preparation, hoisted out of the per-call hot path.

    Pads every feature dim to a multiple of 128, fuses the mu/logvar head
    (fc21|fc22) into a single (aux_pad, 2*hidden_pad) matrix, and casts
    matmul operands to bf16 (biases stay f32 for the f32 epilogue adds).
    """
    input_size, aux_size = params["w1"].shape
    hidden_size = params["w21"].shape[1]
    input_pad = _round_up(input_size, 128)
    aux_pad = _round_up(aux_size, 128)
    hidden_pad = _round_up(hidden_size, 128)

    w1 = _pad2d(params["w1"], input_pad, aux_pad, jnp.bfloat16)
    b1 = _pad2d(params["b1"], 1, aux_pad, jnp.float32)
    w2 = jnp.concatenate(
        [_pad2d(params["w21"], aux_pad, hidden_pad),
         _pad2d(params["w22"], aux_pad, hidden_pad)], axis=1).astype(jnp.bfloat16)
    b2 = jnp.concatenate(
        [_pad2d(params["b21"], 1, hidden_pad),
         _pad2d(params["b22"], 1, hidden_pad)], axis=1).astype(jnp.float32)
    w3 = _pad2d(params["w3"], hidden_pad, aux_pad, jnp.bfloat16)
    b3 = _pad2d(params["b3"], 1, aux_pad, jnp.float32)
    w4 = _pad2d(params["w4"], aux_pad, input_pad, jnp.bfloat16)
    b4 = _pad2d(params["b4"], 1, input_pad, jnp.float32)

    weights = dict(w1=w1, b1=b1, w2=w2, b2=b2, w3=w3, b3=b3, w4=w4, b4=b4)
    return dict(weights=weights,
                input_size=input_size, aux_size=aux_size,
                hidden_size=hidden_size,
                input_pad=input_pad, aux_pad=aux_pad, hidden_pad=hidden_pad)


def vae_simplex_forward(x, prep, eps=None, *, training=False, batch_tile=None):
    """Full VAESimplex forward in one Pallas kernel.

    x: (B, input_size) f32.  prep: output of prepare_params().
    eps: (B, hidden_size) f32, required when training=True (torch randn_like);
    in eval mode eps is not used at all (torch uses eps = 0).
    Returns (recon, mu, logvar) as f32, matching the PyTorch forward().
    """
    B, input_size = x.shape
    assert input_size == prep["input_size"]
    input_pad = prep["input_pad"]
    hidden_pad = prep["hidden_pad"]
    hidden_size = prep["hidden_size"]
    aux_pad = prep["aux_pad"]
    w = prep["weights"]

    if batch_tile is None:
        batch_tile = _default_batch_tile(B)
    b_pad = _round_up(B, batch_tile)
    grid = (b_pad // batch_tile,)

    # --- per-call activation prep only (weights already padded/cast) --------
    x_p = _pad2d(x, b_pad, input_pad, jnp.bfloat16)
    operands = [x_p]
    if training:
        if eps is None:
            raise ValueError("training=True requires eps of shape (B, hidden)")
        assert eps.shape == (B, hidden_size)
        operands.append(_pad2d(eps, b_pad, hidden_pad, jnp.bfloat16))
    operands += [w["w1"], w["b1"], w["w2"], w["b2"],
                 w["w3"], w["b3"], w["w4"], w["b4"]]

    def row_spec(cols):
        # batch-tiled operand: block (batch_tile, cols), tile i along batch
        return pl.BlockSpec((batch_tile, cols), lambda i: (i, 0))

    def build_specs(const_mode):
        def const_spec(rows, cols):
            # small constant operand: whole array resident, same block each step
            if const_mode is None:
                return pl.BlockSpec((rows, cols), lambda i: (0, 0))
            return pl.BlockSpec((rows, cols), lambda i: (0, 0),
                                pipeline_mode=const_mode)
        in_specs = [row_spec(input_pad)]                 # x
        if training:
            in_specs.append(row_spec(hidden_pad))        # eps (training only)
        in_specs += [
            const_spec(input_pad, aux_pad),              # w1
            const_spec(1, aux_pad),                      # b1
            const_spec(aux_pad, 2 * hidden_pad),         # w2 (fused mu|logvar)
            const_spec(1, 2 * hidden_pad),               # b2 (fused)
            const_spec(hidden_pad, aux_pad),             # w3
            const_spec(1, aux_pad),                      # b3
            const_spec(aux_pad, input_pad),              # w4
            const_spec(1, input_pad),                    # b4
        ]
        out_specs = [
            row_spec(input_pad),                         # recon (padded, bf16)
            row_spec(2 * hidden_pad),                    # fused [mu|logvar] (bf16)
        ]
        return in_specs, out_specs

    out_shape = [
        jax.ShapeDtypeStruct((b_pad, input_pad), jnp.bfloat16),
        jax.ShapeDtypeStruct((b_pad, 2 * hidden_pad), jnp.bfloat16),
    ]

    # advisory cost estimate: helps XLA schedule the tiny custom call against
    # the surrounding pad/slice ops instead of serializing around it.
    flops = 2 * b_pad * (input_pad * aux_pad + aux_pad * 2 * hidden_pad
                         + hidden_pad * aux_pad + aux_pad * input_pad)
    transcendentals = b_pad * (input_pad + (hidden_pad if training else 0))
    bytes_in = sum(int(op.size) * int(op.dtype.itemsize) for op in operands)
    bytes_out = (b_pad * input_pad + b_pad * 2 * hidden_pad) * 2  # bf16 outs
    cost = pl.CostEstimate(flops=int(flops),
                           transcendentals=int(transcendentals),
                           bytes_accessed=int(bytes_in + bytes_out))

    kernel = functools.partial(_vae_kernel, training=training,
                               hidden_pad=hidden_pad)

    def run(const_mode):
        in_specs, out_specs = build_specs(const_mode)
        fn = pl.pallas_call(
            kernel,
            out_shape=out_shape,
            grid_spec=pltpu.PrefetchScalarGridSpec(
                num_scalar_prefetch=0,
                grid=grid,
                in_specs=in_specs,
                out_specs=out_specs,
            ),
            compiler_params=pltpu.CompilerParams(
                dimension_semantics=("parallel",),
            ),
            cost_estimate=cost,
        )
        return fn(*operands)

    global _SINGLE_BUFFER_CONSTS
    if _SINGLE_BUFFER_CONSTS:
        try:
            recon_p, mulv_p = run(pl.Buffered(1))
        except Exception:
            # This jax build does not accept single-buffered pallas_call
            # operands; fall back to default buffering (~0.65 MiB extra VMEM).
            _SINGLE_BUFFER_CONSTS = False
            recon_p, mulv_p = run(None)
    else:
        recon_p, mulv_p = run(None)

    # strip padding; cast the (small) real slices back to f32 for the API
    recon = recon_p[:B, :input_size].astype(jnp.float32)
    mu = mulv_p[:B, :hidden_size].astype(jnp.float32)
    logvar = mulv_p[:B, hidden_pad:hidden_pad + hidden_size].astype(jnp.float32)
    return recon, mu, logvar


def init_params(key, input_size, aux_size, hidden_size):
    """Deterministic PyTorch-style Linear init (uniform +-1/sqrt(fan_in)).

    Weights stored pre-transposed as (in_features, out_features),
    biases as (1, out_features).  Unpadded; prepare_params() pads once.
    """
    def linear(k, fan_in, fan_out):
        kw, kb = jax.random.split(k)
        bound = 1.0 / jnp.sqrt(fan_in)
        w = jax.random.uniform(kw, (fan_in, fan_out), jnp.float32, -bound, bound)
        b = jax.random.uniform(kb, (1, fan_out), jnp.float32, -bound, bound)
        return w, b

    k1, k21, k22, k3, k4 = jax.random.split(key, 5)
    w1, b1 = linear(k1, input_size, aux_size)
    w21, b21 = linear(k21, aux_size, hidden_size)
    w22, b22 = linear(k22, aux_size, hidden_size)
    w3, b3 = linear(k3, hidden_size, aux_size)
    w4, b4 = linear(k4, aux_size, input_size)
    return dict(w1=w1, b1=b1, w21=w21, b21=b21, w22=w22, b22=b22,
                w3=w3, b3=b3, w4=w4, b4=b4)


def vae_simplex_ref(x, params, eps):
    """Pure-JAX f32 reference matching the PyTorch forward()."""
    h1 = jnp.maximum(x @ params["w1"] + params["b1"], 0.0)
    mu = h1 @ params["w21"] + params["b21"]
    logvar = h1 @ params["w22"] + params["b22"]
    z = mu + eps * jnp.exp(0.5 * logvar)
    h3 = jnp.maximum(z @ params["w3"] + params["b3"], 0.0)
    recon = jax.nn.sigmoid(h3 @ params["w4"] + params["b4"])
    return recon, mu, logvar


if __name__ == "__main__":
    # Module defaults for aux/hidden; small input; batch large enough that
    # the v7x path gets an even 2-step grid and the 1-TC path gets 1 step.
    B = 256
    INPUT_SIZE = 64
    AUX_SIZE = 400
    HIDDEN_SIZE = 20

    key = jax.random.PRNGKey(0)
    k_params, k_x, k_eps = jax.random.split(key, 3)

    params = init_params(k_params, INPUT_SIZE, AUX_SIZE, HIDDEN_SIZE)
    prep = prepare_params(params)   # one-time weight pad/fuse/bf16-cast

    x = jax.random.normal(k_x, (B, INPUT_SIZE), jnp.float32)
    eps = jax.random.normal(k_eps, (B, HIDDEN_SIZE), jnp.float32)

    # kernel runs in bf16 (f32 accumulation) with bf16 output writeback, so
    # compare against the exact f32 reference with a looser tolerance.
    TOL = dict(atol=2e-2, rtol=2e-2)

    # --- training-mode path (z = mu + eps * std) ----------------------------
    recon, mu, logvar = vae_simplex_forward(x, prep, eps, training=True)
    jax.block_until_ready((recon, mu, logvar))
    r_ref, m_ref, lv_ref = vae_simplex_ref(x, params, eps)
    assert jnp.allclose(recon, r_ref, **TOL)
    assert jnp.allclose(mu, m_ref, **TOL)
    assert jnp.allclose(logvar, lv_ref, **TOL)

    # --- eval-mode path (eps operand dropped entirely; z = mu) --------------
    recon_e, mu_e, logvar_e = vae_simplex_forward(x, prep, training=False)
    jax.block_until_ready((recon_e, mu_e, logvar_e))
    r_ref_e, m_ref_e, lv_ref_e = vae_simplex_ref(
        x, params, jnp.zeros((B, HIDDEN_SIZE), jnp.float32))
    assert jnp.allclose(recon_e, r_ref_e, **TOL)
    assert jnp.allclose(mu_e, m_ref_e, **TOL)
    assert jnp.allclose(logvar_e, lv_ref_e, **TOL)

    print("KERNEL_OK")
</pallas_src>

<mosaic_0001>
module attributes {stable_mosaic.version = 11 : i64} {
  func.func @_vae_kernel(%arg0: i32, %arg1: memref<256x128xbf16, #tpu.memory_space<vmem>>, %arg2: memref<256x128xbf16, #tpu.memory_space<vmem>>, %arg3: memref<128x512xbf16, #tpu.memory_space<vmem>>, %arg4: memref<1x512xf32, #tpu.memory_space<vmem>>, %arg5: memref<512x256xbf16, #tpu.memory_space<vmem>>, %arg6: memref<1x256xf32, #tpu.memory_space<vmem>>, %arg7: memref<128x512xbf16, #tpu.memory_space<vmem>>, %arg8: memref<1x512xf32, #tpu.memory_space<vmem>>, %arg9: memref<512x128xbf16, #tpu.memory_space<vmem>>, %arg10: memref<1x128xf32, #tpu.memory_space<vmem>>, %arg11: memref<256x128xbf16, #tpu.memory_space<vmem>>, %arg12: memref<256x256xbf16, #tpu.memory_space<vmem>>) attributes {dimension_semantics = [#tpu.dimension_semantics<parallel>], iteration_bounds = array<i64: 1>, scalar_prefetch = 0 : i64, scratch_operands = 0 : i64, tpu.core_type = #tpu.core_type<tc>, window_params = [{transform_indices = @transform_0, window_bounds = array<i64: 256, 128>}, {transform_indices = @transform_1, window_bounds = array<i64: 256, 128>}, {pipeline_mode = #tpu.pipeline_mode<synchronous>, transform_indices = @transform_2, window_bounds = array<i64: 128, 512>}, {pipeline_mode = #tpu.pipeline_mode<synchronous>, transform_indices = @transform_3, window_bounds = array<i64: 1, 512>}, {pipeline_mode = #tpu.pipeline_mode<synchronous>, transform_indices = @transform_4, window_bounds = array<i64: 512, 256>}, {pipeline_mode = #tpu.pipeline_mode<synchronous>, transform_indices = @transform_5, window_bounds = array<i64: 1, 256>}, {pipeline_mode = #tpu.pipeline_mode<synchronous>, transform_indices = @transform_6, window_bounds = array<i64: 128, 512>}, {pipeline_mode = #tpu.pipeline_mode<synchronous>, transform_indices = @transform_7, window_bounds = array<i64: 1, 512>}, {pipeline_mode = #tpu.pipeline_mode<synchronous>, transform_indices = @transform_8, window_bounds = array<i64: 512, 128>}, {pipeline_mode = #tpu.pipeline_mode<synchronous>, transform_indices = @transform_9, window_bounds = array<i64: 1, 128>}, {transform_indices = @transform_10, window_bounds = array<i64: 256, 128>}, {transform_indices = @transform_11, window_bounds = array<i64: 256, 256>}]} {
    %c0 = arith.constant 0 : index
    %c0_0 = arith.constant 0 : index
    %0 = vector.load %arg1[%c0, %c0_0] : memref<256x128xbf16, #tpu.memory_space<vmem>>, vector<256x128xbf16>
    %c0_1 = arith.constant 0 : index
    %c0_2 = arith.constant 0 : index
    %1 = vector.load %arg3[%c0_1, %c0_2] : memref<128x512xbf16, #tpu.memory_space<vmem>>, vector<128x512xbf16>
    %cst = arith.constant dense<0.000000e+00> : vector<256x512xf32>
    %2 = tpu.matmul %0, %1, %cst {dimension_numbers = #tpu.dot_dimension_numbers<[1], [0], [0], [1], [0, 0, 1, 1], [], []>} : vector<256x128xbf16>, vector<128x512xbf16>, vector<256x512xf32> -> vector<256x512xf32>
    %c0_3 = arith.constant 0 : index
    %c0_4 = arith.constant 0 : index
    %3 = vector.load %arg4[%c0_3, %c0_4] : memref<1x512xf32, #tpu.memory_space<vmem>>, vector<1x512xf32>
    %4 = vector.broadcast %3 : vector<1x512xf32> to vector<256x512xf32>
    %5 = arith.addf %2, %4 : vector<256x512xf32>
    %cst_5 = arith.constant 0.000000e+00 : f32
    %6 = vector.broadcast %cst_5 : f32 to vector<256x512xf32>
    %7 = arith.maximumf %5, %6 : vector<256x512xf32>
    %8 = arith.truncf %7 : vector<256x512xf32> to vector<256x512xbf16>
    %c0_6 = arith.constant 0 : index
    %c0_7 = arith.constant 0 : index
    %9 = vector.load %arg5[%c0_6, %c0_7] : memref<512x256xbf16, #tpu.memory_space<vmem>>, vector<512x256xbf16>
    %cst_8 = arith.constant dense<0.000000e+00> : vector<256x256xf32>
    %10 = tpu.matmul %8, %9, %cst_8 {dimension_numbers = #tpu.dot_dimension_numbers<[1], [0], [0], [1], [0, 0, 1, 1], [], []>} : vector<256x512xbf16>, vector<512x256xbf16>, vector<256x256xf32> -> vector<256x256xf32>
    %c0_9 = arith.constant 0 : index
    %c0_10 = arith.constant 0 : index
    %11 = vector.load %arg6[%c0_9, %c0_10] : memref<1x256xf32, #tpu.memory_space<vmem>>, vector<1x256xf32>
    %12 = vector.broadcast %11 : vector<1x256xf32> to vector<256x256xf32>
    %13 = arith.addf %10, %12 : vector<256x256xf32>
    %14 = arith.truncf %13 : vector<256x256xf32> to vector<256x256xbf16>
    %c0_11 = arith.constant 0 : index
    %c0_12 = arith.constant 0 : index
    %15 = vector.load %arg12[%c0_11, %c0_12] : memref<256x256xbf16, #tpu.memory_space<vmem>>, vector<256x256xbf16>
    tpu.vector_store %arg12[%c0_11, %c0_12], %14 {strides = array<i32>} : memref<256x256xbf16, #tpu.memory_space<vmem>>, vector<256x256xbf16>,
    %16 = vector.extract_strided_slice %13 {offsets = [0, 0], sizes = [256, 128], strides = [1, 1]} : vector<256x256xf32> to vector<256x128xf32>
    %17 = vector.extract_strided_slice %13 {offsets = [0, 128], sizes = [256, 128], strides = [1, 1]} : vector<256x256xf32> to vector<256x128xf32>
    %c0_13 = arith.constant 0 : index
    %c0_14 = arith.constant 0 : index
    %18 = vector.load %arg2[%c0_13, %c0_14] : memref<256x128xbf16, #tpu.memory_space<vmem>>, vector<256x128xbf16>
    %19 = arith.extf %18 : vector<256x128xbf16> to vector<256x128xf32>
    %cst_15 = arith.constant 5.000000e-01 : f32
    %20 = vector.broadcast %cst_15 : f32 to vector<256x128xf32>
    %21 = arith.mulf %20, %17 : vector<256x128xf32>
    %22 = math.exp %21 : vector<256x128xf32>
    %23 = arith.mulf %19, %22 : vector<256x128xf32>
    %24 = arith.addf %16, %23 : vector<256x128xf32>
    %25 = arith.truncf %24 : vector<256x128xf32> to vector<256x128xbf16>
    %c0_16 = arith.constant 0 : index
    %c0_17 = arith.constant 0 : index
    %26 = vector.load %arg7[%c0_16, %c0_17] : memref<128x512xbf16, #tpu.memory_space<vmem>>, vector<128x512xbf16>
    %cst_18 = arith.constant dense<0.000000e+00> : vector<256x512xf32>
    %27 = tpu.matmul %25, %26, %cst_18 {dimension_numbers = #tpu.dot_dimension_numbers<[1], [0], [0], [1], [0, 0, 1, 1], [], []>} : vector<256x128xbf16>, vector<128x512xbf16>, vector<256x512xf32> -> vector<256x512xf32>
    %c0_19 = arith.constant 0 : index
    %c0_20 = arith.constant 0 : index
    %28 = vector.load %arg8[%c0_19, %c0_20] : memref<1x512xf32, #tpu.memory_space<vmem>>, vector<1x512xf32>
    %29 = vector.broadcast %28 : vector<1x512xf32> to vector<256x512xf32>
    %30 = arith.addf %27, %29 : vector<256x512xf32>
    %cst_21 = arith.constant 0.000000e+00 : f32
    %31 = vector.broadcast %cst_21 : f32 to vector<256x512xf32>
    %32 = arith.maximumf %30, %31 : vector<256x512xf32>
    %33 = arith.truncf %32 : vector<256x512xf32> to vector<256x512xbf16>
    %c0_22 = arith.constant 0 : index
    %c0_23 = arith.constant 0 : index
    %34 = vector.load %arg9[%c0_22, %c0_23] : memref<512x128xbf16, #tpu.memory_space<vmem>>, vector<512x128xbf16>
    %cst_24 = arith.constant dense<0.000000e+00> : vector<256x128xf32>
    %35 = tpu.matmul %33, %34, %cst_24 {dimension_numbers = #tpu.dot_dimension_numbers<[1], [0], [0], [1], [0, 0, 1, 1], [], []>} : vector<256x512xbf16>, vector<512x128xbf16>, vector<256x128xf32> -> vector<256x128xf32>
    %c0_25 = arith.constant 0 : index
    %c0_26 = arith.constant 0 : index
    %36 = vector.load %arg10[%c0_25, %c0_26] : memref<1x128xf32, #tpu.memory_space<vmem>>, vector<1x128xf32>
    %37 = vector.broadcast %36 : vector<1x128xf32> to vector<256x128xf32>
    %38 = arith.addf %35, %37 : vector<256x128xf32>
    %cst_27 = arith.constant 5.000000e-01 : f32
    %39 = vector.broadcast %cst_27 : f32 to vector<256x128xf32>
    %40 = arith.mulf %39, %38 : vector<256x128xf32>
    %41 = math.tanh %40 : vector<256x128xf32>
    %cst_28 = arith.constant 5.000000e-01 : f32
    %42 = vector.broadcast %cst_28 : f32 to vector<256x128xf32>
    %43 = arith.mulf %42, %41 : vector<256x128xf32>
    %cst_29 = arith.constant 5.000000e-01 : f32
    %44 = vector.broadcast %cst_29 : f32 to vector<256x128xf32>
    %45 = arith.addf %43, %44 : vector<256x128xf32>
    %46 = arith.truncf %45 : vector<256x128xf32> to vector<256x128xbf16>
    %c0_30 = arith.constant 0 : index
    %c0_31 = arith.constant 0 : index
    %47 = vector.load %arg11[%c0_30, %c0_31] : memref<256x128xbf16, #tpu.memory_space<vmem>>, vector<256x128xbf16>
    tpu.vector_store %arg11[%c0_30, %c0_31], %46 {strides = array<i32>} : memref<256x128xbf16, #tpu.memory_space<vmem>>, vector<256x128xbf16>,
    return
  }
  func.func @transform_0(%arg0: i32) -> (i32, i32) {
    %c0_i32 = arith.constant 0 : i32
    %c0_i32_0 = arith.constant 0 : i32
    return %arg0, %c0_i32 : i32, i32
  }
  func.func @transform_1(%arg0: i32) -> (i32, i32) {
    %c0_i32 = arith.constant 0 : i32
    %c0_i32_0 = arith.constant 0 : i32
    return %arg0, %c0_i32 : i32, i32
  }
  func.func @transform_2(%arg0: i32) -> (i32, i32) {
    %c0_i32 = arith.constant 0 : i32
    %c0_i32_0 = arith.constant 0 : i32
    %c0_i32_1 = arith.constant 0 : i32
    return %c0_i32, %c0_i32_0 : i32, i32
  }
  func.func @transform_3(%arg0: i32) -> (i32, i32) {
    %c0_i32 = arith.constant 0 : i32
    %c0_i32_0 = arith.constant 0 : i32
    %c0_i32_1 = arith.constant 0 : i32
    return %c0_i32, %c0_i32_0 : i32, i32
  }
  func.func @transform_4(%arg0: i32) -> (i32, i32) {
    %c0_i32 = arith.constant 0 : i32
    %c0_i32_0 = arith.constant 0 : i32
    %c0_i32_1 = arith.constant 0 : i32
    return %c0_i32, %c0_i32_0 : i32, i32
  }
  func.func @transform_5(%arg0: i32) -> (i32, i32) {
    %c0_i32 = arith.constant 0 : i32
    %c0_i32_0 = arith.constant 0 : i32
    %c0_i32_1 = arith.constant 0 : i32
    return %c0_i32, %c0_i32_0 : i32, i32
  }
  func.func @transform_6(%arg0: i32) -> (i32, i32) {
    %c0_i32 = arith.constant 0 : i32
    %c0_i32_0 = arith.constant 0 : i32
    %c0_i32_1 = arith.constant 0 : i32
    return %c0_i32, %c0_i32_0 : i32, i32
  }
  func.func @transform_7(%arg0: i32) -> (i32, i32) {
    %c0_i32 = arith.constant 0 : i32
    %c0_i32_0 = arith.constant 0 : i32
    %c0_i32_1 = arith.constant 0 : i32
    return %c0_i32, %c0_i32_0 : i32, i32
  }
  func.func @transform_8(%arg0: i32) -> (i32, i32) {
    %c0_i32 = arith.constant 0 : i32
    %c0_i32_0 = arith.constant 0 : i32
    %c0_i32_1 = arith.constant 0 : i32
    return %c0_i32, %c0_i32_0 : i32, i32
  }
  func.func @transform_9(%arg0: i32) -> (i32, i32) {
    %c0_i32 = arith.constant 0 : i32
    %c0_i32_0 = arith.constant 0 : i32
    %c0_i32_1 = arith.constant 0 : i32
    return %c0_i32, %c0_i32_0 : i32, i32
  }
  func.func @transform_10(%arg0: i32) -> (i32, i32) {
    %c0_i32 = arith.constant 0 : i32
    %c0_i32_0 = arith.constant 0 : i32
    return %arg0, %c0_i32 : i32, i32
  }
  func.func @transform_11(%arg0: i32) -> (i32, i32) {
    %c0_i32 = arith.constant 0 : i32
    %c0_i32_0 = arith.constant 0 : i32
    return %arg0, %c0_i32 : i32, i32
  }
}

module attributes {stable_mosaic.version = 11 : i64} {
  func.func @_vae_kernel(%arg0: i32, %arg1: memref<256x128xbf16, #tpu.memory_space<vmem>>, %arg2: memref<256x128xbf16, #tpu.memory_space<vmem>>, %arg3: memref<128x512xbf16, #tpu.memory_space<vmem>>, %arg4: memref<1x512xf32, #tpu.memory_space<vmem>>, %arg5: memref<512x256xbf16, #tpu.memory_space<vmem>>, %arg6: memref<1x256xf32, #tpu.memory_space<vmem>>, %arg7: memref<128x512xbf16, #tpu.memory_space<vmem>>, %arg8: memref<1x512xf32, #tpu.memory_space<vmem>>, %arg9: memref<512x128xbf16, #tpu.memory_space<vmem>>, %arg10: memref<1x128xf32, #tpu.memory_space<vmem>>, %arg11: memref<256x128xbf16, #tpu.memory_space<vmem>>, %arg12: memref<256x256xbf16, #tpu.memory_space<vmem>>) attributes {dimension_semantics = [#tpu.dimension_semantics<parallel>], iteration_bounds = array<i64: 1>, scalar_prefetch = 0 : i64, scratch_operands = 0 : i64, tpu.core_type = #tpu.core_type<tc>, window_params = [{transform_indices = @transform_0, window_bounds = array<i64: 256, 128>}, {transform_indices = @transform_1, window_bounds = array<i64: 256, 128>}, {pipeline_mode = #tpu.pipeline_mode<synchronous>, transform_indices = @transform_2, window_bounds = array<i64: 128, 512>}, {pipeline_mode = #tpu.pipeline_mode<synchronous>, transform_indices = @transform_3, window_bounds = array<i64: 1, 512>}, {pipeline_mode = #tpu.pipeline_mode<synchronous>, transform_indices = @transform_4, window_bounds = array<i64: 512, 256>}, {pipeline_mode = #tpu.pipeline_mode<synchronous>, transform_indices = @transform_5, window_bounds = array<i64: 1, 256>}, {pipeline_mode = #tpu.pipeline_mode<synchronous>, transform_indices = @transform_6, window_bounds = array<i64: 128, 512>}, {pipeline_mode = #tpu.pipeline_mode<synchronous>, transform_indices = @transform_7, window_bounds = array<i64: 1, 512>}, {pipeline_mode = #tpu.pipeline_mode<synchronous>, transform_indices = @transform_8, window_bounds = array<i64: 512, 128>}, {pipeline_mode = #tpu.pipeline_mode<synchronous>, transform_indices = @transform_9, window_bounds = array<i64: 1, 128>}, {transform_indices = @transform_10, window_bounds = array<i64: 256, 128>}, {transform_indices = @transform_11, window_bounds = array<i64: 256, 256>}]} {
    %c0 = arith.constant 0 : index
    %c0_0 = arith.constant 0 : index
    %0 = vector.load %arg1[%c0, %c0_0] : memref<256x128xbf16, #tpu.memory_space<vmem>>, vector<256x128xbf16>
    %c0_1 = arith.constant 0 : index
    %c0_2 = arith.constant 0 : index
    %1 = vector.load %arg3[%c0_1, %c0_2] : memref<128x512xbf16, #tpu.memory_space<vmem>>, vector<128x512xbf16>
    %cst = arith.constant dense<0.000000e+00> : vector<256x512xf32>
    %2 = tpu.matmul %0, %1, %cst {dimension_numbers = #tpu.dot_dimension_numbers<[1], [0], [0], [1], [0, 0, 1, 1], [], []>} : vector<256x128xbf16>, vector<128x512xbf16>, vector<256x512xf32> -> vector<256x512xf32>
    %c0_3 = arith.constant 0 : index
    %c0_4 = arith.constant 0 : index
    %3 = vector.load %arg4[%c0_3, %c0_4] : memref<1x512xf32, #tpu.memory_space<vmem>>, vector<1x512xf32>
    %4 = vector.broadcast %3 : vector<1x512xf32> to vector<256x512xf32>
    %5 = arith.addf %2, %4 : vector<256x512xf32>
    %cst_5 = arith.constant 0.000000e+00 : f32
    %6 = vector.broadcast %cst_5 : f32 to vector<256x512xf32>
    %7 = arith.maximumf %5, %6 : vector<256x512xf32>
    %8 = arith.truncf %7 : vector<256x512xf32> to vector<256x512xbf16>
    %c0_6 = arith.constant 0 : index
    %c0_7 = arith.constant 0 : index
    %9 = vector.load %arg5[%c0_6, %c0_7] : memref<512x256xbf16, #tpu.memory_space<vmem>>, vector<512x256xbf16>
    %cst_8 = arith.constant dense<0.000000e+00> : vector<256x256xf32>
    %10 = tpu.matmul %8, %9, %cst_8 {dimension_numbers = #tpu.dot_dimension_numbers<[1], [0], [0], [1], [0, 0, 1, 1], [], []>} : vector<256x512xbf16>, vector<512x256xbf16>, vector<256x256xf32> -> vector<256x256xf32>
    %c0_9 = arith.constant 0 : index
    %c0_10 = arith.constant 0 : index
    %11 = vector.load %arg6[%c0_9, %c0_10] : memref<1x256xf32, #tpu.memory_space<vmem>>, vector<1x256xf32>
    %12 = vector.broadcast %11 : vector<1x256xf32> to vector<256x256xf32>
    %13 = arith.addf %10, %12 : vector<256x256xf32>
    %14 = arith.truncf %13 : vector<256x256xf32> to vector<256x256xbf16>
    %c0_11 = arith.constant 0 : index
    %c0_12 = arith.constant 0 : index
    %15 = vector.load %arg12[%c0_11, %c0_12] : memref<256x256xbf16, #tpu.memory_space<vmem>>, vector<256x256xbf16>
    tpu.vector_store %arg12[%c0_11, %c0_12], %14 {strides = array<i32>} : memref<256x256xbf16, #tpu.memory_space<vmem>>, vector<256x256xbf16>,
    %16 = vector.extract_strided_slice %13 {offsets = [0, 0], sizes = [256, 128], strides = [1, 1]} : vector<256x256xf32> to vector<256x128xf32>
    %17 = vector.extract_strided_slice %13 {offsets = [0, 128], sizes = [256, 128], strides = [1, 1]} : vector<256x256xf32> to vector<256x128xf32>
    %c0_13 = arith.constant 0 : index
    %c0_14 = arith.constant 0 : index
    %18 = vector.load %arg2[%c0_13, %c0_14] : memref<256x128xbf16, #tpu.memory_space<vmem>>, vector<256x128xbf16>
    %19 = arith.extf %18 : vector<256x128xbf16> to vector<256x128xf32>
    %cst_15 = arith.constant 5.000000e-01 : f32
    %20 = vector.broadcast %cst_15 : f32 to vector<256x128xf32>
    %21 = arith.mulf %20, %17 : vector<256x128xf32>
    %22 = math.exp %21 : vector<256x128xf32>
    %23 = arith.mulf %19, %22 : vector<256x128xf32>
    %24 = arith.addf %16, %23 : vector<256x128xf32>
    %25 = arith.truncf %24 : vector<256x128xf32> to vector<256x128xbf16>
    %c0_16 = arith.constant 0 : index
    %c0_17 = arith.constant 0 : index
    %26 = vector.load %arg7[%c0_16, %c0_17] : memref<128x512xbf16, #tpu.memory_space<vmem>>, vector<128x512xbf16>
    %cst_18 = arith.constant dense<0.000000e+00> : vector<256x512xf32>
    %27 = tpu.matmul %25, %26, %cst_18 {dimension_numbers = #tpu.dot_dimension_numbers<[1], [0], [0], [1], [0, 0, 1, 1], [], []>} : vector<256x128xbf16>, vector<128x512xbf16>, vector<256x512xf32> -> vector<256x512xf32>
    %c0_19 = arith.constant 0 : index
    %c0_20 = arith.constant 0 : index
    %28 = vector.load %arg8[%c0_19, %c0_20] : memref<1x512xf32, #tpu.memory_space<vmem>>, vector<1x512xf32>
    %29 = vector.broadcast %28 : vector<1x512xf32> to vector<256x512xf32>
    %30 = arith.addf %27, %29 : vector<256x512xf32>
    %cst_21 = arith.constant 0.000000e+00 : f32
    %31 = vector.broadcast %cst_21 : f32 to vector<256x512xf32>
    %32 = arith.maximumf %30, %31 : vector<256x512xf32>
    %33 = arith.truncf %32 : vector<256x512xf32> to vector<256x512xbf16>
    %c0_22 = arith.constant 0 : index
    %c0_23 = arith.constant 0 : index
    %34 = vector.load %arg9[%c0_22, %c0_23] : memref<512x128xbf16, #tpu.memory_space<vmem>>, vector<512x128xbf16>
    %cst_24 = arith.constant dense<0.000000e+00> : vector<256x128xf32>
    %35 = tpu.matmul %33, %34, %cst_24 {dimension_numbers = #tpu.dot_dimension_numbers<[1], [0], [0], [1], [0, 0, 1, 1], [], []>} : vector<256x512xbf16>, vector<512x128xbf16>, vector<256x128xf32> -> vector<256x128xf32>
    %c0_25 = arith.constant 0 : index
    %c0_26 = arith.constant 0 : index
    %36 = vector.load %arg10[%c0_25, %c0_26] : memref<1x128xf32, #tpu.memory_space<vmem>>, vector<1x128xf32>
    %37 = vector.broadcast %36 : vector<1x128xf32> to vector<256x128xf32>
    %38 = arith.addf %35, %37 : vector<256x128xf32>
    %cst_27 = arith.constant 5.000000e-01 : f32
    %39 = vector.broadcast %cst_27 : f32 to vector<256x128xf32>
    %40 = arith.mulf %39, %38 : vector<256x128xf32>
    %41 = math.tanh %40 : vector<256x128xf32>
    %cst_28 = arith.constant 5.000000e-01 : f32
    %42 = vector.broadcast %cst_28 : f32 to vector<256x128xf32>
    %43 = arith.mulf %42, %41 : vector<256x128xf32>
    %cst_29 = arith.constant 5.000000e-01 : f32
    %44 = vector.broadcast %cst_29 : f32 to vector<256x128xf32>
    %45 = arith.addf %43, %44 : vector<256x128xf32>
    %46 = arith.truncf %45 : vector<256x128xf32> to vector<256x128xbf16>
    %c0_30 = arith.constant 0 : index
    %c0_31 = arith.constant 0 : index
    %47 = vector.load %arg11[%c0_30, %c0_31] : memref<256x128xbf16, #tpu.memory_space<vmem>>, vector<256x128xbf16>
    tpu.vector_store %arg11[%c0_30, %c0_31], %46 {strides = array<i32>} : memref<256x128xbf16, #tpu.memory_space<vmem>>, vector<256x128xbf16>,
    return
  }
  func.func @transform_0(%arg0: i32) -> (i32, i32) {
    %c0_i32 = arith.constant 0 : i32
    %c0_i32_0 = arith.constant 0 : i32
    return %arg0, %c0_i32 : i32, i32
  }
  func.func @transform_1(%arg0: i32) -> (i32, i32) {
    %c0_i32 = arith.constant 0 : i32
    %c0_i32_0 = arith.constant 0 : i32
    return %arg0, %c0_i32 : i32, i32
  }
  func.func @transform_2(%arg0: i32) -> (i32, i32) {
    %c0_i32 = arith.constant 0 : i32
    %c0_i32_0 = arith.constant 0 : i32
    %c0_i32_1 = arith.constant 0 : i32
    return %c0_i32, %c0_i32_0 : i32, i32
  }
  func.func @transform_3(%arg0: i32) -> (i32, i32) {
    %c0_i32 = arith.constant 0 : i32
    %c0_i32_0 = arith.constant 0 : i32
    %c0_i32_1 = arith.constant 0 : i32
    return %c0_i32, %c0_i32_0 : i32, i32
  }
  func.func @transform_4(%arg0: i32) -> (i32, i32) {
    %c0_i32 = arith.constant 0 : i32
    %c0_i32_0 = arith.constant 0 : i32
    %c0_i32_1 = arith.constant 0 : i32
    return %c0_i32, %c0_i32_0 : i32, i32
  }
  func.func @transform_5(%arg0: i32) -> (i32, i32) {
    %c0_i32 = arith.constant 0 : i32
    %c0_i32_0 = arith.constant 0 : i32
    %c0_i32_1 = arith.constant 0 : i32
    return %c0_i32, %c0_i32_0 : i32, i32
  }
  func.func @transform_6(%arg0: i32) -> (i32, i32) {
    %c0_i32 = arith.constant 0 : i32
    %c0_i32_0 = arith.constant 0 : i32
    %c0_i32_1 = arith.constant 0 : i32
    return %c0_i32, %c0_i32_0 : i32, i32
  }
  func.func @transform_7(%arg0: i32) -> (i32, i32) {
    %c0_i32 = arith.constant 0 : i32
    %c0_i32_0 = arith.constant 0 : i32
    %c0_i32_1 = arith.constant 0 : i32
    return %c0_i32, %c0_i32_0 : i32, i32
  }
  func.func @transform_8(%arg0: i32) -> (i32, i32) {
    %c0_i32 = arith.constant 0 : i32
    %c0_i32_0 = arith.constant 0 : i32
    %c0_i32_1 = arith.constant 0 : i32
    return %c0_i32, %c0_i32_0 : i32, i32
  }
  func.func @transform_9(%arg0: i32) -> (i32, i32) {
    %c0_i32 = arith.constant 0 : i32
    %c0_i32_0 = arith.constant 0 : i32
    %c0_i32_1 = arith.constant 0 : i32
    return %c0_i32, %c0_i32_0 : i32, i32
  }
  func.func @transform_10(%arg0: i32) -> (i32, i32) {
    %c0_i32 = arith.constant 0 : i32
    %c0_i32_0 = arith.constant 0 : i32
    return %arg0, %c0_i32 : i32, i32
  }
  func.func @transform_11(%arg0: i32) -> (i32, i32) {
    %c0_i32 = arith.constant 0 : i32
    %c0_i32_0 = arith.constant 0 : i32
    return %arg0, %c0_i32 : i32, i32
  }
}

</mosaic_0001>

<bundles_post_ra>
// kernel: tpu_custom_call.1
= control target key start
LH: loop header
LB: loop body
LE: loop exit
PB: predicated region body
PF: predicated region fallthrough
CT: control target
= control target key end

     0   :  { %17 = vsyncpa [#allocation3], 0  ;;  %s6447_s0 = inlined_call_operand.hbm [shape: bf16[256,128], index: 0, kind: input, shape index: {}]   ;;  %s6448_s1 = inlined_call_operand.hbm [shape: bf16[256,128], index: 1, kind: input, shape index: {}]   ;;  %s6449_s2 = inlined_call_operand.hbm [shape: bf16[128,512], index: 2, kind: input, shape index: {}]   ;;  %s6450_s3 = inlined_call_operand.vmem [shape: f32[1,512], index: 3, kind: input, shape index: {}]   ;;  %s6451_s4 = inlined_call_operand.hbm [shape: bf16[512,256], index: 4, kind: input, shape index: {}]   ;;  %s6452_s5 = inlined_call_operand.vmem [shape: f32[1,256], index: 5, kind: input, shape index: {}]   ;;  %s6453_s6 = inlined_call_operand.hbm [shape: bf16[128,512], index: 6, kind: input, shape index: {}]   ;;  %s6454_s7 = inlined_call_operand.vmem [shape: f32[1,512], index: 7, kind: input, shape index: {}]   ;;  %s6455_s8 = inlined_call_operand.hbm [shape: bf16[512,128], index: 8, kind: input, shape index: {}]   ;;  %s6456_s9 = inlined_call_operand.vmem [shape: f32[1,128], index: 9, kind: input, shape index: {}]   ;;  %s6457_s10 = inlined_call_operand.hbm [shape: bf16[256,128], index: 10, kind: output, shape index: {0}]   ;;  %s6458_s11 = inlined_call_operand.hbm [shape: bf16[256,256], index: 11, kind: output, shape index: {1}]  }
   0x1   :  { %18 = vsyncpa [#allocation6], 0 }
   0x2   :  { %19 = vsyncpa [#allocation9], 0 }
   0x3   :  { %20 = vsyncpa [#allocation12], 0 }
   0x4   :  { %21 = vsyncpa [#allocation4], 0 }
   0x5   :  { %22 = vsyncpa [#allocation15], 0  ;;  %s5391_s17 = smov [#allocation5]   ;;  %s5392_s19 = smov [#allocation8]  }
   0x6   :  { %s40_s18 = sshll.u32 %s5391_s17, 4  ;;  %s66_s20 = sshll.u32 %s5392_s19, 4  ;;  %s41_s18 = int_to_ptr.vmem [resolvable:$true] %s40_s18  ;;  %s5466_s20 = int_to_ptr.vmem [resolvable:$true] %s66_s20 }
   0x7   :  { %s5203_s23 = scalar_lea.hbm %s6448_s1, 2048 }
   0x8   :  { %p5204_p0 = scmp.ne.s32.totalorder %s6448_s1, %s5203_s23  ;;  %p5207_p1 = scmp.lt.u32.totalorder %s5203_s23, %s6448_s1 }
   0xa   :  { %p5209_p2 = pnand %p5207_p1, %p5204_p0 }
   0xc   :  { %5212 = shalt.err (!%p5209_p2)
}
   0xd   :  { %s5213_s28 = scalar_lea.vmem %s41_s18, 2048  ;;  %p5218_p4 = scmp.lt.s32.totalorder %s41_s18, %s41_s18 }
   0xe   :  { %p5214_p3 = scmp.ne.s32.totalorder %s41_s18, %s5213_s28  ;;  %p5219_p5 = scmp.lt.s32.totalorder %s5213_s28, %s5213_s28 }
  0x10   :  { %p5220_p6 = por %p5219_p5, %p5218_p4 }
  0x12   :  { %p5221_p7 = pnand %p5220_p6, %p5214_p3 }
  0x14   :  { %5224 = shalt.err (!%p5221_p7)
}
  0x15   :  { %s5393_s29 = smov 64   ;;  %s5394_s30 = smov 4  }
  0x16   :  { %46 = dma.hbm_to_vmem [thread:$0]  %s6448_s1, 2048, %s41_s18, [#allocation6], %s5393_s29, %s5393_s29, %s5394_s30  }
  0x17   :  { %s5225_s16 = scalar_lea.hbm %s6451_s4, 8192 }
  0x18   :  { %p5226_p8 = scmp.ne.s32.totalorder %s6451_s4, %s5225_s16  ;;  %p5229_p9 = scmp.lt.u32.totalorder %s5225_s16, %s6451_s4 }
  0x1a   :  { %p5231_p10 = pnand %p5229_p9, %p5226_p8 }
  0x1c   :  { %5234 = shalt.err (!%p5231_p10)
}
  0x1d   :  { %s5235_s23 = scalar_lea.vmem %s5466_s20, 8192  ;;  %p5240_p12 = scmp.lt.s32.totalorder %s5466_s20, %s5466_s20 }
  0x1e   :  { %p5236_p11 = scmp.ne.s32.totalorder %s5466_s20, %s5235_s23  ;;  %p5241_p13 = scmp.lt.s32.totalorder %s5235_s23, %s5235_s23 }
  0x20   :  { %p5242_p0 = por %p5241_p13, %p5240_p12 }
  0x22   :  { %p5243_p1 = pnand %p5242_p0, %p5236_p11 }
  0x24   :  { %5246 = shalt.err (!%p5243_p1)
}
  0x25   :  { %s5395_s1 = smov 128   ;;  %s5396_s18 = smov 8  }
  0x26   :  { %72 = dma.hbm_to_vmem [thread:$0]  %s6451_s4, 8192, %s5466_s20, [#allocation9], %s5395_s1, %s5395_s1, %s5396_s18  }
  0x27   :  { %s5397_s26 = smov [#allocation2]   ;;  %s5398_s28 = smov [#allocation7]  }
  0x28   :  { %s28_s27 = sshll.u32 %s5397_s26, 4  ;;  %s52_s12 = sshll.u32 %s5398_s28, 4  ;;  %s29_s27 = int_to_ptr.vmem [resolvable:$true] %s28_s27  ;;  %s5503_s12 = int_to_ptr.vmem [resolvable:$true] %s52_s12 }
  0x29   :  { %s5247_s15 = scalar_lea.hbm %s6447_s0, 2048 }
  0x2a   :  { %p5248_p2 = scmp.ne.s32.totalorder %s6447_s0, %s5247_s15  ;;  %p5251_p3 = scmp.lt.u32.totalorder %s5247_s15, %s6447_s0 }
  0x2c   :  { %p5253_p4 = pnand %p5251_p3, %p5248_p2 }
  0x2e   :  { %5256 = shalt.err (!%p5253_p4)
}
  0x2f   :  { %s5257_s4 = scalar_lea.vmem %s29_s27, 2048  ;;  %p5262_p6 = scmp.lt.s32.totalorder %s29_s27, %s29_s27 }
  0x30   :  { %p5258_p5 = scmp.ne.s32.totalorder %s29_s27, %s5257_s4  ;;  %p5263_p7 = scmp.lt.s32.totalorder %s5257_s4, %s5257_s4 }
  0x32   :  { %p5264_p8 = por %p5263_p7, %p5262_p6 }
  0x34   :  { %p5265_p9 = pnand %p5264_p8, %p5258_p5 }
  0x36   :  { %5268 = shalt.err (!%p5265_p9)
}
  0x37   :  { %34 = dma.hbm_to_vmem [thread:$0]  %s6447_s0, 2048, %s29_s27, [#allocation3], %s5393_s29, %s5393_s29, %s5394_s30  }
  0x38   :  { %s5269_s25 = scalar_lea.hbm %s6449_s2, 4096 }
  0x39   :  { %p5270_p10 = scmp.ne.s32.totalorder %s6449_s2, %s5269_s25  ;;  %p5273_p11 = scmp.lt.u32.totalorder %s5269_s25, %s6449_s2 }
  0x3b   :  { %p5275_p12 = pnand %p5273_p11, %p5270_p10 }
  0x3d   :  { %5278 = shalt.err (!%p5275_p12)
}
  0x3e   :  { %s5279_s15 = scalar_lea.vmem %s5503_s12, 4096  ;;  %p5284_p0 = scmp.lt.s32.totalorder %s5503_s12, %s5503_s12 }
  0x3f   :  { %p5280_p13 = scmp.ne.s32.totalorder %s5503_s12, %s5279_s15  ;;  %p5285_p1 = scmp.lt.s32.totalorder %s5279_s15, %s5279_s15 }
  0x41   :  { %p5286_p2 = por %p5285_p1, %p5284_p0 }
  0x43   :  { %p5287_p3 = pnand %p5286_p2, %p5280_p13 }
  0x45   :  { %5290 = shalt.err (!%p5287_p3)
}
  0x46   :  { %s5399_s0 = smov 256   ;;  %s5400_s27 = smov 16  }
  0x47   :  { %58 = dma.hbm_to_vmem [thread:$0]  %s6449_s2, 4096, %s5503_s12, [#allocation6], %s5399_s0, %s5399_s0, %s5400_s27  }
  0x48   :  { %s5401_s19 = smov [#allocation10]   ;;  %s5402_s4 = smov [#allocation11]  }
  0x49   :  { %s80_s21 = sshll.u32 %s5401_s19, 4  ;;  %s94_s20 = sshll.u32 %s5402_s4, 4  ;;  %s81_s21 = int_to_ptr.vmem [resolvable:$true] %s80_s21  ;;  %s5537_s20 = int_to_ptr.vmem [resolvable:$true] %s94_s20 }
  0x4a   :  { %s5291_s24 = scalar_lea.hbm %s6453_s6, 4096 }
  0x4b   :  { %p5292_p4 = scmp.ne.s32.totalorder %s6453_s6, %s5291_s24  ;;  %p5295_p5 = scmp.lt.u32.totalorder %s5291_s24, %s6453_s6 }
  0x4d   :  { %p5297_p6 = pnand %p5295_p5, %p5292_p4 }
  0x4f   :  { %5300 = shalt.err (!%p5297_p6)
}
  0x50   :  { %s5301_s2 = scalar_lea.vmem %s81_s21, 4096  ;;  %p5306_p8 = scmp.lt.s32.totalorder %s81_s21, %s81_s21 }
  0x51   :  { %p5302_p7 = scmp.ne.s32.totalorder %s81_s21, %s5301_s2  ;;  %p5307_p9 = scmp.lt.s32.totalorder %s5301_s2, %s5301_s2 }
  0x53   :  { %p5308_p10 = por %p5307_p9, %p5306_p8 }
  0x55   :  { %p5309_p11 = pnand %p5308_p10, %p5302_p7 }
  0x57   :  { %5312 = shalt.err (!%p5309_p11)
}
  0x58   :  { %86 = dma.hbm_to_vmem [thread:$0]  %s6453_s6, 4096, %s81_s21, [#allocation9], %s5399_s0, %s5399_s0, %s5400_s27  }
  0x59   :  { %s5313_s17 = scalar_lea.hbm %s6455_s8, 4096 }
  0x5a   :  { %p5314_p12 = scmp.ne.s32.totalorder %s6455_s8, %s5313_s17  ;;  %p5317_p13 = scmp.lt.u32.totalorder %s5313_s17, %s6455_s8 }
  0x5c   :  { %p5319_p0 = pnand %p5317_p13, %p5314_p12 }
  0x5e   :  { %5322 = shalt.err (!%p5319_p0)
}
  0x5f   :  { %s5323_s24 = scalar_lea.vmem %s5537_s20, 4096  ;;  %p5328_p2 = scmp.lt.s32.totalorder %s5537_s20, %s5537_s20 }
  0x60   :  { %p5324_p1 = scmp.ne.s32.totalorder %s5537_s20, %s5323_s24  ;;  %p5329_p3 = scmp.lt.s32.totalorder %s5323_s24, %s5323_s24 }
  0x62   :  { %p5330_p4 = por %p5329_p3, %p5328_p2 }
  0x64   :  { %p5331_p5 = pnand %p5330_p4, %p5324_p1 }
  0x66   :  { %5334 = shalt.err (!%p5331_p5)
}
  0x67   :  { %100 = dma.hbm_to_vmem [thread:$0]  %s6455_s8, 4096, %s5537_s20, [#allocation12], %s5393_s29, %s5393_s29, %s5394_s30  }
  0x68   :  { %5379 = dma.done.wait [#allocation3], 2048  }
  0x69   :  { %5380 = vsyncadd [#allocation3], 4294965248 }
  0x6a   :  { %5381 = dma.done.wait [#allocation6], 6144  }
  0x6b   :  { %5382 = vsyncadd [#allocation6], 4294961152 }
  0x6c   :  { %5383 = dma.done.wait [#allocation9], 12288  }
  0x6d   :  { %5384 = vsyncadd [#allocation9], 4294955008 }
  0x6e   :  { %5385 = dma.done.wait [#allocation12], 4096  }
  0x6f   :  { %5386 = vsyncadd [#allocation12], 4294963200  ;;  %v5403_v0 = vmov 0   ;;  %v4835_v1 = vld [vmem:[#allocation7 + $0x4] ss:$16 sps:$4 sm:$0xff]   ;;  %v4860_v32 = vld [vmem:[#allocation2 + $0x8] sm:$0xff]  }
  0x70   :  { %496 = vmatprep.mubr.bf16.mxu0 %v5403_v0  ;;  %689 = vmatprep.mubr.bf16.mxu1 %v5403_v0  ;;  %v4837_v2 = vld [vmem:[#allocation7] ss:$16 sps:$4 sm:$0xff]   ;;  %v4838_v3 = vld [vmem:[#allocation7 + $0x24] ss:$16 sps:$4 sm:$0xff]   ;;  %v4871_v15 = vld [vmem:[#allocation7 + $0xc] ss:$16 sps:$4 sm:$0xff]  }
  0x71   :  { %464 = vmatprep.subr.bf16.mxu0 %v4835_v1  ;;  %v4840_v4 = vld [vmem:[#allocation7 + $0x20] ss:$16 sps:$4 sm:$0xff]   ;;  %v4841_v5 = vld [vmem:[#allocation7 + $0x44] ss:$16 sps:$4 sm:$0xff]   ;;  %657 = vmatprep.subr.bf16.mxu1 %v4871_v15  ;;  %v4876_v18 = vld [vmem:[#allocation7 + $0x8] ss:$16 sps:$4 sm:$0xff]  }
  0x72   :  { %465 = vmatpush1.bf16.msra.mxu0 %v4837_v2  ;;  %v4843_v6 = vld [vmem:[#allocation7 + $0x40] ss:$16 sps:$4 sm:$0xff]   ;;  %v4844_v7 = vld [vmem:[#allocation7 + $0x64] ss:$16 sps:$4 sm:$0xff]   ;;  %658 = vmatpush1.bf16.msra.mxu1 %v4876_v18  ;;  %v4878_v20 = vld [vmem:[#allocation7 + $0x2c] ss:$16 sps:$4 sm:$0xff]  }
  0x73   :  { %466 = vmatprep.subr.bf16.mxu0 %v4838_v3  ;;  %v4846_v8 = vld [vmem:[#allocation7 + $0x60] ss:$16 sps:$4 sm:$0xff]   ;;  %v4847_v9 = vld [vmem:[#allocation7 + $0x84] ss:$16 sps:$4 sm:$0xff]   ;;  %v4880_v21 = vld [vmem:[#allocation7 + $0x28] ss:$16 sps:$4 sm:$0xff]   ;;  %659 = vmatprep.subr.bf16.mxu1 %v4878_v20 }
  0x74   :  { %v4849_v10 = vld [vmem:[#allocation7 + $0x80] ss:$16 sps:$4 sm:$0xff]   ;;  %v4850_v11 = vld [vmem:[#allocation7 + $0xa4] ss:$16 sps:$4 sm:$0xff]   ;;  %v4881_v22 = vld [vmem:[#allocation7 + $0x4c] ss:$16 sps:$4 sm:$0xff]  }
  0x75   :  { %v4852_v12 = vld [vmem:[#allocation7 + $0xa0] ss:$16 sps:$4 sm:$0xff]   ;;  %v4853_v13 = vld [vmem:[#allocation7 + $0xc4] ss:$16 sps:$4 sm:$0xff]   ;;  %v4886_v26 = vld [vmem:[#allocation7 + $0x48] ss:$16 sps:$4 sm:$0xff]  }
  0x76   :  { %467 = vmatpush1.bf16.msra.mxu0 %v4840_v4  ;;  %v4855_v14 = vld [vmem:[#allocation7 + $0xc0] ss:$16 sps:$4 sm:$0xff]   ;;  %v4856_v16 = vld [vmem:[#allocation7 + $0xe4] ss:$16 sps:$4 sm:$0xff]   ;;  %660 = vmatpush1.bf16.msra.mxu1 %v4880_v21  ;;  %v4888_v27 = vld [vmem:[#allocation7 + $0x6c] ss:$16 sps:$4 sm:$0xff]  }
  0x77   :  { %468 = vmatprep.subr.bf16.mxu0 %v4841_v5  ;;  %v4858_v17 = vld [vmem:[#allocation7 + $0xe0] ss:$16 sps:$4 sm:$0xff]   ;;  %v4875_v19 = vld [vmem:[#allocation8 + $0x4] ss:$8 sps:$4 sm:$0xff]   ;;  %661 = vmatprep.subr.bf16.mxu1 %v4881_v22  ;;  %v4885_v25 = vld [vmem:[#allocation8 + $0x14] ss:$8 sps:$4 sm:$0xff]  }
  0x78   :  { %v5573_v23 = vld [vmem:[#allocation2] sm:$0xff]   ;;  %v4883_v28 = vld [vmem:[#allocation8 + $0x10] ss:$8 sps:$4 sm:$0xff]   ;;  %v4891_v31 = vld [vmem:[#allocation7 + $0x8c] ss:$16 sps:$4 sm:$0xff]  }
  0x79   :  { %v4873_v24 = vld [vmem:[#allocation8] ss:$8 sps:$4 sm:$0xff]   ;;  %v4895_v30 = vld [vmem:[#allocation8 + $0x24] ss:$8 sps:$4 sm:$0xff]   ;;  %v4905_v35 = vld [vmem:[#allocation8 + $0x34] ss:$8 sps:$4 sm:$0xff]  }
  0x7a   :  { %469 = vmatpush1.bf16.msra.mxu0 %v4843_v6  ;;  %v4890_v29 = vld [vmem:[#allocation7 + $0x68] ss:$16 sps:$4 sm:$0xff]   ;;  %662 = vmatpush1.bf16.msra.mxu1 %v4886_v26  ;;  %v4898_v36 = vld [vmem:[#allocation7 + $0xac] ss:$16 sps:$4 sm:$0xff]   ;;  %v4861_v41 = vld [vmem:[#allocation2 + $0x10] sm:$0xff]  }
  0x7b   :  { %470 = vmatprep.subr.bf16.mxu0 %v4844_v7  ;;  %663 = vmatprep.subr.bf16.mxu1 %v4888_v27  ;;  %v4893_v33 = vld [vmem:[#allocation8 + $0x20] ss:$8 sps:$4 sm:$0xff]   ;;  %v4903_v38 = vld [vmem:[#allocation8 + $0x30] ss:$8 sps:$4 sm:$0xff]   ;;  %v4913_v39 = vld [vmem:[#allocation8 + $0x44] ss:$8 sps:$4 sm:$0xff]  }
  0x7c   :  { %v4896_v34 = vld [vmem:[#allocation7 + $0x88] ss:$16 sps:$4 sm:$0xff]   ;;  %v4901_v40 = vld [vmem:[#allocation7 + $0xcc] ss:$16 sps:$4 sm:$0xff]   ;;  %v4863_v54 = vld [vmem:[#allocation2 + $0x20] sm:$0xff]  }
  0x7d   :  { %v4900_v37 = vld [vmem:[#allocation7 + $0xa8] ss:$16 sps:$4 sm:$0xff]   ;;  %v4916_v44 = vld [vmem:[#allocation8 + $0x54] ss:$8 sps:$4 sm:$0xff]   ;;  %v4919_v48 = vld [vmem:[#allocation8 + $0x64] ss:$8 sps:$4 sm:$0xff]  }
  0x7e   :  { %471 = vmatpush1.bf16.msra.mxu0 %v4846_v8  ;;  %664 = vmatpush1.bf16.msra.mxu1 %v4890_v29  ;;  %v4906_v42 = vld [vmem:[#allocation7 + $0xc8] ss:$16 sps:$4 sm:$0xff]   ;;  %v4908_v45 = vld [vmem:[#allocation7 + $0xec] ss:$16 sps:$4 sm:$0xff]   ;;  %v4865_v1 = vld [vmem:[#allocation2 + $0x30] sm:$0xff]  }
  0x7f   :  { %472 = vmatprep.subr.bf16.mxu0 %v4847_v9  ;;  %665 = vmatprep.subr.bf16.mxu1 %v4891_v31  ;;  %v4911_v43 = vld [vmem:[#allocation8 + $0x40] ss:$8 sps:$4 sm:$0xff]   ;;  %v4914_v47 = vld [vmem:[#allocation8 + $0x50] ss:$8 sps:$4 sm:$0xff]   ;;  %v4922_v51 = vld [vmem:[#allocation8 + $0x74] ss:$8 sps:$4 sm:$0xff]  }
  0x80   :  { %v4910_v46 = vld [vmem:[#allocation7 + $0xe8] ss:$16 sps:$4 sm:$0xff]   ;;  %v4925_v53 = vld [vmem:[#allocation8 + $0x84] ss:$8 sps:$4 sm:$0xff]   ;;  %v4928_v56 = vld [vmem:[#allocation8 + $0x94] ss:$8 sps:$4 sm:$0xff]  }
  0x81   :  { %v4862_v49 = vld [vmem:[#allocation2 + $0x18] sm:$0xff]   ;;  %v4917_v50 = vld [vmem:[#allocation8 + $0x60] ss:$8 sps:$4 sm:$0xff]   ;;  %v4931_v58 = vld [vmem:[#allocation8 + $0xa4] ss:$8 sps:$4 sm:$0xff]  }
  0x82   :  { %473 = vmatpush1.bf16.msra.mxu0 %v4849_v10  ;;  %666 = vmatpush1.bf16.msra.mxu1 %v4896_v34  ;;  %v4920_v52 = vld [vmem:[#allocation8 + $0x70] ss:$8 sps:$4 sm:$0xff]   ;;  %v4923_v55 = vld [vmem:[#allocation8 + $0x80] ss:$8 sps:$4 sm:$0xff]   ;;  %v4934_v61 = vld [vmem:[#allocation8 + $0xb4] ss:$8 sps:$4 sm:$0xff]  }
  0x83   :  { %474 = vmatprep.subr.bf16.mxu0 %v4850_v11  ;;  %667 = vmatprep.subr.bf16.mxu1 %v4898_v36  ;;  %v4926_v57 = vld [vmem:[#allocation8 + $0x90] ss:$8 sps:$4 sm:$0xff]   ;;  %v4864_v59 = vld [vmem:[#allocation2 + $0x28] sm:$0xff]   ;;  %v4940_v3 = vld [vmem:[#allocation8 + $0xd4] ss:$8 sps:$4 sm:$0xff]  }
  0x84   :  { %v4929_v60 = vld [vmem:[#allocation8 + $0xa0] ss:$8 sps:$4 sm:$0xff]   ;;  %v4932_v62 = vld [vmem:[#allocation8 + $0xb0] ss:$8 sps:$4 sm:$0xff]   ;;  %v4937_v63 = vld [vmem:[#allocation8 + $0xc4] ss:$8 sps:$4 sm:$0xff]  }
  0x85   :  { %v4935_v2 = vld [vmem:[#allocation8 + $0xc0] ss:$8 sps:$4 sm:$0xff]   ;;  %v4938_v4 = vld [vmem:[#allocation8 + $0xd0] ss:$8 sps:$4 sm:$0xff]   ;;  %v4943_v5 = vld [vmem:[#allocation8 + $0xe4] ss:$8 sps:$4 sm:$0xff]  }
  0x86   :  { %475 = vmatpush1.bf16.msra.mxu0 %v4852_v12  ;;  %668 = vmatpush1.bf16.msra.mxu1 %v4900_v37  ;;  %v4866_v6 = vld [vmem:[#allocation2 + $0x38] sm:$0xff]   ;;  %v4941_v7 = vld [vmem:[#allocation8 + $0xe0] ss:$8 sps:$4 sm:$0xff]   ;;  %v4869_v10 = vld [vmem:[#allocation2 + $0x50] sm:$0xff]  }
  0x87   :  { %476 = vmatprep.subr.bf16.mxu0 %v4853_v13  ;;  %669 = vmatprep.subr.bf16.mxu1 %v4901_v40  ;;  %v4867_v8 = vld [vmem:[#allocation2 + $0x40] sm:$0xff]   ;;  %v4868_v9 = vld [vmem:[#allocation2 + $0x48] sm:$0xff]   ;;  %v4870_v11 = vld [vmem:[#allocation2 + $0x58] sm:$0xff]  }
  0x88   :  { %v4946_v12 = vld [vmem:[#allocation8 + $0xf4] ss:$8 sps:$4 sm:$0xff]   ;;  %v4944_v13 = vld [vmem:[#allocation8 + $0xf0] ss:$8 sps:$4 sm:$0xff]   ;;  %v4949_v15 = vld [vmem:[#allocation8 + $0x104] ss:$8 sps:$4 sm:$0xff]  }
  0x89   :  { %v4907_v18 = vld [vmem:[#allocation2 + $0x78] sm:$0xff]   ;;  %v5616_v22 = vld [vmem:[%s6450_s3] sm:$0xf] }
  0x8a   :  { %477 = vmatpush1.bf16.msra.mxu0 %v4855_v14  ;;  %670 = vmatpush1.bf16.msra.mxu1 %v4906_v42  ;;  %v4877_v14 = vld [vmem:[#allocation2 + $0x60] sm:$0xff]  }
  0x8b   :  { %478 = vmatprep.subr.bf16.mxu0 %v4856_v16  ;;  %671 = vmatprep.subr.bf16.mxu1 %v4908_v45  ;;  %v4887_v16 = vld [vmem:[#allocation2 + $0x68] sm:$0xff]  }
  0x8e   :  { %479 = vmatpush1.bf16.msra.mxu0 %v4858_v17  ;;  %672 = vmatpush1.bf16.msra.mxu1 %v4910_v46  ;;  %v4897_v17 = vld [vmem:[#allocation2 + $0x70] sm:$0xff]  }
  0x8f   :  { %1438 = vmatprep.subr.bf16.mxu0 %v4875_v19  ;;  %v188_v19 = vlaneseq }
  0x91   :  { %497 = vmatmul.mubr.bf16.vlgmr.msra.gmra.mrb[0].mxu0 %v5573_v23  ;;  %690 = vmatmul.mubr.bf16.vlgmr.msra.gmra.mrb[0].mxu1 %v5573_v23  ;;  %v5608_v20 = vshrl.u32 %v188_v19, 7 }
  0x92   :  { %506 = vmatprep.mubr.bf16.mxu0 %v5403_v0  ;;  %1439 = vmatpush1.bf16.msra.mxu0 %v4873_v24 }
  0x93   :  { %1440 = vmatprep.subr.bf16.mxu0 %v4885_v25  ;;  %699 = vmatprep.mubr.bf16.mxu1 %v5403_v0  ;;  %v5611_v21 = vsub.s32 0, %v5608_v20  ;;  %v5619_v23 = vsub.s32 1, %v5608_v20 }
  0x95   :  { %v5623_v24 = vrot.slane %v5616_v22, %v5611_v21  ;;  %v5627_v25 = vrot.slane %v5616_v22, %v5619_v23 }
  0x96   :  { %1441 = vmatpush1.bf16.msra.mxu0 %v4883_v28 }
  0x97   :  { %1442 = vmatprep.subr.bf16.mxu0 %v4895_v30 }
  0x99   :  { %507 = vmatmul.mubr.bf16.gmra.mrb[4].mxu0 %v4860_v32  ;;  %700 = vmatmul.mubr.bf16.gmra.mrb[4].mxu1 %v4860_v32 }
  0x9a   :  { %516 = vmatprep.mubr.bf16.mxu0 %v5403_v0  ;;  %1443 = vmatpush1.bf16.msra.mxu0 %v4893_v33 }
  0x9b   :  { %1444 = vmatprep.subr.bf16.mxu0 %v4905_v35  ;;  %709 = vmatprep.mubr.bf16.mxu1 %v5403_v0 }
  0x9e   :  { %1445 = vmatpush1.bf16.msra.mxu0 %v4903_v38 }
  0x9f   :  { %1446 = vmatprep.subr.bf16.mxu0 %v4913_v39 }
  0xa1   :  { %517 = vmatmul.mubr.bf16.gmra.mrb[8].mxu0 %v4861_v41  ;;  %710 = vmatmul.mubr.bf16.gmra.mrb[8].mxu1 %v4861_v41  ;;  %v4947_v41 = vld [vmem:[#allocation8 + $0x100] ss:$8 sps:$4 sm:$0xff]  }
  0xa2   :  { %526 = vmatprep.mubr.bf16.mxu0 %v5403_v0  ;;  %1447 = vmatpush1.bf16.msra.mxu0 %v4911_v43 }
  0xa3   :  { %1448 = vmatprep.subr.bf16.mxu0 %v4916_v44  ;;  %719 = vmatprep.mubr.bf16.mxu1 %v5403_v0  ;;  %v4952_v44 = vld [vmem:[#allocation8 + $0x114] ss:$8 sps:$4 sm:$0xff]  }
  0xa6   :  { %1449 = vmatpush1.bf16.msra.mxu0 %v4914_v47 }
  0xa7   :  { %1450 = vmatprep.subr.bf16.mxu0 %v4919_v48 }
  0xa9   :  { %527 = vmatmul.mubr.bf16.gmra.mrb[12].mxu0 %v4862_v49  ;;  %720 = vmatmul.mubr.bf16.gmra.mrb[12].mxu1 %v4862_v49 }
  0xaa   :  { %536 = vmatprep.mubr.bf16.mxu0 %v5403_v0  ;;  %1451 = vmatpush1.bf16.msra.mxu0 %v4917_v50  ;;  %v4950_v50 = vld [vmem:[#allocation8 + $0x110] ss:$8 sps:$4 sm:$0xff]  }
  0xab   :  { %1452 = vmatprep.subr.bf16.mxu0 %v4922_v51  ;;  %729 = vmatprep.mubr.bf16.mxu1 %v5403_v0 }
  0xae   :  { %1453 = vmatpush1.bf16.msra.mxu0 %v4920_v52 }
  0xaf   :  { %1454 = vmatprep.subr.bf16.mxu0 %v4925_v53  ;;  %v4955_v53 = vld [vmem:[#allocation8 + $0x124] ss:$8 sps:$4 sm:$0xff]  }
  0xb1   :  { %537 = vmatmul.mubr.bf16.gmra.mrb[16].mxu0 %v4863_v54  ;;  %730 = vmatmul.mubr.bf16.gmra.mrb[16].mxu1 %v4863_v54 }
  0xb2   :  { %546 = vmatprep.mubr.bf16.mxu0 %v5403_v0  ;;  %1455 = vmatpush1.bf16.msra.mxu0 %v4923_v55 }
  0xb3   :  { %1456 = vmatprep.subr.bf16.mxu0 %v4928_v56  ;;  %739 = vmatprep.mubr.bf16.mxu1 %v5403_v0 }
  0xb6   :  { %1457 = vmatpush1.bf16.msra.mxu0 %v4926_v57 }
  0xb7   :  { %1458 = vmatprep.subr.bf16.mxu0 %v4931_v58 }
  0xb9   :  { %547 = vmatmul.mubr.bf16.gmra.mrb[20].mxu0 %v4864_v59  ;;  %740 = vmatmul.mubr.bf16.gmra.mrb[20].mxu1 %v4864_v59  ;;  %v4953_v59 = vld [vmem:[#allocation8 + $0x120] ss:$8 sps:$4 sm:$0xff]  }
  0xba   :  { %556 = vmatprep.mubr.bf16.mxu0 %v5403_v0  ;;  %1459 = vmatpush1.bf16.msra.mxu0 %v4929_v60 }
  0xbb   :  { %1460 = vmatprep.subr.bf16.mxu0 %v4934_v61  ;;  %749 = vmatprep.mubr.bf16.mxu1 %v5403_v0 }
  0xbe   :  { %1461 = vmatpush1.bf16.msra.mxu0 %v4932_v62  ;;  %v4958_v62 = vld [vmem:[#allocation8 + $0x134] ss:$8 sps:$4 sm:$0xff]  }
  0xbf   :  { %1462 = vmatprep.subr.bf16.mxu0 %v4937_v63 }
  0xc1   :  { %557 = vmatmul.mubr.bf16.gmra.mrb[24].mxu0 %v4865_v1  ;;  %750 = vmatmul.mubr.bf16.gmra.mrb[24].mxu1 %v4865_v1 }
  0xc2   :  { %566 = vmatprep.mubr.bf16.mxu0 %v5403_v0  ;;  %1463 = vmatpush1.bf16.msra.mxu0 %v4935_v2  ;;  %v198_v2 = vsub.s32 2, %v5608_v20 }
  0xc3   :  { %1464 = vmatprep.subr.bf16.mxu0 %v4940_v3  ;;  %759 = vmatprep.mubr.bf16.mxu1 %v5403_v0 }
  0xc6   :  { %1465 = vmatpush1.bf16.msra.mxu0 %v4938_v4 }
  0xc7   :  { %1466 = vmatprep.subr.bf16.mxu0 %v4943_v5  ;;  %v202_v5 = vsub.s32 3, %v5608_v20 }
  0xc9   :  { %567 = vmatmul.mubr.bf16.gmra.mrb[28].mxu0 %v4866_v6  ;;  %760 = vmatmul.mubr.bf16.gmra.mrb[28].mxu1 %v4866_v6 }
  0xca   :  { %576 = vmatprep.mubr.bf16.mxu0 %v5403_v0  ;;  %1467 = vmatpush1.bf16.msra.mxu0 %v4941_v7  ;;  %v4956_v7 = vld [vmem:[#allocation8 + $0x130] ss:$8 sps:$4 sm:$0xff]  }
  0xcb   :  { %769 = vmatprep.mubr.bf16.mxu1 %v5403_v0  ;;  %1468 = vmatprep.subr.bf16.mxu0 %v4946_v12 }
  0xce   :  { %1469 = vmatpush1.bf16.msra.mxu0 %v4944_v13  ;;  %v5646_v13 = vrot.slane %v5616_v22, %v198_v2 }
  0xcf   :  { %1631 = vmatprep.subr.bf16.mxu0 %v4949_v15  ;;  %v5651_v15 = vrot.slane %v5616_v22, %v202_v5 }
  0xd1   :  { %577 = vmatmul.mubr.bf16.gmra.mrb[32].mxu0 %v4867_v8  ;;  %770 = vmatmul.mubr.bf16.gmra.mrb[32].mxu1 %v4867_v8 }
  0xd2   :  { %586 = vmatprep.mubr.bf16.mxu0 %v5403_v0  ;;  %779 = vmatprep.mubr.bf16.mxu1 %v5403_v0 }
  0xd9   :  { %587 = vmatmul.mubr.bf16.gmra.mrb[36].mxu0 %v4868_v9  ;;  %780 = vmatmul.mubr.bf16.gmra.mrb[36].mxu1 %v4868_v9 }
  0xda   :  { %596 = vmatprep.mubr.bf16.mxu0 %v5403_v0  ;;  %789 = vmatprep.mubr.bf16.mxu1 %v5403_v0 }
  0xe1   :  { %597 = vmatmul.mubr.bf16.gmra.mrb[40].mxu0 %v4869_v10  ;;  %790 = vmatmul.mubr.bf16.gmra.mrb[40].mxu1 %v4869_v10  ;;  %v4961_v10 = vld [vmem:[#allocation8 + $0x144] ss:$8 sps:$4 sm:$0xff]  }
  0xe2   :  { %606 = vmatprep.mubr.bf16.mxu0 %v5403_v0  ;;  %799 = vmatprep.mubr.bf16.mxu1 %v5403_v0 }
  0xe9   :  { %607 = vmatmul.mubr.bf16.gmra.mrb[44].mxu0 %v4870_v11  ;;  %800 = vmatmul.mubr.bf16.gmra.mrb[44].mxu1 %v4870_v11 }
  0xea   :  { %616 = vmatprep.mubr.bf16.mxu0 %v5403_v0  ;;  %809 = vmatprep.mubr.bf16.mxu1 %v5403_v0 }
  0xf1   :  { %617 = vmatmul.mubr.bf16.gmra.mrb[48].mxu0 %v4877_v14  ;;  %810 = vmatmul.mubr.bf16.gmra.mrb[48].mxu1 %v4877_v14 }
  0xf2   :  { %626 = vmatprep.mubr.bf16.mxu0 %v5403_v0  ;;  %819 = vmatprep.mubr.bf16.mxu1 %v5403_v0 }
  0xf9   :  { %627 = vmatmul.mubr.bf16.gmra.mrb[52].mxu0 %v4887_v16  ;;  %820 = vmatmul.mubr.bf16.gmra.mrb[52].mxu1 %v4887_v16 }
  0xfa   :  { %636 = vmatprep.mubr.bf16.mxu0 %v5403_v0  ;;  %829 = vmatprep.mubr.bf16.mxu1 %v5403_v0 }
 0x101   :  { %637 = vmatmul.mubr.bf16.gmra.mrb[56].mxu0 %v4897_v17  ;;  %830 = vmatmul.mubr.bf16.gmra.mrb[56].mxu1 %v4897_v17 }
 0x102   :  { %646 = vmatprep.mubr.bf16.mxu0 %v5403_v0  ;;  %839 = vmatprep.mubr.bf16.mxu1 %v5403_v0 }
 0x109   :  { %647 = vmatmul.mubr.bf16.gmra.mrb[60].mxu0 %v4907_v18  ;;  %840 = vmatmul.mubr.bf16.gmra.mrb[60].mxu1 %v4907_v18  ;;  %v4959_v18 = vld [vmem:[#allocation8 + $0x140] ss:$8 sps:$4 sm:$0xff]  }
 0x10a   :  { %2534 = vmatprep.mubr.bf16.mxu1 %v5403_v0 }
 0x164   :  { %v498_v26 = vpop.f32.mrb[0].mxu0 }
 0x165   :  { %v499_v27 = vadd.f32 %v498_v26, %v5623_v24  ;;  %v500_v28 = vpop.f32.mrb[1].mxu0 }
 0x166   :  { %v501_v29 = vadd.f32 %v500_v28, %v5627_v25  ;;  %v502_v30 = vpop.f32.mrb[2].mxu0  ;;  %v691_v28 = vpop.f32.mrb[0].mxu1 }
 0x167   :  { %v503_v31 = vadd.f32 %v502_v30, %v5623_v24  ;;  %v504_v32 = vpop.f32.mrb[3].mxu0  ;;  %v850_v34 = vmax.f32 %v499_v27, 0.0  ;;  %v4964_v27 = vld [vmem:[#allocation8 + $0x154] ss:$8 sps:$4 sm:$0xff]  }
 0x168   :  { %v505_v33 = vadd.f32 %v504_v32, %v5627_v25  ;;  %v851_v36 = vmax.f32 %v501_v29, 0.0  ;;  %v693_v32 = vpop.f32.mrb[1].mxu1 }
 0x169   :  { %v854_v35 = vmax.f32 %v503_v31, 0.0  ;;  %v692_v31 = vadd.f32 %v691_v28, %v5646_v13 }
 0x16a   :  { %v855_v37 = vmax.f32 %v505_v33, 0.0 }
 0x16b   :  { %v978_v38 = vpack.c.bf16 %v854_v35, %v850_v34  ;;  %v694_v34 = vadd.f32 %v693_v32, %v5651_v15  ;;  %v695_v35 = vpop.f32.mrb[2].mxu1  ;;  %v4971_v32 = vld [vmem:[#allocation8 + $0x180] ss:$8 sps:$4 sm:$0xff]  }
 0x16c   :  { %v979_v39 = vpack.c.bf16 %v855_v37, %v851_v36  ;;  %v508_v40 = vpop.f32.mrb[4].mxu0  ;;  %v4962_v37 = vld [vmem:[#allocation8 + $0x150] ss:$8 sps:$4 sm:$0xff]  }
 0x16d   :  { %v509_v42 = vadd.f32 %v508_v40, %v5623_v24  ;;  %v510_v43 = vpop.f32.mrb[5].mxu0  ;;  %v697_v40 = vpop.f32.mrb[3].mxu1 }
 0x16e   :  { %v511_v45 = vadd.f32 %v510_v43, %v5627_v25  ;;  %v512_v46 = vpop.f32.mrb[6].mxu0  ;;  %1470 = vmatprep.mubr.bf16.mxu0 %v979_v39  ;;  %v696_v39 = vadd.f32 %v695_v35, %v5646_v13  ;;  %v4967_v43 = vld [vmem:[#allocation8 + $0x164] ss:$8 sps:$4 sm:$0xff]   ;;  %v4976_v35 = vld [vmem:[#allocation8 + $0x194] ss:$8 sps:$4 sm:$0xff]  }
 0x16f   :  { %v513_v47 = vadd.f32 %v512_v46, %v5623_v24  ;;  %v514_v48 = vpop.f32.mrb[7].mxu0  ;;  %1471 = vmatmul.mubr.bf16.vlgmr.msra.gmra.mrb[64].mxu0 %v978_v38  ;;  %v858_v51 = vmax.f32 %v509_v42, 0.0  ;;  %v852_v38 = vmax.f32 %v692_v31, 0.0 }
 0x170   :  { %v515_v49 = vadd.f32 %v514_v48, %v5627_v25  ;;  %1632 = vmatpush1.bf16.msra.mxu0 %v4947_v41  ;;  %v859_v54 = vmax.f32 %v511_v45, 0.0  ;;  %v698_v45 = vadd.f32 %v697_v40, %v5651_v15  ;;  %v856_v48 = vmax.f32 %v696_v39, 0.0 }
 0x171   :  { %v862_v52 = vmax.f32 %v513_v47, 0.0  ;;  %1633 = vmatprep.subr.bf16.mxu0 %v4952_v44  ;;  %v853_v44 = vmax.f32 %v694_v34, 0.0 }
 0x172   :  { %v863_v55 = vmax.f32 %v515_v49, 0.0 }
 0x173   :  { %v982_v56 = vpack.c.bf16 %v862_v52, %v858_v51 }
 0x174   :  { %v983_v57 = vpack.c.bf16 %v863_v55, %v859_v54  ;;  %v518_v58 = vpop.f32.mrb[8].mxu0  ;;  %1634 = vmatpush1.bf16.msra.mxu0 %v4950_v50  ;;  %v857_v50 = vmax.f32 %v698_v45, 0.0  ;;  %v5661_v54 = vpack.c.bf16 %v856_v48, %v852_v38 }
 0x175   :  { %v519_v60 = vadd.f32 %v518_v58, %v5623_v24  ;;  %v520_v61 = vpop.f32.mrb[9].mxu0  ;;  %1635 = vmatprep.subr.bf16.mxu0 %v4955_v53  ;;  %v4965_v53 = vld [vmem:[#allocation8 + $0x160] ss:$8 sps:$4 sm:$0xff]  }
 0x176   :  { %v521_v63 = vadd.f32 %v520_v61, %v5627_v25  ;;  %v522_v1 = vpop.f32.mrb[10].mxu0  ;;  %1480 = vmatprep.mubr.bf16.mxu0 %v983_v57  ;;  %v4970_v57 = vld [vmem:[#allocation8 + $0x174] ss:$8 sps:$4 sm:$0xff]   ;;  %v5664_v58 = vpack.c.bf16 %v857_v50, %v853_v44 }
 0x177   :  { %v523_v3 = vadd.f32 %v522_v1, %v5623_v24  ;;  %v524_v4 = vpop.f32.mrb[11].mxu0  ;;  %1481 = vmatmul.mubr.bf16.gmra.mrb[68].mxu0 %v982_v56  ;;  %v866_v8 = vmax.f32 %v519_v60, 0.0 }
 0x178   :  { %v525_v6 = vadd.f32 %v524_v4, %v5627_v25  ;;  %1636 = vmatpush1.bf16.msra.mxu0 %v4953_v59  ;;  %v867_v11 = vmax.f32 %v521_v63, 0.0  ;;  %v701_v59 = vpop.f32.mrb[4].mxu1 }
 0x179   :  { %v870_v9 = vmax.f32 %v523_v3, 0.0  ;;  %1637 = vmatprep.subr.bf16.mxu0 %v4958_v62  ;;  %v702_v62 = vadd.f32 %v701_v59, %v5646_v13  ;;  %v703_v63 = vpop.f32.mrb[5].mxu1 }
 0x17a   :  { %v871_v12 = vmax.f32 %v525_v6, 0.0  ;;  %v704_v4 = vadd.f32 %v703_v63, %v5651_v15  ;;  %v705_v6 = vpop.f32.mrb[6].mxu1 }
 0x17b   :  { %v986_v14 = vpack.c.bf16 %v870_v9, %v866_v8  ;;  %v4968_v8 = vld [vmem:[#allocation8 + $0x170] ss:$8 sps:$4 sm:$0xff]   ;;  %v860_v9 = vmax.f32 %v702_v62, 0.0 }
 0x17c   :  { %v987_v16 = vpack.c.bf16 %v871_v12, %v867_v11  ;;  %v528_v17 = vpop.f32.mrb[12].mxu0  ;;  %1638 = vmatpush1.bf16.msra.mxu0 %v4956_v7  ;;  %v707_v11 = vpop.f32.mrb[7].mxu1 }
 0x17d   :  { %v529_v19 = vadd.f32 %v528_v17, %v5623_v24  ;;  %v530_v26 = vpop.f32.mrb[13].mxu0  ;;  %1639 = vmatprep.subr.bf16.mxu0 %v4961_v10  ;;  %v706_v10 = vadd.f32 %v705_v6, %v5646_v13  ;;  %v861_v17 = vmax.f32 %v704_v4, 0.0 }
 0x17e   :  { %v531_v29 = vadd.f32 %v530_v26, %v5627_v25  ;;  %v532_v30 = vpop.f32.mrb[14].mxu0  ;;  %1490 = vmatprep.mubr.bf16.mxu0 %v987_v16  ;;  %v4973_v16 = vld [vmem:[#allocation8 + $0x184] ss:$8 sps:$4 sm:$0xff]  }
 0x17f   :  { %v533_v22 = vadd.f32 %v532_v30, %v5623_v24  ;;  %v534_v33 = vpop.f32.mrb[15].mxu0  ;;  %1491 = vmatmul.mubr.bf16.gmra.mrb[72].mxu0 %v986_v14  ;;  %v874_v41 = vmax.f32 %v529_v19, 0.0 }
 0x180   :  { %v535_v36 = vadd.f32 %v534_v33, %v5627_v25  ;;  %1640 = vmatpush1.bf16.msra.mxu0 %v4959_v18  ;;  %v875_v46 = vmax.f32 %v531_v29, 0.0  ;;  %v708_v18 = vadd.f32 %v707_v11, %v5651_v15 }
 0x181   :  { %v878_v42 = vmax.f32 %v533_v22, 0.0  ;;  %1641 = vmatprep.subr.bf16.mxu0 %v4964_v27  ;;  %v864_v27 = vmax.f32 %v706_v10, 0.0 }
 0x182   :  { %v879_v47 = vmax.f32 %v535_v36, 0.0  ;;  %v865_v29 = vmax.f32 %v708_v18, 0.0 }
 0x183   :  { %v990_v49 = vpack.c.bf16 %v878_v42, %v874_v41  ;;  %v5673_v22 = vpack.c.bf16 %v864_v27, %v860_v9 }
 0x184   :  { %v991_v51 = vpack.c.bf16 %v879_v47, %v875_v46  ;;  %v538_v52 = vpop.f32.mrb[16].mxu0  ;;  %1642 = vmatpush1.bf16.msra.mxu0 %v4962_v37  ;;  %v5676_v36 = vpack.c.bf16 %v865_v29, %v861_v17  ;;  %v711_v37 = vpop.f32.mrb[8].mxu1  ;;  %v4974_v47 = vld [vmem:[#allocation8 + $0x190] ss:$8 sps:$4 sm:$0xff]  }
 0x185   :  { %v539_v55 = vadd.f32 %v538_v52, %v5623_v24  ;;  %v540_v56 = vpop.f32.mrb[17].mxu0  ;;  %1643 = vmatprep.subr.bf16.mxu0 %v4967_v43  ;;  %v712_v40 = vadd.f32 %v711_v37, %v5646_v13  ;;  %v713_v41 = vpop.f32.mrb[9].mxu1 }
 0x186   :  { %v541_v60 = vadd.f32 %v540_v56, %v5627_v25  ;;  %v542_v61 = vpop.f32.mrb[18].mxu0  ;;  %1500 = vmatprep.mubr.bf16.mxu0 %v991_v51  ;;  %v714_v44 = vadd.f32 %v713_v41, %v5651_v15  ;;  %v715_v45 = vpop.f32.mrb[10].mxu1 }
 0x187   :  { %v543_v1 = vadd.f32 %v542_v61, %v5623_v24  ;;  %v544_v3 = vpop.f32.mrb[19].mxu0  ;;  %1501 = vmatmul.mubr.bf16.gmra.mrb[76].mxu0 %v990_v49  ;;  %v882_v12 = vmax.f32 %v539_v55, 0.0  ;;  %v868_v48 = vmax.f32 %v712_v40, 0.0  ;;  %v716_v49 = vadd.f32 %v715_v45, %v5646_v13  ;;  %v717_v50 = vpop.f32.mrb[11].mxu1  ;;  %v4983_v45 = vld [vmem:[#allocation8 + $0x1c0] ss:$8 sps:$4 sm:$0xff]  }
 0x188   :  { %v545_v7 = vadd.f32 %v544_v3, %v5627_v25  ;;  %1644 = vmatpush1.bf16.msra.mxu0 %v4965_v53  ;;  %v883_v19 = vmax.f32 %v541_v60, 0.0  ;;  %v4979_v53 = vld [vmem:[#allocation8 + $0x1a4] ss:$8 sps:$4 sm:$0xff]   ;;  %v869_v55 = vmax.f32 %v714_v44, 0.0  ;;  %v718_v56 = vadd.f32 %v717_v50, %v5651_v15  ;;  %v4977_v3 = vld [vmem:[#allocation8 + $0x1a0] ss:$8 sps:$4 sm:$0xff]  }
 0x189   :  { %v886_v14 = vmax.f32 %v543_v1, 0.0  ;;  %1645 = vmatprep.subr.bf16.mxu0 %v4970_v57  ;;  %v872_v60 = vmax.f32 %v716_v49, 0.0  ;;  %v721_v10 = vpop.f32.mrb[12].mxu1  ;;  %v4988_v49 = vld [vmem:[#allocation8 + $0x1d4] ss:$8 sps:$4 sm:$0xff]  }
 0x18a   :  { %v887_v26 = vmax.f32 %v545_v7, 0.0  ;;  %v873_v62 = vmax.f32 %v718_v56, 0.0 }
 0x18b   :  { %v994_v28 = vpack.c.bf16 %v886_v14, %v882_v12  ;;  %v5685_v4 = vpack.c.bf16 %v872_v60, %v868_v48  ;;  %v722_v14 = vadd.f32 %v721_v10, %v5646_v13  ;;  %v4991_v10 = vld [vmem:[#allocation8 + $0x1e4] ss:$8 sps:$4 sm:$0xff]  }
 0x18c   :  { %v995_v30 = vpack.c.bf16 %v887_v26, %v883_v19  ;;  %v548_v31 = vpop.f32.mrb[20].mxu0  ;;  %1646 = vmatpush1.bf16.msra.mxu0 %v4968_v8  ;;  %v4982_v8 = vld [vmem:[#allocation8 + $0x1b4] ss:$8 sps:$4 sm:$0xff]   ;;  %v5688_v9 = vpack.c.bf16 %v873_v62, %v869_v55 }
 0x18d   :  { %v549_v33 = vadd.f32 %v548_v31, %v5623_v24  ;;  %v550_v34 = vpop.f32.mrb[21].mxu0  ;;  %1647 = vmatprep.subr.bf16.mxu0 %v4973_v16  ;;  %v723_v16 = vpop.f32.mrb[13].mxu1  ;;  %v876_v29 = vmax.f32 %v722_v14, 0.0 }
 0x18e   :  { %v551_v38 = vadd.f32 %v550_v34, %v5627_v25  ;;  %v552_v39 = vpop.f32.mrb[22].mxu0  ;;  %1510 = vmatprep.mubr.bf16.mxu0 %v995_v30  ;;  %v724_v19 = vadd.f32 %v723_v16, %v5651_v15  ;;  %v725_v26 = vpop.f32.mrb[14].mxu1  ;;  %v4985_v34 = vld [vmem:[#allocation8 + $0x1c4] ss:$8 sps:$4 sm:$0xff]  }
 0x18f   :  { %v553_v42 = vadd.f32 %v552_v39, %v5623_v24  ;;  %v554_v43 = vpop.f32.mrb[23].mxu0  ;;  %1511 = vmatmul.mubr.bf16.gmra.mrb[80].mxu0 %v994_v28  ;;  %v890_v51 = vmax.f32 %v549_v33, 0.0  ;;  %v4980_v28 = vld [vmem:[#allocation8 + $0x1b0] ss:$8 sps:$4 sm:$0xff]   ;;  %v726_v30 = vadd.f32 %v725_v26, %v5646_v13  ;;  %v727_v31 = vpop.f32.mrb[15].mxu1 }
 0x190   :  { %v555_v46 = vadd.f32 %v554_v43, %v5627_v25  ;;  %1648 = vmatpush1.bf16.msra.mxu0 %v4971_v32  ;;  %v891_v57 = vmax.f32 %v551_v38, 0.0  ;;  %v728_v37 = vadd.f32 %v727_v31, %v5651_v15 }
 0x191   :  { %v894_v52 = vmax.f32 %v553_v42, 0.0  ;;  %1649 = vmatprep.subr.bf16.mxu0 %v4976_v35  ;;  %v877_v35 = vmax.f32 %v724_v19, 0.0  ;;  %v880_v40 = vmax.f32 %v726_v30, 0.0 }
 0x192   :  { %v895_v59 = vmax.f32 %v555_v46, 0.0  ;;  %v881_v42 = vmax.f32 %v728_v37, 0.0 }
 0x193   :  { %v998_v61 = vpack.c.bf16 %v894_v52, %v890_v51  ;;  %v5697_v46 = vpack.c.bf16 %v880_v40, %v876_v29  ;;  %v731_v51 = vpop.f32.mrb[16].mxu1 }
 0x194   :  { %v999_v63 = vpack.c.bf16 %v895_v59, %v891_v57  ;;  %v558_v1 = vpop.f32.mrb[24].mxu0  ;;  %1650 = vmatpush1.bf16.msra.mxu0 %v4974_v47  ;;  %v5700_v50 = vpack.c.bf16 %v881_v42, %v877_v35  ;;  %v732_v55 = vadd.f32 %v731_v51, %v5646_v13  ;;  %v733_v56 = vpop.f32.mrb[17].mxu1 }
 0x195   :  { %v559_v6 = vadd.f32 %v558_v1, %v5623_v24  ;;  %v560_v7 = vpop.f32.mrb[25].mxu0  ;;  %1651 = vmatprep.subr.bf16.mxu0 %v4979_v53  ;;  %v734_v60 = vadd.f32 %v733_v56, %v5651_v15 }
 0x196   :  { %v561_v11 = vadd.f32 %v560_v7, %v5627_v25  ;;  %v562_v12 = vpop.f32.mrb[26].mxu0  ;;  %1520 = vmatprep.mubr.bf16.mxu0 %v999_v63  ;;  %v4986_v63 = vld [vmem:[#allocation8 + $0x1d0] ss:$8 sps:$4 sm:$0xff]   ;;  %v884_v1 = vmax.f32 %v732_v55, 0.0 }
 0x197   :  { %v563_v17 = vadd.f32 %v562_v12, %v5623_v24  ;;  %v564_v18 = vpop.f32.mrb[27].mxu0  ;;  %1521 = vmatmul.mubr.bf16.gmra.mrb[84].mxu0 %v998_v61  ;;  %v898_v32 = vmax.f32 %v559_v6, 0.0  ;;  %v735_v61 = vpop.f32.mrb[18].mxu1 }
 0x198   :  { %v565_v27 = vadd.f32 %v564_v18, %v5627_v25  ;;  %1652 = vmatpush1.bf16.msra.mxu0 %v4977_v3  ;;  %v899_v38 = vmax.f32 %v561_v11, 0.0  ;;  %v736_v3 = vadd.f32 %v735_v61, %v5646_v13  ;;  %v737_v6 = vpop.f32.mrb[19].mxu1  ;;  %v885_v11 = vmax.f32 %v734_v60, 0.0 }
 0x199   :  { %v902_v33 = vmax.f32 %v563_v17, 0.0  ;;  %1653 = vmatprep.subr.bf16.mxu0 %v4982_v8  ;;  %v738_v12 = vadd.f32 %v737_v6, %v5651_v15 }
 0x19a   :  { %v903_v39 = vmax.f32 %v565_v27, 0.0  ;;  %v888_v17 = vmax.f32 %v736_v3, 0.0 }
 0x19b   :  { %v1002_v41 = vpack.c.bf16 %v902_v33, %v898_v32  ;;  %v889_v19 = vmax.f32 %v738_v12, 0.0  ;;  %v4994_v32 = vld [vmem:[#allocation8 + $0x1f4] ss:$8 sps:$4 sm:$0xff]  }
 0x19c   :  { %v1003_v43 = vpack.c.bf16 %v903_v39, %v899_v38  ;;  %v568_v44 = vpop.f32.mrb[28].mxu0  ;;  %1654 = vmatpush1.bf16.msra.mxu0 %v4980_v28  ;;  %v4989_v28 = vld [vmem:[#allocation8 + $0x1e0] ss:$8 sps:$4 sm:$0xff]   ;;  %v5709_v29 = vpack.c.bf16 %v888_v17, %v884_v1 }
 0x19d   :  { %v569_v47 = vadd.f32 %v568_v44, %v5623_v24  ;;  %v570_v48 = vpop.f32.mrb[29].mxu0  ;;  %1655 = vmatprep.subr.bf16.mxu0 %v4985_v34  ;;  %v5712_v33 = vpack.c.bf16 %v889_v19, %v885_v11  ;;  %v741_v34 = vpop.f32.mrb[20].mxu1 }
 0x19e   :  { %v571_v52 = vadd.f32 %v570_v48, %v5627_v25  ;;  %v572_v53 = vpop.f32.mrb[30].mxu0  ;;  %1530 = vmatprep.mubr.bf16.mxu0 %v1003_v43  ;;  %v742_v38 = vadd.f32 %v741_v34, %v5646_v13  ;;  %v743_v39 = vpop.f32.mrb[21].mxu1 }
 0x19f   :  { %v573_v57 = vadd.f32 %v572_v53, %v5623_v24  ;;  %v574_v59 = vpop.f32.mrb[31].mxu0  ;;  %1531 = vmatmul.mubr.bf16.gmra.mrb[88].mxu0 %v1002_v41  ;;  %v906_v7 = vmax.f32 %v569_v47, 0.0  ;;  %v744_v42 = vadd.f32 %v743_v39, %v5651_v15  ;;  %v745_v43 = vpop.f32.mrb[22].mxu1 }
 0x1a0   :  { %v575_v62 = vadd.f32 %v574_v59, %v5627_v25  ;;  %1656 = vmatpush1.bf16.msra.mxu0 %v4983_v45  ;;  %v907_v14 = vmax.f32 %v571_v52, 0.0  ;;  %v4992_v45 = vld [vmem:[#allocation8 + $0x1f0] ss:$8 sps:$4 sm:$0xff]   ;;  %v892_v47 = vmax.f32 %v742_v38, 0.0  ;;  %v746_v48 = vadd.f32 %v745_v43, %v5646_v13 }
 0x1a1   :  { %v910_v8 = vmax.f32 %v573_v57, 0.0  ;;  %1657 = vmatprep.subr.bf16.mxu0 %v4988_v49  ;;  %v747_v49 = vpop.f32.mrb[23].mxu1  ;;  %v893_v53 = vmax.f32 %v744_v42, 0.0 }
 0x1a2   :  { %v911_v16 = vmax.f32 %v575_v62, 0.0  ;;  %v748_v55 = vadd.f32 %v747_v49, %v5651_v15  ;;  %v896_v59 = vmax.f32 %v746_v48, 0.0 }
 0x1a3   :  { %v1006_v18 = vpack.c.bf16 %v910_v8, %v906_v7  ;;  %v751_v8 = vpop.f32.mrb[24].mxu1 }
 0x1a4   :  { %v1007_v26 = vpack.c.bf16 %v911_v16, %v907_v14  ;;  %v578_v27 = vpop.f32.mrb[32].mxu0  ;;  %1658 = vmatpush1.bf16.msra.mxu0 %v4986_v63  ;;  %v897_v61 = vmax.f32 %v748_v55, 0.0  ;;  %v5721_v1 = vpack.c.bf16 %v896_v59, %v892_v47  ;;  %v752_v12 = vadd.f32 %v751_v8, %v5646_v13  ;;  %v753_v14 = vpop.f32.mrb[25].mxu1 }
 0x1a5   :  { %v579_v30 = vadd.f32 %v578_v27, %v5623_v24  ;;  %v580_v31 = vpop.f32.mrb[33].mxu0  ;;  %1659 = vmatprep.subr.bf16.mxu0 %v4991_v10  ;;  %v755_v19 = vpop.f32.mrb[26].mxu1 }
 0x1a6   :  { %v581_v35 = vadd.f32 %v580_v31, %v5627_v25  ;;  %v582_v37 = vpop.f32.mrb[34].mxu0  ;;  %1540 = vmatprep.mubr.bf16.mxu0 %v1007_v26  ;;  %v5724_v7 = vpack.c.bf16 %v897_v61, %v893_v53  ;;  %v900_v27 = vmax.f32 %v752_v12, 0.0 }
 0x1a7   :  { %v583_v40 = vadd.f32 %v582_v37, %v5623_v24  ;;  %v584_v41 = vpop.f32.mrb[35].mxu0  ;;  %1541 = vmatmul.mubr.bf16.gmra.mrb[92].mxu0 %v1006_v18  ;;  %v914_v51 = vmax.f32 %v579_v30, 0.0  ;;  %v754_v18 = vadd.f32 %v753_v14, %v5651_v15  ;;  %v757_v30 = vpop.f32.mrb[27].mxu1 }
 0x1a8   :  { %v585_v44 = vadd.f32 %v584_v41, %v5627_v25  ;;  %1660 = vmatpush1.bf16.msra.mxu0 %v4989_v28  ;;  %v915_v56 = vmax.f32 %v581_v35, 0.0  ;;  %v756_v28 = vadd.f32 %v755_v19, %v5646_v13  ;;  %v758_v35 = vadd.f32 %v757_v30, %v5651_v15  ;;  %v761_v49 = vpop.f32.mrb[28].mxu1 }
 0x1a9   :  { %v918_v52 = vmax.f32 %v583_v40, 0.0  ;;  %1661 = vmatprep.subr.bf16.mxu0 %v4994_v32  ;;  %v901_v34 = vmax.f32 %v754_v18, 0.0  ;;  %v762_v53 = vadd.f32 %v761_v49, %v5646_v13  ;;  %v763_v55 = vpop.f32.mrb[29].mxu1 }
 0x1aa   :  { %v919_v57 = vmax.f32 %v585_v44, 0.0  ;;  %v904_v39 = vmax.f32 %v756_v28, 0.0  ;;  %v905_v41 = vmax.f32 %v758_v35, 0.0  ;;  %v764_v59 = vadd.f32 %v763_v55, %v5651_v15 }
 0x1ab   :  { %v1010_v60 = vpack.c.bf16 %v918_v52, %v914_v51 }
 0x1ac   :  { %v1011_v62 = vpack.c.bf16 %v919_v57, %v915_v56  ;;  %v588_v63 = vpop.f32.mrb[36].mxu0  ;;  %1662 = vmatpush1.bf16.msra.mxu0 %v4992_v45  ;;  %v5733_v44 = vpack.c.bf16 %v904_v39, %v900_v27  ;;  %v5736_v48 = vpack.c.bf16 %v905_v41, %v901_v34 }
 0x1ad   :  { %v589_v3 = vadd.f32 %v588_v63, %v5623_v24  ;;  %v590_v6 = vpop.f32.mrb[37].mxu0 }
 0x1ae   :  { %v591_v10 = vadd.f32 %v590_v6, %v5627_v25  ;;  %v592_v11 = vpop.f32.mrb[38].mxu0  ;;  %1550 = vmatprep.mubr.bf16.mxu0 %v1011_v62  ;;  %v908_v62 = vmax.f32 %v762_v53, 0.0 }
 0x1af   :  { %v593_v16 = vadd.f32 %v592_v11, %v5623_v24  ;;  %v594_v17 = vpop.f32.mrb[39].mxu0  ;;  %1551 = vmatmul.mubr.bf16.gmra.mrb[96].mxu0 %v1010_v60  ;;  %v922_v31 = vmax.f32 %v589_v3, 0.0  ;;  %v765_v60 = vpop.f32.mrb[30].mxu1 }
 0x1b0   :  { %v595_v26 = vadd.f32 %v594_v17, %v5627_v25  ;;  %v923_v37 = vmax.f32 %v591_v10, 0.0  ;;  %v766_v63 = vadd.f32 %v765_v60, %v5646_v13  ;;  %v767_v3 = vpop.f32.mrb[31].mxu1  ;;  %v909_v10 = vmax.f32 %v764_v59, 0.0 }
 0x1b1   :  { %v926_v32 = vmax.f32 %v593_v16, 0.0  ;;  %v768_v11 = vadd.f32 %v767_v3, %v5651_v15 }
 0x1b2   :  { %v927_v38 = vmax.f32 %v595_v26, 0.0  ;;  %v912_v16 = vmax.f32 %v766_v63, 0.0 }
 0x1b3   :  { %v1014_v40 = vpack.c.bf16 %v926_v32, %v922_v31  ;;  %v913_v18 = vmax.f32 %v768_v11, 0.0  ;;  %v771_v32 = vpop.f32.mrb[32].mxu1 }
 0x1b4   :  { %v1015_v42 = vpack.c.bf16 %v927_v38, %v923_v37  ;;  %v598_v43 = vpop.f32.mrb[40].mxu0  ;;  %v5745_v27 = vpack.c.bf16 %v912_v16, %v908_v62  ;;  %v772_v37 = vadd.f32 %v771_v32, %v5646_v13  ;;  %v773_v38 = vpop.f32.mrb[33].mxu1 }
 0x1b5   :  { %v599_v45 = vadd.f32 %v598_v43, %v5623_v24  ;;  %v600_v47 = vpop.f32.mrb[41].mxu0  ;;  %v5748_v31 = vpack.c.bf16 %v913_v18, %v909_v10  ;;  %v774_v41 = vadd.f32 %v773_v38, %v5651_v15 }
 0x1b6   :  { %v601_v51 = vadd.f32 %v600_v47, %v5627_v25  ;;  %v602_v52 = vpop.f32.mrb[42].mxu0  ;;  %1560 = vmatprep.mubr.bf16.mxu0 %v1015_v42  ;;  %v775_v42 = vpop.f32.mrb[34].mxu1 }
 0x1b7   :  { %v603_v56 = vadd.f32 %v602_v52, %v5623_v24  ;;  %v604_v57 = vpop.f32.mrb[43].mxu0  ;;  %1561 = vmatmul.mubr.bf16.gmra.mrb[100].mxu0 %v1014_v40  ;;  %v930_v6 = vmax.f32 %v599_v45, 0.0  ;;  %v916_v45 = vmax.f32 %v772_v37, 0.0  ;;  %v776_v47 = vadd.f32 %v775_v42, %v5646_v13  ;;  %v777_v49 = vpop.f32.mrb[35].mxu1 }
 0x1b8   :  { %v605_v61 = vadd.f32 %v604_v57, %v5627_v25  ;;  %v931_v12 = vmax.f32 %v601_v51, 0.0  ;;  %v917_v53 = vmax.f32 %v774_v41, 0.0  ;;  %v778_v55 = vadd.f32 %v777_v49, %v5651_v15  ;;  %v781_v11 = vpop.f32.mrb[36].mxu1 }
 0x1b9   :  { %v934_v8 = vmax.f32 %v603_v56, 0.0  ;;  %v920_v59 = vmax.f32 %v776_v47, 0.0  ;;  %v782_v16 = vadd.f32 %v781_v11, %v5646_v13 }
 0x1ba   :  { %v935_v14 = vmax.f32 %v605_v61, 0.0  ;;  %v921_v61 = vmax.f32 %v778_v55, 0.0 }
 0x1bb   :  { %v1018_v17 = vpack.c.bf16 %v934_v8, %v930_v6  ;;  %v5757_v3 = vpack.c.bf16 %v920_v59, %v916_v45  ;;  %v924_v32 = vmax.f32 %v782_v16, 0.0 }
 0x1bc   :  { %v1019_v19 = vpack.c.bf16 %v935_v14, %v931_v12  ;;  %v608_v26 = vpop.f32.mrb[44].mxu0  ;;  %v5760_v10 = vpack.c.bf16 %v921_v61, %v917_v53 }
 0x1bd   :  { %v609_v28 = vadd.f32 %v608_v26, %v5623_v24  ;;  %v610_v30 = vpop.f32.mrb[45].mxu0 }
 0x1be   :  { %v611_v34 = vadd.f32 %v610_v30, %v5627_v25  ;;  %v612_v35 = vpop.f32.mrb[46].mxu0  ;;  %1570 = vmatprep.mubr.bf16.mxu0 %v1019_v19 }
 0x1bf   :  { %v613_v39 = vadd.f32 %v612_v35, %v5623_v24  ;;  %v614_v40 = vpop.f32.mrb[47].mxu0  ;;  %1571 = vmatmul.mubr.bf16.gmra.mrb[104].mxu0 %v1018_v17  ;;  %v938_v51 = vmax.f32 %v609_v28, 0.0  ;;  %v783_v17 = vpop.f32.mrb[37].mxu1 }
 0x1c0   :  { %v615_v43 = vadd.f32 %v614_v40, %v5627_v25  ;;  %v939_v56 = vmax.f32 %v611_v34, 0.0  ;;  %v784_v26 = vadd.f32 %v783_v17, %v5651_v15  ;;  %v785_v28 = vpop.f32.mrb[38].mxu1 }
 0x1c1   :  { %v942_v52 = vmax.f32 %v613_v39, 0.0  ;;  %v786_v34 = vadd.f32 %v785_v28, %v5646_v13  ;;  %v787_v35 = vpop.f32.mrb[39].mxu1 }
 0x1c2   :  { %v943_v57 = vmax.f32 %v615_v43, 0.0  ;;  %v925_v39 = vmax.f32 %v784_v26, 0.0  ;;  %v788_v40 = vadd.f32 %v787_v35, %v5651_v15 }
 0x1c3   :  { %v1022_v60 = vpack.c.bf16 %v942_v52, %v938_v51  ;;  %v928_v43 = vmax.f32 %v786_v34, 0.0 }
 0x1c4   :  { %v1023_v62 = vpack.c.bf16 %v943_v57, %v939_v56  ;;  %v618_v63 = vpop.f32.mrb[48].mxu0  ;;  %v929_v47 = vmax.f32 %v788_v40, 0.0  ;;  %v791_v57 = vpop.f32.mrb[40].mxu1 }
 0x1c5   :  { %v619_v6 = vadd.f32 %v618_v63, %v5623_v24  ;;  %v620_v8 = vpop.f32.mrb[49].mxu0  ;;  %v5769_v52 = vpack.c.bf16 %v928_v43, %v924_v32  ;;  %v792_v61 = vadd.f32 %v791_v57, %v5646_v13 }
 0x1c6   :  { %v621_v12 = vadd.f32 %v620_v8, %v5627_v25  ;;  %v622_v14 = vpop.f32.mrb[50].mxu0  ;;  %1580 = vmatprep.mubr.bf16.mxu0 %v1023_v62  ;;  %v5772_v56 = vpack.c.bf16 %v929_v47, %v925_v39  ;;  %v793_v62 = vpop.f32.mrb[41].mxu1 }
 0x1c7   :  { %v623_v18 = vadd.f32 %v622_v14, %v5623_v24  ;;  %v624_v19 = vpop.f32.mrb[51].mxu0  ;;  %1581 = vmatmul.mubr.bf16.gmra.mrb[108].mxu0 %v1022_v60  ;;  %v946_v37 = vmax.f32 %v619_v6, 0.0  ;;  %v794_v8 = vadd.f32 %v793_v62, %v5651_v15  ;;  %v795_v11 = vpop.f32.mrb[42].mxu1  ;;  %v932_v14 = vmax.f32 %v792_v61, 0.0 }
 0x1c8   :  { %v625_v30 = vadd.f32 %v624_v19, %v5627_v25  ;;  %v947_v41 = vmax.f32 %v621_v12, 0.0  ;;  %v796_v16 = vadd.f32 %v795_v11, %v5646_v13  ;;  %v797_v17 = vpop.f32.mrb[43].mxu1 }
 0x1c9   :  { %v950_v38 = vmax.f32 %v623_v18, 0.0  ;;  %v933_v26 = vmax.f32 %v794_v8, 0.0  ;;  %v798_v28 = vadd.f32 %v797_v17, %v5651_v15  ;;  %v4995_v8 = vld [vmem:[#allocation10] ss:$16 sps:$4 sm:$0xff]   ;;  %v4997_v17 = vld [vmem:[#allocation10 + $0x4] ss:$16 sps:$4 sm:$0xff]  }
 0x1ca   :  { %v951_v42 = vmax.f32 %v625_v30, 0.0  ;;  %v936_v34 = vmax.f32 %v796_v16, 0.0  ;;  %2502 = vmatprep.subr.bf16.mxu1 %v4997_v17 }
 0x1cb   :  { %v1026_v45 = vpack.c.bf16 %v950_v38, %v946_v37  ;;  %v937_v37 = vmax.f32 %v798_v28, 0.0  ;;  %2503 = vmatpush1.bf16.msra.mxu1 %v4995_v8 }
 0x1cc   :  { %v1027_v49 = vpack.c.bf16 %v951_v42, %v947_v41  ;;  %v628_v51 = vpop.f32.mrb[52].mxu0  ;;  %v5781_v40 = vpack.c.bf16 %v936_v34, %v932_v14 }
 0x1cd   :  { %v629_v53 = vadd.f32 %v628_v51, %v5623_v24  ;;  %v630_v55 = vpop.f32.mrb[53].mxu0  ;;  %v5784_v43 = vpack.c.bf16 %v937_v37, %v933_v26 }
 0x1ce   :  { %v631_v59 = vadd.f32 %v630_v55, %v5627_v25  ;;  %v632_v60 = vpop.f32.mrb[54].mxu0  ;;  %1590 = vmatprep.mubr.bf16.mxu0 %v1027_v49 }
 0x1cf   :  { %v633_v63 = vadd.f32 %v632_v60, %v5623_v24  ;;  %v634_v6 = vpop.f32.mrb[55].mxu0  ;;  %1591 = vmatmul.mubr.bf16.gmra.mrb[112].mxu0 %v1026_v45  ;;  %v954_v18 = vmax.f32 %v629_v53, 0.0  ;;  %v801_v45 = vpop.f32.mrb[44].mxu1 }
 0x1d0   :  { %v635_v12 = vadd.f32 %v634_v6, %v5627_v25  ;;  %v955_v30 = vmax.f32 %v631_v59, 0.0  ;;  %v802_v51 = vadd.f32 %v801_v45, %v5646_v13  ;;  %v803_v53 = vpop.f32.mrb[45].mxu1 }
 0x1d1   :  { %v958_v19 = vmax.f32 %v633_v63, 0.0  ;;  %v804_v59 = vadd.f32 %v803_v53, %v5651_v15  ;;  %v805_v60 = vpop.f32.mrb[46].mxu1 }
 0x1d2   :  { %v959_v32 = vmax.f32 %v635_v12, 0.0  ;;  %v940_v62 = vmax.f32 %v802_v51, 0.0  ;;  %v806_v63 = vadd.f32 %v805_v60, %v5646_v13  ;;  %v807_v6 = vpop.f32.mrb[47].mxu1 }
 0x1d3   :  { %v1030_v35 = vpack.c.bf16 %v958_v19, %v954_v18  ;;  %v941_v14 = vmax.f32 %v804_v59, 0.0  ;;  %v808_v16 = vadd.f32 %v807_v6, %v5651_v15 }
 0x1d4   :  { %v1031_v38 = vpack.c.bf16 %v959_v32, %v955_v30  ;;  %v638_v39 = vpop.f32.mrb[56].mxu0  ;;  %v944_v26 = vmax.f32 %v806_v63, 0.0 }
 0x1d5   :  { %v639_v41 = vadd.f32 %v638_v39, %v5623_v24  ;;  %v640_v42 = vpop.f32.mrb[57].mxu0  ;;  %v945_v30 = vmax.f32 %v808_v16, 0.0 }
 0x1d6   :  { %v641_v47 = vadd.f32 %v640_v42, %v5627_v25  ;;  %v642_v49 = vpop.f32.mrb[58].mxu0  ;;  %1600 = vmatprep.mubr.bf16.mxu0 %v1031_v38 }
 0x1d7   :  { %v643_v55 = vadd.f32 %v642_v49, %v5623_v24  ;;  %v644_v57 = vpop.f32.mrb[59].mxu0  ;;  %1601 = vmatmul.mubr.bf16.gmra.mrb[116].mxu0 %v1030_v35  ;;  %v962_v11 = vmax.f32 %v639_v41, 0.0  ;;  %v5793_v35 = vpack.c.bf16 %v944_v26, %v940_v62  ;;  %v5796_v39 = vpack.c.bf16 %v945_v30, %v941_v14  ;;  %v811_v41 = vpop.f32.mrb[48].mxu1 }
 0x1d8   :  { %v645_v61 = vadd.f32 %v644_v57, %v5627_v25  ;;  %v963_v18 = vmax.f32 %v641_v47, 0.0  ;;  %v812_v47 = vadd.f32 %v811_v41, %v5646_v13  ;;  %v813_v49 = vpop.f32.mrb[49].mxu1 }
 0x1d9   :  { %v966_v12 = vmax.f32 %v643_v55, 0.0  ;;  %v814_v55 = vadd.f32 %v813_v49, %v5651_v15  ;;  %v815_v57 = vpop.f32.mrb[50].mxu1 }
 0x1da   :  { %v967_v19 = vmax.f32 %v645_v61, 0.0  ;;  %v948_v60 = vmax.f32 %v812_v47, 0.0  ;;  %v816_v61 = vadd.f32 %v815_v57, %v5646_v13  ;;  %v817_v62 = vpop.f32.mrb[51].mxu1  ;;  %v5003_v47 = vld [vmem:[#allocation10 + $0x44] ss:$16 sps:$4 sm:$0xff]  }
 0x1db   :  { %v1034_v28 = vpack.c.bf16 %v966_v12, %v962_v11  ;;  %v949_v8 = vmax.f32 %v814_v55, 0.0  ;;  %v818_v11 = vadd.f32 %v817_v62, %v5651_v15  ;;  %v5001_v55 = vld [vmem:[#allocation10 + $0x40] ss:$16 sps:$4 sm:$0xff]  }
 0x1dc   :  { %v1035_v32 = vpack.c.bf16 %v967_v19, %v963_v18  ;;  %v648_v34 = vpop.f32.mrb[60].mxu0  ;;  %v952_v16 = vmax.f32 %v816_v61, 0.0 }
 0x1dd   :  { %v649_v37 = vadd.f32 %v648_v34, %v5623_v24  ;;  %v650_v38 = vpop.f32.mrb[61].mxu0  ;;  %v953_v17 = vmax.f32 %v818_v11, 0.0 }
 0x1de   :  { %v651_v42 = vadd.f32 %v650_v38, %v5627_v25  ;;  %v652_v45 = vpop.f32.mrb[62].mxu0  ;;  %1610 = vmatprep.mubr.bf16.mxu0 %v1035_v32  ;;  %v5805_v19 = vpack.c.bf16 %v952_v16, %v948_v60  ;;  %v5000_v38 = vld [vmem:[#allocation10 + $0x24] ss:$16 sps:$4 sm:$0xff]  }
 0x1df   :  { %v653_v51 = vadd.f32 %v652_v45, %v5623_v24  ;;  %v654_v53 = vpop.f32.mrb[63].mxu0  ;;  %1611 = vmatmul.mubr.bf16.gmra.mrb[120].mxu0 %v1034_v28  ;;  %v970_v63 = vmax.f32 %v649_v37, 0.0  ;;  %v5807_v26 = vpack.c.bf16 %v953_v17, %v949_v8  ;;  %v4998_v37 = vld [vmem:[#allocation10 + $0x20] ss:$16 sps:$4 sm:$0xff]   ;;  %2504 = vmatprep.subr.bf16.mxu1 %v5000_v38 }
 0x1e0   :  { %v655_v59 = vadd.f32 %v654_v53, %v5627_v25  ;;  %v971_v12 = vmax.f32 %v651_v42, 0.0  ;;  %v821_v25 = vpop.f32.mrb[52].mxu1  ;;  %2505 = vmatpush1.bf16.msra.mxu1 %v4998_v37 }
 0x1e1   :  { %v974_v6 = vmax.f32 %v653_v51, 0.0  ;;  %v822_v28 = vadd.f32 %v821_v25, %v5646_v13  ;;  %v823_v30 = vpop.f32.mrb[53].mxu1  ;;  %2506 = vmatprep.subr.bf16.mxu1 %v5003_v47  ;;  %v5015_v47 = vld [vmem:[#allocation10 + $0xc4] ss:$16 sps:$4 sm:$0xff]  }
 0x1e2   :  { %v975_v14 = vmax.f32 %v655_v59, 0.0  ;;  %v824_v32 = vadd.f32 %v823_v30, %v5651_v15  ;;  %v825_v34 = vpop.f32.mrb[54].mxu1  ;;  %v5006_v59 = vld [vmem:[#allocation10 + $0x64] ss:$16 sps:$4 sm:$0xff]  }
 0x1e3   :  { %v1038_v24 = vpack.c.bf16 %v974_v6, %v970_v63  ;;  %v956_v41 = vmax.f32 %v822_v28, 0.0  ;;  %v826_v42 = vadd.f32 %v825_v34, %v5646_v13  ;;  %v827_v45 = vpop.f32.mrb[55].mxu1  ;;  %v5004_v6 = vld [vmem:[#allocation10 + $0x60] ss:$16 sps:$4 sm:$0xff]  }
 0x1e4   :  { %v1039_v18 = vpack.c.bf16 %v975_v14, %v971_v12  ;;  %v957_v49 = vmax.f32 %v824_v32, 0.0  ;;  %v828_v51 = vadd.f32 %v827_v45, %v5651_v15  ;;  %2507 = vmatpush1.bf16.msra.mxu1 %v5001_v55  ;;  %v5009_v12 = vld [vmem:[#allocation10 + $0x84] ss:$16 sps:$4 sm:$0xff]   ;;  %v5007_v28 = vld [vmem:[#allocation10 + $0x80] ss:$16 sps:$4 sm:$0xff]  }
 0x1e5   :  { %v960_v53 = vmax.f32 %v826_v42, 0.0  ;;  %2508 = vmatprep.subr.bf16.mxu1 %v5006_v59 }
 0x1e6   :  { %1620 = vmatprep.mubr.bf16.mxu0 %v1039_v18  ;;  %v961_v57 = vmax.f32 %v828_v51, 0.0 }
 0x1e7   :  { %1621 = vmatmul.mubr.bf16.gmra.mrb[124].mxu0 %v1038_v24  ;;  %v5814_v60 = vpack.c.bf16 %v960_v53, %v956_v41 }
 0x1e8   :  { %1663 = vmatprep.mubr.bf16.mxu0 %v5664_v58  ;;  %v5816_v61 = vpack.c.bf16 %v961_v57, %v957_v49  ;;  %v831_v58 = vpop.f32.mrb[56].mxu1  ;;  %2509 = vmatpush1.bf16.msra.mxu1 %v5004_v6 }
 0x1e9   :  { %v832_v62 = vadd.f32 %v831_v58, %v5646_v13  ;;  %v833_v63 = vpop.f32.mrb[57].mxu1  ;;  %2510 = vmatprep.subr.bf16.mxu1 %v5009_v12  ;;  %v5013_v58 = vld [vmem:[#allocation10 + $0xc0] ss:$16 sps:$4 sm:$0xff]  }
 0x1ea   :  { %v834_v8 = vadd.f32 %v833_v63, %v5651_v15  ;;  %v835_v11 = vpop.f32.mrb[58].mxu1 }
 0x1eb   :  { %v964_v14 = vmax.f32 %v832_v62, 0.0  ;;  %v836_v16 = vadd.f32 %v835_v11, %v5646_v13  ;;  %v837_v24 = vpop.f32.mrb[59].mxu1 }
 0x1ec   :  { %v965_v17 = vmax.f32 %v834_v8, 0.0  ;;  %v838_v18 = vadd.f32 %v837_v24, %v5651_v15  ;;  %v841_v37 = vpop.f32.mrb[60].mxu1  ;;  %2511 = vmatpush1.bf16.msra.mxu1 %v5007_v28  ;;  %v4295_v8 = vld [vmem:[#allocation5] sm:$0xff]  }
 0x1ed   :  { %v968_v25 = vmax.f32 %v836_v16, 0.0  ;;  %v842_v38 = vadd.f32 %v841_v37, %v5646_v13  ;;  %v843_v41 = vpop.f32.mrb[61].mxu1 }
 0x1ee   :  { %v969_v30 = vmax.f32 %v838_v18, 0.0  ;;  %v844_v42 = vadd.f32 %v843_v41, %v5651_v15  ;;  %v845_v45 = vpop.f32.mrb[62].mxu1  ;;  %v4296_v18 = vunpack.c.l.bf16 %v4295_v8 }
 0x1ef   :  { %1664 = vmatmul.mubr.bf16.vlgmr.msra.gmra.mrb[64].mxu0 %v5661_v54  ;;  %v5012_v54 = vld [vmem:[#allocation10 + $0xa4] ss:$16 sps:$4 sm:$0xff]   ;;  %v1036_v32 = vpack.c.bf16 %v968_v25, %v964_v14  ;;  %v972_v49 = vmax.f32 %v842_v38, 0.0  ;;  %v846_v51 = vadd.f32 %v845_v45, %v5646_v13  ;;  %v847_v53 = vpop.f32.mrb[63].mxu1  ;;  %v5016_v13 = vld [vmem:[#allocation10 + $0xe0] ss:$16 sps:$4 sm:$0xff]  }
 0x1f0   :  { %1673 = vmatprep.mubr.bf16.mxu0 %v5676_v36  ;;  %v1037_v34 = vpack.c.bf16 %v969_v30, %v965_v17  ;;  %v5010_v36 = vld [vmem:[#allocation10 + $0xa0] ss:$16 sps:$4 sm:$0xff]   ;;  %2512 = vmatprep.subr.bf16.mxu1 %v5012_v54  ;;  %v973_v55 = vmax.f32 %v844_v42, 0.0  ;;  %v848_v57 = vadd.f32 %v847_v53, %v5651_v15  ;;  %v5018_v15 = vld [vmem:[#allocation10 + $0xe4] ss:$16 sps:$4 sm:$0xff]   ;;  %v4297_v30 = vunpack.c.h.bf16 %v4295_v8  ;;  %v4438_v53 = vld [vmem:[#allocation5 + $0x8] sm:$0xff]  }
 0x1f1   :  { %v976_v59 = vmax.f32 %v846_v51, 0.0  ;;  %2513 = vmatpush1.bf16.msra.mxu1 %v5010_v36 }
 0x1f2   :  { %v977_v62 = vmax.f32 %v848_v57, 0.0  ;;  %2514 = vmatprep.subr.bf16.mxu1 %v5015_v47 }
 0x1f4   :  { %v1041_v63 = vpack.c.bf16 %v977_v62, %v973_v55 }
 0x1f5   :  { %2515 = vmatpush1.bf16.msra.mxu1 %v5013_v58 }
 0x1f6   :  { %2516 = vmatprep.subr.bf16.mxu1 %v5018_v15 }
 0x1f7   :  { %1674 = vmatmul.mubr.bf16.gmra.mrb[68].mxu0 %v5673_v22  ;;  %v1040_v22 = vpack.c.bf16 %v976_v59, %v972_v49 }
 0x1f8   :  { %1683 = vmatprep.mubr.bf16.mxu0 %v5688_v9  ;;  %v1106_v9 = vld [vmem:[%s6452_s5] sm:$0x3] }
 0x1f9   :  { %2517 = vmatpush1.bf16.msra.mxu1 %v5016_v13 }
 0x1ff   :  { %1684 = vmatmul.mubr.bf16.gmra.mrb[72].mxu0 %v5685_v4  ;;  %v5021_v4 = vld [vmem:[#allocation10 + $0xc] ss:$16 sps:$4 sm:$0xff]  }
 0x200   :  { %1693 = vmatprep.mubr.bf16.mxu0 %v5700_v50  ;;  %2695 = vmatprep.subr.bf16.mxu1 %v5021_v4  ;;  %v5860_v50 = vrot.slane %v1106_v9, %v5619_v23  ;;  %v5019_v4 = vld [vmem:[#allocation10 + $0x8] ss:$16 sps:$4 sm:$0xff]  }
 0x207   :  { %1694 = vmatmul.mubr.bf16.gmra.mrb[76].mxu0 %v5697_v46  ;;  %v5857_v46 = vrot.slane %v1106_v9, %v5611_v21 }
 0x208   :  { %1703 = vmatprep.mubr.bf16.mxu0 %v5712_v33 }
 0x20f   :  { %1704 = vmatmul.mubr.bf16.gmra.mrb[80].mxu0 %v5709_v29 }
 0x210   :  { %1713 = vmatprep.mubr.bf16.mxu0 %v5724_v7 }
 0x217   :  { %1714 = vmatmul.mubr.bf16.gmra.mrb[84].mxu0 %v5721_v1 }
 0x218   :  { %1723 = vmatprep.mubr.bf16.mxu0 %v5736_v48 }
 0x21f   :  { %1724 = vmatmul.mubr.bf16.gmra.mrb[88].mxu0 %v5733_v44 }
 0x220   :  { %1733 = vmatprep.mubr.bf16.mxu0 %v5748_v31 }
 0x227   :  { %1734 = vmatmul.mubr.bf16.gmra.mrb[92].mxu0 %v5745_v27 }
 0x228   :  { %1743 = vmatprep.mubr.bf16.mxu0 %v5760_v10 }
 0x22f   :  { %1744 = vmatmul.mubr.bf16.gmra.mrb[96].mxu0 %v5757_v3 }
 0x230   :  { %1753 = vmatprep.mubr.bf16.mxu0 %v5772_v56 }
 0x237   :  { %1754 = vmatmul.mubr.bf16.gmra.mrb[100].mxu0 %v5769_v52 }
 0x238   :  { %1763 = vmatprep.mubr.bf16.mxu0 %v5784_v43 }
 0x23f   :  { %1764 = vmatmul.mubr.bf16.gmra.mrb[104].mxu0 %v5781_v40 }
 0x240   :  { %1773 = vmatprep.mubr.bf16.mxu0 %v5796_v39 }
 0x247   :  { %1774 = vmatmul.mubr.bf16.gmra.mrb[108].mxu0 %v5793_v35 }
 0x248   :  { %1783 = vmatprep.mubr.bf16.mxu0 %v5807_v26 }
 0x24f   :  { %1784 = vmatmul.mubr.bf16.gmra.mrb[112].mxu0 %v5805_v19 }
 0x250   :  { %1793 = vmatprep.mubr.bf16.mxu0 %v5816_v61 }
 0x257   :  { %1794 = vmatmul.mubr.bf16.gmra.mrb[116].mxu0 %v5814_v60 }
 0x258   :  { %1803 = vmatprep.mubr.bf16.mxu0 %v1037_v34 }
 0x25f   :  { %1804 = vmatmul.mubr.bf16.gmra.mrb[120].mxu0 %v1036_v32 }
 0x260   :  { %1813 = vmatprep.mubr.bf16.mxu0 %v1041_v63  ;;  %v4300_v63 = vunpack.c.l.bf16 %v4438_v53 }
 0x267   :  { %1814 = vmatmul.mubr.bf16.gmra.mrb[124].mxu0 %v1040_v22 }
 0x2c2   :  { %v1665_v29 = vpop.f32.mrb[64].mxu0 }
 0x2c3   :  { %v4692_v33 = vadd.f32 %v1665_v29, %v5857_v46  ;;  %v1667_v1 = vpop.f32.mrb[65].mxu0 }
 0x2c4   :  { %v4693_v7 = vadd.f32 %v1667_v1, %v5860_v50  ;;  %v1669_v44 = vpop.f32.mrb[66].mxu0 }
 0x2c5   :  { %v4694_v48 = vadd.f32 %v1669_v44, %v5857_v46  ;;  %v1671_v27 = vpop.f32.mrb[67].mxu0 }
 0x2c6   :  { %v4230_v31 = vpack.c.bf16 %v4693_v7, %v4692_v33  ;;  %v2112_v3 = vmul.f32 0.5, %v4693_v7  ;;  %v4695_v10 = vadd.f32 %v1671_v27, %v5860_v50  ;;  %v4301_v7 = vunpack.c.h.bf16 %v4438_v53  ;;  %v4440_v53 = vld [vmem:[#allocation5 + $0x18] sm:$0xff]  }
 0x2c8   :  { %2016 = vst [vmem:[#allocation14] sm:$0xff] %v4230_v31  ;;  %v2144_v52 = vmul.f32 1.442695, %v2112_v3  ;;  %v4231_v56 = vpack.c.bf16 %v4695_v10, %v4694_v48  ;;  %v2113_v40 = vmul.f32 0.5, %v4695_v10 }
 0x2ca   :  { %5075 = vpow2.f32 %v2144_v52  ;;  %2017 = vst [vmem:[#allocation14 + $0x8] sm:$0xff] %v4231_v56  ;;  %v2146_v43 = vmul.f32 1.442695, %v2113_v40  ;;  %v1675_v35 = vpop.f32.mrb[68].mxu0 }
 0x2cb   :  { %v5867_v39 = vadd.f32 %v1675_v35, %v5857_v46  ;;  %v1677_v19 = vpop.f32.mrb[69].mxu0  ;;  %v5022_v35 = vld [vmem:[#allocation10 + $0x28] ss:$16 sps:$4 sm:$0xff]  }
 0x2cc   :  { %5077 = vpow2.f32 %v2146_v43  ;;  %v4697_v26 = vadd.f32 %v1677_v19, %v5860_v50  ;;  %v1679_v60 = vpop.f32.mrb[70].mxu0  ;;  %v4439_v19 = vld [vmem:[#allocation5 + $0x10] sm:$0xff]  }
 0x2cd   :  { %v5871_v61 = vadd.f32 %v1679_v60, %v5857_v46  ;;  %v1681_v6 = vpop.f32.mrb[71].mxu0 }
 0x2ce   :  { %v4232_v11 = vpack.c.bf16 %v4697_v26, %v5867_v39  ;;  %v2114_v12 = vmul.f32 0.5, %v4697_v26  ;;  %v4699_v14 = vadd.f32 %v1681_v6, %v5860_v50  ;;  %v5027_v6 = vld [vmem:[#allocation10 + $0x4c] ss:$16 sps:$4 sm:$0xff]  }
 0x2d0   :  { %2018 = vst [vmem:[#allocation14 + $0x10] sm:$0xff] %v4232_v11  ;;  %v2148_v16 = vmul.f32 1.442695, %v2114_v12  ;;  %v4233_v24 = vpack.c.bf16 %v4699_v14, %v5871_v61  ;;  %v2115_v17 = vmul.f32 0.5, %v4699_v14 }
 0x2d2   :  { %5079 = vpow2.f32 %v2148_v16  ;;  %2019 = vst [vmem:[#allocation14 + $0x18] sm:$0xff] %v4233_v24  ;;  %v2150_v25 = vmul.f32 1.442695, %v2115_v17  ;;  %v1685_v28 = vpop.f32.mrb[72].mxu0  ;;  %v4304_v16 = vunpack.c.l.bf16 %v4439_v19 }
 0x2d3   :  { %v5877_v54 = vadd.f32 %v1685_v28, %v5857_v46  ;;  %v1687_v32 = vpop.f32.mrb[73].mxu0 }
 0x2d4   :  { %v5076_v34 = vpop.eup %5075  ;;  %5081 = vpow2.f32 %v2150_v25  ;;  %v4701_v37 = vadd.f32 %v1687_v32, %v5860_v50  ;;  %v1689_v38 = vpop.f32.mrb[74].mxu0  ;;  %v5030_v32 = vld [vmem:[#allocation10 + $0x6c] ss:$16 sps:$4 sm:$0xff]  }
 0x2d5   :  { %v2208_v41 = vmul.f32 %v5076_v34, %v4296_v18  ;;  %v5881_v36 = vadd.f32 %v1689_v38, %v5857_v46  ;;  %v1691_v42 = vpop.f32.mrb[75].mxu0  ;;  %v5025_v18 = vld [vmem:[#allocation10 + $0x48] ss:$16 sps:$4 sm:$0xff]  }
 0x2d6   :  { %v5078_v45 = vpop.eup %5077  ;;  %v4234_v47 = vpack.c.bf16 %v4701_v37, %v5877_v54  ;;  %v2116_v49 = vmul.f32 0.5, %v4701_v37  ;;  %v4703_v51 = vadd.f32 %v1691_v42, %v5860_v50 }
 0x2d7   :  { %v2209_v55 = vmul.f32 %v5078_v45, %v4297_v30  ;;  %v2240_v57 = vadd.f32 %v4692_v33, %v2208_v41  ;;  %v5024_v33 = vld [vmem:[#allocation10 + $0x2c] ss:$16 sps:$4 sm:$0xff]   ;;  %v4305_v30 = vunpack.c.h.bf16 %v4439_v19 }
 0x2d8   :  { %2020 = vst [vmem:[#allocation14 + $0x20] sm:$0xff] %v4234_v47  ;;  %v2152_v59 = vmul.f32 1.442695, %v2116_v49  ;;  %v4235_v58 = vpack.c.bf16 %v4703_v51, %v5881_v36  ;;  %v2117_v62 = vmul.f32 0.5, %v4703_v51 }
 0x2d9   :  { %v2241_v22 = vadd.f32 %v4694_v48, %v2209_v55  ;;  %v5028_v55 = vld [vmem:[#allocation10 + $0x68] ss:$16 sps:$4 sm:$0xff]  }
 0x2da   :  { %5083 = vpow2.f32 %v2152_v59  ;;  %2021 = vst [vmem:[#allocation14 + $0x28] sm:$0xff] %v4235_v58  ;;  %v2154_v13 = vmul.f32 1.442695, %v2117_v62  ;;  %v1695_v15 = vpop.f32.mrb[76].mxu0  ;;  %v5033_v58 = vld [vmem:[#allocation10 + $0x8c] ss:$16 sps:$4 sm:$0xff]  }
 0x2db   :  { %v5887_v9 = vadd.f32 %v1695_v15, %v5857_v46  ;;  %v1697_v29 = vpop.f32.mrb[77].mxu0  ;;  %v5889_v1 = vpack.c.bf16 %v2241_v22, %v2240_v57  ;;  %v4308_v15 = vunpack.c.l.bf16 %v4440_v53 }
 0x2dc   :  { %v5080_v44 = vpop.eup %5079  ;;  %5085 = vpow2.f32 %v2154_v13  ;;  %v4705_v27 = vadd.f32 %v1697_v29, %v5860_v50  ;;  %v1699_v31 = vpop.f32.mrb[78].mxu0 }
 0x2dd   :  { %v5893_v48 = vadd.f32 %v1699_v31, %v5857_v46  ;;  %v1701_v3 = vpop.f32.mrb[79].mxu0  ;;  %2535 = vmatmul.mubr.bf16.vlgmr.msra.gmra.mrb[64].mxu1 %v5889_v1  ;;  %v2210_v10 = vmul.f32 %v5080_v44, %v4300_v63  ;;  %v5036_v31 = vld [vmem:[#allocation10 + $0xac] ss:$16 sps:$4 sm:$0xff]  }
 0x2de   :  { %v5082_v52 = vpop.eup %5081  ;;  %v4236_v56 = vpack.c.bf16 %v4705_v27, %v5887_v9  ;;  %v2118_v40 = vmul.f32 0.5, %v4705_v27  ;;  %v4707_v43 = vadd.f32 %v1701_v3, %v5860_v50  ;;  %2696 = vmatpush1.bf16.msra.mxu1 %v5019_v4  ;;  %2544 = vmatprep.mubr.bf16.mxu1 %v5403_v0  ;;  %v4309_v27 = vunpack.c.h.bf16 %v4440_v53 }
 0x2df   :  { %v2211_v26 = vmul.f32 %v5082_v52, %v4301_v7  ;;  %v2242_v60 = vadd.f32 %v5867_v39, %v2210_v10  ;;  %2697 = vmatprep.subr.bf16.mxu1 %v5024_v33  ;;  %v5031_v7 = vld [vmem:[#allocation10 + $0x88] ss:$16 sps:$4 sm:$0xff]  }
 0x2e0   :  { %2022 = vst [vmem:[#allocation14 + $0x30] sm:$0xff] %v4236_v56  ;;  %v2156_v8 = vmul.f32 1.442695, %v2118_v40  ;;  %v4237_v11 = vpack.c.bf16 %v4707_v43, %v5893_v48  ;;  %v2119_v12 = vmul.f32 0.5, %v4707_v43 }
 0x2e1   :  { %v2243_v14 = vadd.f32 %v5871_v61, %v2211_v26 }
 0x2e2   :  { %5087 = vpow2.f32 %v2156_v8  ;;  %2023 = vst [vmem:[#allocation14 + $0x38] sm:$0xff] %v4237_v11  ;;  %v2158_v24 = vmul.f32 1.442695, %v2119_v12  ;;  %v1705_v17 = vpop.f32.mrb[80].mxu0  ;;  %2698 = vmatpush1.bf16.msra.mxu1 %v5022_v35  ;;  %v5039_v12 = vld [vmem:[#allocation10 + $0xcc] ss:$16 sps:$4 sm:$0xff]  }
 0x2e3   :  { %v5903_v25 = vadd.f32 %v1705_v17, %v5857_v46  ;;  %v1707_v39 = vpop.f32.mrb[81].mxu0  ;;  %v5905_v28 = vpack.c.bf16 %v2243_v14, %v2242_v60  ;;  %2699 = vmatprep.subr.bf16.mxu1 %v5027_v6  ;;  %v4441_v60 = vld [vmem:[#allocation5 + $0x20] sm:$0xff]   ;;  %v5034_v6 = vld [vmem:[#allocation10 + $0xa8] ss:$16 sps:$4 sm:$0xff]  }
 0x2e4   :  { %v5084_v34 = vpop.eup %5083  ;;  %5089 = vpow2.f32 %v2158_v24  ;;  %v4709_v61 = vadd.f32 %v1707_v39, %v5860_v50  ;;  %v1709_v37 = vpop.f32.mrb[82].mxu0 }
 0x2e5   :  { %v5909_v38 = vadd.f32 %v1709_v37, %v5857_v46  ;;  %v1711_v41 = vpop.f32.mrb[83].mxu0  ;;  %2545 = vmatmul.mubr.bf16.gmra.mrb[68].mxu1 %v5905_v28  ;;  %v2212_v42 = vmul.f32 %v5084_v34, %v4304_v16  ;;  %v4313_v37 = vunpack.c.h.bf16 %v4441_v60 }
 0x2e6   :  { %v5086_v45 = vpop.eup %5085  ;;  %v4238_v47 = vpack.c.bf16 %v4709_v61, %v5903_v25  ;;  %v2120_v49 = vmul.f32 0.5, %v4709_v61  ;;  %v4711_v51 = vadd.f32 %v1711_v41, %v5860_v50  ;;  %2554 = vmatprep.mubr.bf16.mxu1 %v5403_v0  ;;  %2700 = vmatpush1.bf16.msra.mxu1 %v5025_v18  ;;  %v4312_v18 = vunpack.c.l.bf16 %v4441_v60  ;;  %v5042_v41 = vld [vmem:[#allocation10 + $0xec] ss:$16 sps:$4 sm:$0xff]  }
 0x2e7   :  { %v2213_v57 = vmul.f32 %v5086_v45, %v4305_v30  ;;  %v2244_v59 = vadd.f32 %v5877_v54, %v2212_v42  ;;  %2701 = vmatprep.subr.bf16.mxu1 %v5030_v32  ;;  %v5037_v32 = vld [vmem:[#allocation10 + $0xc8] ss:$16 sps:$4 sm:$0xff]  }
 0x2e8   :  { %2024 = vst [vmem:[#allocation14 + $0x40] sm:$0xff] %v4238_v47  ;;  %v2160_v62 = vmul.f32 1.442695, %v2120_v49  ;;  %v4239_v22 = vpack.c.bf16 %v4711_v51, %v5909_v38  ;;  %v2121_v63 = vmul.f32 0.5, %v4711_v51 }
 0x2e9   :  { %v2245_v13 = vadd.f32 %v5881_v36, %v2213_v57 }
 0x2ea   :  { %5091 = vpow2.f32 %v2160_v62  ;;  %2025 = vst [vmem:[#allocation14 + $0x48] sm:$0xff] %v4239_v22  ;;  %v2162_v4 = vmul.f32 1.442695, %v2121_v63  ;;  %v1715_v29 = vpop.f32.mrb[84].mxu0  ;;  %2702 = vmatpush1.bf16.msra.mxu1 %v5028_v55  ;;  %v5040_v62 = vld [vmem:[#allocation10 + $0xe8] ss:$16 sps:$4 sm:$0xff]  }
 0x2eb   :  { %v5919_v33 = vadd.f32 %v1715_v29, %v5857_v46  ;;  %v1717_v54 = vpop.f32.mrb[85].mxu0  ;;  %v5921_v44 = vpack.c.bf16 %v2245_v13, %v2244_v59  ;;  %2703 = vmatprep.subr.bf16.mxu1 %v5033_v58  ;;  %v4442_v58 = vld [vmem:[#allocation5 + $0x28] sm:$0xff]  }
 0x2ec   :  { %v5088_v3 = vpop.eup %5087  ;;  %5093 = vpow2.f32 %v2162_v4  ;;  %v4713_v36 = vadd.f32 %v1717_v54, %v5860_v50  ;;  %v1719_v10 = vpop.f32.mrb[86].mxu0 }
 0x2ed   :  { %v5925_v52 = vadd.f32 %v1719_v10, %v5857_v46  ;;  %v1721_v56 = vpop.f32.mrb[87].mxu0  ;;  %2555 = vmatmul.mubr.bf16.gmra.mrb[72].mxu1 %v5921_v44  ;;  %v2214_v40 = vmul.f32 %v5088_v3, %v4308_v15 }
 0x2ee   :  { %v5090_v43 = vpop.eup %5089  ;;  %v4240_v35 = vpack.c.bf16 %v4713_v36, %v5919_v33  ;;  %v2122_v19 = vmul.f32 0.5, %v4713_v36  ;;  %v4715_v26 = vadd.f32 %v1721_v56, %v5860_v50  ;;  %2564 = vmatprep.mubr.bf16.mxu1 %v5403_v0  ;;  %2704 = vmatpush1.bf16.msra.mxu1 %v5031_v7  ;;  %v4316_v7 = vunpack.c.l.bf16 %v4442_v58 }
 0x2ef   :  { %v2215_v8 = vmul.f32 %v5090_v43, %v4309_v27  ;;  %v2246_v11 = vadd.f32 %v5887_v9, %v2214_v40  ;;  %2705 = vmatprep.subr.bf16.mxu1 %v5036_v31 }
 0x2f0   :  { %2026 = vst [vmem:[#allocation14 + $0x50] sm:$0xff] %v4240_v35  ;;  %v2164_v14 = vmul.f32 1.442695, %v2122_v19  ;;  %v4241_v16 = vpack.c.bf16 %v4715_v26, %v5925_v52  ;;  %v2123_v24 = vmul.f32 0.5, %v4715_v26 }
 0x2f1   :  { %v2247_v17 = vadd.f32 %v5893_v48, %v2215_v8  ;;  %v4443_v8 = vld [vmem:[#allocation5 + $0x30] sm:$0xff]  }
 0x2f2   :  { %5095 = vpow2.f32 %v2164_v14  ;;  %2027 = vst [vmem:[#allocation14 + $0x58] sm:$0xff] %v4241_v16  ;;  %v2166_v39 = vmul.f32 1.442695, %v2123_v24  ;;  %v1725_v30 = vpop.f32.mrb[88].mxu0  ;;  %2706 = vmatpush1.bf16.msra.mxu1 %v5034_v6 }
 0x2f3   :  { %v5935_v34 = vadd.f32 %v1725_v30, %v5857_v46  ;;  %v1727_v9 = vpop.f32.mrb[89].mxu0  ;;  %v5937_v61 = vpack.c.bf16 %v2247_v17, %v2246_v11  ;;  %2707 = vmatprep.subr.bf16.mxu1 %v5039_v12 }
 0x2f4   :  { %v5092_v42 = vpop.eup %5091  ;;  %5097 = vpow2.f32 %v2166_v39  ;;  %v4717_v48 = vadd.f32 %v1727_v9, %v5860_v50  ;;  %v1729_v45 = vpop.f32.mrb[90].mxu0 }
 0x2f5   :  { %v5941_v47 = vadd.f32 %v1729_v45, %v5857_v46  ;;  %v1731_v49 = vpop.f32.mrb[91].mxu0  ;;  %2565 = vmatmul.mubr.bf16.gmra.mrb[76].mxu1 %v5937_v61  ;;  %v2216_v51 = vmul.f32 %v5092_v42, %v4312_v18  ;;  %v4320_v18 = vunpack.c.l.bf16 %v4443_v8 }
 0x2f6   :  { %v5094_v53 = vpop.eup %5093  ;;  %v4242_v55 = vpack.c.bf16 %v4717_v48, %v5935_v34  ;;  %v2124_v57 = vmul.f32 0.5, %v4717_v48  ;;  %v4719_v59 = vadd.f32 %v1731_v49, %v5860_v50  ;;  %2574 = vmatprep.mubr.bf16.mxu1 %v5403_v0  ;;  %2708 = vmatpush1.bf16.msra.mxu1 %v5037_v32 }
 0x2f7   :  { %v2217_v22 = vmul.f32 %v5094_v53, %v4313_v37  ;;  %v2248_v63 = vadd.f32 %v5903_v25, %v2216_v51  ;;  %2709 = vmatprep.subr.bf16.mxu1 %v5042_v41  ;;  %v4317_v25 = vunpack.c.h.bf16 %v4442_v58  ;;  %v4321_v41 = vunpack.c.h.bf16 %v4443_v8 }
 0x2f8   :  { %2028 = vst [vmem:[#allocation14 + $0x60] sm:$0xff] %v4242_v55  ;;  %v2168_v13 = vmul.f32 1.442695, %v2124_v57  ;;  %v4243_v15 = vpack.c.bf16 %v4719_v59, %v5941_v47  ;;  %v2125_v4 = vmul.f32 0.5, %v4719_v59  ;;  %v4444_v59 = vld [vmem:[#allocation5 + $0x38] sm:$0xff]  }
 0x2f9   :  { %v2249_v29 = vadd.f32 %v5909_v38, %v2217_v22 }
 0x2fa   :  { %5099 = vpow2.f32 %v2168_v13  ;;  %2029 = vst [vmem:[#allocation14 + $0x68] sm:$0xff] %v4243_v15  ;;  %v2170_v54 = vmul.f32 1.442695, %v2125_v4  ;;  %v1735_v27 = vpop.f32.mrb[92].mxu0  ;;  %2710 = vmatpush1.bf16.msra.mxu1 %v5040_v62  ;;  %v4324_v4 = vunpack.c.l.bf16 %v4444_v59 }
 0x2fb   :  { %v5951_v31 = vadd.f32 %v1735_v27, %v5857_v46  ;;  %v1737_v3 = vpop.f32.mrb[93].mxu0  ;;  %v5953_v36 = vpack.c.bf16 %v2249_v29, %v2248_v63 }
 0x2fc   :  { %v5096_v10 = vpop.eup %5095  ;;  %5101 = vpow2.f32 %v2170_v54  ;;  %v4721_v56 = vadd.f32 %v1737_v3, %v5860_v50  ;;  %v1739_v40 = vpop.f32.mrb[94].mxu0 }
 0x2fd   :  { %v5957_v38 = vadd.f32 %v1739_v40, %v5857_v46  ;;  %v1741_v43 = vpop.f32.mrb[95].mxu0  ;;  %2575 = vmatmul.mubr.bf16.gmra.mrb[80].mxu1 %v5953_v36  ;;  %v2218_v35 = vmul.f32 %v5096_v10, %v4316_v7 }
 0x2fe   :  { %v5098_v19 = vpop.eup %5097  ;;  %v4244_v26 = vpack.c.bf16 %v4721_v56, %v5951_v31  ;;  %v2126_v60 = vmul.f32 0.5, %v4721_v56  ;;  %v4723_v6 = vadd.f32 %v1741_v43, %v5860_v50  ;;  %2584 = vmatprep.mubr.bf16.mxu1 %v5403_v0 }
 0x2ff   :  { %v2219_v11 = vmul.f32 %v5098_v19, %v4317_v25  ;;  %v2250_v12 = vadd.f32 %v5919_v33, %v2218_v35  ;;  %v4325_v25 = vunpack.c.h.bf16 %v4444_v59 }
 0x300   :  { %2030 = vst [vmem:[#allocation14 + $0x70] sm:$0xff] %v4244_v26  ;;  %v2172_v14 = vmul.f32 1.442695, %v2126_v60  ;;  %v4245_v16 = vpack.c.bf16 %v4723_v6, %v5957_v38  ;;  %v2127_v24 = vmul.f32 0.5, %v4723_v6  ;;  %v4445_v6 = vld [vmem:[#allocation5 + $0x40] sm:$0xff]  }
 0x301   :  { %v2251_v17 = vadd.f32 %v5925_v52, %v2219_v11 }
 0x302   :  { %5103 = vpow2.f32 %v2172_v14  ;;  %2031 = vst [vmem:[#allocation14 + $0x78] sm:$0xff] %v4245_v16  ;;  %v2174_v39 = vmul.f32 1.442695, %v2127_v24  ;;  %v1745_v30 = vpop.f32.mrb[96].mxu0 }
 0x303   :  { %v5967_v32 = vadd.f32 %v1745_v30, %v5857_v46  ;;  %v1747_v9 = vpop.f32.mrb[97].mxu0  ;;  %v5969_v37 = vpack.c.bf16 %v2251_v17, %v2250_v12  ;;  %v4328_v17 = vunpack.c.l.bf16 %v4445_v6 }
 0x304   :  { %v5100_v33 = vpop.eup %5099  ;;  %5105 = vpow2.f32 %v2174_v39  ;;  %v4725_v42 = vadd.f32 %v1747_v9, %v5860_v50  ;;  %v1749_v48 = vpop.f32.mrb[98].mxu0 }
 0x305   :  { %v5973_v45 = vadd.f32 %v1749_v48, %v5857_v46  ;;  %v1751_v52 = vpop.f32.mrb[99].mxu0  ;;  %2585 = vmatmul.mubr.bf16.gmra.mrb[84].mxu1 %v5969_v37  ;;  %v2220_v49 = vmul.f32 %v5100_v33, %v4320_v18  ;;  %v4329_v33 = vunpack.c.h.bf16 %v4445_v6  ;;  %v5046_v6 = vld [vmem:[#allocation11 + $0x8] sm:$0xff]  }
 0x306   :  { %v5102_v51 = vpop.eup %5101  ;;  %v4246_v53 = vpack.c.bf16 %v4725_v42, %v5967_v32  ;;  %v2128_v55 = vmul.f32 0.5, %v4725_v42  ;;  %v4727_v57 = vadd.f32 %v1751_v52, %v5860_v50  ;;  %2594 = vmatprep.mubr.bf16.mxu1 %v5403_v0 }
 0x307   :  { %v2221_v58 = vmul.f32 %v5102_v51, %v4321_v41  ;;  %v2252_v62 = vadd.f32 %v5935_v34, %v2220_v49  ;;  %v5043_v51 = vld [vmem:[#allocation11 + $0x40] sm:$0xff]  }
 0x308   :  { %2032 = vst [vmem:[#allocation14 + $0x80] sm:$0xff] %v4246_v53  ;;  %v2176_v22 = vmul.f32 1.442695, %v2128_v55  ;;  %v4247_v63 = vpack.c.bf16 %v4727_v57, %v5973_v45  ;;  %v2129_v13 = vmul.f32 0.5, %v4727_v57  ;;  %4468 = vmatprep.subr.bf16.mxu0 %v5043_v51 }
 0x309   :  { %v2253_v15 = vadd.f32 %v5941_v47, %v2221_v58  ;;  %v4446_v58 = vld [vmem:[#allocation5 + $0x48] sm:$0xff]  }
 0x30a   :  { %5107 = vpow2.f32 %v2176_v22  ;;  %2033 = vst [vmem:[#allocation14 + $0x88] sm:$0xff] %v4247_v63  ;;  %v2178_v29 = vmul.f32 1.442695, %v2129_v13  ;;  %v1755_v7 = vpop.f32.mrb[100].mxu0 }
 0x30b   :  { %v5983_v54 = vadd.f32 %v1755_v7, %v5857_v46  ;;  %v1757_v27 = vpop.f32.mrb[101].mxu0  ;;  %v5985_v3 = vpack.c.bf16 %v2253_v15, %v2252_v62  ;;  %v5044_v62 = vld [vmem:[#allocation11] sm:$0xff]   ;;  %v4332_v7 = vunpack.c.l.bf16 %v4446_v58 }
 0x30c   :  { %v5104_v34 = vpop.eup %5103  ;;  %5109 = vpow2.f32 %v2178_v29  ;;  %v4729_v10 = vadd.f32 %v1757_v27, %v5860_v50  ;;  %v1759_v56 = vpop.f32.mrb[102].mxu0  ;;  %4469 = vmatpush3.bf16.msra.mxu0 %v5044_v62 }
 0x30d   :  { %v5989_v40 = vadd.f32 %v1759_v56, %v5857_v46  ;;  %v1761_v47 = vpop.f32.mrb[103].mxu0  ;;  %2595 = vmatmul.mubr.bf16.gmra.mrb[88].mxu1 %v5985_v3  ;;  %v2222_v43 = vmul.f32 %v5104_v34, %v4324_v4 }
 0x30e   :  { %v5106_v35 = vpop.eup %5105  ;;  %v4248_v19 = vpack.c.bf16 %v4729_v10, %v5983_v54  ;;  %v2130_v26 = vmul.f32 0.5, %v4729_v10  ;;  %v4731_v60 = vadd.f32 %v1761_v47, %v5860_v50  ;;  %2604 = vmatprep.mubr.bf16.mxu1 %v5403_v0 }
 0x30f   :  { %v2223_v8 = vmul.f32 %v5106_v35, %v4325_v25  ;;  %v2254_v11 = vadd.f32 %v5951_v31, %v2222_v43 }
 0x310   :  { %2034 = vst [vmem:[#allocation14 + $0x90] sm:$0xff] %v4248_v19  ;;  %v2180_v12 = vmul.f32 1.442695, %v2130_v26  ;;  %v4249_v14 = vpack.c.bf16 %v4731_v60, %v5989_v40  ;;  %v2131_v16 = vmul.f32 0.5, %v4731_v60  ;;  %v5045_v60 = vld [vmem:[#allocation11 + $0x48] sm:$0xff]  }
 0x311   :  { %v2255_v24 = vadd.f32 %v5957_v38, %v2223_v8  ;;  %v5047_v8 = vld [vmem:[#allocation11 + $0x50] sm:$0xff]   ;;  %4470 = vmatprep.subr.bf16.mxu0 %v5045_v60 }
 0x312   :  { %5111 = vpow2.f32 %v2180_v12  ;;  %2035 = vst [vmem:[#allocation14 + $0x98] sm:$0xff] %v4249_v14  ;;  %v2182_v18 = vmul.f32 1.442695, %v2131_v16  ;;  %v1765_v39 = vpop.f32.mrb[104].mxu0  ;;  %4471 = vmatpush3.bf16.msra.mxu0 %v5046_v6 }
 0x313   :  { %v5999_v30 = vadd.f32 %v1765_v39, %v5857_v46  ;;  %v1767_v9 = vpop.f32.mrb[105].mxu0  ;;  %v6001_v41 = vpack.c.bf16 %v2255_v24, %v2254_v11  ;;  %v4447_v24 = vld [vmem:[#allocation5 + $0x50] sm:$0xff]   ;;  %4472 = vmatprep.subr.bf16.mxu0 %v5047_v8 }
 0x314   :  { %v5108_v31 = vpop.eup %5107  ;;  %5113 = vpow2.f32 %v2182_v18  ;;  %v4733_v42 = vadd.f32 %v1767_v9, %v5860_v50  ;;  %v1769_v48 = vpop.f32.mrb[106].mxu0 }
 0x315   :  { %v6005_v52 = vadd.f32 %v1769_v48, %v5857_v46  ;;  %v1771_v38 = vpop.f32.mrb[107].mxu0  ;;  %2605 = vmatmul.mubr.bf16.gmra.mrb[92].mxu1 %v6001_v41  ;;  %v2224_v49 = vmul.f32 %v5108_v31, %v4328_v17  ;;  %v5048_v31 = vld [vmem:[#allocation11 + $0x10] sm:$0xff]   ;;  %v4336_v48 = vunpack.c.l.bf16 %v4447_v24 }
 0x316   :  { %v5110_v53 = vpop.eup %5109  ;;  %v4250_v55 = vpack.c.bf16 %v4733_v42, %v5999_v30  ;;  %v2132_v57 = vmul.f32 0.5, %v4733_v42  ;;  %v4735_v59 = vadd.f32 %v1771_v38, %v5860_v50  ;;  %2614 = vmatprep.mubr.bf16.mxu1 %v5403_v0  ;;  %4473 = vmatpush3.bf16.msra.mxu0 %v5048_v31 }
 0x317   :  { %v2225_v22 = vmul.f32 %v5110_v53, %v4329_v33  ;;  %v2256_v63 = vadd.f32 %v5967_v32, %v2224_v49  ;;  %v4333_v32 = vunpack.c.h.bf16 %v4446_v58 }
 0x318   :  { %2036 = vst [vmem:[#allocation14 + $0xa0] sm:$0xff] %v4250_v55  ;;  %v2184_v13 = vmul.f32 1.442695, %v2132_v57  ;;  %v4251_v15 = vpack.c.bf16 %v4735_v59, %v6005_v52  ;;  %v2133_v4 = vmul.f32 0.5, %v4735_v59  ;;  %v4337_v55 = vunpack.c.h.bf16 %v4447_v24 }
 0x319   :  { %v2257_v29 = vadd.f32 %v5973_v45, %v2225_v22 }
 0x31a   :  { %5115 = vpow2.f32 %v2184_v13  ;;  %2037 = vst [vmem:[#allocation14 + $0xa8] sm:$0xff] %v4251_v15  ;;  %v2186_v27 = vmul.f32 1.442695, %v2133_v4  ;;  %v1775_v25 = vpop.f32.mrb[108].mxu0  ;;  %v5050_v13 = vld [vmem:[#allocation11 + $0x18] sm:$0xff]   ;;  %v5051_v15 = vld [vmem:[#allocation11 + $0x60] sm:$0xff]  }
 0x31b   :  { %v6015_v34 = vadd.f32 %v1775_v25, %v5857_v46  ;;  %v1777_v10 = vpop.f32.mrb[109].mxu0  ;;  %v6017_v56 = vpack.c.bf16 %v2257_v29, %v2256_v63  ;;  %v5049_v63 = vld [vmem:[#allocation11 + $0x58] sm:$0xff]  }
 0x31c   :  { %v5112_v47 = vpop.eup %5111  ;;  %5117 = vpow2.f32 %v2186_v27  ;;  %v4737_v43 = vadd.f32 %v1777_v10, %v5860_v50  ;;  %v1779_v35 = vpop.f32.mrb[110].mxu0  ;;  %v4448_v25 = vld [vmem:[#allocation5 + $0x58] sm:$0xff]   ;;  %4474 = vmatprep.subr.bf16.mxu0 %v5049_v63  ;;  %v5055_v63 = vld [vmem:[#allocation11 + $0x70] sm:$0xff]  }
 0x31d   :  { %v6021_v19 = vadd.f32 %v1779_v35, %v5857_v46  ;;  %v1781_v45 = vpop.f32.mrb[111].mxu0  ;;  %2615 = vmatmul.mubr.bf16.gmra.mrb[96].mxu1 %v6017_v56  ;;  %v2226_v26 = vmul.f32 %v5112_v47, %v4332_v7  ;;  %4475 = vmatpush3.bf16.msra.mxu0 %v5050_v13  ;;  %v4340_v60 = vunpack.c.l.bf16 %v4448_v25 }
 0x31e   :  { %v5114_v11 = vpop.eup %5113  ;;  %v4252_v12 = vpack.c.bf16 %v4737_v43, %v6015_v34  ;;  %v2134_v14 = vmul.f32 0.5, %v4737_v43  ;;  %v4739_v16 = vadd.f32 %v1781_v45, %v5860_v50  ;;  %2624 = vmatprep.mubr.bf16.mxu1 %v5403_v0  ;;  %v5052_v45 = vld [vmem:[#allocation11 + $0x20] sm:$0xff]   ;;  %4476 = vmatprep.subr.bf16.mxu0 %v5051_v15 }
 0x31f   :  { %v2227_v17 = vmul.f32 %v5114_v11, %v4333_v32  ;;  %v2258_v18 = vadd.f32 %v5983_v54, %v2226_v26 }
 0x320   :  { %2038 = vst [vmem:[#allocation14 + $0xb0] sm:$0xff] %v4252_v12  ;;  %v2188_v39 = vmul.f32 1.442695, %v2134_v14  ;;  %v4253_v9 = vpack.c.bf16 %v4739_v16, %v6021_v19  ;;  %v2135_v33 = vmul.f32 0.5, %v4739_v16  ;;  %v4341_v14 = vunpack.c.h.bf16 %v4448_v25 }
 0x321   :  { %v2259_v42 = vadd.f32 %v5989_v40, %v2227_v17  ;;  %4477 = vmatpush3.bf16.msra.mxu0 %v5052_v45 }
 0x322   :  { %5119 = vpow2.f32 %v2188_v39  ;;  %2039 = vst [vmem:[#allocation14 + $0xb8] sm:$0xff] %v4253_v9  ;;  %v2190_v38 = vmul.f32 1.442695, %v2135_v33  ;;  %v1785_v49 = vpop.f32.mrb[112].mxu0  ;;  %v5053_v9 = vld [vmem:[#allocation11 + $0x68] sm:$0xff]  }
 0x323   :  { %v6031_v51 = vadd.f32 %v1785_v49, %v5857_v46  ;;  %v1787_v54 = vpop.f32.mrb[113].mxu0  ;;  %v6033_v53 = vpack.c.bf16 %v2259_v42, %v2258_v18  ;;  %v5054_v49 = vld [vmem:[#allocation11 + $0x28] sm:$0xff]   ;;  %4478 = vmatprep.subr.bf16.mxu0 %v5053_v9 }
 0x324   :  { %v5116_v57 = vpop.eup %5115  ;;  %5121 = vpow2.f32 %v2190_v38  ;;  %v4741_v59 = vadd.f32 %v1787_v54, %v5860_v50  ;;  %v1789_v58 = vpop.f32.mrb[114].mxu0  ;;  %v4449_v38 = vld [vmem:[#allocation5 + $0x60] sm:$0xff]  }
 0x325   :  { %v6037_v40 = vadd.f32 %v1789_v58, %v5857_v46  ;;  %v1791_v62 = vpop.f32.mrb[115].mxu0  ;;  %2625 = vmatmul.mubr.bf16.gmra.mrb[100].mxu1 %v6033_v53  ;;  %v2228_v22 = vmul.f32 %v5116_v57, %v4336_v48  ;;  %4479 = vmatpush3.bf16.msra.mxu0 %v5054_v49 }
 0x326   :  { %v5118_v4 = vpop.eup %5117  ;;  %v4254_v29 = vpack.c.bf16 %v4741_v59, %v6031_v51  ;;  %v2136_v7 = vmul.f32 0.5, %v4741_v59  ;;  %v4743_v27 = vadd.f32 %v1791_v62, %v5860_v50  ;;  %2634 = vmatprep.mubr.bf16.mxu1 %v5403_v0  ;;  %4480 = vmatprep.subr.bf16.mxu0 %v5055_v63 }
 0x327   :  { %v2229_v10 = vmul.f32 %v5118_v4, %v4337_v55  ;;  %v2260_v32 = vadd.f32 %v5999_v30, %v2228_v22  ;;  %v4344_v22 = vunpack.c.l.bf16 %v4449_v38  ;;  %v5056_v4 = vld [vmem:[#allocation11 + $0x30] sm:$0xff]  }
 0x328   :  { %2040 = vst [vmem:[#allocation14 + $0xc0] sm:$0xff] %v4254_v29  ;;  %v2192_v47 = vmul.f32 1.442695, %v2136_v7  ;;  %v4255_v43 = vpack.c.bf16 %v4743_v27, %v6037_v40  ;;  %v2137_v35 = vmul.f32 0.5, %v4743_v27  ;;  %v4345_v27 = vunpack.c.h.bf16 %v4449_v38 }
 0x329   :  { %v2261_v26 = vadd.f32 %v6005_v52, %v2229_v10  ;;  %4481 = vmatpush3.bf16.msra.mxu0 %v5056_v4 }
 0x32a   :  { %5123 = vpow2.f32 %v2192_v47  ;;  %2041 = vst [vmem:[#allocation14 + $0xc8] sm:$0xff] %v4255_v43  ;;  %v2194_v6 = vmul.f32 1.442695, %v2137_v35  ;;  %v1795_v8 = vpop.f32.mrb[116].mxu0  ;;  %v5057_v35 = vld [vmem:[#allocation11 + $0x78] sm:$0xff]  }
 0x32b   :  { %v6047_v11 = vadd.f32 %v1795_v8, %v5857_v46  ;;  %v1797_v30 = vpop.f32.mrb[117].mxu0  ;;  %v6049_v12 = vpack.c.bf16 %v2261_v26, %v2260_v32  ;;  %v4450_v8 = vld [vmem:[#allocation5 + $0x68] sm:$0xff]   ;;  %4482 = vmatprep.subr.bf16.mxu0 %v5057_v35 }
 0x32c   :  { %v5120_v16 = vpop.eup %5119  ;;  %5125 = vpow2.f32 %v2194_v6  ;;  %v4745_v24 = vadd.f32 %v1797_v30, %v5860_v50  ;;  %v1799_v17 = vpop.f32.mrb[118].mxu0  ;;  %v5058_v30 = vld [vmem:[#allocation11 + $0x38] sm:$0xff]   ;;  %v4348_v9 = vunpack.c.l.bf16 %v4450_v8 }
 0x32d   :  { %v6053_v52 = vadd.f32 %v1799_v17, %v5857_v46  ;;  %v1801_v18 = vpop.f32.mrb[119].mxu0  ;;  %2635 = vmatmul.mubr.bf16.gmra.mrb[104].mxu1 %v6049_v12  ;;  %v2230_v39 = vmul.f32 %v5120_v16, %v4340_v60  ;;  %4483 = vmatpush3.bf16.msra.mxu0 %v5058_v30 }
 0x32e   :  { %v5122_v33 = vpop.eup %5121  ;;  %v4256_v31 = vpack.c.bf16 %v4745_v24, %v6047_v11  ;;  %v2138_v42 = vmul.f32 0.5, %v4745_v24  ;;  %v4747_v48 = vadd.f32 %v1801_v18, %v5860_v50  ;;  %2644 = vmatprep.mubr.bf16.mxu1 %v5403_v0 }
 0x32f   :  { %v2231_v54 = vmul.f32 %v5122_v33, %v4341_v14  ;;  %v2262_v55 = vadd.f32 %v6015_v34, %v2230_v39 }
 0x330   :  { %2042 = vst [vmem:[#allocation14 + $0xd0] sm:$0xff] %v4256_v31  ;;  %v2196_v57 = vmul.f32 1.442695, %v2138_v42  ;;  %v4257_v59 = vpack.c.bf16 %v4747_v48, %v6053_v52  ;;  %v2139_v58 = vmul.f32 0.5, %v4747_v48 }
 0x331   :  { %v2263_v62 = vadd.f32 %v6021_v19, %v2231_v54 }
 0x332   :  { %5127 = vpow2.f32 %v2196_v57  ;;  %2043 = vst [vmem:[#allocation14 + $0xd8] sm:$0xff] %v4257_v59  ;;  %v2198_v13 = vmul.f32 1.442695, %v2139_v58  ;;  %v1805_v15 = vpop.f32.mrb[120].mxu0 }
 0x333   :  { %v6063_v29 = vadd.f32 %v1805_v15, %v5857_v46  ;;  %v1807_v34 = vpop.f32.mrb[121].mxu0  ;;  %v6065_v7 = vpack.c.bf16 %v2263_v62, %v2262_v55 }
 0x334   :  { %v5124_v25 = vpop.eup %5123  ;;  %5129 = vpow2.f32 %v2198_v13  ;;  %v4749_v10 = vadd.f32 %v1807_v34, %v5860_v50  ;;  %v1809_v19 = vpop.f32.mrb[122].mxu0  ;;  %v4451_v13 = vld [vmem:[#allocation5 + $0x70] sm:$0xff]   ;;  %v5059_v34 = vld [vmem:[#allocation11 + $0xc0] sm:$0xff]  }
 0x335   :  { %v6069_v32 = vadd.f32 %v1809_v19, %v5857_v46  ;;  %v1811_v47 = vpop.f32.mrb[123].mxu0  ;;  %2645 = vmatmul.mubr.bf16.gmra.mrb[108].mxu1 %v6065_v7  ;;  %v2232_v43 = vmul.f32 %v5124_v25, %v4344_v22  ;;  %v4352_v19 = vunpack.c.l.bf16 %v4451_v13  ;;  %4580 = vmatprep.subr.bf16.mxu1 %v5059_v34 }
 0x336   :  { %v5126_v45 = vpop.eup %5125  ;;  %v4258_v26 = vpack.c.bf16 %v4749_v10, %v6063_v29  ;;  %v2140_v60 = vmul.f32 0.5, %v4749_v10  ;;  %v4751_v6 = vadd.f32 %v1811_v47, %v5860_v50  ;;  %2654 = vmatprep.mubr.bf16.mxu1 %v5403_v0 }
 0x337   :  { %v2233_v14 = vmul.f32 %v5126_v45, %v4345_v27  ;;  %v2264_v16 = vadd.f32 %v6031_v51, %v2232_v43  ;;  %v4349_v51 = vunpack.c.h.bf16 %v4450_v8 }
 0x338   :  { %2044 = vst [vmem:[#allocation14 + $0xe0] sm:$0xff] %v4258_v26  ;;  %v2200_v24 = vmul.f32 1.442695, %v2140_v60  ;;  %v4259_v17 = vpack.c.bf16 %v4751_v6, %v6069_v32  ;;  %v2141_v18 = vmul.f32 0.5, %v4751_v6  ;;  %v4452_v26 = vld [vmem:[#allocation5 + $0x78] sm:$0xff]  }
 0x339   :  { %v2265_v39 = vadd.f32 %v6037_v40, %v2233_v14  ;;  %v4356_v8 = vunpack.c.l.bf16 %v4452_v26  ;;  %v4357_v14 = vunpack.c.h.bf16 %v4452_v26 }
 0x33a   :  { %5131 = vpow2.f32 %v2200_v24  ;;  %2045 = vst [vmem:[#allocation14 + $0xe8] sm:$0xff] %v4259_v17  ;;  %v2202_v33 = vmul.f32 1.442695, %v2141_v18  ;;  %v1815_v31 = vpop.f32.mrb[124].mxu0 }
 0x33b   :  { %v4752_v42 = vadd.f32 %v1815_v31, %v5857_v46  ;;  %v1817_v48 = vpop.f32.mrb[125].mxu0  ;;  %v6079_v38 = vpack.c.bf16 %v2265_v39, %v2264_v16  ;;  %v5062_v31 = vld [vmem:[#allocation11 + $0x88] sm:$0xff]  }
 0x33c   :  { %v5128_v49 = vpop.eup %5127  ;;  %5133 = vpow2.f32 %v2202_v33  ;;  %v4753_v54 = vadd.f32 %v1817_v48, %v5860_v50  ;;  %v1819_v55 = vpop.f32.mrb[126].mxu0  ;;  %v5063_v48 = vld [vmem:[#allocation11 + $0xd0] sm:$0xff]  }
 0x33d   :  { %v4754_v57 = vadd.f32 %v1819_v55, %v5857_v46  ;;  %v1821_v59 = vpop.f32.mrb[127].mxu0  ;;  %2655 = vmatmul.mubr.bf16.gmra.mrb[112].mxu1 %v6079_v38  ;;  %v2234_v40 = vmul.f32 %v5128_v49, %v4348_v9  ;;  %v5068_v49 = vld [vmem:[#allocation11 + $0xa0] sm:$0xff]   ;;  %v5074_v55 = vld [vmem:[#allocation11 + $0xb8] sm:$0xff]  }
 0x33e   :  { %v5130_v58 = vpop.eup %5129  ;;  %v4260_v62 = vpack.c.bf16 %v4753_v54, %v4752_v42  ;;  %v2142_v22 = vmul.f32 0.5, %v4753_v54  ;;  %v4755_v63 = vadd.f32 %v1821_v59, %v5860_v50  ;;  %2664 = vmatprep.mubr.bf16.mxu1 %v5403_v0  ;;  %v4353_v50 = vunpack.c.h.bf16 %v4451_v13 }
 0x33f   :  { %v2235_v15 = vmul.f32 %v5130_v58, %v4349_v51  ;;  %v2266_v4 = vadd.f32 %v6047_v11, %v2234_v40  ;;  %v5064_v51 = vld [vmem:[#allocation11 + $0x90] sm:$0xff]  }
 0x340   :  { %2046 = vst [vmem:[#allocation14 + $0xf0] sm:$0xff] %v4260_v62  ;;  %v2204_v27 = vmul.f32 1.442695, %v2142_v22  ;;  %v4261_v25 = vpack.c.bf16 %v4755_v63, %v4754_v57  ;;  %v2143_v46 = vmul.f32 0.5, %v4755_v63 }
 0x341   :  { %v2267_v10 = vadd.f32 %v6053_v52, %v2235_v15 }
 0x342   :  { %5135 = vpow2.f32 %v2204_v27  ;;  %2047 = vst [vmem:[#allocation14 + $0xf8] sm:$0xff] %v4261_v25  ;;  %v2206_v47 = vmul.f32 1.442695, %v2143_v46 }
 0x343   :  { %v6088_v43 = vpack.c.bf16 %v2267_v10, %v2266_v4 }
 0x344   :  { %v5132_v35 = vpop.eup %5131  ;;  %5137 = vpow2.f32 %v2206_v47 }
 0x345   :  { %2665 = vmatmul.mubr.bf16.gmra.mrb[116].mxu1 %v6088_v43  ;;  %v2236_v11 = vmul.f32 %v5132_v35, %v4352_v19 }
 0x346   :  { %v5134_v45 = vpop.eup %5133  ;;  %2674 = vmatprep.mubr.bf16.mxu1 %v5403_v0 }
 0x347   :  { %v2237_v60 = vmul.f32 %v5134_v45, %v4353_v50  ;;  %v2268_v52 = vadd.f32 %v6063_v29, %v2236_v11  ;;  %v5060_v29 = vld [vmem:[#allocation11 + $0x80] sm:$0xff]  }
 0x349   :  { %v2269_v6 = vadd.f32 %v6069_v32, %v2237_v60  ;;  %v5061_v32 = vld [vmem:[#allocation11 + $0xc8] sm:$0xff]  }
 0x34b   :  { %v6094_v30 = vpack.c.bf16 %v2269_v6, %v2268_v52 }
 0x34c   :  { %v5136_v16 = vpop.eup %5135 }
 0x34d   :  { %2675 = vmatmul.mubr.bf16.gmra.mrb[120].mxu1 %v6094_v30  ;;  %v2238_v24 = vmul.f32 %v5136_v16, %v4356_v8 }
 0x34e   :  { %v5138_v17 = vpop.eup %5137  ;;  %2684 = vmatprep.mubr.bf16.mxu1 %v5403_v0 }
 0x34f   :  { %v2239_v18 = vmul.f32 %v5138_v17, %v4357_v14  ;;  %v2270_v39 = vadd.f32 %v4752_v42, %v2238_v24  ;;  %v5065_v42 = vld [vmem:[#allocation11 + $0xd8] sm:$0xff]  }
 0x351   :  { %v2271_v9 = vadd.f32 %v4754_v57, %v2239_v18 }
 0x353   :  { %v6098_v33 = vpack.c.bf16 %v2271_v9, %v2270_v39 }
 0x355   :  { %2685 = vmatmul.mubr.bf16.gmra.mrb[124].mxu1 %v6098_v33 }
 0x356   :  { %2727 = vmatprep.mubr.bf16.mxu1 %v5403_v0 }
 0x35d   :  { %2728 = vmatmul.mubr.bf16.vlgmr.msra.gmra.mrb[128].mxu1 %v5889_v1  ;;  %v5066_v1 = vld [vmem:[#allocation11 + $0x98] sm:$0xff]  }
 0x35e   :  { %2737 = vmatprep.mubr.bf16.mxu1 %v5403_v0  ;;  %4581 = vmatpush3.bf16.msra.mxu1 %v5060_v29 }
 0x35f   :  { %4582 = vmatprep.subr.bf16.mxu1 %v5061_v32 }
 0x362   :  { %4583 = vmatpush3.bf16.msra.mxu1 %v5062_v31 }
 0x363   :  { %4584 = vmatprep.subr.bf16.mxu1 %v5063_v48 }
 0x365   :  { %2738 = vmatmul.mubr.bf16.gmra.mrb[132].mxu1 %v5905_v28  ;;  %v5067_v28 = vld [vmem:[#allocation11 + $0xe0] sm:$0xff]  }
 0x366   :  { %2747 = vmatprep.mubr.bf16.mxu1 %v5403_v0  ;;  %4585 = vmatpush3.bf16.msra.mxu1 %v5064_v51 }
 0x367   :  { %4586 = vmatprep.subr.bf16.mxu1 %v5065_v42 }
 0x36a   :  { %4587 = vmatpush3.bf16.msra.mxu1 %v5066_v1 }
 0x36b   :  { %4588 = vmatprep.subr.bf16.mxu1 %v5067_v28 }
 0x36d   :  { %2748 = vmatmul.mubr.bf16.gmra.mrb[136].mxu1 %v5921_v44  ;;  %v5069_v44 = vld [vmem:[#allocation11 + $0xe8] sm:$0xff]  }
 0x36e   :  { %2757 = vmatprep.mubr.bf16.mxu1 %v5403_v0  ;;  %4589 = vmatpush3.bf16.msra.mxu1 %v5068_v49 }
 0x36f   :  { %4590 = vmatprep.subr.bf16.mxu1 %v5069_v44 }
 0x375   :  { %2758 = vmatmul.mubr.bf16.gmra.mrb[140].mxu1 %v5937_v61  ;;  %v5070_v61 = vld [vmem:[#allocation11 + $0xa8] sm:$0xff]  }
 0x376   :  { %2767 = vmatprep.mubr.bf16.mxu1 %v5403_v0  ;;  %4591 = vmatpush3.bf16.msra.mxu1 %v5070_v61 }
 0x37d   :  { %2768 = vmatmul.mubr.bf16.gmra.mrb[144].mxu1 %v5953_v36  ;;  %v5071_v36 = vld [vmem:[#allocation11 + $0xf0] sm:$0xff]  }
 0x37e   :  { %2777 = vmatprep.mubr.bf16.mxu1 %v5403_v0  ;;  %4592 = vmatprep.subr.bf16.mxu1 %v5071_v36 }
 0x385   :  { %2778 = vmatmul.mubr.bf16.gmra.mrb[148].mxu1 %v5969_v37  ;;  %v5072_v37 = vld [vmem:[#allocation11 + $0xb0] sm:$0xff]  }
 0x386   :  { %2787 = vmatprep.mubr.bf16.mxu1 %v5403_v0  ;;  %4593 = vmatpush3.bf16.msra.mxu1 %v5072_v37 }
 0x38d   :  { %2788 = vmatmul.mubr.bf16.gmra.mrb[152].mxu1 %v5985_v3  ;;  %v6125_v3 = vld [vmem:[%s6454_s7] sm:$0xf] }
 0x38e   :  { %2797 = vmatprep.mubr.bf16.mxu1 %v5403_v0 }
 0x395   :  { %2798 = vmatmul.mubr.bf16.gmra.mrb[156].mxu1 %v6001_v41  ;;  %v6130_v41 = vrot.slane %v6125_v3, %v5611_v21 }
 0x396   :  { %2807 = vmatprep.mubr.bf16.mxu1 %v5403_v0 }
 0x39d   :  { %2808 = vmatmul.mubr.bf16.gmra.mrb[160].mxu1 %v6017_v56  ;;  %v6134_v56 = vrot.slane %v6125_v3, %v5619_v23 }
 0x39e   :  { %2817 = vmatprep.mubr.bf16.mxu1 %v5403_v0 }
 0x3a5   :  { %2818 = vmatmul.mubr.bf16.gmra.mrb[164].mxu1 %v6033_v53  ;;  %v5073_v53 = vld [vmem:[#allocation11 + $0xf8] sm:$0xff]  }
 0x3a6   :  { %2827 = vmatprep.mubr.bf16.mxu1 %v5403_v0  ;;  %4594 = vmatprep.subr.bf16.mxu1 %v5073_v53 }
 0x3a7   :  { %4595 = vmatpush3.bf16.msra.mxu1 %v5074_v55 }
 0x3ad   :  { %2828 = vmatmul.mubr.bf16.gmra.mrb[168].mxu1 %v6049_v12 }
 0x3ae   :  { %2837 = vmatprep.mubr.bf16.mxu1 %v5403_v0 }
 0x3b0   :  { %v2536_v54 = vpop.f32.mrb[64].mxu1 }
 0x3b1   :  { %v2537_v57 = vadd.f32 %v2536_v54, %v6130_v41  ;;  %v2538_v59 = vpop.f32.mrb[65].mxu1 }
 0x3b2   :  { %v2539_v40 = vadd.f32 %v2538_v59, %v6134_v56  ;;  %v2540_v12 = vpop.f32.mrb[66].mxu1 }
 0x3b3   :  { %v2541_v21 = vadd.f32 %v2540_v12, %v6130_v41  ;;  %v2542_v58 = vpop.f32.mrb[67].mxu1  ;;  %v2888_v23 = vmax.f32 %v2537_v57, 0.0 }
 0x3b4   :  { %v2543_v62 = vadd.f32 %v2542_v58, %v6134_v56  ;;  %v2889_v63 = vmax.f32 %v2539_v40, 0.0 }
 0x3b5   :  { %v2892_v22 = vmax.f32 %v2541_v21, 0.0  ;;  %2838 = vmatmul.mubr.bf16.gmra.mrb[172].mxu1 %v6065_v7 }
 0x3b6   :  { %v2893_v13 = vmax.f32 %v2543_v62, 0.0  ;;  %2847 = vmatprep.mubr.bf16.mxu1 %v5403_v0 }
 0x3b7   :  { %v3016_v15 = vpack.c.bf16 %v2892_v22, %v2888_v23 }
 0x3b8   :  { %v3017_v4 = vpack.c.bf16 %v2893_v13, %v2889_v63  ;;  %v2546_v34 = vpop.f32.mrb[68].mxu1 }
 0x3b9   :  { %v2547_v27 = vadd.f32 %v2546_v34, %v6130_v41  ;;  %v2548_v25 = vpop.f32.mrb[69].mxu1 }
 0x3ba   :  { %v2549_v46 = vadd.f32 %v2548_v25, %v6134_v56  ;;  %v2550_v10 = vpop.f32.mrb[70].mxu1  ;;  %3375 = vmatprep.mubr.bf16.mxu0 %v3017_v4 }
 0x3bb   :  { %v2551_v19 = vadd.f32 %v2550_v10, %v6130_v41  ;;  %v2552_v47 = vpop.f32.mrb[71].mxu1  ;;  %3376 = vmatmul.mubr.bf16.vlgmr.msra.gmra.mrb[128].mxu0 %v3016_v15  ;;  %v2896_v50 = vmax.f32 %v2547_v27, 0.0 }
 0x3bc   :  { %v2553_v7 = vadd.f32 %v2552_v47, %v6134_v56  ;;  %v2897_v11 = vmax.f32 %v2549_v46, 0.0 }
 0x3bd   :  { %v2900_v35 = vmax.f32 %v2551_v19, 0.0  ;;  %2848 = vmatmul.mubr.bf16.gmra.mrb[176].mxu1 %v6079_v38 }
 0x3be   :  { %v2901_v45 = vmax.f32 %v2553_v7, 0.0  ;;  %2857 = vmatprep.mubr.bf16.mxu1 %v5403_v0 }
 0x3bf   :  { %v3020_v26 = vpack.c.bf16 %v2900_v35, %v2896_v50 }
 0x3c0   :  { %v3021_v60 = vpack.c.bf16 %v2901_v45, %v2897_v11  ;;  %v2556_v52 = vpop.f32.mrb[72].mxu1 }
 0x3c1   :  { %v2557_v6 = vadd.f32 %v2556_v52, %v6130_v41  ;;  %v2558_v8 = vpop.f32.mrb[73].mxu1 }
 0x3c2   :  { %v2559_v14 = vadd.f32 %v2558_v8, %v6134_v56  ;;  %v2560_v16 = vpop.f32.mrb[74].mxu1  ;;  %3383 = vmatprep.mubr.bf16.mxu0 %v3021_v60 }
 0x3c3   :  { %v2561_v24 = vadd.f32 %v2560_v16, %v6130_v41  ;;  %v2562_v17 = vpop.f32.mrb[75].mxu1  ;;  %3384 = vmatmul.mubr.bf16.gmra.mrb[132].mxu0 %v3020_v26  ;;  %v2904_v18 = vmax.f32 %v2557_v6, 0.0 }
 0x3c4   :  { %v2563_v38 = vadd.f32 %v2562_v17, %v6134_v56  ;;  %v2905_v9 = vmax.f32 %v2559_v14, 0.0 }
 0x3c5   :  { %v2908_v39 = vmax.f32 %v2561_v24, 0.0  ;;  %2858 = vmatmul.mubr.bf16.gmra.mrb[180].mxu1 %v6088_v43 }
 0x3c6   :  { %v2909_v29 = vmax.f32 %v2563_v38, 0.0  ;;  %2867 = vmatprep.mubr.bf16.mxu1 %v5403_v0 }
 0x3c7   :  { %v3024_v32 = vpack.c.bf16 %v2908_v39, %v2904_v18 }
 0x3c8   :  { %v3025_v31 = vpack.c.bf16 %v2909_v29, %v2905_v9  ;;  %v2566_v48 = vpop.f32.mrb[76].mxu1 }
 0x3c9   :  { %v2567_v51 = vadd.f32 %v2566_v48, %v6130_v41  ;;  %v2568_v42 = vpop.f32.mrb[77].mxu1 }
 0x3ca   :  { %v2569_v1 = vadd.f32 %v2568_v42, %v6134_v56  ;;  %v2570_v28 = vpop.f32.mrb[78].mxu1  ;;  %3391 = vmatprep.mubr.bf16.mxu0 %v3025_v31 }
 0x3cb   :  { %v2571_v49 = vadd.f32 %v2570_v28, %v6130_v41  ;;  %v2572_v44 = vpop.f32.mrb[79].mxu1  ;;  %3392 = vmatmul.mubr.bf16.gmra.mrb[136].mxu0 %v3024_v32  ;;  %v2912_v61 = vmax.f32 %v2567_v51, 0.0 }
 0x3cc   :  { %v2573_v43 = vadd.f32 %v2572_v44, %v6134_v56  ;;  %v2913_v37 = vmax.f32 %v2569_v1, 0.0 }
 0x3cd   :  { %v2916_v36 = vmax.f32 %v2571_v49, 0.0  ;;  %2868 = vmatmul.mubr.bf16.gmra.mrb[184].mxu1 %v6094_v30 }
 0x3ce   :  { %v2917_v53 = vmax.f32 %v2573_v43, 0.0  ;;  %2877 = vmatprep.mubr.bf16.mxu1 %v5403_v0 }
 0x3cf   :  { %v3028_v54 = vpack.c.bf16 %v2916_v36, %v2912_v61 }
 0x3d0   :  { %v3029_v55 = vpack.c.bf16 %v2917_v53, %v2913_v37  ;;  %v2576_v57 = vpop.f32.mrb[80].mxu1 }
 0x3d1   :  { %v2577_v59 = vadd.f32 %v2576_v57, %v6130_v41  ;;  %v2578_v40 = vpop.f32.mrb[81].mxu1 }
 0x3d2   :  { %v2579_v12 = vadd.f32 %v2578_v40, %v6134_v56  ;;  %v2580_v21 = vpop.f32.mrb[82].mxu1  ;;  %3399 = vmatprep.mubr.bf16.mxu0 %v3029_v55 }
 0x3d3   :  { %v2581_v58 = vadd.f32 %v2580_v21, %v6130_v41  ;;  %v2582_v62 = vpop.f32.mrb[83].mxu1  ;;  %3400 = vmatmul.mubr.bf16.gmra.mrb[140].mxu0 %v3028_v54  ;;  %v2920_v23 = vmax.f32 %v2577_v59, 0.0 }
 0x3d4   :  { %v2583_v30 = vadd.f32 %v2582_v62, %v6134_v56  ;;  %v2921_v0 = vmax.f32 %v2579_v12, 0.0 }
 0x3d5   :  { %v2924_v22 = vmax.f32 %v2581_v58, 0.0  ;;  %2878 = vmatmul.mubr.bf16.gmra.mrb[188].mxu1 %v6098_v33 }
 0x3d6   :  { %v2925_v63 = vmax.f32 %v2583_v30, 0.0 }
 0x3d7   :  { %v3032_v13 = vpack.c.bf16 %v2924_v22, %v2920_v23 }
 0x3d8   :  { %v3033_v15 = vpack.c.bf16 %v2925_v63, %v2921_v0  ;;  %v2586_v4 = vpop.f32.mrb[84].mxu1 }
 0x3d9   :  { %v2587_v34 = vadd.f32 %v2586_v4, %v6130_v41  ;;  %v2588_v27 = vpop.f32.mrb[85].mxu1 }
 0x3da   :  { %v2589_v25 = vadd.f32 %v2588_v27, %v6134_v56  ;;  %v2590_v46 = vpop.f32.mrb[86].mxu1  ;;  %3407 = vmatprep.mubr.bf16.mxu0 %v3033_v15 }
 0x3db   :  { %v2591_v10 = vadd.f32 %v2590_v46, %v6130_v41  ;;  %v2592_v19 = vpop.f32.mrb[87].mxu1  ;;  %3408 = vmatmul.mubr.bf16.gmra.mrb[144].mxu0 %v3032_v13  ;;  %v2928_v7 = vmax.f32 %v2587_v34, 0.0 }
 0x3dc   :  { %v2593_v47 = vadd.f32 %v2592_v19, %v6134_v56  ;;  %v2929_v50 = vmax.f32 %v2589_v25, 0.0 }
 0x3dd   :  { %v2932_v33 = vmax.f32 %v2591_v10, 0.0 }
 0x3de   :  { %v2933_v35 = vmax.f32 %v2593_v47, 0.0 }
 0x3df   :  { %v3036_v11 = vpack.c.bf16 %v2932_v33, %v2928_v7 }
 0x3e0   :  { %v3037_v45 = vpack.c.bf16 %v2933_v35, %v2929_v50  ;;  %v2596_v26 = vpop.f32.mrb[88].mxu1 }
 0x3e1   :  { %v2597_v60 = vadd.f32 %v2596_v26, %v6130_v41  ;;  %v2598_v52 = vpop.f32.mrb[89].mxu1 }
 0x3e2   :  { %v2599_v6 = vadd.f32 %v2598_v52, %v6134_v56  ;;  %v2600_v8 = vpop.f32.mrb[90].mxu1  ;;  %3415 = vmatprep.mubr.bf16.mxu0 %v3037_v45 }
 0x3e3   :  { %v2601_v14 = vadd.f32 %v2600_v8, %v6130_v41  ;;  %v2602_v16 = vpop.f32.mrb[91].mxu1  ;;  %3416 = vmatmul.mubr.bf16.gmra.mrb[148].mxu0 %v3036_v11  ;;  %v2936_v17 = vmax.f32 %v2597_v60, 0.0 }
 0x3e4   :  { %v2603_v24 = vadd.f32 %v2602_v16, %v6134_v56  ;;  %v2937_v18 = vmax.f32 %v2599_v6, 0.0 }
 0x3e5   :  { %v2940_v38 = vmax.f32 %v2601_v14, 0.0 }
 0x3e6   :  { %v2941_v39 = vmax.f32 %v2603_v24, 0.0 }
 0x3e7   :  { %v3040_v9 = vpack.c.bf16 %v2940_v38, %v2936_v17 }
 0x3e8   :  { %v3041_v29 = vpack.c.bf16 %v2941_v39, %v2937_v18  ;;  %v2606_v32 = vpop.f32.mrb[92].mxu1 }
 0x3e9   :  { %v2607_v31 = vadd.f32 %v2606_v32, %v6130_v41  ;;  %v2608_v48 = vpop.f32.mrb[93].mxu1 }
 0x3ea   :  { %v2609_v51 = vadd.f32 %v2608_v48, %v6134_v56  ;;  %v2610_v42 = vpop.f32.mrb[94].mxu1  ;;  %3423 = vmatprep.mubr.bf16.mxu0 %v3041_v29 }
 0x3eb   :  { %v2611_v1 = vadd.f32 %v2610_v42, %v6130_v41  ;;  %v2612_v28 = vpop.f32.mrb[95].mxu1  ;;  %3424 = vmatmul.mubr.bf16.gmra.mrb[152].mxu0 %v3040_v9  ;;  %v2944_v44 = vmax.f32 %v2607_v31, 0.0 }
 0x3ec   :  { %v2613_v49 = vadd.f32 %v2612_v28, %v6134_v56  ;;  %v2945_v61 = vmax.f32 %v2609_v51, 0.0 }
 0x3ed   :  { %v2948_v43 = vmax.f32 %v2611_v1, 0.0 }
 0x3ee   :  { %v2949_v36 = vmax.f32 %v2613_v49, 0.0 }
 0x3ef   :  { %v3044_v37 = vpack.c.bf16 %v2948_v43, %v2944_v44 }
 0x3f0   :  { %v3045_v53 = vpack.c.bf16 %v2949_v36, %v2945_v61  ;;  %v2616_v54 = vpop.f32.mrb[96].mxu1 }
 0x3f1   :  { %v2617_v55 = vadd.f32 %v2616_v54, %v6130_v41  ;;  %v2618_v57 = vpop.f32.mrb[97].mxu1 }
 0x3f2   :  { %v2619_v59 = vadd.f32 %v2618_v57, %v6134_v56  ;;  %v2620_v40 = vpop.f32.mrb[98].mxu1  ;;  %3431 = vmatprep.mubr.bf16.mxu0 %v3045_v53 }
 0x3f3   :  { %v2621_v12 = vadd.f32 %v2620_v40, %v6130_v41  ;;  %v2622_v21 = vpop.f32.mrb[99].mxu1  ;;  %3432 = vmatmul.mubr.bf16.gmra.mrb[156].mxu0 %v3044_v37  ;;  %v2952_v62 = vmax.f32 %v2617_v55, 0.0 }
 0x3f4   :  { %v2623_v58 = vadd.f32 %v2622_v21, %v6134_v56  ;;  %v2953_v23 = vmax.f32 %v2619_v59, 0.0 }
 0x3f5   :  { %v2956_v30 = vmax.f32 %v2621_v12, 0.0 }
 0x3f6   :  { %v2957_v22 = vmax.f32 %v2623_v58, 0.0 }
 0x3f7   :  { %v3048_v0 = vpack.c.bf16 %v2956_v30, %v2952_v62 }
 0x3f8   :  { %v3049_v63 = vpack.c.bf16 %v2957_v22, %v2953_v23  ;;  %v2626_v13 = vpop.f32.mrb[100].mxu1 }
 0x3f9   :  { %v2627_v15 = vadd.f32 %v2626_v13, %v6130_v41  ;;  %v2628_v4 = vpop.f32.mrb[101].mxu1 }
 0x3fa   :  { %v2629_v34 = vadd.f32 %v2628_v4, %v6134_v56  ;;  %v2630_v27 = vpop.f32.mrb[102].mxu1  ;;  %3439 = vmatprep.mubr.bf16.mxu0 %v3049_v63 }
 0x3fb   :  { %v2631_v25 = vadd.f32 %v2630_v27, %v6130_v41  ;;  %v2632_v46 = vpop.f32.mrb[103].mxu1  ;;  %3440 = vmatmul.mubr.bf16.gmra.mrb[160].mxu0 %v3048_v0  ;;  %v2960_v19 = vmax.f32 %v2627_v15, 0.0 }
 0x3fc   :  { %v2633_v10 = vadd.f32 %v2632_v46, %v6134_v56  ;;  %v2961_v7 = vmax.f32 %v2629_v34, 0.0 }
 0x3fd   :  { %v2964_v47 = vmax.f32 %v2631_v25, 0.0 }
 0x3fe   :  { %v2965_v33 = vmax.f32 %v2633_v10, 0.0 }
 0x3ff   :  { %v3052_v50 = vpack.c.bf16 %v2964_v47, %v2960_v19 }
 0x400   :  { %v3053_v35 = vpack.c.bf16 %v2965_v33, %v2961_v7  ;;  %v2636_v11 = vpop.f32.mrb[104].mxu1 }
 0x401   :  { %v2637_v45 = vadd.f32 %v2636_v11, %v6130_v41  ;;  %v2638_v26 = vpop.f32.mrb[105].mxu1 }
 0x402   :  { %v2639_v60 = vadd.f32 %v2638_v26, %v6134_v56  ;;  %v2640_v52 = vpop.f32.mrb[106].mxu1  ;;  %3447 = vmatprep.mubr.bf16.mxu0 %v3053_v35 }
 0x403   :  { %v2641_v6 = vadd.f32 %v2640_v52, %v6130_v41  ;;  %v2642_v8 = vpop.f32.mrb[107].mxu1  ;;  %3448 = vmatmul.mubr.bf16.gmra.mrb[164].mxu0 %v3052_v50  ;;  %v2968_v16 = vmax.f32 %v2637_v45, 0.0 }
 0x404   :  { %v2643_v14 = vadd.f32 %v2642_v8, %v6134_v56  ;;  %v2969_v17 = vmax.f32 %v2639_v60, 0.0 }
 0x405   :  { %v2972_v24 = vmax.f32 %v2641_v6, 0.0 }
 0x406   :  { %v2973_v38 = vmax.f32 %v2643_v14, 0.0 }
 0x407   :  { %v3056_v18 = vpack.c.bf16 %v2972_v24, %v2968_v16 }
 0x408   :  { %v3057_v39 = vpack.c.bf16 %v2973_v38, %v2969_v17  ;;  %v2646_v9 = vpop.f32.mrb[108].mxu1 }
 0x409   :  { %v2647_v29 = vadd.f32 %v2646_v9, %v6130_v41  ;;  %v2648_v32 = vpop.f32.mrb[109].mxu1 }
 0x40a   :  { %v2649_v31 = vadd.f32 %v2648_v32, %v6134_v56  ;;  %v2650_v48 = vpop.f32.mrb[110].mxu1  ;;  %3455 = vmatprep.mubr.bf16.mxu0 %v3057_v39 }
 0x40b   :  { %v2651_v51 = vadd.f32 %v2650_v48, %v6130_v41  ;;  %v2652_v42 = vpop.f32.mrb[111].mxu1  ;;  %3456 = vmatmul.mubr.bf16.gmra.mrb[168].mxu0 %v3056_v18  ;;  %v2976_v28 = vmax.f32 %v2647_v29, 0.0 }
 0x40c   :  { %v2653_v1 = vadd.f32 %v2652_v42, %v6134_v56  ;;  %v2977_v44 = vmax.f32 %v2649_v31, 0.0 }
 0x40d   :  { %v2980_v49 = vmax.f32 %v2651_v51, 0.0 }
 0x40e   :  { %v2981_v43 = vmax.f32 %v2653_v1, 0.0 }
 0x40f   :  { %v3060_v61 = vpack.c.bf16 %v2980_v49, %v2976_v28  ;;  %v6213_v28 = vrot.slane %v6125_v3, %v198_v2 }
 0x410   :  { %v3061_v36 = vpack.c.bf16 %v2981_v43, %v2977_v44  ;;  %v2656_v37 = vpop.f32.mrb[112].mxu1  ;;  %v6218_v43 = vrot.slane %v6125_v3, %v202_v5 }
 0x411   :  { %v2657_v53 = vadd.f32 %v2656_v37, %v6130_v41  ;;  %v2658_v54 = vpop.f32.mrb[113].mxu1 }
 0x412   :  { %v2659_v55 = vadd.f32 %v2658_v54, %v6134_v56  ;;  %v2660_v57 = vpop.f32.mrb[114].mxu1  ;;  %3463 = vmatprep.mubr.bf16.mxu0 %v3061_v36 }
 0x413   :  { %v2661_v59 = vadd.f32 %v2660_v57, %v6130_v41  ;;  %v2662_v40 = vpop.f32.mrb[115].mxu1  ;;  %3464 = vmatmul.mubr.bf16.gmra.mrb[172].mxu0 %v3060_v61  ;;  %v2984_v21 = vmax.f32 %v2657_v53, 0.0 }
 0x414   :  { %v2663_v12 = vadd.f32 %v2662_v40, %v6134_v56  ;;  %v2985_v62 = vmax.f32 %v2659_v55, 0.0 }
 0x415   :  { %v2988_v58 = vmax.f32 %v2661_v59, 0.0 }
 0x416   :  { %v2989_v30 = vmax.f32 %v2663_v12, 0.0 }
 0x417   :  { %v3064_v23 = vpack.c.bf16 %v2988_v58, %v2984_v21 }
 0x418   :  { %v3065_v22 = vpack.c.bf16 %v2989_v30, %v2985_v62  ;;  %v2666_v0 = vpop.f32.mrb[116].mxu1 }
 0x419   :  { %v2667_v63 = vadd.f32 %v2666_v0, %v6130_v41  ;;  %v2668_v13 = vpop.f32.mrb[117].mxu1 }
 0x41a   :  { %v2669_v15 = vadd.f32 %v2668_v13, %v6134_v56  ;;  %v2670_v4 = vpop.f32.mrb[118].mxu1  ;;  %3471 = vmatprep.mubr.bf16.mxu0 %v3065_v22 }
 0x41b   :  { %v2671_v34 = vadd.f32 %v2670_v4, %v6130_v41  ;;  %v2672_v27 = vpop.f32.mrb[119].mxu1  ;;  %3472 = vmatmul.mubr.bf16.gmra.mrb[176].mxu0 %v3064_v23  ;;  %v2992_v46 = vmax.f32 %v2667_v63, 0.0 }
 0x41c   :  { %v2673_v25 = vadd.f32 %v2672_v27, %v6134_v56  ;;  %v2993_v19 = vmax.f32 %v2669_v15, 0.0 }
 0x41d   :  { %v2996_v10 = vmax.f32 %v2671_v34, 0.0 }
 0x41e   :  { %v2997_v47 = vmax.f32 %v2673_v25, 0.0 }
 0x41f   :  { %v3068_v7 = vpack.c.bf16 %v2996_v10, %v2992_v46 }
 0x420   :  { %v3069_v33 = vpack.c.bf16 %v2997_v47, %v2993_v19  ;;  %v2676_v50 = vpop.f32.mrb[120].mxu1 }
 0x421   :  { %v2677_v35 = vadd.f32 %v2676_v50, %v6130_v41  ;;  %v2678_v11 = vpop.f32.mrb[121].mxu1 }
 0x422   :  { %v2679_v45 = vadd.f32 %v2678_v11, %v6134_v56  ;;  %v2680_v26 = vpop.f32.mrb[122].mxu1  ;;  %3479 = vmatprep.mubr.bf16.mxu0 %v3069_v33 }
 0x423   :  { %v2681_v60 = vadd.f32 %v2680_v26, %v6130_v41  ;;  %v2682_v52 = vpop.f32.mrb[123].mxu1  ;;  %3480 = vmatmul.mubr.bf16.gmra.mrb[180].mxu0 %v3068_v7  ;;  %v3000_v8 = vmax.f32 %v2677_v35, 0.0 }
 0x424   :  { %v2683_v6 = vadd.f32 %v2682_v52, %v6134_v56  ;;  %v3001_v16 = vmax.f32 %v2679_v45, 0.0 }
 0x425   :  { %v3004_v14 = vmax.f32 %v2681_v60, 0.0 }
 0x426   :  { %v3005_v24 = vmax.f32 %v2683_v6, 0.0 }
 0x427   :  { %v3072_v17 = vpack.c.bf16 %v3004_v14, %v3000_v8 }
 0x428   :  { %v3073_v38 = vpack.c.bf16 %v3005_v24, %v3001_v16  ;;  %v2686_v18 = vpop.f32.mrb[124].mxu1 }
 0x429   :  { %v2687_v39 = vadd.f32 %v2686_v18, %v6130_v41  ;;  %v2688_v9 = vpop.f32.mrb[125].mxu1 }
 0x42a   :  { %v2689_v29 = vadd.f32 %v2688_v9, %v6134_v56  ;;  %v2690_v32 = vpop.f32.mrb[126].mxu1  ;;  %3487 = vmatprep.mubr.bf16.mxu0 %v3073_v38 }
 0x42b   :  { %v2691_v31 = vadd.f32 %v2690_v32, %v6130_v41  ;;  %v2692_v48 = vpop.f32.mrb[127].mxu1  ;;  %3488 = vmatmul.mubr.bf16.gmra.mrb[184].mxu0 %v3072_v17  ;;  %v3008_v42 = vmax.f32 %v2687_v39, 0.0 }
 0x42c   :  { %v2693_v51 = vadd.f32 %v2692_v48, %v6134_v56  ;;  %v3009_v49 = vmax.f32 %v2689_v29, 0.0 }
 0x42d   :  { %v3012_v1 = vmax.f32 %v2691_v31, 0.0 }
 0x42e   :  { %v3013_v44 = vmax.f32 %v2693_v51, 0.0 }
 0x42f   :  { %v3076_v61 = vpack.c.bf16 %v3012_v1, %v3008_v42 }
 0x430   :  { %v3077_v41 = vpack.c.bf16 %v3013_v44, %v3009_v49  ;;  %v2729_v36 = vpop.f32.mrb[128].mxu1 }
 0x431   :  { %v2730_v37 = vadd.f32 %v2729_v36, %v6213_v28  ;;  %v2731_v56 = vpop.f32.mrb[129].mxu1 }
 0x432   :  { %v2732_v53 = vadd.f32 %v2731_v56, %v6218_v43  ;;  %v2733_v54 = vpop.f32.mrb[130].mxu1  ;;  %3495 = vmatprep.mubr.bf16.mxu0 %v3077_v41 }
 0x433   :  { %v2734_v2 = vadd.f32 %v2733_v54, %v6213_v28  ;;  %v2735_v55 = vpop.f32.mrb[131].mxu1  ;;  %3496 = vmatmul.mubr.bf16.gmra.mrb[188].mxu0 %v3076_v61  ;;  %v2890_v20 = vmax.f32 %v2730_v37, 0.0 }
 0x434   :  { %v2736_v57 = vadd.f32 %v2735_v55, %v6218_v43  ;;  %v2891_v5 = vmax.f32 %v2732_v53, 0.0 }
 0x435   :  { %v2894_v59 = vmax.f32 %v2734_v2, 0.0 }
 0x436   :  { %v2895_v3 = vmax.f32 %v2736_v57, 0.0 }
 0x437   :  { %v3018_v40 = vpack.c.bf16 %v2894_v59, %v2890_v20 }
 0x438   :  { %v3019_v12 = vpack.c.bf16 %v2895_v3, %v2891_v5  ;;  %v2739_v21 = vpop.f32.mrb[132].mxu1 }
 0x439   :  { %v2740_v58 = vadd.f32 %v2739_v21, %v6213_v28  ;;  %v2741_v62 = vpop.f32.mrb[133].mxu1 }
 0x43a   :  { %v2742_v30 = vadd.f32 %v2741_v62, %v6218_v43  ;;  %v2743_v23 = vpop.f32.mrb[134].mxu1  ;;  %3536 = vmatprep.mubr.bf16.mxu1 %v3019_v12 }
 0x43b   :  { %v2744_v22 = vadd.f32 %v2743_v23, %v6213_v28  ;;  %v2745_v0 = vpop.f32.mrb[135].mxu1  ;;  %3537 = vmatmul.mubr.bf16.vlgmr.msra.gmra.mrb[192].mxu1 %v3018_v40  ;;  %v2898_v13 = vmax.f32 %v2740_v58, 0.0 }
 0x43c   :  { %v2746_v63 = vadd.f32 %v2745_v0, %v6218_v43  ;;  %v2899_v4 = vmax.f32 %v2742_v30, 0.0 }
 0x43d   :  { %v2902_v15 = vmax.f32 %v2744_v22, 0.0 }
 0x43e   :  { %v2903_v34 = vmax.f32 %v2746_v63, 0.0 }
 0x43f   :  { %v3022_v27 = vpack.c.bf16 %v2902_v15, %v2898_v13 }
 0x440   :  { %v3023_v25 = vpack.c.bf16 %v2903_v34, %v2899_v4  ;;  %v2749_v46 = vpop.f32.mrb[136].mxu1 }
 0x441   :  { %v2750_v10 = vadd.f32 %v2749_v46, %v6213_v28  ;;  %v2751_v19 = vpop.f32.mrb[137].mxu1 }
 0x442   :  { %v2752_v47 = vadd.f32 %v2751_v19, %v6218_v43  ;;  %v2753_v7 = vpop.f32.mrb[138].mxu1  ;;  %3544 = vmatprep.mubr.bf16.mxu1 %v3023_v25 }
 0x443   :  { %v2754_v33 = vadd.f32 %v2753_v7, %v6213_v28  ;;  %v2755_v50 = vpop.f32.mrb[139].mxu1  ;;  %3545 = vmatmul.mubr.bf16.gmra.mrb[196].mxu1 %v3022_v27  ;;  %v2906_v11 = vmax.f32 %v2750_v10, 0.0 }
 0x444   :  { %v2756_v35 = vadd.f32 %v2755_v50, %v6218_v43  ;;  %v2907_v26 = vmax.f32 %v2752_v47, 0.0 }
 0x445   :  { %v2910_v45 = vmax.f32 %v2754_v33, 0.0 }
 0x446   :  { %v2911_v60 = vmax.f32 %v2756_v35, 0.0 }
 0x447   :  { %v3026_v52 = vpack.c.bf16 %v2910_v45, %v2906_v11 }
 0x448   :  { %v3027_v6 = vpack.c.bf16 %v2911_v60, %v2907_v26  ;;  %v2759_v8 = vpop.f32.mrb[140].mxu1 }
 0x449   :  { %v2760_v14 = vadd.f32 %v2759_v8, %v6213_v28  ;;  %v2761_v16 = vpop.f32.mrb[141].mxu1 }
 0x44a   :  { %v2762_v24 = vadd.f32 %v2761_v16, %v6218_v43  ;;  %v2763_v17 = vpop.f32.mrb[142].mxu1  ;;  %3552 = vmatprep.mubr.bf16.mxu1 %v3027_v6 }
 0x44b   :  { %v2764_v38 = vadd.f32 %v2763_v17, %v6213_v28  ;;  %v2765_v18 = vpop.f32.mrb[143].mxu1  ;;  %3553 = vmatmul.mubr.bf16.gmra.mrb[200].mxu1 %v3026_v52  ;;  %v2914_v9 = vmax.f32 %v2760_v14, 0.0 }
 0x44c   :  { %v2766_v39 = vadd.f32 %v2765_v18, %v6218_v43  ;;  %v2915_v32 = vmax.f32 %v2762_v24, 0.0 }
 0x44d   :  { %v2918_v29 = vmax.f32 %v2764_v38, 0.0 }
 0x44e   :  { %v2919_v31 = vmax.f32 %v2766_v39, 0.0 }
 0x44f   :  { %v3030_v48 = vpack.c.bf16 %v2918_v29, %v2914_v9 }
 0x450   :  { %v3031_v51 = vpack.c.bf16 %v2919_v31, %v2915_v32  ;;  %v2769_v42 = vpop.f32.mrb[144].mxu1 }
 0x451   :  { %v2770_v1 = vadd.f32 %v2769_v42, %v6213_v28  ;;  %v2771_v49 = vpop.f32.mrb[145].mxu1 }
 0x452   :  { %v2772_v44 = vadd.f32 %v2771_v49, %v6218_v43  ;;  %v2773_v61 = vpop.f32.mrb[146].mxu1  ;;  %3560 = vmatprep.mubr.bf16.mxu1 %v3031_v51 }
 0x453   :  { %v2774_v41 = vadd.f32 %v2773_v61, %v6213_v28  ;;  %v2775_v36 = vpop.f32.mrb[147].mxu1  ;;  %3561 = vmatmul.mubr.bf16.gmra.mrb[204].mxu1 %v3030_v48  ;;  %v2922_v56 = vmax.f32 %v2770_v1, 0.0 }
 0x454   :  { %v2776_v37 = vadd.f32 %v2775_v36, %v6218_v43  ;;  %v2923_v54 = vmax.f32 %v2772_v44, 0.0 }
 0x455   :  { %v2926_v53 = vmax.f32 %v2774_v41, 0.0 }
 0x456   :  { %v2927_v2 = vmax.f32 %v2776_v37, 0.0 }
 0x457   :  { %v3034_v55 = vpack.c.bf16 %v2926_v53, %v2922_v56 }
 0x458   :  { %v3035_v57 = vpack.c.bf16 %v2927_v2, %v2923_v54  ;;  %v2779_v20 = vpop.f32.mrb[148].mxu1 }
 0x459   :  { %v2780_v59 = vadd.f32 %v2779_v20, %v6213_v28  ;;  %v2781_v5 = vpop.f32.mrb[149].mxu1 }
 0x45a   :  { %v2782_v3 = vadd.f32 %v2781_v5, %v6218_v43  ;;  %v2783_v40 = vpop.f32.mrb[150].mxu1  ;;  %3568 = vmatprep.mubr.bf16.mxu1 %v3035_v57 }
 0x45b   :  { %v2784_v12 = vadd.f32 %v2783_v40, %v6213_v28  ;;  %v2785_v21 = vpop.f32.mrb[151].mxu1  ;;  %3569 = vmatmul.mubr.bf16.gmra.mrb[208].mxu1 %v3034_v55  ;;  %v2930_v62 = vmax.f32 %v2780_v59, 0.0 }
 0x45c   :  { %v2786_v58 = vadd.f32 %v2785_v21, %v6218_v43  ;;  %v2931_v23 = vmax.f32 %v2782_v3, 0.0 }
 0x45d   :  { %v2934_v30 = vmax.f32 %v2784_v12, 0.0 }
 0x45e   :  { %v2935_v22 = vmax.f32 %v2786_v58, 0.0 }
 0x45f   :  { %v3038_v0 = vpack.c.bf16 %v2934_v30, %v2930_v62 }
 0x460   :  { %v3039_v63 = vpack.c.bf16 %v2935_v22, %v2931_v23  ;;  %v2789_v13 = vpop.f32.mrb[152].mxu1 }
 0x461   :  { %v2790_v15 = vadd.f32 %v2789_v13, %v6213_v28  ;;  %v2791_v4 = vpop.f32.mrb[153].mxu1 }
 0x462   :  { %v2792_v34 = vadd.f32 %v2791_v4, %v6218_v43  ;;  %v2793_v27 = vpop.f32.mrb[154].mxu1  ;;  %3576 = vmatprep.mubr.bf16.mxu1 %v3039_v63 }
 0x463   :  { %v2794_v25 = vadd.f32 %v2793_v27, %v6213_v28  ;;  %v2795_v46 = vpop.f32.mrb[155].mxu1  ;;  %3577 = vmatmul.mubr.bf16.gmra.mrb[212].mxu1 %v3038_v0  ;;  %v2938_v19 = vmax.f32 %v2790_v15, 0.0 }
 0x464   :  { %v2796_v10 = vadd.f32 %v2795_v46, %v6218_v43  ;;  %v2939_v7 = vmax.f32 %v2792_v34, 0.0 }
 0x465   :  { %v2942_v47 = vmax.f32 %v2794_v25, 0.0 }
 0x466   :  { %v2943_v33 = vmax.f32 %v2796_v10, 0.0 }
 0x467   :  { %v3042_v50 = vpack.c.bf16 %v2942_v47, %v2938_v19 }
 0x468   :  { %v3043_v35 = vpack.c.bf16 %v2943_v33, %v2939_v7  ;;  %v2799_v11 = vpop.f32.mrb[156].mxu1 }
 0x469   :  { %v2800_v45 = vadd.f32 %v2799_v11, %v6213_v28  ;;  %v2801_v26 = vpop.f32.mrb[157].mxu1 }
 0x46a   :  { %v2802_v60 = vadd.f32 %v2801_v26, %v6218_v43  ;;  %v2803_v52 = vpop.f32.mrb[158].mxu1  ;;  %3584 = vmatprep.mubr.bf16.mxu1 %v3043_v35 }
 0x46b   :  { %v2804_v6 = vadd.f32 %v2803_v52, %v6213_v28  ;;  %v2805_v8 = vpop.f32.mrb[159].mxu1  ;;  %3585 = vmatmul.mubr.bf16.gmra.mrb[216].mxu1 %v3042_v50  ;;  %v2946_v16 = vmax.f32 %v2800_v45, 0.0 }
 0x46c   :  { %v2806_v14 = vadd.f32 %v2805_v8, %v6218_v43  ;;  %v2947_v17 = vmax.f32 %v2802_v60, 0.0 }
 0x46d   :  { %v2950_v24 = vmax.f32 %v2804_v6, 0.0 }
 0x46e   :  { %v2951_v38 = vmax.f32 %v2806_v14, 0.0 }
 0x46f   :  { %v3046_v18 = vpack.c.bf16 %v2950_v24, %v2946_v16 }
 0x470   :  { %v3047_v39 = vpack.c.bf16 %v2951_v38, %v2947_v17  ;;  %v2809_v9 = vpop.f32.mrb[160].mxu1 }
 0x471   :  { %v2810_v29 = vadd.f32 %v2809_v9, %v6213_v28  ;;  %v2811_v32 = vpop.f32.mrb[161].mxu1 }
 0x472   :  { %v2812_v31 = vadd.f32 %v2811_v32, %v6218_v43  ;;  %v2813_v48 = vpop.f32.mrb[162].mxu1  ;;  %3592 = vmatprep.mubr.bf16.mxu1 %v3047_v39 }
 0x473   :  { %v2814_v51 = vadd.f32 %v2813_v48, %v6213_v28  ;;  %v2815_v42 = vpop.f32.mrb[163].mxu1  ;;  %3593 = vmatmul.mubr.bf16.gmra.mrb[220].mxu1 %v3046_v18  ;;  %v2954_v49 = vmax.f32 %v2810_v29, 0.0 }
 0x474   :  { %v2816_v1 = vadd.f32 %v2815_v42, %v6218_v43  ;;  %v2955_v61 = vmax.f32 %v2812_v31, 0.0 }
 0x475   :  { %v2958_v44 = vmax.f32 %v2814_v51, 0.0 }
 0x476   :  { %v2959_v41 = vmax.f32 %v2816_v1, 0.0 }
 0x477   :  { %v3050_v36 = vpack.c.bf16 %v2958_v44, %v2954_v49 }
 0x478   :  { %v3051_v37 = vpack.c.bf16 %v2959_v41, %v2955_v61  ;;  %v2819_v56 = vpop.f32.mrb[164].mxu1 }
 0x479   :  { %v2820_v53 = vadd.f32 %v2819_v56, %v6213_v28  ;;  %v2821_v54 = vpop.f32.mrb[165].mxu1 }
 0x47a   :  { %v2822_v2 = vadd.f32 %v2821_v54, %v6218_v43  ;;  %v2823_v55 = vpop.f32.mrb[166].mxu1  ;;  %3600 = vmatprep.mubr.bf16.mxu1 %v3051_v37 }
 0x47b   :  { %v2824_v57 = vadd.f32 %v2823_v55, %v6213_v28  ;;  %v2825_v20 = vpop.f32.mrb[167].mxu1  ;;  %3601 = vmatmul.mubr.bf16.gmra.mrb[224].mxu1 %v3050_v36  ;;  %v2962_v5 = vmax.f32 %v2820_v53, 0.0 }
 0x47c   :  { %v2826_v59 = vadd.f32 %v2825_v20, %v6218_v43  ;;  %v2963_v40 = vmax.f32 %v2822_v2, 0.0 }
 0x47d   :  { %v2966_v3 = vmax.f32 %v2824_v57, 0.0 }
 0x47e   :  { %v2967_v12 = vmax.f32 %v2826_v59, 0.0 }
 0x47f   :  { %v3054_v21 = vpack.c.bf16 %v2966_v3, %v2962_v5 }
 0x480   :  { %v3055_v58 = vpack.c.bf16 %v2967_v12, %v2963_v40  ;;  %v2829_v62 = vpop.f32.mrb[168].mxu1 }
 0x481   :  { %v2830_v30 = vadd.f32 %v2829_v62, %v6213_v28  ;;  %v2831_v23 = vpop.f32.mrb[169].mxu1 }
 0x482   :  { %v2832_v22 = vadd.f32 %v2831_v23, %v6218_v43  ;;  %v2833_v0 = vpop.f32.mrb[170].mxu1  ;;  %3608 = vmatprep.mubr.bf16.mxu1 %v3055_v58 }
 0x483   :  { %v2834_v63 = vadd.f32 %v2833_v0, %v6213_v28  ;;  %v2835_v13 = vpop.f32.mrb[171].mxu1  ;;  %3609 = vmatmul.mubr.bf16.gmra.mrb[228].mxu1 %v3054_v21  ;;  %v2970_v4 = vmax.f32 %v2830_v30, 0.0 }
 0x484   :  { %v2836_v15 = vadd.f32 %v2835_v13, %v6218_v43  ;;  %v2971_v27 = vmax.f32 %v2832_v22, 0.0 }
 0x485   :  { %v2974_v34 = vmax.f32 %v2834_v63, 0.0 }
 0x486   :  { %v2975_v25 = vmax.f32 %v2836_v15, 0.0 }
 0x487   :  { %v3058_v46 = vpack.c.bf16 %v2974_v34, %v2970_v4 }
 0x488   :  { %v3059_v10 = vpack.c.bf16 %v2975_v25, %v2971_v27  ;;  %v2839_v19 = vpop.f32.mrb[172].mxu1 }
 0x489   :  { %v2840_v47 = vadd.f32 %v2839_v19, %v6213_v28  ;;  %v2841_v7 = vpop.f32.mrb[173].mxu1 }
 0x48a   :  { %v2842_v33 = vadd.f32 %v2841_v7, %v6218_v43  ;;  %v2843_v50 = vpop.f32.mrb[174].mxu1  ;;  %3616 = vmatprep.mubr.bf16.mxu1 %v3059_v10 }
 0x48b   :  { %v2844_v35 = vadd.f32 %v2843_v50, %v6213_v28  ;;  %v2845_v11 = vpop.f32.mrb[175].mxu1  ;;  %3617 = vmatmul.mubr.bf16.gmra.mrb[232].mxu1 %v3058_v46  ;;  %v2978_v26 = vmax.f32 %v2840_v47, 0.0 }
 0x48c   :  { %v2846_v45 = vadd.f32 %v2845_v11, %v6218_v43  ;;  %v2979_v52 = vmax.f32 %v2842_v33, 0.0 }
 0x48d   :  { %v2982_v60 = vmax.f32 %v2844_v35, 0.0 }
 0x48e   :  { %v2983_v6 = vmax.f32 %v2846_v45, 0.0  ;;  %v4484_v8 = vpop.f32.mrb[128].mxu0 }
 0x48f   :  { %v3062_v14 = vpack.c.bf16 %v2982_v60, %v2978_v26  ;;  %v4485_v16 = vpop.f32.mrb[129].mxu0 }
 0x490   :  { %v3063_v24 = vpack.c.bf16 %v2983_v6, %v2979_v52  ;;  %v6268_v17 = vadd.f32 %v4485_v16, %v4484_v8  ;;  %v2849_v38 = vpop.f32.mrb[176].mxu1  ;;  %v4487_v18 = vpop.f32.mrb[130].mxu0 }
 0x491   :  { %v2850_v39 = vadd.f32 %v2849_v38, %v6213_v28  ;;  %v2851_v9 = vpop.f32.mrb[177].mxu1  ;;  %v4488_v29 = vpop.f32.mrb[131].mxu0 }
 0x492   :  { %v2852_v32 = vadd.f32 %v2851_v9, %v6218_v43  ;;  %v6272_v31 = vadd.f32 %v4488_v29, %v4487_v18  ;;  %v2853_v48 = vpop.f32.mrb[178].mxu1  ;;  %3624 = vmatprep.mubr.bf16.mxu1 %v3063_v24 }
 0x493   :  { %v2854_v51 = vadd.f32 %v2853_v48, %v6213_v28  ;;  %v2855_v42 = vpop.f32.mrb[179].mxu1  ;;  %3625 = vmatmul.mubr.bf16.gmra.mrb[236].mxu1 %v3062_v14  ;;  %v2986_v49 = vmax.f32 %v2850_v39, 0.0 }
 0x494   :  { %v2856_v1 = vadd.f32 %v2855_v42, %v6218_v43  ;;  %v2987_v61 = vmax.f32 %v2852_v32, 0.0 }
 0x495   :  { %v2990_v44 = vmax.f32 %v2854_v51, 0.0 }
 0x496   :  { %v2991_v41 = vmax.f32 %v2856_v1, 0.0  ;;  %v4490_v36 = vpop.f32.mrb[132].mxu0 }
 0x497   :  { %v3066_v37 = vpack.c.bf16 %v2990_v44, %v2986_v49  ;;  %v4491_v56 = vpop.f32.mrb[133].mxu0 }
 0x498   :  { %v3067_v53 = vpack.c.bf16 %v2991_v41, %v2987_v61  ;;  %v6276_v54 = vadd.f32 %v4491_v56, %v4490_v36  ;;  %v2859_v2 = vpop.f32.mrb[180].mxu1  ;;  %v4493_v55 = vpop.f32.mrb[134].mxu0 }
 0x499   :  { %v2860_v57 = vadd.f32 %v2859_v2, %v6213_v28  ;;  %v2861_v20 = vpop.f32.mrb[181].mxu1  ;;  %v4494_v59 = vpop.f32.mrb[135].mxu0 }
 0x49a   :  { %v2862_v5 = vadd.f32 %v2861_v20, %v6218_v43  ;;  %v6280_v3 = vadd.f32 %v4494_v59, %v4493_v55  ;;  %v2863_v40 = vpop.f32.mrb[182].mxu1  ;;  %3632 = vmatprep.mubr.bf16.mxu1 %v3067_v53 }
 0x49b   :  { %v2864_v12 = vadd.f32 %v2863_v40, %v6213_v28  ;;  %v2865_v21 = vpop.f32.mrb[183].mxu1  ;;  %3633 = vmatmul.mubr.bf16.gmra.mrb[240].mxu1 %v3066_v37  ;;  %v2994_v62 = vmax.f32 %v2860_v57, 0.0 }
 0x49c   :  { %v2866_v58 = vadd.f32 %v2865_v21, %v6218_v43  ;;  %v2995_v23 = vmax.f32 %v2862_v5, 0.0 }
 0x49d   :  { %v2998_v30 = vmax.f32 %v2864_v12, 0.0 }
 0x49e   :  { %v2999_v22 = vmax.f32 %v2866_v58, 0.0  ;;  %v4496_v0 = vpop.f32.mrb[136].mxu0 }
 0x49f   :  { %v3070_v63 = vpack.c.bf16 %v2998_v30, %v2994_v62  ;;  %v4497_v13 = vpop.f32.mrb[137].mxu0 }
 0x4a0   :  { %v3071_v15 = vpack.c.bf16 %v2999_v22, %v2995_v23  ;;  %v6284_v4 = vadd.f32 %v4497_v13, %v4496_v0  ;;  %v2869_v34 = vpop.f32.mrb[184].mxu1  ;;  %v4499_v27 = vpop.f32.mrb[138].mxu0 }
 0x4a1   :  { %v2870_v25 = vadd.f32 %v2869_v34, %v6213_v28  ;;  %v2871_v46 = vpop.f32.mrb[185].mxu1  ;;  %v4500_v10 = vpop.f32.mrb[139].mxu0 }
 0x4a2   :  { %v2872_v19 = vadd.f32 %v2871_v46, %v6218_v43  ;;  %v6288_v47 = vadd.f32 %v4500_v10, %v4499_v27  ;;  %v2873_v7 = vpop.f32.mrb[186].mxu1  ;;  %3640 = vmatprep.mubr.bf16.mxu1 %v3071_v15 }
 0x4a3   :  { %v2874_v33 = vadd.f32 %v2873_v7, %v6213_v28  ;;  %v2875_v50 = vpop.f32.mrb[187].mxu1  ;;  %3641 = vmatmul.mubr.bf16.gmra.mrb[244].mxu1 %v3070_v63  ;;  %v3002_v11 = vmax.f32 %v2870_v25, 0.0 }
 0x4a4   :  { %v2876_v35 = vadd.f32 %v2875_v50, %v6218_v43  ;;  %v3003_v26 = vmax.f32 %v2872_v19, 0.0 }
 0x4a5   :  { %v3006_v45 = vmax.f32 %v2874_v33, 0.0 }
 0x4a6   :  { %v3007_v60 = vmax.f32 %v2876_v35, 0.0  ;;  %v4502_v52 = vpop.f32.mrb[140].mxu0 }
 0x4a7   :  { %v3074_v6 = vpack.c.bf16 %v3006_v45, %v3002_v11  ;;  %v4503_v8 = vpop.f32.mrb[141].mxu0 }
 0x4a8   :  { %v3075_v14 = vpack.c.bf16 %v3007_v60, %v3003_v26  ;;  %v6292_v16 = vadd.f32 %v4503_v8, %v4502_v52  ;;  %v2879_v24 = vpop.f32.mrb[188].mxu1  ;;  %v4505_v38 = vpop.f32.mrb[142].mxu0 }
 0x4a9   :  { %v2880_v18 = vadd.f32 %v2879_v24, %v6213_v28  ;;  %v2881_v39 = vpop.f32.mrb[189].mxu1  ;;  %v4506_v9 = vpop.f32.mrb[143].mxu0 }
 0x4aa   :  { %v2882_v29 = vadd.f32 %v2881_v39, %v6218_v43  ;;  %v6296_v32 = vadd.f32 %v4506_v9, %v4505_v38  ;;  %v2883_v48 = vpop.f32.mrb[190].mxu1  ;;  %3648 = vmatprep.mubr.bf16.mxu1 %v3075_v14 }
 0x4ab   :  { %v2884_v51 = vadd.f32 %v2883_v48, %v6213_v28  ;;  %v2885_v42 = vpop.f32.mrb[191].mxu1  ;;  %3649 = vmatmul.mubr.bf16.gmra.mrb[248].mxu1 %v3074_v6  ;;  %v3010_v49 = vmax.f32 %v2880_v18, 0.0 }
 0x4ac   :  { %v2886_v1 = vadd.f32 %v2885_v42, %v6218_v43  ;;  %v3011_v61 = vmax.f32 %v2882_v29, 0.0 }
 0x4ad   :  { %v3014_v44 = vmax.f32 %v2884_v51, 0.0 }
 0x4ae   :  { %v3015_v41 = vmax.f32 %v2886_v1, 0.0  ;;  %v4508_v36 = vpop.f32.mrb[144].mxu0 }
 0x4af   :  { %v3078_v37 = vpack.c.bf16 %v3014_v44, %v3010_v49  ;;  %v4509_v56 = vpop.f32.mrb[145].mxu0 }
 0x4b0   :  { %v3079_v53 = vpack.c.bf16 %v3015_v41, %v3011_v61  ;;  %v6300_v2 = vadd.f32 %v4509_v56, %v4508_v36  ;;  %v4511_v55 = vpop.f32.mrb[146].mxu0 }
 0x4b1   :  { %v4512_v57 = vpop.f32.mrb[147].mxu0 }
 0x4b2   :  { %v6302_v20 = vadd.f32 %v4512_v57, %v4511_v55  ;;  %3656 = vmatprep.mubr.bf16.mxu1 %v3079_v53 }
 0x4b3   :  { %3657 = vmatmul.mubr.bf16.gmra.mrb[252].mxu1 %v3078_v37 }
 0x4b6   :  { %v4514_v28 = vpop.f32.mrb[148].mxu0 }
 0x4b7   :  { %v4515_v59 = vpop.f32.mrb[149].mxu0 }
 0x4b8   :  { %v6304_v5 = vadd.f32 %v4515_v59, %v4514_v28  ;;  %v4517_v43 = vpop.f32.mrb[150].mxu0 }
 0x4b9   :  { %v4518_v40 = vpop.f32.mrb[151].mxu0 }
 0x4ba   :  { %v6306_v12 = vadd.f32 %v4518_v40, %v4517_v43 }
 0x4be   :  { %v4520_v21 = vpop.f32.mrb[152].mxu0 }
 0x4bf   :  { %v4521_v58 = vpop.f32.mrb[153].mxu0 }
 0x4c0   :  { %v6308_v62 = vadd.f32 %v4521_v58, %v4520_v21  ;;  %v4523_v30 = vpop.f32.mrb[154].mxu0 }
 0x4c1   :  { %v4524_v23 = vpop.f32.mrb[155].mxu0 }
 0x4c2   :  { %v6310_v22 = vadd.f32 %v4524_v23, %v4523_v30 }
 0x4c6   :  { %v4526_v0 = vpop.f32.mrb[156].mxu0 }
 0x4c7   :  { %v4527_v63 = vpop.f32.mrb[157].mxu0 }
 0x4c8   :  { %v6312_v13 = vadd.f32 %v4527_v63, %v4526_v0  ;;  %v4529_v15 = vpop.f32.mrb[158].mxu0 }
 0x4c9   :  { %v4530_v34 = vpop.f32.mrb[159].mxu0 }
 0x4ca   :  { %v6314_v27 = vadd.f32 %v4530_v34, %v4529_v15 }
 0x4ce   :  { %v4532_v25 = vpop.f32.mrb[160].mxu0 }
 0x4cf   :  { %v4533_v46 = vpop.f32.mrb[161].mxu0 }
 0x4d0   :  { %v6316_v10 = vadd.f32 %v4533_v46, %v4532_v25  ;;  %v4535_v19 = vpop.f32.mrb[162].mxu0  ;;  %v6351_v25 = vld [vmem:[%s6456_s9] ss:$0 sm:$0xff]  ;;  %s5404_s9 = smov [#allocation14]  }
 0x4d1   :  { %v4536_v7 = vpop.f32.mrb[163].mxu0  ;;  %s3970_s26 = sshll.u32 %s5404_s9, 4  ;;  %s3971_s26 = int_to_ptr.vmem [resolvable:$true] %s3970_s26 }
 0x4d2   :  { %v6318_v33 = vadd.f32 %v4536_v7, %v4535_v19  ;;  %v3378_v7 = vadd.f32 %v6268_v17, %v6351_v25  ;;  %s5335_s28 = scalar_lea.vmem %s3971_s26, 4096  ;;  %p5340_p7 = scmp.lt.s32.totalorder %s3971_s26, %s3971_s26 }
 0x4d3   :  { %p5336_p6 = scmp.ne.s32.totalorder %s3971_s26, %s5335_s28  ;;  %p5341_p8 = scmp.lt.s32.totalorder %s5335_s28, %s5335_s28 }
 0x4d5   :  { %p5342_p9 = por %p5341_p8, %p5340_p7 }
 0x4d6   :  { %v4538_v50 = vpop.f32.mrb[164].mxu0 }
 0x4d7   :  { %v4539_v35 = vpop.f32.mrb[165].mxu0  ;;  %p5343_p10 = pnand %p5342_p9, %p5336_p6 }
 0x4d8   :  { %v6320_v11 = vadd.f32 %v4539_v35, %v4538_v50  ;;  %v4541_v45 = vpop.f32.mrb[166].mxu0 }
 0x4d9   :  { %v4542_v26 = vpop.f32.mrb[167].mxu0 }
 0x4da   :  { %v6322_v60 = vadd.f32 %v4542_v26, %v4541_v45  ;;  %v3381_v26 = vadd.f32 %v6272_v31, %v6351_v25 }
 0x4de   :  { %v4544_v52 = vpop.f32.mrb[168].mxu0 }
 0x4df   :  { %v4545_v6 = vpop.f32.mrb[169].mxu0 }
 0x4e0   :  { %v6324_v8 = vadd.f32 %v4545_v6, %v4544_v52  ;;  %v4547_v14 = vpop.f32.mrb[170].mxu0 }
 0x4e1   :  { %v4548_v24 = vpop.f32.mrb[171].mxu0 }
 0x4e2   :  { %v6326_v38 = vadd.f32 %v4548_v24, %v4547_v14 }
 0x4e6   :  { %v4550_v18 = vpop.f32.mrb[172].mxu0 }
 0x4e7   :  { %v4551_v39 = vpop.f32.mrb[173].mxu0 }
 0x4e8   :  { %v6328_v9 = vadd.f32 %v4551_v39, %v4550_v18  ;;  %v4553_v29 = vpop.f32.mrb[174].mxu0 }
 0x4e9   :  { %v4554_v48 = vpop.f32.mrb[175].mxu0 }
 0x4ea   :  { %v6330_v51 = vadd.f32 %v4554_v48, %v4553_v29  ;;  %v3386_v48 = vadd.f32 %v6276_v54, %v6351_v25 }
 0x4ee   :  { %v4556_v42 = vpop.f32.mrb[176].mxu0 }
 0x4ef   :  { %v4557_v1 = vpop.f32.mrb[177].mxu0 }
 0x4f0   :  { %v6332_v49 = vadd.f32 %v4557_v1, %v4556_v42  ;;  %v4559_v44 = vpop.f32.mrb[178].mxu0 }
 0x4f1   :  { %v4560_v61 = vpop.f32.mrb[179].mxu0 }
 0x4f2   :  { %v6334_v41 = vadd.f32 %v4560_v61, %v4559_v44  ;;  %v3389_v44 = vadd.f32 %v6280_v3, %v6351_v25 }
 0x4f6   :  { %v4562_v36 = vpop.f32.mrb[180].mxu0 }
 0x4f7   :  { %v4563_v37 = vpop.f32.mrb[181].mxu0 }
 0x4f8   :  { %v6336_v56 = vadd.f32 %v4563_v37, %v4562_v36  ;;  %v4565_v53 = vpop.f32.mrb[182].mxu0 }
 0x4f9   :  { %v4566_v55 = vpop.f32.mrb[183].mxu0 }
 0x4fa   :  { %v6338_v57 = vadd.f32 %v4566_v55, %v4565_v53 }
 0x4fe   :  { %v4568_v28 = vpop.f32.mrb[184].mxu0 }
 0x4ff   :  { %v4569_v59 = vpop.f32.mrb[185].mxu0 }
 0x500   :  { %v6340_v43 = vadd.f32 %v4569_v59, %v4568_v28  ;;  %v4571_v40 = vpop.f32.mrb[186].mxu0 }
 0x501   :  { %v4572_v21 = vpop.f32.mrb[187].mxu0 }
 0x502   :  { %v6342_v58 = vadd.f32 %v4572_v21, %v4571_v40  ;;  %v3394_v40 = vadd.f32 %v6284_v4, %v6351_v25 }
 0x506   :  { %v4574_v30 = vpop.f32.mrb[188].mxu0 }
 0x507   :  { %v4575_v23 = vpop.f32.mrb[189].mxu0 }
 0x508   :  { %v6344_v0 = vadd.f32 %v4575_v23, %v4574_v30  ;;  %v4577_v63 = vpop.f32.mrb[190].mxu0 }
 0x509   :  { %v4578_v15 = vpop.f32.mrb[191].mxu0 }
 0x50a   :  { %v6346_v34 = vadd.f32 %v4578_v15, %v4577_v63  ;;  %v3397_v63 = vadd.f32 %v6288_v47, %v6351_v25 }
 0x50e   :  { %v4596_v46 = vpop.f32.mrb[192].mxu1 }
 0x50f   :  { %v4597_v19 = vpop.f32.mrb[193].mxu1 }
 0x510   :  { %v4598_v50 = vadd.f32 %v4597_v19, %v4596_v46  ;;  %v4599_v35 = vpop.f32.mrb[194].mxu1 }
 0x511   :  { %v4600_v45 = vpop.f32.mrb[195].mxu1 }
 0x512   :  { %v3539_v52 = vadd.f32 %v4598_v50, %v3378_v7  ;;  %v4601_v6 = vadd.f32 %v4600_v45, %v4599_v35 }
 0x514   :  { %v3665_v14 = vmul.f32 0.5, %v3539_v52  ;;  %v3542_v24 = vadd.f32 %v4601_v6, %v3381_v26 }
 0x516   :  { %5139 = vtanh.f32 %v3665_v14  ;;  %v3666_v18 = vmul.f32 0.5, %v3542_v24  ;;  %v4602_v39 = vpop.f32.mrb[196].mxu1 }
 0x517   :  { %v4603_v29 = vpop.f32.mrb[197].mxu1 }
 0x518   :  { %5141 = vtanh.f32 %v3666_v18  ;;  %v4604_v42 = vadd.f32 %v4603_v29, %v4602_v39  ;;  %v4605_v17 = vpop.f32.mrb[198].mxu1 }
 0x519   :  { %v4606_v1 = vpop.f32.mrb[199].mxu1 }
 0x51a   :  { %v3547_v61 = vadd.f32 %v4604_v42, %v3386_v48  ;;  %v4607_v31 = vadd.f32 %v4606_v1, %v4605_v17 }
 0x51c   :  { %v3667_v36 = vmul.f32 0.5, %v3547_v61  ;;  %v3550_v37 = vadd.f32 %v4607_v31, %v3389_v44 }
 0x51e   :  { %5143 = vtanh.f32 %v3667_v36  ;;  %v3668_v53 = vmul.f32 0.5, %v3550_v37  ;;  %v4608_v55 = vpop.f32.mrb[200].mxu1 }
 0x51f   :  { %v4609_v28 = vpop.f32.mrb[201].mxu1 }
 0x520   :  { %v5140_v59 = vpop.eup %5139  ;;  %5145 = vtanh.f32 %v3668_v53  ;;  %v4610_v54 = vadd.f32 %v4609_v28, %v4608_v55  ;;  %v4611_v21 = vpop.f32.mrb[202].mxu1 }
 0x521   :  { %v3729_v30 = vmul.f32 0.5, %v5140_v59  ;;  %v4612_v23 = vpop.f32.mrb[203].mxu1 }
 0x522   :  { %v5142_v3 = vpop.eup %5141  ;;  %v3555_v15 = vadd.f32 %v4610_v54, %v3394_v40  ;;  %v4613_v46 = vadd.f32 %v4612_v23, %v4611_v21 }
 0x523   :  { %5346 = shalt.err (!%p5343_p10)
}
 0x524   :  { %s5347_s12 = scalar_lea.hbm %s6458_s11, 4096 }
 0x525   :  { %p5348_p11 = scmp.ne.s32.totalorder %s6458_s11, %s5347_s12  ;;  %p5351_p12 = scmp.lt.u32.totalorder %s5347_s12, %s6458_s11 }
 0x527   :  { %p5353_p13 = pnand %p5351_p12, %p5348_p11 }
 0x529   :  { %5356 = shalt.err (!%p5353_p13)
}
 0x52a   :  { %3976 = dma.vmem_to_hbm [thread:$0]  %s3971_s26, 4096, %s6458_s11, [#allocation15], %s5395_s1, %s5395_s1, %s5396_s18   ;;  %v3730_v4 = vmul.f32 0.5, %v5142_v3  ;;  %v3669_v47 = vmul.f32 0.5, %v3555_v15  ;;  %v3558_v19 = vadd.f32 %v4613_v46, %v3397_v63  ;;  %v3761_v7 = vadd.f32 0.5, %v3729_v30  ;;  %v4614_v45 = vpop.f32.mrb[204].mxu1  ;;  %v5144_v6 = vpop.eup %5143 }
 0x52b   :  { %v4615_v52 = vpop.f32.mrb[205].mxu1  ;;  %v3402_v14 = vadd.f32 %v6292_v16, %v6351_v25  ;;  %v3731_v39 = vmul.f32 0.5, %v5144_v6  ;;  %v5146_v48 = vpop.eup %5145  ;;  %v3405_v42 = vadd.f32 %v6296_v32, %v6351_v25  ;;  %v3410_v40 = vadd.f32 %v6300_v2, %v6351_v25  ;;  %s5405_s11 = smov [#allocation13]  }
 0x52c   :  { %v3762_v50 = vadd.f32 0.5, %v3730_v4  ;;  %5147 = vtanh.f32 %v3669_v47  ;;  %v3670_v35 = vmul.f32 0.5, %v3558_v19  ;;  %v4616_v24 = vadd.f32 %v4615_v52, %v4614_v45  ;;  %v4617_v18 = vpop.f32.mrb[206].mxu1  ;;  %s3958_s1 = sshll.u32 %s5405_s11, 4  ;;  %s3959_s1 = int_to_ptr.vmem [resolvable:$true] %s3958_s1 }
 0x52d   :  { %v4618_v29 = vpop.f32.mrb[207].mxu1  ;;  %v3732_v44 = vmul.f32 0.5, %v5146_v48  ;;  %v3763_v36 = vadd.f32 0.5, %v3731_v39  ;;  %v3413_v3 = vadd.f32 %v6302_v20, %v6351_v25  ;;  %v3418_v52 = vadd.f32 %v6304_v5, %v6351_v25  ;;  %s5357_s18 = scalar_lea.vmem %s3959_s1, 2048  ;;  %p5362_p1 = scmp.lt.s32.totalorder %s3959_s1, %s3959_s1 }
 0x52e   :  { %v4361_v26 = vpack.c.bf16 %v3762_v50, %v3761_v7  ;;  %5149 = vtanh.f32 %v3670_v35  ;;  %v3563_v17 = vadd.f32 %v4616_v24, %v3402_v14  ;;  %v4619_v1 = vadd.f32 %v4618_v29, %v4617_v18  ;;  %v4620_v16 = vpop.f32.mrb[208].mxu1  ;;  %p5358_p0 = scmp.ne.s32.totalorder %s3959_s1, %s5357_s18  ;;  %p5363_p2 = scmp.lt.s32.totalorder %s5357_s18, %s5357_s18 }
 0x52f   :  { %v3764_v37 = vadd.f32 0.5, %v3732_v44  ;;  %v4621_v28 = vpop.f32.mrb[209].mxu1  ;;  %v3421_v39 = vadd.f32 %v6306_v12, %v6351_v25 }
 0x530   :  { %4362 = vst [vmem:[#allocation13] sm:$0xff] %v4361_v26   ;;  %v3671_v61 = vmul.f32 0.5, %v3563_v17  ;;  %v3566_v31 = vadd.f32 %v4619_v1, %v3405_v42  ;;  %v4622_v54 = vadd.f32 %v4621_v28, %v4620_v16  ;;  %v4623_v21 = vpop.f32.mrb[210].mxu1  ;;  %v3426_v16 = vadd.f32 %v6308_v62, %v6351_v25  ;;  %p5364_p3 = por %p5363_p2, %p5362_p1 }
 0x531   :  { %v4366_v55 = vpack.c.bf16 %v3764_v37, %v3763_v36  ;;  %v4624_v30 = vpop.f32.mrb[211].mxu1 }
 0x532   :  { %5151 = vtanh.f32 %v3671_v61  ;;  %v3672_v53 = vmul.f32 0.5, %v3566_v31  ;;  %v3571_v63 = vadd.f32 %v4622_v54, %v3410_v40  ;;  %v4625_v15 = vadd.f32 %v4624_v30, %v4623_v21  ;;  %p5365_p4 = pnand %p5364_p3, %p5358_p0 }
 0x533   :  { %4453 = vst [vmem:[#allocation13 + $0x8] sm:$0xff] %v4366_v55   ;;  %v3429_v54 = vadd.f32 %v6310_v22, %v6351_v25 }
 0x534   :  { %5153 = vtanh.f32 %v3672_v53  ;;  %v3673_v4 = vmul.f32 0.5, %v3571_v63  ;;  %v3574_v47 = vadd.f32 %v4625_v15, %v3413_v3 }
 0x536   :  { %v5148_v59 = vpop.eup %5147  ;;  %5155 = vtanh.f32 %v3673_v4  ;;  %v3674_v50 = vmul.f32 0.5, %v3574_v47  ;;  %v4626_v2 = vpop.f32.mrb[212].mxu1 }
 0x537   :  { %v3733_v32 = vmul.f32 0.5, %v5148_v59  ;;  %v4627_v45 = vpop.f32.mrb[213].mxu1 }
 0x538   :  { %v5150_v23 = vpop.eup %5149  ;;  %5157 = vtanh.f32 %v3674_v50  ;;  %v4628_v6 = vadd.f32 %v4627_v45, %v4626_v2  ;;  %v4629_v14 = vpop.f32.mrb[214].mxu1 }
 0x539   :  { %v3734_v46 = vmul.f32 0.5, %v5150_v23  ;;  %v3765_v19 = vadd.f32 0.5, %v3733_v32  ;;  %v4630_v24 = vpop.f32.mrb[215].mxu1 }
 0x53a   :  { %v3579_v29 = vadd.f32 %v4628_v6, %v3418_v52  ;;  %v4631_v48 = vadd.f32 %v4630_v24, %v4629_v14 }
 0x53b   :  { %v3766_v7 = vadd.f32 0.5, %v3734_v46 }
 0x53c   :  { %v5152_v26 = vpop.eup %5151  ;;  %v3675_v17 = vmul.f32 0.5, %v3579_v29  ;;  %v3582_v1 = vadd.f32 %v4631_v48, %v3421_v39 }
 0x53d   :  { %v4371_v35 = vpack.c.bf16 %v3766_v7, %v3765_v19  ;;  %v3735_v20 = vmul.f32 0.5, %v5152_v26  ;;  %v3434_v7 = vadd.f32 %v6312_v13, %v6351_v25  ;;  %v3437_v26 = vadd.f32 %v6314_v27, %v6351_v25 }
 0x53e   :  { %v5154_v18 = vpop.eup %5153  ;;  %5159 = vtanh.f32 %v3675_v17  ;;  %v3676_v31 = vmul.f32 0.5, %v3582_v1  ;;  %v4632_v5 = vpop.f32.mrb[216].mxu1  ;;  %v3442_v1 = vadd.f32 %v6316_v10, %v6351_v25 }
 0x53f   :  { %4454 = vst [vmem:[#allocation13 + $0x10] sm:$0xff] %v4371_v35   ;;  %v3736_v42 = vmul.f32 0.5, %v5154_v18  ;;  %v3767_v44 = vadd.f32 0.5, %v3735_v20  ;;  %v4633_v37 = vpop.f32.mrb[217].mxu1 }
 0x540   :  { %v5156_v53 = vpop.eup %5155  ;;  %5161 = vtanh.f32 %v3676_v31  ;;  %v4634_v55 = vadd.f32 %v4633_v37, %v4632_v5  ;;  %v4635_v28 = vpop.f32.mrb[218].mxu1 }
 0x541   :  { %v3768_v61 = vadd.f32 0.5, %v3736_v42  ;;  %v3737_v12 = vmul.f32 0.5, %v5156_v53  ;;  %v4636_v59 = vpop.f32.mrb[219].mxu1 }
 0x542   :  { %v5158_v40 = vpop.eup %5157  ;;  %v3587_v21 = vadd.f32 %v4634_v55, %v3426_v16  ;;  %v4637_v32 = vadd.f32 %v4636_v59, %v4635_v28 }
 0x543   :  { %v4376_v36 = vpack.c.bf16 %v3768_v61, %v3767_v44  ;;  %v3738_v30 = vmul.f32 0.5, %v5158_v40  ;;  %v3769_v63 = vadd.f32 0.5, %v3737_v12 }
 0x544   :  { %v3677_v23 = vmul.f32 0.5, %v3587_v21  ;;  %v3590_v3 = vadd.f32 %v4637_v32, %v3429_v54 }
 0x545   :  { %4455 = vst [vmem:[#allocation13 + $0x18] sm:$0xff] %v4376_v36   ;;  %v3770_v15 = vadd.f32 0.5, %v3738_v30  ;;  %v3445_v36 = vadd.f32 %v6318_v33, %v6351_v25  ;;  %v3450_v30 = vadd.f32 %v6320_v11, %v6351_v25 }
 0x546   :  { %5163 = vtanh.f32 %v3677_v23  ;;  %v3678_v46 = vmul.f32 0.5, %v3590_v3  ;;  %v4638_v62 = vpop.f32.mrb[220].mxu1 }
 0x547   :  { %v4381_v4 = vpack.c.bf16 %v3770_v15, %v3769_v63  ;;  %v4639_v47 = vpop.f32.mrb[221].mxu1 }
 0x548   :  { %v5160_v19 = vpop.eup %5159  ;;  %5165 = vtanh.f32 %v3678_v46  ;;  %v4640_v50 = vadd.f32 %v4639_v47, %v4638_v62  ;;  %v4641_v2 = vpop.f32.mrb[222].mxu1  ;;  %v3453_v46 = vadd.f32 %v6322_v60, %v6351_v25 }
 0x549   :  { %4456 = vst [vmem:[#allocation13 + $0x20] sm:$0xff] %v4381_v4   ;;  %v3739_v22 = vmul.f32 0.5, %v5160_v19  ;;  %v4642_v35 = vpop.f32.mrb[223].mxu1 }
 0x54a   :  { %v5162_v45 = vpop.eup %5161  ;;  %v3595_v52 = vadd.f32 %v4640_v50, %v3434_v7  ;;  %v4643_v6 = vadd.f32 %v4642_v35, %v4641_v2 }
 0x54b   :  { %v3740_v14 = vmul.f32 0.5, %v5162_v45  ;;  %v3771_v18 = vadd.f32 0.5, %v3739_v22 }
 0x54c   :  { %v3679_v20 = vmul.f32 0.5, %v3595_v52  ;;  %v3598_v24 = vadd.f32 %v4643_v6, %v3437_v26  ;;  %v3458_v52 = vadd.f32 %v6324_v8, %v6351_v25 }
 0x54d   :  { %v3772_v39 = vadd.f32 0.5, %v3740_v14 }
 0x54e   :  { %5167 = vtanh.f32 %v3679_v20  ;;  %v3680_v29 = vmul.f32 0.5, %v3598_v24  ;;  %v4644_v13 = vpop.f32.mrb[224].mxu1 }
 0x54f   :  { %v4386_v48 = vpack.c.bf16 %v3772_v39, %v3771_v18  ;;  %v4645_v42 = vpop.f32.mrb[225].mxu1  ;;  %v3461_v18 = vadd.f32 %v6326_v38, %v6351_v25 }
 0x550   :  { %v5164_v17 = vpop.eup %5163  ;;  %5169 = vtanh.f32 %v3680_v29  ;;  %v4646_v44 = vadd.f32 %v4645_v42, %v4644_v13  ;;  %v4647_v61 = vpop.f32.mrb[226].mxu1 }
 0x551   :  { %4457 = vst [vmem:[#allocation13 + $0x28] sm:$0xff] %v4386_v48   ;;  %v3741_v27 = vmul.f32 0.5, %v5164_v17  ;;  %v4648_v31 = vpop.f32.mrb[227].mxu1 }
 0x552   :  { %v5166_v5 = vpop.eup %5165  ;;  %v3603_v37 = vadd.f32 %v4646_v44, %v3442_v1  ;;  %v4649_v53 = vadd.f32 %v4648_v31, %v4647_v61 }
 0x553   :  { %v3742_v16 = vmul.f32 0.5, %v5166_v5  ;;  %v3773_v12 = vadd.f32 0.5, %v3741_v27  ;;  %v3466_v5 = vadd.f32 %v6328_v9, %v6351_v25 }
 0x554   :  { %v3681_v55 = vmul.f32 0.5, %v3603_v37  ;;  %v3606_v28 = vadd.f32 %v4649_v53, %v3445_v36 }
 0x555   :  { %v3774_v59 = vadd.f32 0.5, %v3742_v16 }
 0x556   :  { %5171 = vtanh.f32 %v3681_v55  ;;  %v3682_v40 = vmul.f32 0.5, %v3606_v28  ;;  %v4650_v10 = vpop.f32.mrb[228].mxu1  ;;  %v3469_v55 = vadd.f32 %v6330_v51, %v6351_v25 }
 0x557   :  { %v4391_v54 = vpack.c.bf16 %v3774_v59, %v3773_v12  ;;  %v4651_v21 = vpop.f32.mrb[229].mxu1 }
 0x558   :  { %v5168_v32 = vpop.eup %5167  ;;  %5173 = vtanh.f32 %v3682_v40  ;;  %v4652_v23 = vadd.f32 %v4651_v21, %v4650_v10  ;;  %v4653_v3 = vpop.f32.mrb[230].mxu1 }
 0x559   :  { %4458 = vst [vmem:[#allocation13 + $0x30] sm:$0xff] %v4391_v54   ;;  %v3743_v33 = vmul.f32 0.5, %v5168_v32  ;;  %v4654_v63 = vpop.f32.mrb[231].mxu1 }
 0x55a   :  { %v5170_v15 = vpop.eup %5169  ;;  %v3611_v62 = vadd.f32 %v4652_v23, %v3450_v30  ;;  %v4655_v4 = vadd.f32 %v4654_v63, %v4653_v3 }
 0x55b   :  { %v3744_v47 = vmul.f32 0.5, %v5170_v15  ;;  %v3775_v50 = vadd.f32 0.5, %v3743_v33  ;;  %v3474_v33 = vadd.f32 %v6332_v49, %v6351_v25 }
 0x55c   :  { %v3683_v19 = vmul.f32 0.5, %v3611_v62  ;;  %v3614_v7 = vadd.f32 %v4655_v4, %v3453_v46  ;;  %v3477_v4 = vadd.f32 %v6334_v41, %v6351_v25 }
 0x55d   :  { %v3776_v2 = vadd.f32 0.5, %v3744_v47 }
 0x55e   :  { %5175 = vtanh.f32 %v3683_v19  ;;  %v3684_v22 = vmul.f32 0.5, %v3614_v7  ;;  %v4656_v11 = vpop.f32.mrb[232].mxu1 }
 0x55f   :  { %v4396_v35 = vpack.c.bf16 %v3776_v2, %v3775_v50  ;;  %v4657_v45 = vpop.f32.mrb[233].mxu1 }
 0x560   :  { %v5172_v26 = vpop.eup %5171  ;;  %5177 = vtanh.f32 %v3684_v22  ;;  %v4658_v6 = vadd.f32 %v4657_v45, %v4656_v11  ;;  %v4659_v14 = vpop.f32.mrb[234].mxu1 }
 0x561   :  { %4459 = vst [vmem:[#allocation13 + $0x38] sm:$0xff] %v4396_v35   ;;  %v3745_v60 = vmul.f32 0.5, %v5172_v26  ;;  %v4660_v20 = vpop.f32.mrb[235].mxu1 }
 0x562   :  { %v5174_v24 = vpop.eup %5173  ;;  %v3619_v39 = vadd.f32 %v4658_v6, %v3458_v52  ;;  %v4661_v29 = vadd.f32 %v4660_v20, %v4659_v14  ;;  %v3482_v6 = vadd.f32 %v6336_v56, %v6351_v25 }
 0x563   :  { %v3746_v13 = vmul.f32 0.5, %v5174_v24  ;;  %v3777_v17 = vadd.f32 0.5, %v3745_v60 }
 0x564   :  { %v3685_v48 = vmul.f32 0.5, %v3619_v39  ;;  %v3622_v42 = vadd.f32 %v4661_v29, %v3461_v18  ;;  %v3485_v18 = vadd.f32 %v6338_v57, %v6351_v25 }
 0x565   :  { %v3778_v1 = vadd.f32 0.5, %v3746_v13 }
 0x566   :  { %5179 = vtanh.f32 %v3685_v48  ;;  %v3686_v44 = vmul.f32 0.5, %v3622_v42  ;;  %v4662_v8 = vpop.f32.mrb[236].mxu1 }
 0x567   :  { %v4401_v61 = vpack.c.bf16 %v3778_v1, %v3777_v17  ;;  %v4663_v27 = vpop.f32.mrb[237].mxu1 }
 0x568   :  { %v5176_v31 = vpop.eup %5175  ;;  %5181 = vtanh.f32 %v3686_v44  ;;  %v4664_v36 = vadd.f32 %v4663_v27, %v4662_v8  ;;  %v4665_v37 = vpop.f32.mrb[238].mxu1 }
 0x569   :  { %4460 = vst [vmem:[#allocation13 + $0x40] sm:$0xff] %v4401_v61   ;;  %v3747_v38 = vmul.f32 0.5, %v5176_v31  ;;  %v4666_v53 = vpop.f32.mrb[239].mxu1  ;;  %v3490_v31 = vadd.f32 %v6340_v43, %v6351_v25 }
 0x56a   :  { %v5178_v16 = vpop.eup %5177  ;;  %v3627_v28 = vadd.f32 %v4664_v36, %v3466_v5  ;;  %v4667_v12 = vadd.f32 %v4666_v53, %v4665_v37  ;;  %v3493_v53 = vadd.f32 %v6342_v58, %v6351_v25 }
 0x56b   :  { %v3748_v59 = vmul.f32 0.5, %v5178_v16  ;;  %v3779_v54 = vadd.f32 0.5, %v3747_v38 }
 0x56c   :  { %v3687_v40 = vmul.f32 0.5, %v3627_v28  ;;  %v3630_v10 = vadd.f32 %v4667_v12, %v3469_v55 }
 0x56d   :  { %v3780_v21 = vadd.f32 0.5, %v3748_v59 }
 0x56e   :  { %5183 = vtanh.f32 %v3687_v40  ;;  %v3688_v32 = vmul.f32 0.5, %v3630_v10  ;;  %v4668_v9 = vpop.f32.mrb[240].mxu1 }
 0x56f   :  { %v4406_v30 = vpack.c.bf16 %v3780_v21, %v3779_v54  ;;  %v4669_v23 = vpop.f32.mrb[241].mxu1 }
 0x570   :  { %v5180_v3 = vpop.eup %5179  ;;  %5185 = vtanh.f32 %v3688_v32  ;;  %v4670_v63 = vadd.f32 %v4669_v23, %v4668_v9  ;;  %v4671_v15 = vpop.f32.mrb[242].mxu1 }
 0x571   :  { %4461 = vst [vmem:[#allocation13 + $0x48] sm:$0xff] %v4406_v30   ;;  %v3749_v51 = vmul.f32 0.5, %v5180_v3  ;;  %v4672_v46 = vpop.f32.mrb[243].mxu1  ;;  %v3498_v30 = vadd.f32 %v6344_v0, %v6351_v25 }
 0x572   :  { %v5182_v62 = vpop.eup %5181  ;;  %v3635_v47 = vadd.f32 %v4670_v63, %v3474_v33  ;;  %v4673_v19 = vadd.f32 %v4672_v46, %v4671_v15  ;;  %v3501_v15 = vadd.f32 %v6346_v34, %v6351_v25 }
 0x573   :  { %v3750_v7 = vmul.f32 0.5, %v5182_v62  ;;  %v3781_v22 = vadd.f32 0.5, %v3749_v51 }
 0x574   :  { %v3689_v50 = vmul.f32 0.5, %v3635_v47  ;;  %v3638_v2 = vadd.f32 %v4673_v19, %v3477_v4 }
 0x575   :  { %v3782_v11 = vadd.f32 0.5, %v3750_v7 }
 0x576   :  { %5187 = vtanh.f32 %v3689_v50  ;;  %v3690_v35 = vmul.f32 0.5, %v3638_v2  ;;  %v4674_v49 = vpop.f32.mrb[244].mxu1 }
 0x577   :  { %v4411_v45 = vpack.c.bf16 %v3782_v11, %v3781_v22  ;;  %v4675_v26 = vpop.f32.mrb[245].mxu1 }
 0x578   :  { %v5184_v52 = vpop.eup %5183  ;;  %5189 = vtanh.f32 %v3690_v35  ;;  %v4676_v14 = vadd.f32 %v4675_v26, %v4674_v49  ;;  %v4677_v60 = vpop.f32.mrb[246].mxu1 }
 0x579   :  { %4462 = vst [vmem:[#allocation13 + $0x50] sm:$0xff] %v4411_v45   ;;  %v3751_v41 = vmul.f32 0.5, %v5184_v52  ;;  %v4678_v20 = vpop.f32.mrb[247].mxu1 }
 0x57a   :  { %v5186_v24 = vpop.eup %5185  ;;  %v3643_v39 = vadd.f32 %v4676_v14, %v3482_v6  ;;  %v4679_v29 = vadd.f32 %v4678_v20, %v4677_v60 }
 0x57b   :  { %v3752_v13 = vmul.f32 0.5, %v5186_v24  ;;  %v3783_v17 = vadd.f32 0.5, %v3751_v41 }
 0x57c   :  { %v3691_v48 = vmul.f32 0.5, %v3643_v39  ;;  %v3646_v42 = vadd.f32 %v4679_v29, %v3485_v18 }
 0x57d   :  { %v3784_v1 = vadd.f32 0.5, %v3752_v13 }
 0x57e   :  { %5191 = vtanh.f32 %v3691_v48  ;;  %v3692_v44 = vmul.f32 0.5, %v3646_v42  ;;  %v4680_v56 = vpop.f32.mrb[248].mxu1 }
 0x57f   :  { %v4416_v8 = vpack.c.bf16 %v3784_v1, %v3783_v17  ;;  %v4681_v61 = vpop.f32.mrb[249].mxu1 }
 0x580   :  { %v5188_v27 = vpop.eup %5187  ;;  %5193 = vtanh.f32 %v3692_v44  ;;  %v4682_v5 = vadd.f32 %v4681_v61, %v4680_v56  ;;  %v4683_v36 = vpop.f32.mrb[250].mxu1 }
 0x581   :  { %4463 = vst [vmem:[#allocation13 + $0x58] sm:$0xff] %v4416_v8   ;;  %v3753_v57 = vmul.f32 0.5, %v5188_v27  ;;  %v4684_v37 = vpop.f32.mrb[251].mxu1 }
 0x582   :  { %v5190_v38 = vpop.eup %5189  ;;  %v3651_v16 = vadd.f32 %v4682_v5, %v3490_v31  ;;  %v4685_v55 = vadd.f32 %v4684_v37, %v4683_v36 }
 0x583   :  { %v3754_v28 = vmul.f32 0.5, %v5190_v38  ;;  %v3785_v40 = vadd.f32 0.5, %v3753_v57 }
 0x584   :  { %v3693_v12 = vmul.f32 0.5, %v3651_v16  ;;  %v3654_v59 = vadd.f32 %v4685_v55, %v3493_v53 }
 0x585   :  { %v3786_v10 = vadd.f32 0.5, %v3754_v28 }
 0x586   :  { %5195 = vtanh.f32 %v3693_v12  ;;  %v3694_v54 = vmul.f32 0.5, %v3654_v59  ;;  %v4686_v43 = vpop.f32.mrb[252].mxu1 }
 0x587   :  { %v4421_v21 = vpack.c.bf16 %v3786_v10, %v3785_v40  ;;  %v4687_v32 = vpop.f32.mrb[253].mxu1 }
 0x588   :  { %v5192_v9 = vpop.eup %5191  ;;  %5197 = vtanh.f32 %v3694_v54  ;;  %v4688_v23 = vadd.f32 %v4687_v32, %v4686_v43  ;;  %v4689_v3 = vpop.f32.mrb[254].mxu1 }
 0x589   :  { %4464 = vst [vmem:[#allocation13 + $0x60] sm:$0xff] %v4421_v21   ;;  %v3755_v58 = vmul.f32 0.5, %v5192_v9  ;;  %v4690_v33 = vpop.f32.mrb[255].mxu1 }
 0x58a   :  { %v5194_v63 = vpop.eup %5193  ;;  %v3659_v51 = vadd.f32 %v4688_v23, %v3498_v30  ;;  %v4691_v46 = vadd.f32 %v4690_v33, %v4689_v3 }
 0x58b   :  { %v3756_v62 = vmul.f32 0.5, %v5194_v63  ;;  %v3787_v19 = vadd.f32 0.5, %v3755_v58 }
 0x58c   :  { %v3695_v4 = vmul.f32 0.5, %v3659_v51  ;;  %v3662_v47 = vadd.f32 %v4691_v46, %v3501_v15 }
 0x58d   :  { %v3788_v7 = vadd.f32 0.5, %v3756_v62 }
 0x58e   :  { %5199 = vtanh.f32 %v3695_v4  ;;  %v3696_v50 = vmul.f32 0.5, %v3662_v47 }
 0x58f   :  { %v4426_v0 = vpack.c.bf16 %v3788_v7, %v3787_v19 }
 0x590   :  { %v5196_v2 = vpop.eup %5195  ;;  %5201 = vtanh.f32 %v3696_v50 }
 0x591   :  { %4465 = vst [vmem:[#allocation13 + $0x68] sm:$0xff] %v4426_v0   ;;  %v3757_v22 = vmul.f32 0.5, %v5196_v2 }
 0x592   :  { %v5198_v11 = vpop.eup %5197 }
 0x593   :  { %v3758_v35 = vmul.f32 0.5, %v5198_v11  ;;  %v3789_v49 = vadd.f32 0.5, %v3757_v22 }
 0x595   :  { %v3790_v45 = vadd.f32 0.5, %v3758_v35 }
 0x597   :  { %v4431_v26 = vpack.c.bf16 %v3790_v45, %v3789_v49 }
 0x598   :  { %v5200_v34 = vpop.eup %5199 }
 0x599   :  { %4466 = vst [vmem:[#allocation13 + $0x70] sm:$0xff] %v4431_v26   ;;  %v3759_v25 = vmul.f32 0.5, %v5200_v34 }
 0x59a   :  { %v5202_v52 = vpop.eup %5201 }
 0x59b   :  { %v3760_v6 = vmul.f32 0.5, %v5202_v52  ;;  %v3791_v14 = vadd.f32 0.5, %v3759_v25 }
 0x59d   :  { %v3792_v60 = vadd.f32 0.5, %v3760_v6 }
 0x59f   :  { %v4436_v41 = vpack.c.bf16 %v3792_v60, %v3791_v14 }
 0x5a1   :  { %4467 = vst [vmem:[#allocation13 + $0x78] sm:$0xff] %v4436_v41  }
 0x5a2   :  { %5368 = shalt.err (!%p5365_p4)
}
 0x5a3   :  { %s5369_s24 = scalar_lea.hbm %s6457_s10, 2048 }
 0x5a4   :  { %p5370_p5 = scmp.ne.s32.totalorder %s6457_s10, %s5369_s24  ;;  %p5373_p6 = scmp.lt.u32.totalorder %s5369_s24, %s6457_s10 }
 0x5a6   :  { %p5375_p7 = pnand %p5373_p6, %p5370_p5 }
 0x5a8   :  { %5378 = shalt.err (!%p5375_p7)
}
 0x5a9   :  { %3964 = dma.vmem_to_hbm [thread:$0]  %s3959_s1, 2048, %s6457_s10, [#allocation4], %s5393_s29, %s5393_s29, %s5394_s30  }
 0x5aa   :  { %5387 = dma.done.wait [#allocation4], 2048  }
 0x5ab   :  { %5388 = vsyncadd [#allocation4], 4294965248 }
 0x5ac   :  { %5389 = dma.done.wait [#allocation15], 4096  }
 0x5ad   :  { %5390 = vsyncadd [#allocation15], 4294963200 }
 0x5ae   :  { %3983 = vsyncpa [#allocation3], 1 }
 0x5af   :  { %3984 = vsyncpa [#allocation6], 1 }
 0x5b0   :  { %3985 = vsyncpa [#allocation9], 1 }
 0x5b1   :  { %3986 = vsyncpa [#allocation12], 1 }
 0x5b2   :  { %3987 = vsyncpa [#allocation4], 1 }
 0x5b3   :  { %3988 = vsyncpa [#allocation15], 1 }

// kernel: tpu_custom_call.1
= control target key start
LH: loop header
LB: loop body
LE: loop exit
PB: predicated region body
PF: predicated region fallthrough
CT: control target
= control target key end

     0   :  { %17 = vsyncpa [#allocation3], 0  ;;  %s6447_s0 = inlined_call_operand.hbm [shape: bf16[256,128], index: 0, kind: input, shape index: {}]   ;;  %s6448_s1 = inlined_call_operand.hbm [shape: bf16[256,128], index: 1, kind: input, shape index: {}]   ;;  %s6449_s2 = inlined_call_operand.hbm [shape: bf16[128,512], index: 2, kind: input, shape index: {}]   ;;  %s6450_s3 = inlined_call_operand.vmem [shape: f32[1,512], index: 3, kind: input, shape index: {}]   ;;  %s6451_s4 = inlined_call_operand.hbm [shape: bf16[512,256], index: 4, kind: input, shape index: {}]   ;;  %s6452_s5 = inlined_call_operand.vmem [shape: f32[1,256], index: 5, kind: input, shape index: {}]   ;;  %s6453_s6 = inlined_call_operand.hbm [shape: bf16[128,512], index: 6, kind: input, shape index: {}]   ;;  %s6454_s7 = inlined_call_operand.vmem [shape: f32[1,512], index: 7, kind: input, shape index: {}]   ;;  %s6455_s8 = inlined_call_operand.hbm [shape: bf16[512,128], index: 8, kind: input, shape index: {}]   ;;  %s6456_s9 = inlined_call_operand.vmem [shape: f32[1,128], index: 9, kind: input, shape index: {}]   ;;  %s6457_s10 = inlined_call_operand.hbm [shape: bf16[256,128], index: 10, kind: output, shape index: {0}]   ;;  %s6458_s11 = inlined_call_operand.hbm [shape: bf16[256,256], index: 11, kind: output, shape index: {1}]  }
   0x1   :  { %18 = vsyncpa [#allocation6], 0 }
   0x2   :  { %19 = vsyncpa [#allocation9], 0 }
   0x3   :  { %20 = vsyncpa [#allocation12], 0 }
   0x4   :  { %21 = vsyncpa [#allocation4], 0 }
   0x5   :  { %22 = vsyncpa [#allocation15], 0  ;;  %s5391_s17 = smov [#allocation5]   ;;  %s5392_s19 = smov [#allocation8]  }
   0x6   :  { %s40_s18 = sshll.u32 %s5391_s17, 4  ;;  %s66_s20 = sshll.u32 %s5392_s19, 4  ;;  %s41_s18 = int_to_ptr.vmem [resolvable:$true] %s40_s18  ;;  %s5466_s20 = int_to_ptr.vmem [resolvable:$true] %s66_s20 }
   0x7   :  { %s5203_s23 = scalar_lea.hbm %s6448_s1, 2048 }
   0x8   :  { %p5204_p0 = scmp.ne.s32.totalorder %s6448_s1, %s5203_s23  ;;  %p5207_p1 = scmp.lt.u32.totalorder %s5203_s23, %s6448_s1 }
   0xa   :  { %p5209_p2 = pnand %p5207_p1, %p5204_p0 }
   0xc   :  { %5212 = shalt.err (!%p5209_p2)
}
   0xd   :  { %s5213_s28 = scalar_lea.vmem %s41_s18, 2048  ;;  %p5218_p4 = scmp.lt.s32.totalorder %s41_s18, %s41_s18 }
   0xe   :  { %p5214_p3 = scmp.ne.s32.totalorder %s41_s18, %s5213_s28  ;;  %p5219_p5 = scmp.lt.s32.totalorder %s5213_s28, %s5213_s28 }
  0x10   :  { %p5220_p6 = por %p5219_p5, %p5218_p4 }
  0x12   :  { %p5221_p7 = pnand %p5220_p6, %p5214_p3 }
  0x14   :  { %5224 = shalt.err (!%p5221_p7)
}
  0x15   :  { %s5393_s29 = smov 64   ;;  %s5394_s30 = smov 4  }
  0x16   :  { %46 = dma.hbm_to_vmem [thread:$0]  %s6448_s1, 2048, %s41_s18, [#allocation6], %s5393_s29, %s5393_s29, %s5394_s30  }
  0x17   :  { %s5225_s16 = scalar_lea.hbm %s6451_s4, 8192 }
  0x18   :  { %p5226_p8 = scmp.ne.s32.totalorder %s6451_s4, %s5225_s16  ;;  %p5229_p9 = scmp.lt.u32.totalorder %s5225_s16, %s6451_s4 }
  0x1a   :  { %p5231_p10 = pnand %p5229_p9, %p5226_p8 }
  0x1c   :  { %5234 = shalt.err (!%p5231_p10)
}
  0x1d   :  { %s5235_s23 = scalar_lea.vmem %s5466_s20, 8192  ;;  %p5240_p12 = scmp.lt.s32.totalorder %s5466_s20, %s5466_s20 }
  0x1e   :  { %p5236_p11 = scmp.ne.s32.totalorder %s5466_s20, %s5235_s23  ;;  %p5241_p13 = scmp.lt.s32.totalorder %s5235_s23, %s5235_s23 }
  0x20   :  { %p5242_p0 = por %p5241_p13, %p5240_p12 }
  0x22   :  { %p5243_p1 = pnand %p5242_p0, %p5236_p11 }
  0x24   :  { %5246 = shalt.err (!%p5243_p1)
}
  0x25   :  { %s5395_s1 = smov 128   ;;  %s5396_s18 = smov 8  }
  0x26   :  { %72 = dma.hbm_to_vmem [thread:$0]  %s6451_s4, 8192, %s5466_s20, [#allocation9], %s5395_s1, %s5395_s1, %s5396_s18  }
  0x27   :  { %s5397_s26 = smov [#allocation2]   ;;  %s5398_s28 = smov [#allocation7]  }
  0x28   :  { %s28_s27 = sshll.u32 %s5397_s26, 4  ;;  %s52_s12 = sshll.u32 %s5398_s28, 4  ;;  %s29_s27 = int_to_ptr.vmem [resolvable:$true] %s28_s27  ;;  %s5503_s12 = int_to_ptr.vmem [resolvable:$true] %s52_s12 }
  0x29   :  { %s5247_s15 = scalar_lea.hbm %s6447_s0, 2048 }
  0x2a   :  { %p5248_p2 = scmp.ne.s32.totalorder %s6447_s0, %s5247_s15  ;;  %p5251_p3 = scmp.lt.u32.totalorder %s5247_s15, %s6447_s0 }
  0x2c   :  { %p5253_p4 = pnand %p5251_p3, %p5248_p2 }
  0x2e   :  { %5256 = shalt.err (!%p5253_p4)
}
  0x2f   :  { %s5257_s4 = scalar_lea.vmem %s29_s27, 2048  ;;  %p5262_p6 = scmp.lt.s32.totalorder %s29_s27, %s29_s27 }
  0x30   :  { %p5258_p5 = scmp.ne.s32.totalorder %s29_s27, %s5257_s4  ;;  %p5263_p7 = scmp.lt.s32.totalorder %s5257_s4, %s5257_s4 }
  0x32   :  { %p5264_p8 = por %p5263_p7, %p5262_p6 }
  0x34   :  { %p5265_p9 = pnand %p5264_p8, %p5258_p5 }
  0x36   :  { %5268 = shalt.err (!%p5265_p9)
}
  0x37   :  { %34 = dma.hbm_to_vmem [thread:$0]  %s6447_s0, 2048, %s29_s27, [#allocation3], %s5393_s29, %s5393_s29, %s5394_s30  }
  0x38   :  { %s5269_s25 = scalar_lea.hbm %s6449_s2, 4096 }
  0x39   :  { %p5270_p10 = scmp.ne.s32.totalorder %s6449_s2, %s5269_s25  ;;  %p5273_p11 = scmp.lt.u32.totalorder %s5269_s25, %s6449_s2 }
  0x3b   :  { %p5275_p12 = pnand %p5273_p11, %p5270_p10 }
  0x3d   :  { %5278 = shalt.err (!%p5275_p12)
}
  0x3e   :  { %s5279_s15 = scalar_lea.vmem %s5503_s12, 4096  ;;  %p5284_p0 = scmp.lt.s32.totalorder %s5503_s12, %s5503_s12 }
  0x3f   :  { %p5280_p13 = scmp.ne.s32.totalorder %s5503_s12, %s5279_s15  ;;  %p5285_p1 = scmp.lt.s32.totalorder %s5279_s15, %s5279_s15 }
  0x41   :  { %p5286_p2 = por %p5285_p1, %p5284_p0 }
  0x43   :  { %p5287_p3 = pnand %p5286_p2, %p5280_p13 }
  0x45   :  { %5290 = shalt.err (!%p5287_p3)
}
  0x46   :  { %s5399_s0 = smov 256   ;;  %s5400_s27 = smov 16  }
  0x47   :  { %58 = dma.hbm_to_vmem [thread:$0]  %s6449_s2, 4096, %s5503_s12, [#allocation6], %s5399_s0, %s5399_s0, %s5400_s27  }
  0x48   :  { %s5401_s19 = smov [#allocation10]   ;;  %s5402_s4 = smov [#allocation11]  }
  0x49   :  { %s80_s21 = sshll.u32 %s5401_s19, 4  ;;  %s94_s20 = sshll.u32 %s5402_s4, 4  ;;  %s81_s21 = int_to_ptr.vmem [resolvable:$true] %s80_s21  ;;  %s5537_s20 = int_to_ptr.vmem [resolvable:$true] %s94_s20 }
  0x4a   :  { %s5291_s24 = scalar_lea.hbm %s6453_s6, 4096 }
  0x4b   :  { %p5292_p4 = scmp.ne.s32.totalorder %s6453_s6, %s5291_s24  ;;  %p5295_p5 = scmp.lt.u32.totalorder %s5291_s24, %s6453_s6 }
  0x4d   :  { %p5297_p6 = pnand %p5295_p5, %p5292_p4 }
  0x4f   :  { %5300 = shalt.err (!%p5297_p6)
}
  0x50   :  { %s5301_s2 = scalar_lea.vmem %s81_s21, 4096  ;;  %p5306_p8 = scmp.lt.s32.totalorder %s81_s21, %s81_s21 }
  0x51   :  { %p5302_p7 = scmp.ne.s32.totalorder %s81_s21, %s5301_s2  ;;  %p5307_p9 = scmp.lt.s32.totalorder %s5301_s2, %s5301_s2 }
  0x53   :  { %p5308_p10 = por %p5307_p9, %p5306_p8 }
  0x55   :  { %p5309_p11 = pnand %p5308_p10, %p5302_p7 }
  0x57   :  { %5312 = shalt.err (!%p5309_p11)
}
  0x58   :  { %86 = dma.hbm_to_vmem [thread:$0]  %s6453_s6, 4096, %s81_s21, [#allocation9], %s5399_s0, %s5399_s0, %s5400_s27  }
  0x59   :  { %s5313_s17 = scalar_lea.hbm %s6455_s8, 4096 }
  0x5a   :  { %p5314_p12 = scmp.ne.s32.totalorder %s6455_s8, %s5313_s17  ;;  %p5317_p13 = scmp.lt.u32.totalorder %s5313_s17, %s6455_s8 }
  0x5c   :  { %p5319_p0 = pnand %p5317_p13, %p5314_p12 }
  0x5e   :  { %5322 = shalt.err (!%p5319_p0)
}
  0x5f   :  { %s5323_s24 = scalar_lea.vmem %s5537_s20, 4096  ;;  %p5328_p2 = scmp.lt.s32.totalorder %s5537_s20, %s5537_s20 }
  0x60   :  { %p5324_p1 = scmp.ne.s32.totalorder %s5537_s20, %s5323_s24  ;;  %p5329_p3 = scmp.lt.s32.totalorder %s5323_s24, %s5323_s24 }
  0x62   :  { %p5330_p4 = por %p5329_p3, %p5328_p2 }
  0x64   :  { %p5331_p5 = pnand %p5330_p4, %p5324_p1 }
  0x66   :  { %5334 = shalt.err (!%p5331_p5)
}
  0x67   :  { %100 = dma.hbm_to_vmem [thread:$0]  %s6455_s8, 4096, %s5537_s20, [#allocation12], %s5393_s29, %s5393_s29, %s5394_s30  }
  0x68   :  { %5379 = dma.done.wait [#allocation3], 2048  }
  0x69   :  { %5380 = vsyncadd [#allocation3], 4294965248 }
  0x6a   :  { %5381 = dma.done.wait [#allocation6], 6144  }
  0x6b   :  { %5382 = vsyncadd [#allocation6], 4294961152 }
  0x6c   :  { %5383 = dma.done.wait [#allocation9], 12288  }
  0x6d   :  { %5384 = vsyncadd [#allocation9], 4294955008 }
  0x6e   :  { %5385 = dma.done.wait [#allocation12], 4096  }
  0x6f   :  { %5386 = vsyncadd [#allocation12], 4294963200  ;;  %v5403_v0 = vmov 0   ;;  %v4835_v1 = vld [vmem:[#allocation7 + $0x4] ss:$16 sps:$4 sm:$0xff]   ;;  %v4860_v32 = vld [vmem:[#allocation2 + $0x8] sm:$0xff]  }
  0x70   :  { %496 = vmatprep.mubr.bf16.mxu0 %v5403_v0  ;;  %689 = vmatprep.mubr.bf16.mxu1 %v5403_v0  ;;  %v4837_v2 = vld [vmem:[#allocation7] ss:$16 sps:$4 sm:$0xff]   ;;  %v4838_v3 = vld [vmem:[#allocation7 + $0x24] ss:$16 sps:$4 sm:$0xff]   ;;  %v4871_v15 = vld [vmem:[#allocation7 + $0xc] ss:$16 sps:$4 sm:$0xff]  }
  0x71   :  { %464 = vmatprep.subr.bf16.mxu0 %v4835_v1  ;;  %v4840_v4 = vld [vmem:[#allocation7 + $0x20] ss:$16 sps:$4 sm:$0xff]   ;;  %v4841_v5 = vld [vmem:[#allocation7 + $0x44] ss:$16 sps:$4 sm:$0xff]   ;;  %657 = vmatprep.subr.bf16.mxu1 %v4871_v15  ;;  %v4876_v18 = vld [vmem:[#allocation7 + $0x8] ss:$16 sps:$4 sm:$0xff]  }
  0x72   :  { %465 = vmatpush1.bf16.msra.mxu0 %v4837_v2  ;;  %v4843_v6 = vld [vmem:[#allocation7 + $0x40] ss:$16 sps:$4 sm:$0xff]   ;;  %v4844_v7 = vld [vmem:[#allocation7 + $0x64] ss:$16 sps:$4 sm:$0xff]   ;;  %658 = vmatpush1.bf16.msra.mxu1 %v4876_v18  ;;  %v4878_v20 = vld [vmem:[#allocation7 + $0x2c] ss:$16 sps:$4 sm:$0xff]  }
  0x73   :  { %466 = vmatprep.subr.bf16.mxu0 %v4838_v3  ;;  %v4846_v8 = vld [vmem:[#allocation7 + $0x60] ss:$16 sps:$4 sm:$0xff]   ;;  %v4847_v9 = vld [vmem:[#allocation7 + $0x84] ss:$16 sps:$4 sm:$0xff]   ;;  %v4880_v21 = vld [vmem:[#allocation7 + $0x28] ss:$16 sps:$4 sm:$0xff]   ;;  %659 = vmatprep.subr.bf16.mxu1 %v4878_v20 }
  0x74   :  { %v4849_v10 = vld [vmem:[#allocation7 + $0x80] ss:$16 sps:$4 sm:$0xff]   ;;  %v4850_v11 = vld [vmem:[#allocation7 + $0xa4] ss:$16 sps:$4 sm:$0xff]   ;;  %v4881_v22 = vld [vmem:[#allocation7 + $0x4c] ss:$16 sps:$4 sm:$0xff]  }
  0x75   :  { %v4852_v12 = vld [vmem:[#allocation7 + $0xa0] ss:$16 sps:$4 sm:$0xff]   ;;  %v4853_v13 = vld [vmem:[#allocation7 + $0xc4] ss:$16 sps:$4 sm:$0xff]   ;;  %v4886_v26 = vld [vmem:[#allocation7 + $0x48] ss:$16 sps:$4 sm:$0xff]  }
  0x76   :  { %467 = vmatpush1.bf16.msra.mxu0 %v4840_v4  ;;  %v4855_v14 = vld [vmem:[#allocation7 + $0xc0] ss:$16 sps:$4 sm:$0xff]   ;;  %v4856_v16 = vld [vmem:[#allocation7 + $0xe4] ss:$16 sps:$4 sm:$0xff]   ;;  %660 = vmatpush1.bf16.msra.mxu1 %v4880_v21  ;;  %v4888_v27 = vld [vmem:[#allocation7 + $0x6c] ss:$16 sps:$4 sm:$0xff]  }
  0x77   :  { %468 = vmatprep.subr.bf16.mxu0 %v4841_v5  ;;  %v4858_v17 = vld [vmem:[#allocation7 + $0xe0] ss:$16 sps:$4 sm:$0xff]   ;;  %v4875_v19 = vld [vmem:[#allocation8 + $0x4] ss:$8 sps:$4 sm:$0xff]   ;;  %661 = vmatprep.subr.bf16.mxu1 %v4881_v22  ;;  %v4885_v25 = vld [vmem:[#allocation8 + $0x14] ss:$8 sps:$4 sm:$0xff]  }
  0x78   :  { %v5573_v23 = vld [vmem:[#allocation2] sm:$0xff]   ;;  %v4883_v28 = vld [vmem:[#allocation8 + $0x10] ss:$8 sps:$4 sm:$0xff]   ;;  %v4891_v31 = vld [vmem:[#allocation7 + $0x8c] ss:$16 sps:$4 sm:$0xff]  }
  0x79   :  { %v4873_v24 = vld [vmem:[#allocation8] ss:$8 sps:$4 sm:$0xff]   ;;  %v4895_v30 = vld [vmem:[#allocation8 + $0x24] ss:$8 sps:$4 sm:$0xff]   ;;  %v4905_v35 = vld [vmem:[#allocation8 + $0x34] ss:$8 sps:$4 sm:$0xff]  }
  0x7a   :  { %469 = vmatpush1.bf16.msra.mxu0 %v4843_v6  ;;  %v4890_v29 = vld [vmem:[#allocation7 + $0x68] ss:$16 sps:$4 sm:$0xff]   ;;  %662 = vmatpush1.bf16.msra.mxu1 %v4886_v26  ;;  %v4898_v36 = vld [vmem:[#allocation7 + $0xac] ss:$16 sps:$4 sm:$0xff]   ;;  %v4861_v41 = vld [vmem:[#allocation2 + $0x10] sm:$0xff]  }
  0x7b   :  { %470 = vmatprep.subr.bf16.mxu0 %v4844_v7  ;;  %663 = vmatprep.subr.bf16.mxu1 %v4888_v27  ;;  %v4893_v33 = vld [vmem:[#allocation8 + $0x20] ss:$8 sps:$4 sm:$0xff]   ;;  %v4903_v38 = vld [vmem:[#allocation8 + $0x30] ss:$8 sps:$4 sm:$0xff]   ;;  %v4913_v39 = vld [vmem:[#allocation8 + $0x44] ss:$8 sps:$4 sm:$0xff]  }
  0x7c   :  { %v4896_v34 = vld [vmem:[#allocation7 + $0x88] ss:$16 sps:$4 sm:$0xff]   ;;  %v4901_v40 = vld [vmem:[#allocation7 + $0xcc] ss:$16 sps:$4 sm:$0xff]   ;;  %v4863_v54 = vld [vmem:[#allocation2 + $0x20] sm:$0xff]  }
  0x7d   :  { %v4900_v37 = vld [vmem:[#allocation7 + $0xa8] ss:$16 sps:$4 sm:$0xff]   ;;  %v4916_v44 = vld [vmem:[#allocation8 + $0x54] ss:$8 sps:$4 sm:$0xff]   ;;  %v4919_v48 = vld [vmem:[#allocation8 + $0x64] ss:$8 sps:$4 sm:$0xff]  }
  0x7e   :  { %471 = vmatpush1.bf16.msra.mxu0 %v4846_v8  ;;  %664 = vmatpush1.bf16.msra.mxu1 %v4890_v29  ;;  %v4906_v42 = vld [vmem:[#allocation7 + $0xc8] ss:$16 sps:$4 sm:$0xff]   ;;  %v4908_v45 = vld [vmem:[#allocation7 + $0xec] ss:$16 sps:$4 sm:$0xff]   ;;  %v4865_v1 = vld [vmem:[#allocation2 + $0x30] sm:$0xff]  }
  0x7f   :  { %472 = vmatprep.subr.bf16.mxu0 %v4847_v9  ;;  %665 = vmatprep.subr.bf16.mxu1 %v4891_v31  ;;  %v4911_v43 = vld [vmem:[#allocation8 + $0x40] ss:$8 sps:$4 sm:$0xff]   ;;  %v4914_v47 = vld [vmem:[#allocation8 + $0x50] ss:$8 sps:$4 sm:$0xff]   ;;  %v4922_v51 = vld [vmem:[#allocation8 + $0x74] ss:$8 sps:$4 sm:$0xff]  }
  0x80   :  { %v4910_v46 = vld [vmem:[#allocation7 + $0xe8] ss:$16 sps:$4 sm:$0xff]   ;;  %v4925_v53 = vld [vmem:[#allocation8 + $0x84] ss:$8 sps:$4 sm:$0xff]   ;;  %v4928_v56 = vld [vmem:[#allocation8 + $0x94] ss:$8 sps:$4 sm:$0xff]  }
  0x81   :  { %v4862_v49 = vld [vmem:[#allocation2 + $0x18] sm:$0xff]   ;;  %v4917_v50 = vld [vmem:[#allocation8 + $0x60] ss:$8 sps:$4 sm:$0xff]   ;;  %v4931_v58 = vld [vmem:[#allocation8 + $0xa4] ss:$8 sps:$4 sm:$0xff]  }
  0x82   :  { %473 = vmatpush1.bf16.msra.mxu0 %v4849_v10  ;;  %666 = vmatpush1.bf16.msra.mxu1 %v4896_v34  ;;  %v4920_v52 = vld [vmem:[#allocation8 + $0x70] ss:$8 sps:$4 sm:$0xff]   ;;  %v4923_v55 = vld [vmem:[#allocation8 + $0x80] ss:$8 sps:$4 sm:$0xff]   ;;  %v4934_v61 = vld [vmem:[#allocation8 + $0xb4] ss:$8 sps:$4 sm:$0xff]  }
  0x83   :  { %474 = vmatprep.subr.bf16.mxu0 %v4850_v11  ;;  %667 = vmatprep.subr.bf16.mxu1 %v4898_v36  ;;  %v4926_v57 = vld [vmem:[#allocation8 + $0x90] ss:$8 sps:$4 sm:$0xff]   ;;  %v4864_v59 = vld [vmem:[#allocation2 + $0x28] sm:$0xff]   ;;  %v4940_v3 = vld [vmem:[#allocation8 + $0xd4] ss:$8 sps:$4 sm:$0xff]  }
  0x84   :  { %v4929_v60 = vld [vmem:[#allocation8 + $0xa0] ss:$8 sps:$4 sm:$0xff]   ;;  %v4932_v62 = vld [vmem:[#allocation8 + $0xb0] ss:$8 sps:$4 sm:$0xff]   ;;  %v4937_v63 = vld [vmem:[#allocation8 + $0xc4] ss:$8 sps:$4 sm:$0xff]  }
  0x85   :  { %v4935_v2 = vld [vmem:[#allocation8 + $0xc0] ss:$8 sps:$4 sm:$0xff]   ;;  %v4938_v4 = vld [vmem:[#allocation8 + $0xd0] ss:$8 sps:$4 sm:$0xff]   ;;  %v4943_v5 = vld [vmem:[#allocation8 + $0xe4] ss:$8 sps:$4 sm:$0xff]  }
  0x86   :  { %475 = vmatpush1.bf16.msra.mxu0 %v4852_v12  ;;  %668 = vmatpush1.bf16.msra.mxu1 %v4900_v37  ;;  %v4866_v6 = vld [vmem:[#allocation2 + $0x38] sm:$0xff]   ;;  %v4941_v7 = vld [vmem:[#allocation8 + $0xe0] ss:$8 sps:$4 sm:$0xff]   ;;  %v4869_v10 = vld [vmem:[#allocation2 + $0x50] sm:$0xff]  }
  0x87   :  { %476 = vmatprep.subr.bf16.mxu0 %v4853_v13  ;;  %669 = vmatprep.subr.bf16.mxu1 %v4901_v40  ;;  %v4867_v8 = vld [vmem:[#allocation2 + $0x40] sm:$0xff]   ;;  %v4868_v9 = vld [vmem:[#allocation2 + $0x48] sm:$0xff]   ;;  %v4870_v11 = vld [vmem:[#allocation2 + $0x58] sm:$0xff]  }
  0x88   :  { %v4946_v12 = vld [vmem:[#allocation8 + $0xf4] ss:$8 sps:$4 sm:$0xff]   ;;  %v4944_v13 = vld [vmem:[#allocation8 + $0xf0] ss:$8 sps:$4 sm:$0xff]   ;;  %v4949_v15 = vld [vmem:[#allocation8 + $0x104] ss:$8 sps:$4 sm:$0xff]  }
  0x89   :  { %v4907_v18 = vld [vmem:[#allocation2 + $0x78] sm:$0xff]   ;;  %v5616_v22 = vld [vmem:[%s6450_s3] sm:$0xf] }
  0x8a   :  { %477 = vmatpush1.bf16.msra.mxu0 %v4855_v14  ;;  %670 = vmatpush1.bf16.msra.mxu1 %v4906_v42  ;;  %v4877_v14 = vld [vmem:[#allocation2 + $0x60] sm:$0xff]  }
  0x8b   :  { %478 = vmatprep.subr.bf16.mxu0 %v4856_v16  ;;  %671 = vmatprep.subr.bf16.mxu1 %v4908_v45  ;;  %v4887_v16 = vld [vmem:[#allocation2 + $0x68] sm:$0xff]  }
  0x8e   :  { %479 = vmatpush1.bf16.msra.mxu0 %v4858_v17  ;;  %672 = vmatpush1.bf16.msra.mxu1 %v4910_v46  ;;  %v4897_v17 = vld [vmem:[#allocation2 + $0x70] sm:$0xff]  }
  0x8f   :  { %1438 = vmatprep.subr.bf16.mxu0 %v4875_v19  ;;  %v188_v19 = vlaneseq }
  0x91   :  { %497 = vmatmul.mubr.bf16.vlgmr.msra.gmra.mrb[0].mxu0 %v5573_v23  ;;  %690 = vmatmul.mubr.bf16.vlgmr.msra.gmra.mrb[0].mxu1 %v5573_v23  ;;  %v5608_v20 = vshrl.u32 %v188_v19, 7 }
  0x92   :  { %506 = vmatprep.mubr.bf16.mxu0 %v5403_v0  ;;  %1439 = vmatpush1.bf16.msra.mxu0 %v4873_v24 }
  0x93   :  { %1440 = vmatprep.subr.bf16.mxu0 %v4885_v25  ;;  %699 = vmatprep.mubr.bf16.mxu1 %v5403_v0  ;;  %v5611_v21 = vsub.s32 0, %v5608_v20  ;;  %v5619_v23 = vsub.s32 1, %v5608_v20 }
  0x95   :  { %v5623_v24 = vrot.slane %v5616_v22, %v5611_v21  ;;  %v5627_v25 = vrot.slane %v5616_v22, %v5619_v23 }
  0x96   :  { %1441 = vmatpush1.bf16.msra.mxu0 %v4883_v28 }
  0x97   :  { %1442 = vmatprep.subr.bf16.mxu0 %v4895_v30 }
  0x99   :  { %507 = vmatmul.mubr.bf16.gmra.mrb[4].mxu0 %v4860_v32  ;;  %700 = vmatmul.mubr.bf16.gmra.mrb[4].mxu1 %v4860_v32 }
  0x9a   :  { %516 = vmatprep.mubr.bf16.mxu0 %v5403_v0  ;;  %1443 = vmatpush1.bf16.msra.mxu0 %v4893_v33 }
  0x9b   :  { %1444 = vmatprep.subr.bf16.mxu0 %v4905_v35  ;;  %709 = vmatprep.mubr.bf16.mxu1 %v5403_v0 }
  0x9e   :  { %1445 = vmatpush1.bf16.msra.mxu0 %v4903_v38 }
  0x9f   :  { %1446 = vmatprep.subr.bf16.mxu0 %v4913_v39 }
  0xa1   :  { %517 = vmatmul.mubr.bf16.gmra.mrb[8].mxu0 %v4861_v41  ;;  %710 = vmatmul.mubr.bf16.gmra.mrb[8].mxu1 %v4861_v41  ;;  %v4947_v41 = vld [vmem:[#allocation8 + $0x100] ss:$8 sps:$4 sm:$0xff]  }
  0xa2   :  { %526 = vmatprep.mubr.bf16.mxu0 %v5403_v0  ;;  %1447 = vmatpush1.bf16.msra.mxu0 %v4911_v43 }
  0xa3   :  { %1448 = vmatprep.subr.bf16.mxu0 %v4916_v44  ;;  %719 = vmatprep.mubr.bf16.mxu1 %v5403_v0  ;;  %v4952_v44 = vld [vmem:[#allocation8 + $0x114] ss:$8 sps:$4 sm:$0xff]  }
  0xa6   :  { %1449 = vmatpush1.bf16.msra.mxu0 %v4914_v47 }
  0xa7   :  { %1450 = vmatprep.subr.bf16.mxu0 %v4919_v48 }
  0xa9   :  { %527 = vmatmul.mubr.bf16.gmra.mrb[12].mxu0 %v4862_v49  ;;  %720 = vmatmul.mubr.bf16.gmra.mrb[12].mxu1 %v4862_v49 }
  0xaa   :  { %536 = vmatprep.mubr.bf16.mxu0 %v5403_v0  ;;  %1451 = vmatpush1.bf16.msra.mxu0 %v4917_v50  ;;  %v4950_v50 = vld [vmem:[#allocation8 + $0x110] ss:$8 sps:$4 sm:$0xff]  }
  0xab   :  { %1452 = vmatprep.subr.bf16.mxu0 %v4922_v51  ;;  %729 = vmatprep.mubr.bf16.mxu1 %v5403_v0 }
  0xae   :  { %1453 = vmatpush1.bf16.msra.mxu0 %v4920_v52 }
  0xaf   :  { %1454 = vmatprep.subr.bf16.mxu0 %v4925_v53  ;;  %v4955_v53 = vld [vmem:[#allocation8 + $0x124] ss:$8 sps:$4 sm:$0xff]  }
  0xb1   :  { %537 = vmatmul.mubr.bf16.gmra.mrb[16].mxu0 %v4863_v54  ;;  %730 = vmatmul.mubr.bf16.gmra.mrb[16].mxu1 %v4863_v54 }
  0xb2   :  { %546 = vmatprep.mubr.bf16.mxu0 %v5403_v0  ;;  %1455 = vmatpush1.bf16.msra.mxu0 %v4923_v55 }
  0xb3   :  { %1456 = vmatprep.subr.bf16.mxu0 %v4928_v56  ;;  %739 = vmatprep.mubr.bf16.mxu1 %v5403_v0 }
  0xb6   :  { %1457 = vmatpush1.bf16.msra.mxu0 %v4926_v57 }
  0xb7   :  { %1458 = vmatprep.subr.bf16.mxu0 %v4931_v58 }
  0xb9   :  { %547 = vmatmul.mubr.bf16.gmra.mrb[20].mxu0 %v4864_v59  ;;  %740 = vmatmul.mubr.bf16.gmra.mrb[20].mxu1 %v4864_v59  ;;  %v4953_v59 = vld [vmem:[#allocation8 + $0x120] ss:$8 sps:$4 sm:$0xff]  }
  0xba   :  { %556 = vmatprep.mubr.bf16.mxu0 %v5403_v0  ;;  %1459 = vmatpush1.bf16.msra.mxu0 %v4929_v60 }
  0xbb   :  { %1460 = vmatprep.subr.bf16.mxu0 %v4934_v61  ;;  %749 = vmatprep.mubr.bf16.mxu1 %v5403_v0 }
  0xbe   :  { %1461 = vmatpush1.bf16.msra.mxu0 %v4932_v62  ;;  %v4958_v62 = vld [vmem:[#allocation8 + $0x134] ss:$8 sps:$4 sm:$0xff]  }
  0xbf   :  { %1462 = vmatprep.subr.bf16.mxu0 %v4937_v63 }
  0xc1   :  { %557 = vmatmul.mubr.bf16.gmra.mrb[24].mxu0 %v4865_v1  ;;  %750 = vmatmul.mubr.bf16.gmra.mrb[24].mxu1 %v4865_v1 }
  0xc2   :  { %566 = vmatprep.mubr.bf16.mxu0 %v5403_v0  ;;  %1463 = vmatpush1.bf16.msra.mxu0 %v4935_v2  ;;  %v198_v2 = vsub.s32 2, %v5608_v20 }
  0xc3   :  { %1464 = vmatprep.subr.bf16.mxu0 %v4940_v3  ;;  %759 = vmatprep.mubr.bf16.mxu1 %v5403_v0 }
  0xc6   :  { %1465 = vmatpush1.bf16.msra.mxu0 %v4938_v4 }
  0xc7   :  { %1466 = vmatprep.subr.bf16.mxu0 %v4943_v5  ;;  %v202_v5 = vsub.s32 3, %v5608_v20 }
  0xc9   :  { %567 = vmatmul.mubr.bf16.gmra.mrb[28].mxu0 %v4866_v6  ;;  %760 = vmatmul.mubr.bf16.gmra.mrb[28].mxu1 %v4866_v6 }
  0xca   :  { %576 = vmatprep.mubr.bf16.mxu0 %v5403_v0  ;;  %1467 = vmatpush1.bf16.msra.mxu0 %v4941_v7  ;;  %v4956_v7 = vld [vmem:[#allocation8 + $0x130] ss:$8 sps:$4 sm:$0xff]  }
  0xcb   :  { %769 = vmatprep.mubr.bf16.mxu1 %v5403_v0  ;;  %1468 = vmatprep.subr.bf16.mxu0 %v4946_v12 }
  0xce   :  { %1469 = vmatpush1.bf16.msra.mxu0 %v4944_v13  ;;  %v5646_v13 = vrot.slane %v5616_v22, %v198_v2 }
  0xcf   :  { %1631 = vmatprep.subr.bf16.mxu0 %v4949_v15  ;;  %v5651_v15 = vrot.slane %v5616_v22, %v202_v5 }
  0xd1   :  { %577 = vmatmul.mubr.bf16.gmra.mrb[32].mxu0 %v4867_v8  ;;  %770 = vmatmul.mubr.bf16.gmra.mrb[32].mxu1 %v4867_v8 }
  0xd2   :  { %586 = vmatprep.mubr.bf16.mxu0 %v5403_v0  ;;  %779 = vmatprep.mubr.bf16.mxu1 %v5403_v0 }
  0xd9   :  { %587 = vmatmul.mubr.bf16.gmra.mrb[36].mxu0 %v4868_v9  ;;  %780 = vmatmul.mubr.bf16.gmra.mrb[36].mxu1 %v4868_v9 }
  0xda   :  { %596 = vmatprep.mubr.bf16.mxu0 %v5403_v0  ;;  %789 = vmatprep.mubr.bf16.mxu1 %v5403_v0 }
  0xe1   :  { %597 = vmatmul.mubr.bf16.gmra.mrb[40].mxu0 %v4869_v10  ;;  %790 = vmatmul.mubr.bf16.gmra.mrb[40].mxu1 %v4869_v10  ;;  %v4961_v10 = vld [vmem:[#allocation8 + $0x144] ss:$8 sps:$4 sm:$0xff]  }
  0xe2   :  { %606 = vmatprep.mubr.bf16.mxu0 %v5403_v0  ;;  %799 = vmatprep.mubr.bf16.mxu1 %v5403_v0 }
  0xe9   :  { %607 = vmatmul.mubr.bf16.gmra.mrb[44].mxu0 %v4870_v11  ;;  %800 = vmatmul.mubr.bf16.gmra.mrb[44].mxu1 %v4870_v11 }
  0xea   :  { %616 = vmatprep.mubr.bf16.mxu0 %v5403_v0  ;;  %809 = vmatprep.mubr.bf16.mxu1 %v5403_v0 }
  0xf1   :  { %617 = vmatmul.mubr.bf16.gmra.mrb[48].mxu0 %v4877_v14  ;;  %810 = vmatmul.mubr.bf16.gmra.mrb[48].mxu1 %v4877_v14 }
  0xf2   :  { %626 = vmatprep.mubr.bf16.mxu0 %v5403_v0  ;;  %819 = vmatprep.mubr.bf16.mxu1 %v5403_v0 }
  0xf9   :  { %627 = vmatmul.mubr.bf16.gmra.mrb[52].mxu0 %v4887_v16  ;;  %820 = vmatmul.mubr.bf16.gmra.mrb[52].mxu1 %v4887_v16 }
  0xfa   :  { %636 = vmatprep.mubr.bf16.mxu0 %v5403_v0  ;;  %829 = vmatprep.mubr.bf16.mxu1 %v5403_v0 }
 0x101   :  { %637 = vmatmul.mubr.bf16.gmra.mrb[56].mxu0 %v4897_v17  ;;  %830 = vmatmul.mubr.bf16.gmra.mrb[56].mxu1 %v4897_v17 }
 0x102   :  { %646 = vmatprep.mubr.bf16.mxu0 %v5403_v0  ;;  %839 = vmatprep.mubr.bf16.mxu1 %v5403_v0 }
 0x109   :  { %647 = vmatmul.mubr.bf16.gmra.mrb[60].mxu0 %v4907_v18  ;;  %840 = vmatmul.mubr.bf16.gmra.mrb[60].mxu1 %v4907_v18  ;;  %v4959_v18 = vld [vmem:[#allocation8 + $0x140] ss:$8 sps:$4 sm:$0xff]  }
 0x10a   :  { %2534 = vmatprep.mubr.bf16.mxu1 %v5403_v0 }
 0x164   :  { %v498_v26 = vpop.f32.mrb[0].mxu0 }
 0x165   :  { %v499_v27 = vadd.f32 %v498_v26, %v5623_v24  ;;  %v500_v28 = vpop.f32.mrb[1].mxu0 }
 0x166   :  { %v501_v29 = vadd.f32 %v500_v28, %v5627_v25  ;;  %v502_v30 = vpop.f32.mrb[2].mxu0  ;;  %v691_v28 = vpop.f32.mrb[0].mxu1 }
 0x167   :  { %v503_v31 = vadd.f32 %v502_v30, %v5623_v24  ;;  %v504_v32 = vpop.f32.mrb[3].mxu0  ;;  %v850_v34 = vmax.f32 %v499_v27, 0.0  ;;  %v4964_v27 = vld [vmem:[#allocation8 + $0x154] ss:$8 sps:$4 sm:$0xff]  }
 0x168   :  { %v505_v33 = vadd.f32 %v504_v32, %v5627_v25  ;;  %v851_v36 = vmax.f32 %v501_v29, 0.0  ;;  %v693_v32 = vpop.f32.mrb[1].mxu1 }
 0x169   :  { %v854_v35 = vmax.f32 %v503_v31, 0.0  ;;  %v692_v31 = vadd.f32 %v691_v28, %v5646_v13 }
 0x16a   :  { %v855_v37 = vmax.f32 %v505_v33, 0.0 }
 0x16b   :  { %v978_v38 = vpack.c.bf16 %v854_v35, %v850_v34  ;;  %v694_v34 = vadd.f32 %v693_v32, %v5651_v15  ;;  %v695_v35 = vpop.f32.mrb[2].mxu1  ;;  %v4971_v32 = vld [vmem:[#allocation8 + $0x180] ss:$8 sps:$4 sm:$0xff]  }
 0x16c   :  { %v979_v39 = vpack.c.bf16 %v855_v37, %v851_v36  ;;  %v508_v40 = vpop.f32.mrb[4].mxu0  ;;  %v4962_v37 = vld [vmem:[#allocation8 + $0x150] ss:$8 sps:$4 sm:$0xff]  }
 0x16d   :  { %v509_v42 = vadd.f32 %v508_v40, %v5623_v24  ;;  %v510_v43 = vpop.f32.mrb[5].mxu0  ;;  %v697_v40 = vpop.f32.mrb[3].mxu1 }
 0x16e   :  { %v511_v45 = vadd.f32 %v510_v43, %v5627_v25  ;;  %v512_v46 = vpop.f32.mrb[6].mxu0  ;;  %1470 = vmatprep.mubr.bf16.mxu0 %v979_v39  ;;  %v696_v39 = vadd.f32 %v695_v35, %v5646_v13  ;;  %v4967_v43 = vld [vmem:[#allocation8 + $0x164] ss:$8 sps:$4 sm:$0xff]   ;;  %v4976_v35 = vld [vmem:[#allocation8 + $0x194] ss:$8 sps:$4 sm:$0xff]  }
 0x16f   :  { %v513_v47 = vadd.f32 %v512_v46, %v5623_v24  ;;  %v514_v48 = vpop.f32.mrb[7].mxu0  ;;  %1471 = vmatmul.mubr.bf16.vlgmr.msra.gmra.mrb[64].mxu0 %v978_v38  ;;  %v858_v51 = vmax.f32 %v509_v42, 0.0  ;;  %v852_v38 = vmax.f32 %v692_v31, 0.0 }
 0x170   :  { %v515_v49 = vadd.f32 %v514_v48, %v5627_v25  ;;  %1632 = vmatpush1.bf16.msra.mxu0 %v4947_v41  ;;  %v859_v54 = vmax.f32 %v511_v45, 0.0  ;;  %v698_v45 = vadd.f32 %v697_v40, %v5651_v15  ;;  %v856_v48 = vmax.f32 %v696_v39, 0.0 }
 0x171   :  { %v862_v52 = vmax.f32 %v513_v47, 0.0  ;;  %1633 = vmatprep.subr.bf16.mxu0 %v4952_v44  ;;  %v853_v44 = vmax.f32 %v694_v34, 0.0 }
 0x172   :  { %v863_v55 = vmax.f32 %v515_v49, 0.0 }
 0x173   :  { %v982_v56 = vpack.c.bf16 %v862_v52, %v858_v51 }
 0x174   :  { %v983_v57 = vpack.c.bf16 %v863_v55, %v859_v54  ;;  %v518_v58 = vpop.f32.mrb[8].mxu0  ;;  %1634 = vmatpush1.bf16.msra.mxu0 %v4950_v50  ;;  %v857_v50 = vmax.f32 %v698_v45, 0.0  ;;  %v5661_v54 = vpack.c.bf16 %v856_v48, %v852_v38 }
 0x175   :  { %v519_v60 = vadd.f32 %v518_v58, %v5623_v24  ;;  %v520_v61 = vpop.f32.mrb[9].mxu0  ;;  %1635 = vmatprep.subr.bf16.mxu0 %v4955_v53  ;;  %v4965_v53 = vld [vmem:[#allocation8 + $0x160] ss:$8 sps:$4 sm:$0xff]  }
 0x176   :  { %v521_v63 = vadd.f32 %v520_v61, %v5627_v25  ;;  %v522_v1 = vpop.f32.mrb[10].mxu0  ;;  %1480 = vmatprep.mubr.bf16.mxu0 %v983_v57  ;;  %v4970_v57 = vld [vmem:[#allocation8 + $0x174] ss:$8 sps:$4 sm:$0xff]   ;;  %v5664_v58 = vpack.c.bf16 %v857_v50, %v853_v44 }
 0x177   :  { %v523_v3 = vadd.f32 %v522_v1, %v5623_v24  ;;  %v524_v4 = vpop.f32.mrb[11].mxu0  ;;  %1481 = vmatmul.mubr.bf16.gmra.mrb[68].mxu0 %v982_v56  ;;  %v866_v8 = vmax.f32 %v519_v60, 0.0 }
 0x178   :  { %v525_v6 = vadd.f32 %v524_v4, %v5627_v25  ;;  %1636 = vmatpush1.bf16.msra.mxu0 %v4953_v59  ;;  %v867_v11 = vmax.f32 %v521_v63, 0.0  ;;  %v701_v59 = vpop.f32.mrb[4].mxu1 }
 0x179   :  { %v870_v9 = vmax.f32 %v523_v3, 0.0  ;;  %1637 = vmatprep.subr.bf16.mxu0 %v4958_v62  ;;  %v702_v62 = vadd.f32 %v701_v59, %v5646_v13  ;;  %v703_v63 = vpop.f32.mrb[5].mxu1 }
 0x17a   :  { %v871_v12 = vmax.f32 %v525_v6, 0.0  ;;  %v704_v4 = vadd.f32 %v703_v63, %v5651_v15  ;;  %v705_v6 = vpop.f32.mrb[6].mxu1 }
 0x17b   :  { %v986_v14 = vpack.c.bf16 %v870_v9, %v866_v8  ;;  %v4968_v8 = vld [vmem:[#allocation8 + $0x170] ss:$8 sps:$4 sm:$0xff]   ;;  %v860_v9 = vmax.f32 %v702_v62, 0.0 }
 0x17c   :  { %v987_v16 = vpack.c.bf16 %v871_v12, %v867_v11  ;;  %v528_v17 = vpop.f32.mrb[12].mxu0  ;;  %1638 = vmatpush1.bf16.msra.mxu0 %v4956_v7  ;;  %v707_v11 = vpop.f32.mrb[7].mxu1 }
 0x17d   :  { %v529_v19 = vadd.f32 %v528_v17, %v5623_v24  ;;  %v530_v26 = vpop.f32.mrb[13].mxu0  ;;  %1639 = vmatprep.subr.bf16.mxu0 %v4961_v10  ;;  %v706_v10 = vadd.f32 %v705_v6, %v5646_v13  ;;  %v861_v17 = vmax.f32 %v704_v4, 0.0 }
 0x17e   :  { %v531_v29 = vadd.f32 %v530_v26, %v5627_v25  ;;  %v532_v30 = vpop.f32.mrb[14].mxu0  ;;  %1490 = vmatprep.mubr.bf16.mxu0 %v987_v16  ;;  %v4973_v16 = vld [vmem:[#allocation8 + $0x184] ss:$8 sps:$4 sm:$0xff]  }
 0x17f   :  { %v533_v22 = vadd.f32 %v532_v30, %v5623_v24  ;;  %v534_v33 = vpop.f32.mrb[15].mxu0  ;;  %1491 = vmatmul.mubr.bf16.gmra.mrb[72].mxu0 %v986_v14  ;;  %v874_v41 = vmax.f32 %v529_v19, 0.0 }
 0x180   :  { %v535_v36 = vadd.f32 %v534_v33, %v5627_v25  ;;  %1640 = vmatpush1.bf16.msra.mxu0 %v4959_v18  ;;  %v875_v46 = vmax.f32 %v531_v29, 0.0  ;;  %v708_v18 = vadd.f32 %v707_v11, %v5651_v15 }
 0x181   :  { %v878_v42 = vmax.f32 %v533_v22, 0.0  ;;  %1641 = vmatprep.subr.bf16.mxu0 %v4964_v27  ;;  %v864_v27 = vmax.f32 %v706_v10, 0.0 }
 0x182   :  { %v879_v47 = vmax.f32 %v535_v36, 0.0  ;;  %v865_v29 = vmax.f32 %v708_v18, 0.0 }
 0x183   :  { %v990_v49 = vpack.c.bf16 %v878_v42, %v874_v41  ;;  %v5673_v22 = vpack.c.bf16 %v864_v27, %v860_v9 }
 0x184   :  { %v991_v51 = vpack.c.bf16 %v879_v47, %v875_v46  ;;  %v538_v52 = vpop.f32.mrb[16].mxu0  ;;  %1642 = vmatpush1.bf16.msra.mxu0 %v4962_v37  ;;  %v5676_v36 = vpack.c.bf16 %v865_v29, %v861_v17  ;;  %v711_v37 = vpop.f32.mrb[8].mxu1  ;;  %v4974_v47 = vld [vmem:[#allocation8 + $0x190] ss:$8 sps:$4 sm:$0xff]  }
 0x185   :  { %v539_v55 = vadd.f32 %v538_v52, %v5623_v24  ;;  %v540_v56 = vpop.f32.mrb[17].mxu0  ;;  %1643 = vmatprep.subr.bf16.mxu0 %v4967_v43  ;;  %v712_v40 = vadd.f32 %v711_v37, %v5646_v13  ;;  %v713_v41 = vpop.f32.mrb[9].mxu1 }
 0x186   :  { %v541_v60 = vadd.f32 %v540_v56, %v5627_v25  ;;  %v542_v61 = vpop.f32.mrb[18].mxu0  ;;  %1500 = vmatprep.mubr.bf16.mxu0 %v991_v51  ;;  %v714_v44 = vadd.f32 %v713_v41, %v5651_v15  ;;  %v715_v45 = vpop.f32.mrb[10].mxu1 }
 0x187   :  { %v543_v1 = vadd.f32 %v542_v61, %v5623_v24  ;;  %v544_v3 = vpop.f32.mrb[19].mxu0  ;;  %1501 = vmatmul.mubr.bf16.gmra.mrb[76].mxu0 %v990_v49  ;;  %v882_v12 = vmax.f32 %v539_v55, 0.0  ;;  %v868_v48 = vmax.f32 %v712_v40, 0.0  ;;  %v716_v49 = vadd.f32 %v715_v45, %v5646_v13  ;;  %v717_v50 = vpop.f32.mrb[11].mxu1  ;;  %v4983_v45 = vld [vmem:[#allocation8 + $0x1c0] ss:$8 sps:$4 sm:$0xff]  }
 0x188   :  { %v545_v7 = vadd.f32 %v544_v3, %v5627_v25  ;;  %1644 = vmatpush1.bf16.msra.mxu0 %v4965_v53  ;;  %v883_v19 = vmax.f32 %v541_v60, 0.0  ;;  %v4979_v53 = vld [vmem:[#allocation8 + $0x1a4] ss:$8 sps:$4 sm:$0xff]   ;;  %v869_v55 = vmax.f32 %v714_v44, 0.0  ;;  %v718_v56 = vadd.f32 %v717_v50, %v5651_v15  ;;  %v4977_v3 = vld [vmem:[#allocation8 + $0x1a0] ss:$8 sps:$4 sm:$0xff]  }
 0x189   :  { %v886_v14 = vmax.f32 %v543_v1, 0.0  ;;  %1645 = vmatprep.subr.bf16.mxu0 %v4970_v57  ;;  %v872_v60 = vmax.f32 %v716_v49, 0.0  ;;  %v721_v10 = vpop.f32.mrb[12].mxu1  ;;  %v4988_v49 = vld [vmem:[#allocation8 + $0x1d4] ss:$8 sps:$4 sm:$0xff]  }
 0x18a   :  { %v887_v26 = vmax.f32 %v545_v7, 0.0  ;;  %v873_v62 = vmax.f32 %v718_v56, 0.0 }
 0x18b   :  { %v994_v28 = vpack.c.bf16 %v886_v14, %v882_v12  ;;  %v5685_v4 = vpack.c.bf16 %v872_v60, %v868_v48  ;;  %v722_v14 = vadd.f32 %v721_v10, %v5646_v13  ;;  %v4991_v10 = vld [vmem:[#allocation8 + $0x1e4] ss:$8 sps:$4 sm:$0xff]  }
 0x18c   :  { %v995_v30 = vpack.c.bf16 %v887_v26, %v883_v19  ;;  %v548_v31 = vpop.f32.mrb[20].mxu0  ;;  %1646 = vmatpush1.bf16.msra.mxu0 %v4968_v8  ;;  %v4982_v8 = vld [vmem:[#allocation8 + $0x1b4] ss:$8 sps:$4 sm:$0xff]   ;;  %v5688_v9 = vpack.c.bf16 %v873_v62, %v869_v55 }
 0x18d   :  { %v549_v33 = vadd.f32 %v548_v31, %v5623_v24  ;;  %v550_v34 = vpop.f32.mrb[21].mxu0  ;;  %1647 = vmatprep.subr.bf16.mxu0 %v4973_v16  ;;  %v723_v16 = vpop.f32.mrb[13].mxu1  ;;  %v876_v29 = vmax.f32 %v722_v14, 0.0 }
 0x18e   :  { %v551_v38 = vadd.f32 %v550_v34, %v5627_v25  ;;  %v552_v39 = vpop.f32.mrb[22].mxu0  ;;  %1510 = vmatprep.mubr.bf16.mxu0 %v995_v30  ;;  %v724_v19 = vadd.f32 %v723_v16, %v5651_v15  ;;  %v725_v26 = vpop.f32.mrb[14].mxu1  ;;  %v4985_v34 = vld [vmem:[#allocation8 + $0x1c4] ss:$8 sps:$4 sm:$0xff]  }
 0x18f   :  { %v553_v42 = vadd.f32 %v552_v39, %v5623_v24  ;;  %v554_v43 = vpop.f32.mrb[23].mxu0  ;;  %1511 = vmatmul.mubr.bf16.gmra.mrb[80].mxu0 %v994_v28  ;;  %v890_v51 = vmax.f32 %v549_v33, 0.0  ;;  %v4980_v28 = vld [vmem:[#allocation8 + $0x1b0] ss:$8 sps:$4 sm:$0xff]   ;;  %v726_v30 = vadd.f32 %v725_v26, %v5646_v13  ;;  %v727_v31 = vpop.f32.mrb[15].mxu1 }
 0x190   :  { %v555_v46 = vadd.f32 %v554_v43, %v5627_v25  ;;  %1648 = vmatpush1.bf16.msra.mxu0 %v4971_v32  ;;  %v891_v57 = vmax.f32 %v551_v38, 0.0  ;;  %v728_v37 = vadd.f32 %v727_v31, %v5651_v15 }
 0x191   :  { %v894_v52 = vmax.f32 %v553_v42, 0.0  ;;  %1649 = vmatprep.subr.bf16.mxu0 %v4976_v35  ;;  %v877_v35 = vmax.f32 %v724_v19, 0.0  ;;  %v880_v40 = vmax.f32 %v726_v30, 0.0 }
 0x192   :  { %v895_v59 = vmax.f32 %v555_v46, 0.0  ;;  %v881_v42 = vmax.f32 %v728_v37, 0.0 }
 0x193   :  { %v998_v61 = vpack.c.bf16 %v894_v52, %v890_v51  ;;  %v5697_v46 = vpack.c.bf16 %v880_v40, %v876_v29  ;;  %v731_v51 = vpop.f32.mrb[16].mxu1 }
 0x194   :  { %v999_v63 = vpack.c.bf16 %v895_v59, %v891_v57  ;;  %v558_v1 = vpop.f32.mrb[24].mxu0  ;;  %1650 = vmatpush1.bf16.msra.mxu0 %v4974_v47  ;;  %v5700_v50 = vpack.c.bf16 %v881_v42, %v877_v35  ;;  %v732_v55 = vadd.f32 %v731_v51, %v5646_v13  ;;  %v733_v56 = vpop.f32.mrb[17].mxu1 }
 0x195   :  { %v559_v6 = vadd.f32 %v558_v1, %v5623_v24  ;;  %v560_v7 = vpop.f32.mrb[25].mxu0  ;;  %1651 = vmatprep.subr.bf16.mxu0 %v4979_v53  ;;  %v734_v60 = vadd.f32 %v733_v56, %v5651_v15 }
 0x196   :  { %v561_v11 = vadd.f32 %v560_v7, %v5627_v25  ;;  %v562_v12 = vpop.f32.mrb[26].mxu0  ;;  %1520 = vmatprep.mubr.bf16.mxu0 %v999_v63  ;;  %v4986_v63 = vld [vmem:[#allocation8 + $0x1d0] ss:$8 sps:$4 sm:$0xff]   ;;  %v884_v1 = vmax.f32 %v732_v55, 0.0 }
 0x197   :  { %v563_v17 = vadd.f32 %v562_v12, %v5623_v24  ;;  %v564_v18 = vpop.f32.mrb[27].mxu0  ;;  %1521 = vmatmul.mubr.bf16.gmra.mrb[84].mxu0 %v998_v61  ;;  %v898_v32 = vmax.f32 %v559_v6, 0.0  ;;  %v735_v61 = vpop.f32.mrb[18].mxu1 }
 0x198   :  { %v565_v27 = vadd.f32 %v564_v18, %v5627_v25  ;;  %1652 = vmatpush1.bf16.msra.mxu0 %v4977_v3  ;;  %v899_v38 = vmax.f32 %v561_v11, 0.0  ;;  %v736_v3 = vadd.f32 %v735_v61, %v5646_v13  ;;  %v737_v6 = vpop.f32.mrb[19].mxu1  ;;  %v885_v11 = vmax.f32 %v734_v60, 0.0 }
 0x199   :  { %v902_v33 = vmax.f32 %v563_v17, 0.0  ;;  %1653 = vmatprep.subr.bf16.mxu0 %v4982_v8  ;;  %v738_v12 = vadd.f32 %v737_v6, %v5651_v15 }
 0x19a   :  { %v903_v39 = vmax.f32 %v565_v27, 0.0  ;;  %v888_v17 = vmax.f32 %v736_v3, 0.0 }
 0x19b   :  { %v1002_v41 = vpack.c.bf16 %v902_v33, %v898_v32  ;;  %v889_v19 = vmax.f32 %v738_v12, 0.0  ;;  %v4994_v32 = vld [vmem:[#allocation8 + $0x1f4] ss:$8 sps:$4 sm:$0xff]  }
 0x19c   :  { %v1003_v43 = vpack.c.bf16 %v903_v39, %v899_v38  ;;  %v568_v44 = vpop.f32.mrb[28].mxu0  ;;  %1654 = vmatpush1.bf16.msra.mxu0 %v4980_v28  ;;  %v4989_v28 = vld [vmem:[#allocation8 + $0x1e0] ss:$8 sps:$4 sm:$0xff]   ;;  %v5709_v29 = vpack.c.bf16 %v888_v17, %v884_v1 }
 0x19d   :  { %v569_v47 = vadd.f32 %v568_v44, %v5623_v24  ;;  %v570_v48 = vpop.f32.mrb[29].mxu0  ;;  %1655 = vmatprep.subr.bf16.mxu0 %v4985_v34  ;;  %v5712_v33 = vpack.c.bf16 %v889_v19, %v885_v11  ;;  %v741_v34 = vpop.f32.mrb[20].mxu1 }
 0x19e   :  { %v571_v52 = vadd.f32 %v570_v48, %v5627_v25  ;;  %v572_v53 = vpop.f32.mrb[30].mxu0  ;;  %1530 = vmatprep.mubr.bf16.mxu0 %v1003_v43  ;;  %v742_v38 = vadd.f32 %v741_v34, %v5646_v13  ;;  %v743_v39 = vpop.f32.mrb[21].mxu1 }
 0x19f   :  { %v573_v57 = vadd.f32 %v572_v53, %v5623_v24  ;;  %v574_v59 = vpop.f32.mrb[31].mxu0  ;;  %1531 = vmatmul.mubr.bf16.gmra.mrb[88].mxu0 %v1002_v41  ;;  %v906_v7 = vmax.f32 %v569_v47, 0.0  ;;  %v744_v42 = vadd.f32 %v743_v39, %v5651_v15  ;;  %v745_v43 = vpop.f32.mrb[22].mxu1 }
 0x1a0   :  { %v575_v62 = vadd.f32 %v574_v59, %v5627_v25  ;;  %1656 = vmatpush1.bf16.msra.mxu0 %v4983_v45  ;;  %v907_v14 = vmax.f32 %v571_v52, 0.0  ;;  %v4992_v45 = vld [vmem:[#allocation8 + $0x1f0] ss:$8 sps:$4 sm:$0xff]   ;;  %v892_v47 = vmax.f32 %v742_v38, 0.0  ;;  %v746_v48 = vadd.f32 %v745_v43, %v5646_v13 }
 0x1a1   :  { %v910_v8 = vmax.f32 %v573_v57, 0.0  ;;  %1657 = vmatprep.subr.bf16.mxu0 %v4988_v49  ;;  %v747_v49 = vpop.f32.mrb[23].mxu1  ;;  %v893_v53 = vmax.f32 %v744_v42, 0.0 }
 0x1a2   :  { %v911_v16 = vmax.f32 %v575_v62, 0.0  ;;  %v748_v55 = vadd.f32 %v747_v49, %v5651_v15  ;;  %v896_v59 = vmax.f32 %v746_v48, 0.0 }
 0x1a3   :  { %v1006_v18 = vpack.c.bf16 %v910_v8, %v906_v7  ;;  %v751_v8 = vpop.f32.mrb[24].mxu1 }
 0x1a4   :  { %v1007_v26 = vpack.c.bf16 %v911_v16, %v907_v14  ;;  %v578_v27 = vpop.f32.mrb[32].mxu0  ;;  %1658 = vmatpush1.bf16.msra.mxu0 %v4986_v63  ;;  %v897_v61 = vmax.f32 %v748_v55, 0.0  ;;  %v5721_v1 = vpack.c.bf16 %v896_v59, %v892_v47  ;;  %v752_v12 = vadd.f32 %v751_v8, %v5646_v13  ;;  %v753_v14 = vpop.f32.mrb[25].mxu1 }
 0x1a5   :  { %v579_v30 = vadd.f32 %v578_v27, %v5623_v24  ;;  %v580_v31 = vpop.f32.mrb[33].mxu0  ;;  %1659 = vmatprep.subr.bf16.mxu0 %v4991_v10  ;;  %v755_v19 = vpop.f32.mrb[26].mxu1 }
 0x1a6   :  { %v581_v35 = vadd.f32 %v580_v31, %v5627_v25  ;;  %v582_v37 = vpop.f32.mrb[34].mxu0  ;;  %1540 = vmatprep.mubr.bf16.mxu0 %v1007_v26  ;;  %v5724_v7 = vpack.c.bf16 %v897_v61, %v893_v53  ;;  %v900_v27 = vmax.f32 %v752_v12, 0.0 }
 0x1a7   :  { %v583_v40 = vadd.f32 %v582_v37, %v5623_v24  ;;  %v584_v41 = vpop.f32.mrb[35].mxu0  ;;  %1541 = vmatmul.mubr.bf16.gmra.mrb[92].mxu0 %v1006_v18  ;;  %v914_v51 = vmax.f32 %v579_v30, 0.0  ;;  %v754_v18 = vadd.f32 %v753_v14, %v5651_v15  ;;  %v757_v30 = vpop.f32.mrb[27].mxu1 }
 0x1a8   :  { %v585_v44 = vadd.f32 %v584_v41, %v5627_v25  ;;  %1660 = vmatpush1.bf16.msra.mxu0 %v4989_v28  ;;  %v915_v56 = vmax.f32 %v581_v35, 0.0  ;;  %v756_v28 = vadd.f32 %v755_v19, %v5646_v13  ;;  %v758_v35 = vadd.f32 %v757_v30, %v5651_v15  ;;  %v761_v49 = vpop.f32.mrb[28].mxu1 }
 0x1a9   :  { %v918_v52 = vmax.f32 %v583_v40, 0.0  ;;  %1661 = vmatprep.subr.bf16.mxu0 %v4994_v32  ;;  %v901_v34 = vmax.f32 %v754_v18, 0.0  ;;  %v762_v53 = vadd.f32 %v761_v49, %v5646_v13  ;;  %v763_v55 = vpop.f32.mrb[29].mxu1 }
 0x1aa   :  { %v919_v57 = vmax.f32 %v585_v44, 0.0  ;;  %v904_v39 = vmax.f32 %v756_v28, 0.0  ;;  %v905_v41 = vmax.f32 %v758_v35, 0.0  ;;  %v764_v59 = vadd.f32 %v763_v55, %v5651_v15 }
 0x1ab   :  { %v1010_v60 = vpack.c.bf16 %v918_v52, %v914_v51 }
 0x1ac   :  { %v1011_v62 = vpack.c.bf16 %v919_v57, %v915_v56  ;;  %v588_v63 = vpop.f32.mrb[36].mxu0  ;;  %1662 = vmatpush1.bf16.msra.mxu0 %v4992_v45  ;;  %v5733_v44 = vpack.c.bf16 %v904_v39, %v900_v27  ;;  %v5736_v48 = vpack.c.bf16 %v905_v41, %v901_v34 }
 0x1ad   :  { %v589_v3 = vadd.f32 %v588_v63, %v5623_v24  ;;  %v590_v6 = vpop.f32.mrb[37].mxu0 }
 0x1ae   :  { %v591_v10 = vadd.f32 %v590_v6, %v5627_v25  ;;  %v592_v11 = vpop.f32.mrb[38].mxu0  ;;  %1550 = vmatprep.mubr.bf16.mxu0 %v1011_v62  ;;  %v908_v62 = vmax.f32 %v762_v53, 0.0 }
 0x1af   :  { %v593_v16 = vadd.f32 %v592_v11, %v5623_v24  ;;  %v594_v17 = vpop.f32.mrb[39].mxu0  ;;  %1551 = vmatmul.mubr.bf16.gmra.mrb[96].mxu0 %v1010_v60  ;;  %v922_v31 = vmax.f32 %v589_v3, 0.0  ;;  %v765_v60 = vpop.f32.mrb[30].mxu1 }
 0x1b0   :  { %v595_v26 = vadd.f32 %v594_v17, %v5627_v25  ;;  %v923_v37 = vmax.f32 %v591_v10, 0.0  ;;  %v766_v63 = vadd.f32 %v765_v60, %v5646_v13  ;;  %v767_v3 = vpop.f32.mrb[31].mxu1  ;;  %v909_v10 = vmax.f32 %v764_v59, 0.0 }
 0x1b1   :  { %v926_v32 = vmax.f32 %v593_v16, 0.0  ;;  %v768_v11 = vadd.f32 %v767_v3, %v5651_v15 }
 0x1b2   :  { %v927_v38 = vmax.f32 %v595_v26, 0.0  ;;  %v912_v16 = vmax.f32 %v766_v63, 0.0 }
 0x1b3   :  { %v1014_v40 = vpack.c.bf16 %v926_v32, %v922_v31  ;;  %v913_v18 = vmax.f32 %v768_v11, 0.0  ;;  %v771_v32 = vpop.f32.mrb[32].mxu1 }
 0x1b4   :  { %v1015_v42 = vpack.c.bf16 %v927_v38, %v923_v37  ;;  %v598_v43 = vpop.f32.mrb[40].mxu0  ;;  %v5745_v27 = vpack.c.bf16 %v912_v16, %v908_v62  ;;  %v772_v37 = vadd.f32 %v771_v32, %v5646_v13  ;;  %v773_v38 = vpop.f32.mrb[33].mxu1 }
 0x1b5   :  { %v599_v45 = vadd.f32 %v598_v43, %v5623_v24  ;;  %v600_v47 = vpop.f32.mrb[41].mxu0  ;;  %v5748_v31 = vpack.c.bf16 %v913_v18, %v909_v10  ;;  %v774_v41 = vadd.f32 %v773_v38, %v5651_v15 }
 0x1b6   :  { %v601_v51 = vadd.f32 %v600_v47, %v5627_v25  ;;  %v602_v52 = vpop.f32.mrb[42].mxu0  ;;  %1560 = vmatprep.mubr.bf16.mxu0 %v1015_v42  ;;  %v775_v42 = vpop.f32.mrb[34].mxu1 }
 0x1b7   :  { %v603_v56 = vadd.f32 %v602_v52, %v5623_v24  ;;  %v604_v57 = vpop.f32.mrb[43].mxu0  ;;  %1561 = vmatmul.mubr.bf16.gmra.mrb[100].mxu0 %v1014_v40  ;;  %v930_v6 = vmax.f32 %v599_v45, 0.0  ;;  %v916_v45 = vmax.f32 %v772_v37, 0.0  ;;  %v776_v47 = vadd.f32 %v775_v42, %v5646_v13  ;;  %v777_v49 = vpop.f32.mrb[35].mxu1 }
 0x1b8   :  { %v605_v61 = vadd.f32 %v604_v57, %v5627_v25  ;;  %v931_v12 = vmax.f32 %v601_v51, 0.0  ;;  %v917_v53 = vmax.f32 %v774_v41, 0.0  ;;  %v778_v55 = vadd.f32 %v777_v49, %v5651_v15  ;;  %v781_v11 = vpop.f32.mrb[36].mxu1 }
 0x1b9   :  { %v934_v8 = vmax.f32 %v603_v56, 0.0  ;;  %v920_v59 = vmax.f32 %v776_v47, 0.0  ;;  %v782_v16 = vadd.f32 %v781_v11, %v5646_v13 }
 0x1ba   :  { %v935_v14 = vmax.f32 %v605_v61, 0.0  ;;  %v921_v61 = vmax.f32 %v778_v55, 0.0 }
 0x1bb   :  { %v1018_v17 = vpack.c.bf16 %v934_v8, %v930_v6  ;;  %v5757_v3 = vpack.c.bf16 %v920_v59, %v916_v45  ;;  %v924_v32 = vmax.f32 %v782_v16, 0.0 }
 0x1bc   :  { %v1019_v19 = vpack.c.bf16 %v935_v14, %v931_v12  ;;  %v608_v26 = vpop.f32.mrb[44].mxu0  ;;  %v5760_v10 = vpack.c.bf16 %v921_v61, %v917_v53 }
 0x1bd   :  { %v609_v28 = vadd.f32 %v608_v26, %v5623_v24  ;;  %v610_v30 = vpop.f32.mrb[45].mxu0 }
 0x1be   :  { %v611_v34 = vadd.f32 %v610_v30, %v5627_v25  ;;  %v612_v35 = vpop.f32.mrb[46].mxu0  ;;  %1570 = vmatprep.mubr.bf16.mxu0 %v1019_v19 }
 0x1bf   :  { %v613_v39 = vadd.f32 %v612_v35, %v5623_v24  ;;  %v614_v40 = vpop.f32.mrb[47].mxu0  ;;  %1571 = vmatmul.mubr.bf16.gmra.mrb[104].mxu0 %v1018_v17  ;;  %v938_v51 = vmax.f32 %v609_v28, 0.0  ;;  %v783_v17 = vpop.f32.mrb[37].mxu1 }
 0x1c0   :  { %v615_v43 = vadd.f32 %v614_v40, %v5627_v25  ;;  %v939_v56 = vmax.f32 %v611_v34, 0.0  ;;  %v784_v26 = vadd.f32 %v783_v17, %v5651_v15  ;;  %v785_v28 = vpop.f32.mrb[38].mxu1 }
 0x1c1   :  { %v942_v52 = vmax.f32 %v613_v39, 0.0  ;;  %v786_v34 = vadd.f32 %v785_v28, %v5646_v13  ;;  %v787_v35 = vpop.f32.mrb[39].mxu1 }
 0x1c2   :  { %v943_v57 = vmax.f32 %v615_v43, 0.0  ;;  %v925_v39 = vmax.f32 %v784_v26, 0.0  ;;  %v788_v40 = vadd.f32 %v787_v35, %v5651_v15 }
 0x1c3   :  { %v1022_v60 = vpack.c.bf16 %v942_v52, %v938_v51  ;;  %v928_v43 = vmax.f32 %v786_v34, 0.0 }
 0x1c4   :  { %v1023_v62 = vpack.c.bf16 %v943_v57, %v939_v56  ;;  %v618_v63 = vpop.f32.mrb[48].mxu0  ;;  %v929_v47 = vmax.f32 %v788_v40, 0.0  ;;  %v791_v57 = vpop.f32.mrb[40].mxu1 }
 0x1c5   :  { %v619_v6 = vadd.f32 %v618_v63, %v5623_v24  ;;  %v620_v8 = vpop.f32.mrb[49].mxu0  ;;  %v5769_v52 = vpack.c.bf16 %v928_v43, %v924_v32  ;;  %v792_v61 = vadd.f32 %v791_v57, %v5646_v13 }
 0x1c6   :  { %v621_v12 = vadd.f32 %v620_v8, %v5627_v25  ;;  %v622_v14 = vpop.f32.mrb[50].mxu0  ;;  %1580 = vmatprep.mubr.bf16.mxu0 %v1023_v62  ;;  %v5772_v56 = vpack.c.bf16 %v929_v47, %v925_v39  ;;  %v793_v62 = vpop.f32.mrb[41].mxu1 }
 0x1c7   :  { %v623_v18 = vadd.f32 %v622_v14, %v5623_v24  ;;  %v624_v19 = vpop.f32.mrb[51].mxu0  ;;  %1581 = vmatmul.mubr.bf16.gmra.mrb[108].mxu0 %v1022_v60  ;;  %v946_v37 = vmax.f32 %v619_v6, 0.0  ;;  %v794_v8 = vadd.f32 %v793_v62, %v5651_v15  ;;  %v795_v11 = vpop.f32.mrb[42].mxu1  ;;  %v932_v14 = vmax.f32 %v792_v61, 0.0 }
 0x1c8   :  { %v625_v30 = vadd.f32 %v624_v19, %v5627_v25  ;;  %v947_v41 = vmax.f32 %v621_v12, 0.0  ;;  %v796_v16 = vadd.f32 %v795_v11, %v5646_v13  ;;  %v797_v17 = vpop.f32.mrb[43].mxu1 }
 0x1c9   :  { %v950_v38 = vmax.f32 %v623_v18, 0.0  ;;  %v933_v26 = vmax.f32 %v794_v8, 0.0  ;;  %v798_v28 = vadd.f32 %v797_v17, %v5651_v15  ;;  %v4995_v8 = vld [vmem:[#allocation10] ss:$16 sps:$4 sm:$0xff]   ;;  %v4997_v17 = vld [vmem:[#allocation10 + $0x4] ss:$16 sps:$4 sm:$0xff]  }
 0x1ca   :  { %v951_v42 = vmax.f32 %v625_v30, 0.0  ;;  %v936_v34 = vmax.f32 %v796_v16, 0.0  ;;  %2502 = vmatprep.subr.bf16.mxu1 %v4997_v17 }
 0x1cb   :  { %v1026_v45 = vpack.c.bf16 %v950_v38, %v946_v37  ;;  %v937_v37 = vmax.f32 %v798_v28, 0.0  ;;  %2503 = vmatpush1.bf16.msra.mxu1 %v4995_v8 }
 0x1cc   :  { %v1027_v49 = vpack.c.bf16 %v951_v42, %v947_v41  ;;  %v628_v51 = vpop.f32.mrb[52].mxu0  ;;  %v5781_v40 = vpack.c.bf16 %v936_v34, %v932_v14 }
 0x1cd   :  { %v629_v53 = vadd.f32 %v628_v51, %v5623_v24  ;;  %v630_v55 = vpop.f32.mrb[53].mxu0  ;;  %v5784_v43 = vpack.c.bf16 %v937_v37, %v933_v26 }
 0x1ce   :  { %v631_v59 = vadd.f32 %v630_v55, %v5627_v25  ;;  %v632_v60 = vpop.f32.mrb[54].mxu0  ;;  %1590 = vmatprep.mubr.bf16.mxu0 %v1027_v49 }
 0x1cf   :  { %v633_v63 = vadd.f32 %v632_v60, %v5623_v24  ;;  %v634_v6 = vpop.f32.mrb[55].mxu0  ;;  %1591 = vmatmul.mubr.bf16.gmra.mrb[112].mxu0 %v1026_v45  ;;  %v954_v18 = vmax.f32 %v629_v53, 0.0  ;;  %v801_v45 = vpop.f32.mrb[44].mxu1 }
 0x1d0   :  { %v635_v12 = vadd.f32 %v634_v6, %v5627_v25  ;;  %v955_v30 = vmax.f32 %v631_v59, 0.0  ;;  %v802_v51 = vadd.f32 %v801_v45, %v5646_v13  ;;  %v803_v53 = vpop.f32.mrb[45].mxu1 }
 0x1d1   :  { %v958_v19 = vmax.f32 %v633_v63, 0.0  ;;  %v804_v59 = vadd.f32 %v803_v53, %v5651_v15  ;;  %v805_v60 = vpop.f32.mrb[46].mxu1 }
 0x1d2   :  { %v959_v32 = vmax.f32 %v635_v12, 0.0  ;;  %v940_v62 = vmax.f32 %v802_v51, 0.0  ;;  %v806_v63 = vadd.f32 %v805_v60, %v5646_v13  ;;  %v807_v6 = vpop.f32.mrb[47].mxu1 }
 0x1d3   :  { %v1030_v35 = vpack.c.bf16 %v958_v19, %v954_v18  ;;  %v941_v14 = vmax.f32 %v804_v59, 0.0  ;;  %v808_v16 = vadd.f32 %v807_v6, %v5651_v15 }
 0x1d4   :  { %v1031_v38 = vpack.c.bf16 %v959_v32, %v955_v30  ;;  %v638_v39 = vpop.f32.mrb[56].mxu0  ;;  %v944_v26 = vmax.f32 %v806_v63, 0.0 }
 0x1d5   :  { %v639_v41 = vadd.f32 %v638_v39, %v5623_v24  ;;  %v640_v42 = vpop.f32.mrb[57].mxu0  ;;  %v945_v30 = vmax.f32 %v808_v16, 0.0 }
 0x1d6   :  { %v641_v47 = vadd.f32 %v640_v42, %v5627_v25  ;;  %v642_v49 = vpop.f32.mrb[58].mxu0  ;;  %1600 = vmatprep.mubr.bf16.mxu0 %v1031_v38 }
 0x1d7   :  { %v643_v55 = vadd.f32 %v642_v49, %v5623_v24  ;;  %v644_v57 = vpop.f32.mrb[59].mxu0  ;;  %1601 = vmatmul.mubr.bf16.gmra.mrb[116].mxu0 %v1030_v35  ;;  %v962_v11 = vmax.f32 %v639_v41, 0.0  ;;  %v5793_v35 = vpack.c.bf16 %v944_v26, %v940_v62  ;;  %v5796_v39 = vpack.c.bf16 %v945_v30, %v941_v14  ;;  %v811_v41 = vpop.f32.mrb[48].mxu1 }
 0x1d8   :  { %v645_v61 = vadd.f32 %v644_v57, %v5627_v25  ;;  %v963_v18 = vmax.f32 %v641_v47, 0.0  ;;  %v812_v47 = vadd.f32 %v811_v41, %v5646_v13  ;;  %v813_v49 = vpop.f32.mrb[49].mxu1 }
 0x1d9   :  { %v966_v12 = vmax.f32 %v643_v55, 0.0  ;;  %v814_v55 = vadd.f32 %v813_v49, %v5651_v15  ;;  %v815_v57 = vpop.f32.mrb[50].mxu1 }
 0x1da   :  { %v967_v19 = vmax.f32 %v645_v61, 0.0  ;;  %v948_v60 = vmax.f32 %v812_v47, 0.0  ;;  %v816_v61 = vadd.f32 %v815_v57, %v5646_v13  ;;  %v817_v62 = vpop.f32.mrb[51].mxu1  ;;  %v5003_v47 = vld [vmem:[#allocation10 + $0x44] ss:$16 sps:$4 sm:$0xff]  }
 0x1db   :  { %v1034_v28 = vpack.c.bf16 %v966_v12, %v962_v11  ;;  %v949_v8 = vmax.f32 %v814_v55, 0.0  ;;  %v818_v11 = vadd.f32 %v817_v62, %v5651_v15  ;;  %v5001_v55 = vld [vmem:[#allocation10 + $0x40] ss:$16 sps:$4 sm:$0xff]  }
 0x1dc   :  { %v1035_v32 = vpack.c.bf16 %v967_v19, %v963_v18  ;;  %v648_v34 = vpop.f32.mrb[60].mxu0  ;;  %v952_v16 = vmax.f32 %v816_v61, 0.0 }
 0x1dd   :  { %v649_v37 = vadd.f32 %v648_v34, %v5623_v24  ;;  %v650_v38 = vpop.f32.mrb[61].mxu0  ;;  %v953_v17 = vmax.f32 %v818_v11, 0.0 }
 0x1de   :  { %v651_v42 = vadd.f32 %v650_v38, %v5627_v25  ;;  %v652_v45 = vpop.f32.mrb[62].mxu0  ;;  %1610 = vmatprep.mubr.bf16.mxu0 %v1035_v32  ;;  %v5805_v19 = vpack.c.bf16 %v952_v16, %v948_v60  ;;  %v5000_v38 = vld [vmem:[#allocation10 + $0x24] ss:$16 sps:$4 sm:$0xff]  }
 0x1df   :  { %v653_v51 = vadd.f32 %v652_v45, %v5623_v24  ;;  %v654_v53 = vpop.f32.mrb[63].mxu0  ;;  %1611 = vmatmul.mubr.bf16.gmra.mrb[120].mxu0 %v1034_v28  ;;  %v970_v63 = vmax.f32 %v649_v37, 0.0  ;;  %v5807_v26 = vpack.c.bf16 %v953_v17, %v949_v8  ;;  %v4998_v37 = vld [vmem:[#allocation10 + $0x20] ss:$16 sps:$4 sm:$0xff]   ;;  %2504 = vmatprep.subr.bf16.mxu1 %v5000_v38 }
 0x1e0   :  { %v655_v59 = vadd.f32 %v654_v53, %v5627_v25  ;;  %v971_v12 = vmax.f32 %v651_v42, 0.0  ;;  %v821_v25 = vpop.f32.mrb[52].mxu1  ;;  %2505 = vmatpush1.bf16.msra.mxu1 %v4998_v37 }
 0x1e1   :  { %v974_v6 = vmax.f32 %v653_v51, 0.0  ;;  %v822_v28 = vadd.f32 %v821_v25, %v5646_v13  ;;  %v823_v30 = vpop.f32.mrb[53].mxu1  ;;  %2506 = vmatprep.subr.bf16.mxu1 %v5003_v47  ;;  %v5015_v47 = vld [vmem:[#allocation10 + $0xc4] ss:$16 sps:$4 sm:$0xff]  }
 0x1e2   :  { %v975_v14 = vmax.f32 %v655_v59, 0.0  ;;  %v824_v32 = vadd.f32 %v823_v30, %v5651_v15  ;;  %v825_v34 = vpop.f32.mrb[54].mxu1  ;;  %v5006_v59 = vld [vmem:[#allocation10 + $0x64] ss:$16 sps:$4 sm:$0xff]  }
 0x1e3   :  { %v1038_v24 = vpack.c.bf16 %v974_v6, %v970_v63  ;;  %v956_v41 = vmax.f32 %v822_v28, 0.0  ;;  %v826_v42 = vadd.f32 %v825_v34, %v5646_v13  ;;  %v827_v45 = vpop.f32.mrb[55].mxu1  ;;  %v5004_v6 = vld [vmem:[#allocation10 + $0x60] ss:$16 sps:$4 sm:$0xff]  }
 0x1e4   :  { %v1039_v18 = vpack.c.bf16 %v975_v14, %v971_v12  ;;  %v957_v49 = vmax.f32 %v824_v32, 0.0  ;;  %v828_v51 = vadd.f32 %v827_v45, %v5651_v15  ;;  %2507 = vmatpush1.bf16.msra.mxu1 %v5001_v55  ;;  %v5009_v12 = vld [vmem:[#allocation10 + $0x84] ss:$16 sps:$4 sm:$0xff]   ;;  %v5007_v28 = vld [vmem:[#allocation10 + $0x80] ss:$16 sps:$4 sm:$0xff]  }
 0x1e5   :  { %v960_v53 = vmax.f32 %v826_v42, 0.0  ;;  %2508 = vmatprep.subr.bf16.mxu1 %v5006_v59 }
 0x1e6   :  { %1620 = vmatprep.mubr.bf16.mxu0 %v1039_v18  ;;  %v961_v57 = vmax.f32 %v828_v51, 0.0 }
 0x1e7   :  { %1621 = vmatmul.mubr.bf16.gmra.mrb[124].mxu0 %v1038_v24  ;;  %v5814_v60 = vpack.c.bf16 %v960_v53, %v956_v41 }
 0x1e8   :  { %1663 = vmatprep.mubr.bf16.mxu0 %v5664_v58  ;;  %v5816_v61 = vpack.c.bf16 %v961_v57, %v957_v49  ;;  %v831_v58 = vpop.f32.mrb[56].mxu1  ;;  %2509 = vmatpush1.bf16.msra.mxu1 %v5004_v6 }
 0x1e9   :  { %v832_v62 = vadd.f32 %v831_v58, %v5646_v13  ;;  %v833_v63 = vpop.f32.mrb[57].mxu1  ;;  %2510 = vmatprep.subr.bf16.mxu1 %v5009_v12  ;;  %v5013_v58 = vld [vmem:[#allocation10 + $0xc0] ss:$16 sps:$4 sm:$0xff]  }
 0x1ea   :  { %v834_v8 = vadd.f32 %v833_v63, %v5651_v15  ;;  %v835_v11 = vpop.f32.mrb[58].mxu1 }
 0x1eb   :  { %v964_v14 = vmax.f32 %v832_v62, 0.0  ;;  %v836_v16 = vadd.f32 %v835_v11, %v5646_v13  ;;  %v837_v24 = vpop.f32.mrb[59].mxu1 }
 0x1ec   :  { %v965_v17 = vmax.f32 %v834_v8, 0.0  ;;  %v838_v18 = vadd.f32 %v837_v24, %v5651_v15  ;;  %v841_v37 = vpop.f32.mrb[60].mxu1  ;;  %2511 = vmatpush1.bf16.msra.mxu1 %v5007_v28  ;;  %v4295_v8 = vld [vmem:[#allocation5] sm:$0xff]  }
 0x1ed   :  { %v968_v25 = vmax.f32 %v836_v16, 0.0  ;;  %v842_v38 = vadd.f32 %v841_v37, %v5646_v13  ;;  %v843_v41 = vpop.f32.mrb[61].mxu1 }
 0x1ee   :  { %v969_v30 = vmax.f32 %v838_v18, 0.0  ;;  %v844_v42 = vadd.f32 %v843_v41, %v5651_v15  ;;  %v845_v45 = vpop.f32.mrb[62].mxu1  ;;  %v4296_v18 = vunpack.c.l.bf16 %v4295_v8 }
 0x1ef   :  { %1664 = vmatmul.mubr.bf16.vlgmr.msra.gmra.mrb[64].mxu0 %v5661_v54  ;;  %v5012_v54 = vld [vmem:[#allocation10 + $0xa4] ss:$16 sps:$4 sm:$0xff]   ;;  %v1036_v32 = vpack.c.bf16 %v968_v25, %v964_v14  ;;  %v972_v49 = vmax.f32 %v842_v38, 0.0  ;;  %v846_v51 = vadd.f32 %v845_v45, %v5646_v13  ;;  %v847_v53 = vpop.f32.mrb[63].mxu1  ;;  %v5016_v13 = vld [vmem:[#allocation10 + $0xe0] ss:$16 sps:$4 sm:$0xff]  }
 0x1f0   :  { %1673 = vmatprep.mubr.bf16.mxu0 %v5676_v36  ;;  %v1037_v34 = vpack.c.bf16 %v969_v30, %v965_v17  ;;  %v5010_v36 = vld [vmem:[#allocation10 + $0xa0] ss:$16 sps:$4 sm:$0xff]   ;;  %2512 = vmatprep.subr.bf16.mxu1 %v5012_v54  ;;  %v973_v55 = vmax.f32 %v844_v42, 0.0  ;;  %v848_v57 = vadd.f32 %v847_v53, %v5651_v15  ;;  %v5018_v15 = vld [vmem:[#allocation10 + $0xe4] ss:$16 sps:$4 sm:$0xff]   ;;  %v4297_v30 = vunpack.c.h.bf16 %v4295_v8  ;;  %v4438_v53 = vld [vmem:[#allocation5 + $0x8] sm:$0xff]  }
 0x1f1   :  { %v976_v59 = vmax.f32 %v846_v51, 0.0  ;;  %2513 = vmatpush1.bf16.msra.mxu1 %v5010_v36 }
 0x1f2   :  { %v977_v62 = vmax.f32 %v848_v57, 0.0  ;;  %2514 = vmatprep.subr.bf16.mxu1 %v5015_v47 }
 0x1f4   :  { %v1041_v63 = vpack.c.bf16 %v977_v62, %v973_v55 }
 0x1f5   :  { %2515 = vmatpush1.bf16.msra.mxu1 %v5013_v58 }
 0x1f6   :  { %2516 = vmatprep.subr.bf16.mxu1 %v5018_v15 }
 0x1f7   :  { %1674 = vmatmul.mubr.bf16.gmra.mrb[68].mxu0 %v5673_v22  ;;  %v1040_v22 = vpack.c.bf16 %v976_v59, %v972_v49 }
 0x1f8   :  { %1683 = vmatprep.mubr.bf16.mxu0 %v5688_v9  ;;  %v1106_v9 = vld [vmem:[%s6452_s5] sm:$0x3] }
 0x1f9   :  { %2517 = vmatpush1.bf16.msra.mxu1 %v5016_v13 }
 0x1ff   :  { %1684 = vmatmul.mubr.bf16.gmra.mrb[72].mxu0 %v5685_v4  ;;  %v5021_v4 = vld [vmem:[#allocation10 + $0xc] ss:$16 sps:$4 sm:$0xff]  }
 0x200   :  { %1693 = vmatprep.mubr.bf16.mxu0 %v5700_v50  ;;  %2695 = vmatprep.subr.bf16.mxu1 %v5021_v4  ;;  %v5860_v50 = vrot.slane %v1106_v9, %v5619_v23  ;;  %v5019_v4 = vld [vmem:[#allocation10 + $0x8] ss:$16 sps:$4 sm:$0xff]  }
 0x207   :  { %1694 = vmatmul.mubr.bf16.gmra.mrb[76].mxu0 %v5697_v46  ;;  %v5857_v46 = vrot.slane %v1106_v9, %v5611_v21 }
 0x208   :  { %1703 = vmatprep.mubr.bf16.mxu0 %v5712_v33 }
 0x20f   :  { %1704 = vmatmul.mubr.bf16.gmra.mrb[80].mxu0 %v5709_v29 }
 0x210   :  { %1713 = vmatprep.mubr.bf16.mxu0 %v5724_v7 }
 0x217   :  { %1714 = vmatmul.mubr.bf16.gmra.mrb[84].mxu0 %v5721_v1 }
 0x218   :  { %1723 = vmatprep.mubr.bf16.mxu0 %v5736_v48 }
 0x21f   :  { %1724 = vmatmul.mubr.bf16.gmra.mrb[88].mxu0 %v5733_v44 }
 0x220   :  { %1733 = vmatprep.mubr.bf16.mxu0 %v5748_v31 }
 0x227   :  { %1734 = vmatmul.mubr.bf16.gmra.mrb[92].mxu0 %v5745_v27 }
 0x228   :  { %1743 = vmatprep.mubr.bf16.mxu0 %v5760_v10 }
 0x22f   :  { %1744 = vmatmul.mubr.bf16.gmra.mrb[96].mxu0 %v5757_v3 }
 0x230   :  { %1753 = vmatprep.mubr.bf16.mxu0 %v5772_v56 }
 0x237   :  { %1754 = vmatmul.mubr.bf16.gmra.mrb[100].mxu0 %v5769_v52 }
 0x238   :  { %1763 = vmatprep.mubr.bf16.mxu0 %v5784_v43 }
 0x23f   :  { %1764 = vmatmul.mubr.bf16.gmra.mrb[104].mxu0 %v5781_v40 }
 0x240   :  { %1773 = vmatprep.mubr.bf16.mxu0 %v5796_v39 }
 0x247   :  { %1774 = vmatmul.mubr.bf16.gmra.mrb[108].mxu0 %v5793_v35 }
 0x248   :  { %1783 = vmatprep.mubr.bf16.mxu0 %v5807_v26 }
 0x24f   :  { %1784 = vmatmul.mubr.bf16.gmra.mrb[112].mxu0 %v5805_v19 }
 0x250   :  { %1793 = vmatprep.mubr.bf16.mxu0 %v5816_v61 }
 0x257   :  { %1794 = vmatmul.mubr.bf16.gmra.mrb[116].mxu0 %v5814_v60 }
 0x258   :  { %1803 = vmatprep.mubr.bf16.mxu0 %v1037_v34 }
 0x25f   :  { %1804 = vmatmul.mubr.bf16.gmra.mrb[120].mxu0 %v1036_v32 }
 0x260   :  { %1813 = vmatprep.mubr.bf16.mxu0 %v1041_v63  ;;  %v4300_v63 = vunpack.c.l.bf16 %v4438_v53 }
 0x267   :  { %1814 = vmatmul.mubr.bf16.gmra.mrb[124].mxu0 %v1040_v22 }
 0x2c2   :  { %v1665_v29 = vpop.f32.mrb[64].mxu0 }
 0x2c3   :  { %v4692_v33 = vadd.f32 %v1665_v29, %v5857_v46  ;;  %v1667_v1 = vpop.f32.mrb[65].mxu0 }
 0x2c4   :  { %v4693_v7 = vadd.f32 %v1667_v1, %v5860_v50  ;;  %v1669_v44 = vpop.f32.mrb[66].mxu0 }
 0x2c5   :  { %v4694_v48 = vadd.f32 %v1669_v44, %v5857_v46  ;;  %v1671_v27 = vpop.f32.mrb[67].mxu0 }
 0x2c6   :  { %v4230_v31 = vpack.c.bf16 %v4693_v7, %v4692_v33  ;;  %v2112_v3 = vmul.f32 0.5, %v4693_v7  ;;  %v4695_v10 = vadd.f32 %v1671_v27, %v5860_v50  ;;  %v4301_v7 = vunpack.c.h.bf16 %v4438_v53  ;;  %v4440_v53 = vld [vmem:[#allocation5 + $0x18] sm:$0xff]  }
 0x2c8   :  { %2016 = vst [vmem:[#allocation14] sm:$0xff] %v4230_v31  ;;  %v2144_v52 = vmul.f32 1.442695, %v2112_v3  ;;  %v4231_v56 = vpack.c.bf16 %v4695_v10, %v4694_v48  ;;  %v2113_v40 = vmul.f32 0.5, %v4695_v10 }
 0x2ca   :  { %5075 = vpow2.f32 %v2144_v52  ;;  %2017 = vst [vmem:[#allocation14 + $0x8] sm:$0xff] %v4231_v56  ;;  %v2146_v43 = vmul.f32 1.442695, %v2113_v40  ;;  %v1675_v35 = vpop.f32.mrb[68].mxu0 }
 0x2cb   :  { %v5867_v39 = vadd.f32 %v1675_v35, %v5857_v46  ;;  %v1677_v19 = vpop.f32.mrb[69].mxu0  ;;  %v5022_v35 = vld [vmem:[#allocation10 + $0x28] ss:$16 sps:$4 sm:$0xff]  }
 0x2cc   :  { %5077 = vpow2.f32 %v2146_v43  ;;  %v4697_v26 = vadd.f32 %v1677_v19, %v5860_v50  ;;  %v1679_v60 = vpop.f32.mrb[70].mxu0  ;;  %v4439_v19 = vld [vmem:[#allocation5 + $0x10] sm:$0xff]  }
 0x2cd   :  { %v5871_v61 = vadd.f32 %v1679_v60, %v5857_v46  ;;  %v1681_v6 = vpop.f32.mrb[71].mxu0 }
 0x2ce   :  { %v4232_v11 = vpack.c.bf16 %v4697_v26, %v5867_v39  ;;  %v2114_v12 = vmul.f32 0.5, %v4697_v26  ;;  %v4699_v14 = vadd.f32 %v1681_v6, %v5860_v50  ;;  %v5027_v6 = vld [vmem:[#allocation10 + $0x4c] ss:$16 sps:$4 sm:$0xff]  }
 0x2d0   :  { %2018 = vst [vmem:[#allocation14 + $0x10] sm:$0xff] %v4232_v11  ;;  %v2148_v16 = vmul.f32 1.442695, %v2114_v12  ;;  %v4233_v24 = vpack.c.bf16 %v4699_v14, %v5871_v61  ;;  %v2115_v17 = vmul.f32 0.5, %v4699_v14 }
 0x2d2   :  { %5079 = vpow2.f32 %v2148_v16  ;;  %2019 = vst [vmem:[#allocation14 + $0x18] sm:$0xff] %v4233_v24  ;;  %v2150_v25 = vmul.f32 1.442695, %v2115_v17  ;;  %v1685_v28 = vpop.f32.mrb[72].mxu0  ;;  %v4304_v16 = vunpack.c.l.bf16 %v4439_v19 }
 0x2d3   :  { %v5877_v54 = vadd.f32 %v1685_v28, %v5857_v46  ;;  %v1687_v32 = vpop.f32.mrb[73].mxu0 }
 0x2d4   :  { %v5076_v34 = vpop.eup %5075  ;;  %5081 = vpow2.f32 %v2150_v25  ;;  %v4701_v37 = vadd.f32 %v1687_v32, %v5860_v50  ;;  %v1689_v38 = vpop.f32.mrb[74].mxu0  ;;  %v5030_v32 = vld [vmem:[#allocation10 + $0x6c] ss:$16 sps:$4 sm:$0xff]  }
 0x2d5   :  { %v2208_v41 = vmul.f32 %v5076_v34, %v4296_v18  ;;  %v5881_v36 = vadd.f32 %v1689_v38, %v5857_v46  ;;  %v1691_v42 = vpop.f32.mrb[75].mxu0  ;;  %v5025_v18 = vld [vmem:[#allocation10 + $0x48] ss:$16 sps:$4 sm:$0xff]  }
 0x2d6   :  { %v5078_v45 = vpop.eup %5077  ;;  %v4234_v47 = vpack.c.bf16 %v4701_v37, %v5877_v54  ;;  %v2116_v49 = vmul.f32 0.5, %v4701_v37  ;;  %v4703_v51 = vadd.f32 %v1691_v42, %v5860_v50 }
 0x2d7   :  { %v2209_v55 = vmul.f32 %v5078_v45, %v4297_v30  ;;  %v2240_v57 = vadd.f32 %v4692_v33, %v2208_v41  ;;  %v5024_v33 = vld [vmem:[#allocation10 + $0x2c] ss:$16 sps:$4 sm:$0xff]   ;;  %v4305_v30 = vunpack.c.h.bf16 %v4439_v19 }
 0x2d8   :  { %2020 = vst [vmem:[#allocation14 + $0x20] sm:$0xff] %v4234_v47  ;;  %v2152_v59 = vmul.f32 1.442695, %v2116_v49  ;;  %v4235_v58 = vpack.c.bf16 %v4703_v51, %v5881_v36  ;;  %v2117_v62 = vmul.f32 0.5, %v4703_v51 }
 0x2d9   :  { %v2241_v22 = vadd.f32 %v4694_v48, %v2209_v55  ;;  %v5028_v55 = vld [vmem:[#allocation10 + $0x68] ss:$16 sps:$4 sm:$0xff]  }
 0x2da   :  { %5083 = vpow2.f32 %v2152_v59  ;;  %2021 = vst [vmem:[#allocation14 + $0x28] sm:$0xff] %v4235_v58  ;;  %v2154_v13 = vmul.f32 1.442695, %v2117_v62  ;;  %v1695_v15 = vpop.f32.mrb[76].mxu0  ;;  %v5033_v58 = vld [vmem:[#allocation10 + $0x8c] ss:$16 sps:$4 sm:$0xff]  }
 0x2db   :  { %v5887_v9 = vadd.f32 %v1695_v15, %v5857_v46  ;;  %v1697_v29 = vpop.f32.mrb[77].mxu0  ;;  %v5889_v1 = vpack.c.bf16 %v2241_v22, %v2240_v57  ;;  %v4308_v15 = vunpack.c.l.bf16 %v4440_v53 }
 0x2dc   :  { %v5080_v44 = vpop.eup %5079  ;;  %5085 = vpow2.f32 %v2154_v13  ;;  %v4705_v27 = vadd.f32 %v1697_v29, %v5860_v50  ;;  %v1699_v31 = vpop.f32.mrb[78].mxu0 }
 0x2dd   :  { %v5893_v48 = vadd.f32 %v1699_v31, %v5857_v46  ;;  %v1701_v3 = vpop.f32.mrb[79].mxu0  ;;  %2535 = vmatmul.mubr.bf16.vlgmr.msra.gmra.mrb[64].mxu1 %v5889_v1  ;;  %v2210_v10 = vmul.f32 %v5080_v44, %v4300_v63  ;;  %v5036_v31 = vld [vmem:[#allocation10 + $0xac] ss:$16 sps:$4 sm:$0xff]  }
 0x2de   :  { %v5082_v52 = vpop.eup %5081  ;;  %v4236_v56 = vpack.c.bf16 %v4705_v27, %v5887_v9  ;;  %v2118_v40 = vmul.f32 0.5, %v4705_v27  ;;  %v4707_v43 = vadd.f32 %v1701_v3, %v5860_v50  ;;  %2696 = vmatpush1.bf16.msra.mxu1 %v5019_v4  ;;  %2544 = vmatprep.mubr.bf16.mxu1 %v5403_v0  ;;  %v4309_v27 = vunpack.c.h.bf16 %v4440_v53 }
 0x2df   :  { %v2211_v26 = vmul.f32 %v5082_v52, %v4301_v7  ;;  %v2242_v60 = vadd.f32 %v5867_v39, %v2210_v10  ;;  %2697 = vmatprep.subr.bf16.mxu1 %v5024_v33  ;;  %v5031_v7 = vld [vmem:[#allocation10 + $0x88] ss:$16 sps:$4 sm:$0xff]  }
 0x2e0   :  { %2022 = vst [vmem:[#allocation14 + $0x30] sm:$0xff] %v4236_v56  ;;  %v2156_v8 = vmul.f32 1.442695, %v2118_v40  ;;  %v4237_v11 = vpack.c.bf16 %v4707_v43, %v5893_v48  ;;  %v2119_v12 = vmul.f32 0.5, %v4707_v43 }
 0x2e1   :  { %v2243_v14 = vadd.f32 %v5871_v61, %v2211_v26 }
 0x2e2   :  { %5087 = vpow2.f32 %v2156_v8  ;;  %2023 = vst [vmem:[#allocation14 + $0x38] sm:$0xff] %v4237_v11  ;;  %v2158_v24 = vmul.f32 1.442695, %v2119_v12  ;;  %v1705_v17 = vpop.f32.mrb[80].mxu0  ;;  %2698 = vmatpush1.bf16.msra.mxu1 %v5022_v35  ;;  %v5039_v12 = vld [vmem:[#allocation10 + $0xcc] ss:$16 sps:$4 sm:$0xff]  }
 0x2e3   :  { %v5903_v25 = vadd.f32 %v1705_v17, %v5857_v46  ;;  %v1707_v39 = vpop.f32.mrb[81].mxu0  ;;  %v5905_v28 = vpack.c.bf16 %v2243_v14, %v2242_v60  ;;  %2699 = vmatprep.subr.bf16.mxu1 %v5027_v6  ;;  %v4441_v60 = vld [vmem:[#allocation5 + $0x20] sm:$0xff]   ;;  %v5034_v6 = vld [vmem:[#allocation10 + $0xa8] ss:$16 sps:$4 sm:$0xff]  }
 0x2e4   :  { %v5084_v34 = vpop.eup %5083  ;;  %5089 = vpow2.f32 %v2158_v24  ;;  %v4709_v61 = vadd.f32 %v1707_v39, %v5860_v50  ;;  %v1709_v37 = vpop.f32.mrb[82].mxu0 }
 0x2e5   :  { %v5909_v38 = vadd.f32 %v1709_v37, %v5857_v46  ;;  %v1711_v41 = vpop.f32.mrb[83].mxu0  ;;  %2545 = vmatmul.mubr.bf16.gmra.mrb[68].mxu1 %v5905_v28  ;;  %v2212_v42 = vmul.f32 %v5084_v34, %v4304_v16  ;;  %v4313_v37 = vunpack.c.h.bf16 %v4441_v60 }
 0x2e6   :  { %v5086_v45 = vpop.eup %5085  ;;  %v4238_v47 = vpack.c.bf16 %v4709_v61, %v5903_v25  ;;  %v2120_v49 = vmul.f32 0.5, %v4709_v61  ;;  %v4711_v51 = vadd.f32 %v1711_v41, %v5860_v50  ;;  %2554 = vmatprep.mubr.bf16.mxu1 %v5403_v0  ;;  %2700 = vmatpush1.bf16.msra.mxu1 %v5025_v18  ;;  %v4312_v18 = vunpack.c.l.bf16 %v4441_v60  ;;  %v5042_v41 = vld [vmem:[#allocation10 + $0xec] ss:$16 sps:$4 sm:$0xff]  }
 0x2e7   :  { %v2213_v57 = vmul.f32 %v5086_v45, %v4305_v30  ;;  %v2244_v59 = vadd.f32 %v5877_v54, %v2212_v42  ;;  %2701 = vmatprep.subr.bf16.mxu1 %v5030_v32  ;;  %v5037_v32 = vld [vmem:[#allocation10 + $0xc8] ss:$16 sps:$4 sm:$0xff]  }
 0x2e8   :  { %2024 = vst [vmem:[#allocation14 + $0x40] sm:$0xff] %v4238_v47  ;;  %v2160_v62 = vmul.f32 1.442695, %v2120_v49  ;;  %v4239_v22 = vpack.c.bf16 %v4711_v51, %v5909_v38  ;;  %v2121_v63 = vmul.f32 0.5, %v4711_v51 }
 0x2e9   :  { %v2245_v13 = vadd.f32 %v5881_v36, %v2213_v57 }
 0x2ea   :  { %5091 = vpow2.f32 %v2160_v62  ;;  %2025 = vst [vmem:[#allocation14 + $0x48] sm:$0xff] %v4239_v22  ;;  %v2162_v4 = vmul.f32 1.442695, %v2121_v63  ;;  %v1715_v29 = vpop.f32.mrb[84].mxu0  ;;  %2702 = vmatpush1.bf16.msra.mxu1 %v5028_v55  ;;  %v5040_v62 = vld [vmem:[#allocation10 + $0xe8] ss:$16 sps:$4 sm:$0xff]  }
 0x2eb   :  { %v5919_v33 = vadd.f32 %v1715_v29, %v5857_v46  ;;  %v1717_v54 = vpop.f32.mrb[85].mxu0  ;;  %v5921_v44 = vpack.c.bf16 %v2245_v13, %v2244_v59  ;;  %2703 = vmatprep.subr.bf16.mxu1 %v5033_v58  ;;  %v4442_v58 = vld [vmem:[#allocation5 + $0x28] sm:$0xff]  }
 0x2ec   :  { %v5088_v3 = vpop.eup %5087  ;;  %5093 = vpow2.f32 %v2162_v4  ;;  %v4713_v36 = vadd.f32 %v1717_v54, %v5860_v50  ;;  %v1719_v10 = vpop.f32.mrb[86].mxu0 }
 0x2ed   :  { %v5925_v52 = vadd.f32 %v1719_v10, %v5857_v46  ;;  %v1721_v56 = vpop.f32.mrb[87].mxu0  ;;  %2555 = vmatmul.mubr.bf16.gmra.mrb[72].mxu1 %v5921_v44  ;;  %v2214_v40 = vmul.f32 %v5088_v3, %v4308_v15 }
 0x2ee   :  { %v5090_v43 = vpop.eup %5089  ;;  %v4240_v35 = vpack.c.bf16 %v4713_v36, %v5919_v33  ;;  %v2122_v19 = vmul.f32 0.5, %v4713_v36  ;;  %v4715_v26 = vadd.f32 %v1721_v56, %v5860_v50  ;;  %2564 = vmatprep.mubr.bf16.mxu1 %v5403_v0  ;;  %2704 = vmatpush1.bf16.msra.mxu1 %v5031_v7  ;;  %v4316_v7 = vunpack.c.l.bf16 %v4442_v58 }
 0x2ef   :  { %v2215_v8 = vmul.f32 %v5090_v43, %v4309_v27  ;;  %v2246_v11 = vadd.f32 %v5887_v9, %v2214_v40  ;;  %2705 = vmatprep.subr.bf16.mxu1 %v5036_v31 }
 0x2f0   :  { %2026 = vst [vmem:[#allocation14 + $0x50] sm:$0xff] %v4240_v35  ;;  %v2164_v14 = vmul.f32 1.442695, %v2122_v19  ;;  %v4241_v16 = vpack.c.bf16 %v4715_v26, %v5925_v52  ;;  %v2123_v24 = vmul.f32 0.5, %v4715_v26 }
 0x2f1   :  { %v2247_v17 = vadd.f32 %v5893_v48, %v2215_v8  ;;  %v4443_v8 = vld [vmem:[#allocation5 + $0x30] sm:$0xff]  }
 0x2f2   :  { %5095 = vpow2.f32 %v2164_v14  ;;  %2027 = vst [vmem:[#allocation14 + $0x58] sm:$0xff] %v4241_v16  ;;  %v2166_v39 = vmul.f32 1.442695, %v2123_v24  ;;  %v1725_v30 = vpop.f32.mrb[88].mxu0  ;;  %2706 = vmatpush1.bf16.msra.mxu1 %v5034_v6 }
 0x2f3   :  { %v5935_v34 = vadd.f32 %v1725_v30, %v5857_v46  ;;  %v1727_v9 = vpop.f32.mrb[89].mxu0  ;;  %v5937_v61 = vpack.c.bf16 %v2247_v17, %v2246_v11  ;;  %2707 = vmatprep.subr.bf16.mxu1 %v5039_v12 }
 0x2f4   :  { %v5092_v42 = vpop.eup %5091  ;;  %5097 = vpow2.f32 %v2166_v39  ;;  %v4717_v48 = vadd.f32 %v1727_v9, %v5860_v50  ;;  %v1729_v45 = vpop.f32.mrb[90].mxu0 }
 0x2f5   :  { %v5941_v47 = vadd.f32 %v1729_v45, %v5857_v46  ;;  %v1731_v49 = vpop.f32.mrb[91].mxu0  ;;  %2565 = vmatmul.mubr.bf16.gmra.mrb[76].mxu1 %v5937_v61  ;;  %v2216_v51 = vmul.f32 %v5092_v42, %v4312_v18  ;;  %v4320_v18 = vunpack.c.l.bf16 %v4443_v8 }
 0x2f6   :  { %v5094_v53 = vpop.eup %5093  ;;  %v4242_v55 = vpack.c.bf16 %v4717_v48, %v5935_v34  ;;  %v2124_v57 = vmul.f32 0.5, %v4717_v48  ;;  %v4719_v59 = vadd.f32 %v1731_v49, %v5860_v50  ;;  %2574 = vmatprep.mubr.bf16.mxu1 %v5403_v0  ;;  %2708 = vmatpush1.bf16.msra.mxu1 %v5037_v32 }
 0x2f7   :  { %v2217_v22 = vmul.f32 %v5094_v53, %v4313_v37  ;;  %v2248_v63 = vadd.f32 %v5903_v25, %v2216_v51  ;;  %2709 = vmatprep.subr.bf16.mxu1 %v5042_v41  ;;  %v4317_v25 = vunpack.c.h.bf16 %v4442_v58  ;;  %v4321_v41 = vunpack.c.h.bf16 %v4443_v8 }
 0x2f8   :  { %2028 = vst [vmem:[#allocation14 + $0x60] sm:$0xff] %v4242_v55  ;;  %v2168_v13 = vmul.f32 1.442695, %v2124_v57  ;;  %v4243_v15 = vpack.c.bf16 %v4719_v59, %v5941_v47  ;;  %v2125_v4 = vmul.f32 0.5, %v4719_v59  ;;  %v4444_v59 = vld [vmem:[#allocation5 + $0x38] sm:$0xff]  }
 0x2f9   :  { %v2249_v29 = vadd.f32 %v5909_v38, %v2217_v22 }
 0x2fa   :  { %5099 = vpow2.f32 %v2168_v13  ;;  %2029 = vst [vmem:[#allocation14 + $0x68] sm:$0xff] %v4243_v15  ;;  %v2170_v54 = vmul.f32 1.442695, %v2125_v4  ;;  %v1735_v27 = vpop.f32.mrb[92].mxu0  ;;  %2710 = vmatpush1.bf16.msra.mxu1 %v5040_v62  ;;  %v4324_v4 = vunpack.c.l.bf16 %v4444_v59 }
 0x2fb   :  { %v5951_v31 = vadd.f32 %v1735_v27, %v5857_v46  ;;  %v1737_v3 = vpop.f32.mrb[93].mxu0  ;;  %v5953_v36 = vpack.c.bf16 %v2249_v29, %v2248_v63 }
 0x2fc   :  { %v5096_v10 = vpop.eup %5095  ;;  %5101 = vpow2.f32 %v2170_v54  ;;  %v4721_v56 = vadd.f32 %v1737_v3, %v5860_v50  ;;  %v1739_v40 = vpop.f32.mrb[94].mxu0 }
 0x2fd   :  { %v5957_v38 = vadd.f32 %v1739_v40, %v5857_v46  ;;  %v1741_v43 = vpop.f32.mrb[95].mxu0  ;;  %2575 = vmatmul.mubr.bf16.gmra.mrb[80].mxu1 %v5953_v36  ;;  %v2218_v35 = vmul.f32 %v5096_v10, %v4316_v7 }
 0x2fe   :  { %v5098_v19 = vpop.eup %5097  ;;  %v4244_v26 = vpack.c.bf16 %v4721_v56, %v5951_v31  ;;  %v2126_v60 = vmul.f32 0.5, %v4721_v56  ;;  %v4723_v6 = vadd.f32 %v1741_v43, %v5860_v50  ;;  %2584 = vmatprep.mubr.bf16.mxu1 %v5403_v0 }
 0x2ff   :  { %v2219_v11 = vmul.f32 %v5098_v19, %v4317_v25  ;;  %v2250_v12 = vadd.f32 %v5919_v33, %v2218_v35  ;;  %v4325_v25 = vunpack.c.h.bf16 %v4444_v59 }
 0x300   :  { %2030 = vst [vmem:[#allocation14 + $0x70] sm:$0xff] %v4244_v26  ;;  %v2172_v14 = vmul.f32 1.442695, %v2126_v60  ;;  %v4245_v16 = vpack.c.bf16 %v4723_v6, %v5957_v38  ;;  %v2127_v24 = vmul.f32 0.5, %v4723_v6  ;;  %v4445_v6 = vld [vmem:[#allocation5 + $0x40] sm:$0xff]  }
 0x301   :  { %v2251_v17 = vadd.f32 %v5925_v52, %v2219_v11 }
 0x302   :  { %5103 = vpow2.f32 %v2172_v14  ;;  %2031 = vst [vmem:[#allocation14 + $0x78] sm:$0xff] %v4245_v16  ;;  %v2174_v39 = vmul.f32 1.442695, %v2127_v24  ;;  %v1745_v30 = vpop.f32.mrb[96].mxu0 }
 0x303   :  { %v5967_v32 = vadd.f32 %v1745_v30, %v5857_v46  ;;  %v1747_v9 = vpop.f32.mrb[97].mxu0  ;;  %v5969_v37 = vpack.c.bf16 %v2251_v17, %v2250_v12  ;;  %v4328_v17 = vunpack.c.l.bf16 %v4445_v6 }
 0x304   :  { %v5100_v33 = vpop.eup %5099  ;;  %5105 = vpow2.f32 %v2174_v39  ;;  %v4725_v42 = vadd.f32 %v1747_v9, %v5860_v50  ;;  %v1749_v48 = vpop.f32.mrb[98].mxu0 }
 0x305   :  { %v5973_v45 = vadd.f32 %v1749_v48, %v5857_v46  ;;  %v1751_v52 = vpop.f32.mrb[99].mxu0  ;;  %2585 = vmatmul.mubr.bf16.gmra.mrb[84].mxu1 %v5969_v37  ;;  %v2220_v49 = vmul.f32 %v5100_v33, %v4320_v18  ;;  %v4329_v33 = vunpack.c.h.bf16 %v4445_v6  ;;  %v5046_v6 = vld [vmem:[#allocation11 + $0x8] sm:$0xff]  }
 0x306   :  { %v5102_v51 = vpop.eup %5101  ;;  %v4246_v53 = vpack.c.bf16 %v4725_v42, %v5967_v32  ;;  %v2128_v55 = vmul.f32 0.5, %v4725_v42  ;;  %v4727_v57 = vadd.f32 %v1751_v52, %v5860_v50  ;;  %2594 = vmatprep.mubr.bf16.mxu1 %v5403_v0 }
 0x307   :  { %v2221_v58 = vmul.f32 %v5102_v51, %v4321_v41  ;;  %v2252_v62 = vadd.f32 %v5935_v34, %v2220_v49  ;;  %v5043_v51 = vld [vmem:[#allocation11 + $0x40] sm:$0xff]  }
 0x308   :  { %2032 = vst [vmem:[#allocation14 + $0x80] sm:$0xff] %v4246_v53  ;;  %v2176_v22 = vmul.f32 1.442695, %v2128_v55  ;;  %v4247_v63 = vpack.c.bf16 %v4727_v57, %v5973_v45  ;;  %v2129_v13 = vmul.f32 0.5, %v4727_v57  ;;  %4468 = vmatprep.subr.bf16.mxu0 %v5043_v51 }
 0x309   :  { %v2253_v15 = vadd.f32 %v5941_v47, %v2221_v58  ;;  %v4446_v58 = vld [vmem:[#allocation5 + $0x48] sm:$0xff]  }
 0x30a   :  { %5107 = vpow2.f32 %v2176_v22  ;;  %2033 = vst [vmem:[#allocation14 + $0x88] sm:$0xff] %v4247_v63  ;;  %v2178_v29 = vmul.f32 1.442695, %v2129_v13  ;;  %v1755_v7 = vpop.f32.mrb[100].mxu0 }
 0x30b   :  { %v5983_v54 = vadd.f32 %v1755_v7, %v5857_v46  ;;  %v1757_v27 = vpop.f32.mrb[101].mxu0  ;;  %v5985_v3 = vpack.c.bf16 %v2253_v15, %v2252_v62  ;;  %v5044_v62 = vld [vmem:[#allocation11] sm:$0xff]   ;;  %v4332_v7 = vunpack.c.l.bf16 %v4446_v58 }
 0x30c   :  { %v5104_v34 = vpop.eup %5103  ;;  %5109 = vpow2.f32 %v2178_v29  ;;  %v4729_v10 = vadd.f32 %v1757_v27, %v5860_v50  ;;  %v1759_v56 = vpop.f32.mrb[102].mxu0  ;;  %4469 = vmatpush3.bf16.msra.mxu0 %v5044_v62 }
 0x30d   :  { %v5989_v40 = vadd.f32 %v1759_v56, %v5857_v46  ;;  %v1761_v47 = vpop.f32.mrb[103].mxu0  ;;  %2595 = vmatmul.mubr.bf16.gmra.mrb[88].mxu1 %v5985_v3  ;;  %v2222_v43 = vmul.f32 %v5104_v34, %v4324_v4 }
 0x30e   :  { %v5106_v35 = vpop.eup %5105  ;;  %v4248_v19 = vpack.c.bf16 %v4729_v10, %v5983_v54  ;;  %v2130_v26 = vmul.f32 0.5, %v4729_v10  ;;  %v4731_v60 = vadd.f32 %v1761_v47, %v5860_v50  ;;  %2604 = vmatprep.mubr.bf16.mxu1 %v5403_v0 }
 0x30f   :  { %v2223_v8 = vmul.f32 %v5106_v35, %v4325_v25  ;;  %v2254_v11 = vadd.f32 %v5951_v31, %v2222_v43 }
 0x310   :  { %2034 = vst [vmem:[#allocation14 + $0x90] sm:$0xff] %v4248_v19  ;;  %v2180_v12 = vmul.f32 1.442695, %v2130_v26  ;;  %v4249_v14 = vpack.c.bf16 %v4731_v60, %v5989_v40  ;;  %v2131_v16 = vmul.f32 0.5, %v4731_v60  ;;  %v5045_v60 = vld [vmem:[#allocation11 + $0x48] sm:$0xff]  }
 0x311   :  { %v2255_v24 = vadd.f32 %v5957_v38, %v2223_v8  ;;  %v5047_v8 = vld [vmem:[#allocation11 + $0x50] sm:$0xff]   ;;  %4470 = vmatprep.subr.bf16.mxu0 %v5045_v60 }
 0x312   :  { %5111 = vpow2.f32 %v2180_v12  ;;  %2035 = vst [vmem:[#allocation14 + $0x98] sm:$0xff] %v4249_v14  ;;  %v2182_v18 = vmul.f32 1.442695, %v2131_v16  ;;  %v1765_v39 = vpop.f32.mrb[104].mxu0  ;;  %4471 = vmatpush3.bf16.msra.mxu0 %v5046_v6 }
 0x313   :  { %v5999_v30 = vadd.f32 %v1765_v39, %v5857_v46  ;;  %v1767_v9 = vpop.f32.mrb[105].mxu0  ;;  %v6001_v41 = vpack.c.bf16 %v2255_v24, %v2254_v11  ;;  %v4447_v24 = vld [vmem:[#allocation5 + $0x50] sm:$0xff]   ;;  %4472 = vmatprep.subr.bf16.mxu0 %v5047_v8 }
 0x314   :  { %v5108_v31 = vpop.eup %5107  ;;  %5113 = vpow2.f32 %v2182_v18  ;;  %v4733_v42 = vadd.f32 %v1767_v9, %v5860_v50  ;;  %v1769_v48 = vpop.f32.mrb[106].mxu0 }
 0x315   :  { %v6005_v52 = vadd.f32 %v1769_v48, %v5857_v46  ;;  %v1771_v38 = vpop.f32.mrb[107].mxu0  ;;  %2605 = vmatmul.mubr.bf16.gmra.mrb[92].mxu1 %v6001_v41  ;;  %v2224_v49 = vmul.f32 %v5108_v31, %v4328_v17  ;;  %v5048_v31 = vld [vmem:[#allocation11 + $0x10] sm:$0xff]   ;;  %v4336_v48 = vunpack.c.l.bf16 %v4447_v24 }
 0x316   :  { %v5110_v53 = vpop.eup %5109  ;;  %v4250_v55 = vpack.c.bf16 %v4733_v42, %v5999_v30  ;;  %v2132_v57 = vmul.f32 0.5, %v4733_v42  ;;  %v4735_v59 = vadd.f32 %v1771_v38, %v5860_v50  ;;  %2614 = vmatprep.mubr.bf16.mxu1 %v5403_v0  ;;  %4473 = vmatpush3.bf16.msra.mxu0 %v5048_v31 }
 0x317   :  { %v2225_v22 = vmul.f32 %v5110_v53, %v4329_v33  ;;  %v2256_v63 = vadd.f32 %v5967_v32, %v2224_v49  ;;  %v4333_v32 = vunpack.c.h.bf16 %v4446_v58 }
 0x318   :  { %2036 = vst [vmem:[#allocation14 + $0xa0] sm:$0xff] %v4250_v55  ;;  %v2184_v13 = vmul.f32 1.442695, %v2132_v57  ;;  %v4251_v15 = vpack.c.bf16 %v4735_v59, %v6005_v52  ;;  %v2133_v4 = vmul.f32 0.5, %v4735_v59  ;;  %v4337_v55 = vunpack.c.h.bf16 %v4447_v24 }
 0x319   :  { %v2257_v29 = vadd.f32 %v5973_v45, %v2225_v22 }
 0x31a   :  { %5115 = vpow2.f32 %v2184_v13  ;;  %2037 = vst [vmem:[#allocation14 + $0xa8] sm:$0xff] %v4251_v15  ;;  %v2186_v27 = vmul.f32 1.442695, %v2133_v4  ;;  %v1775_v25 = vpop.f32.mrb[108].mxu0  ;;  %v5050_v13 = vld [vmem:[#allocation11 + $0x18] sm:$0xff]   ;;  %v5051_v15 = vld [vmem:[#allocation11 + $0x60] sm:$0xff]  }
 0x31b   :  { %v6015_v34 = vadd.f32 %v1775_v25, %v5857_v46  ;;  %v1777_v10 = vpop.f32.mrb[109].mxu0  ;;  %v6017_v56 = vpack.c.bf16 %v2257_v29, %v2256_v63  ;;  %v5049_v63 = vld [vmem:[#allocation11 + $0x58] sm:$0xff]  }
 0x31c   :  { %v5112_v47 = vpop.eup %5111  ;;  %5117 = vpow2.f32 %v2186_v27  ;;  %v4737_v43 = vadd.f32 %v1777_v10, %v5860_v50  ;;  %v1779_v35 = vpop.f32.mrb[110].mxu0  ;;  %v4448_v25 = vld [vmem:[#allocation5 + $0x58] sm:$0xff]   ;;  %4474 = vmatprep.subr.bf16.mxu0 %v5049_v63  ;;  %v5055_v63 = vld [vmem:[#allocation11 + $0x70] sm:$0xff]  }
 0x31d   :  { %v6021_v19 = vadd.f32 %v1779_v35, %v5857_v46  ;;  %v1781_v45 = vpop.f32.mrb[111].mxu0  ;;  %2615 = vmatmul.mubr.bf16.gmra.mrb[96].mxu1 %v6017_v56  ;;  %v2226_v26 = vmul.f32 %v5112_v47, %v4332_v7  ;;  %4475 = vmatpush3.bf16.msra.mxu0 %v5050_v13  ;;  %v4340_v60 = vunpack.c.l.bf16 %v4448_v25 }
 0x31e   :  { %v5114_v11 = vpop.eup %5113  ;;  %v4252_v12 = vpack.c.bf16 %v4737_v43, %v6015_v34  ;;  %v2134_v14 = vmul.f32 0.5, %v4737_v43  ;;  %v4739_v16 = vadd.f32 %v1781_v45, %v5860_v50  ;;  %2624 = vmatprep.mubr.bf16.mxu1 %v5403_v0  ;;  %v5052_v45 = vld [vmem:[#allocation11 + $0x20] sm:$0xff]   ;;  %4476 = vmatprep.subr.bf16.mxu0 %v5051_v15 }
 0x31f   :  { %v2227_v17 = vmul.f32 %v5114_v11, %v4333_v32  ;;  %v2258_v18 = vadd.f32 %v5983_v54, %v2226_v26 }
 0x320   :  { %2038 = vst [vmem:[#allocation14 + $0xb0] sm:$0xff] %v4252_v12  ;;  %v2188_v39 = vmul.f32 1.442695, %v2134_v14  ;;  %v4253_v9 = vpack.c.bf16 %v4739_v16, %v6021_v19  ;;  %v2135_v33 = vmul.f32 0.5, %v4739_v16  ;;  %v4341_v14 = vunpack.c.h.bf16 %v4448_v25 }
 0x321   :  { %v2259_v42 = vadd.f32 %v5989_v40, %v2227_v17  ;;  %4477 = vmatpush3.bf16.msra.mxu0 %v5052_v45 }
 0x322   :  { %5119 = vpow2.f32 %v2188_v39  ;;  %2039 = vst [vmem:[#allocation14 + $0xb8] sm:$0xff] %v4253_v9  ;;  %v2190_v38 = vmul.f32 1.442695, %v2135_v33  ;;  %v1785_v49 = vpop.f32.mrb[112].mxu0  ;;  %v5053_v9 = vld [vmem:[#allocation11 + $0x68] sm:$0xff]  }
 0x323   :  { %v6031_v51 = vadd.f32 %v1785_v49, %v5857_v46  ;;  %v1787_v54 = vpop.f32.mrb[113].mxu0  ;;  %v6033_v53 = vpack.c.bf16 %v2259_v42, %v2258_v18  ;;  %v5054_v49 = vld [vmem:[#allocation11 + $0x28] sm:$0xff]   ;;  %4478 = vmatprep.subr.bf16.mxu0 %v5053_v9 }
 0x324   :  { %v5116_v57 = vpop.eup %5115  ;;  %5121 = vpow2.f32 %v2190_v38  ;;  %v4741_v59 = vadd.f32 %v1787_v54, %v5860_v50  ;;  %v1789_v58 = vpop.f32.mrb[114].mxu0  ;;  %v4449_v38 = vld [vmem:[#allocation5 + $0x60] sm:$0xff]  }
 0x325   :  { %v6037_v40 = vadd.f32 %v1789_v58, %v5857_v46  ;;  %v1791_v62 = vpop.f32.mrb[115].mxu0  ;;  %2625 = vmatmul.mubr.bf16.gmra.mrb[100].mxu1 %v6033_v53  ;;  %v2228_v22 = vmul.f32 %v5116_v57, %v4336_v48  ;;  %4479 = vmatpush3.bf16.msra.mxu0 %v5054_v49 }
 0x326   :  { %v5118_v4 = vpop.eup %5117  ;;  %v4254_v29 = vpack.c.bf16 %v4741_v59, %v6031_v51  ;;  %v2136_v7 = vmul.f32 0.5, %v4741_v59  ;;  %v4743_v27 = vadd.f32 %v1791_v62, %v5860_v50  ;;  %2634 = vmatprep.mubr.bf16.mxu1 %v5403_v0  ;;  %4480 = vmatprep.subr.bf16.mxu0 %v5055_v63 }
 0x327   :  { %v2229_v10 = vmul.f32 %v5118_v4, %v4337_v55  ;;  %v2260_v32 = vadd.f32 %v5999_v30, %v2228_v22  ;;  %v4344_v22 = vunpack.c.l.bf16 %v4449_v38  ;;  %v5056_v4 = vld [vmem:[#allocation11 + $0x30] sm:$0xff]  }
 0x328   :  { %2040 = vst [vmem:[#allocation14 + $0xc0] sm:$0xff] %v4254_v29  ;;  %v2192_v47 = vmul.f32 1.442695, %v2136_v7  ;;  %v4255_v43 = vpack.c.bf16 %v4743_v27, %v6037_v40  ;;  %v2137_v35 = vmul.f32 0.5, %v4743_v27  ;;  %v4345_v27 = vunpack.c.h.bf16 %v4449_v38 }
 0x329   :  { %v2261_v26 = vadd.f32 %v6005_v52, %v2229_v10  ;;  %4481 = vmatpush3.bf16.msra.mxu0 %v5056_v4 }
 0x32a   :  { %5123 = vpow2.f32 %v2192_v47  ;;  %2041 = vst [vmem:[#allocation14 + $0xc8] sm:$0xff] %v4255_v43  ;;  %v2194_v6 = vmul.f32 1.442695, %v2137_v35  ;;  %v1795_v8 = vpop.f32.mrb[116].mxu0  ;;  %v5057_v35 = vld [vmem:[#allocation11 + $0x78] sm:$0xff]  }
 0x32b   :  { %v6047_v11 = vadd.f32 %v1795_v8, %v5857_v46  ;;  %v1797_v30 = vpop.f32.mrb[117].mxu0  ;;  %v6049_v12 = vpack.c.bf16 %v2261_v26, %v2260_v32  ;;  %v4450_v8 = vld [vmem:[#allocation5 + $0x68] sm:$0xff]   ;;  %4482 = vmatprep.subr.bf16.mxu0 %v5057_v35 }
 0x32c   :  { %v5120_v16 = vpop.eup %5119  ;;  %5125 = vpow2.f32 %v2194_v6  ;;  %v4745_v24 = vadd.f32 %v1797_v30, %v5860_v50  ;;  %v1799_v17 = vpop.f32.mrb[118].mxu0  ;;  %v5058_v30 = vld [vmem:[#allocation11 + $0x38] sm:$0xff]   ;;  %v4348_v9 = vunpack.c.l.bf16 %v4450_v8 }
 0x32d   :  { %v6053_v52 = vadd.f32 %v1799_v17, %v5857_v46  ;;  %v1801_v18 = vpop.f32.mrb[119].mxu0  ;;  %2635 = vmatmul.mubr.bf16.gmra.mrb[104].mxu1 %v6049_v12  ;;  %v2230_v39 = vmul.f32 %v5120_v16, %v4340_v60  ;;  %4483 = vmatpush3.bf16.msra.mxu0 %v5058_v30 }
 0x32e   :  { %v5122_v33 = vpop.eup %5121  ;;  %v4256_v31 = vpack.c.bf16 %v4745_v24, %v6047_v11  ;;  %v2138_v42 = vmul.f32 0.5, %v4745_v24  ;;  %v4747_v48 = vadd.f32 %v1801_v18, %v5860_v50  ;;  %2644 = vmatprep.mubr.bf16.mxu1 %v5403_v0 }
 0x32f   :  { %v2231_v54 = vmul.f32 %v5122_v33, %v4341_v14  ;;  %v2262_v55 = vadd.f32 %v6015_v34, %v2230_v39 }
 0x330   :  { %2042 = vst [vmem:[#allocation14 + $0xd0] sm:$0xff] %v4256_v31  ;;  %v2196_v57 = vmul.f32 1.442695, %v2138_v42  ;;  %v4257_v59 = vpack.c.bf16 %v4747_v48, %v6053_v52  ;;  %v2139_v58 = vmul.f32 0.5, %v4747_v48 }
 0x331   :  { %v2263_v62 = vadd.f32 %v6021_v19, %v2231_v54 }
 0x332   :  { %5127 = vpow2.f32 %v2196_v57  ;;  %2043 = vst [vmem:[#allocation14 + $0xd8] sm:$0xff] %v4257_v59  ;;  %v2198_v13 = vmul.f32 1.442695, %v2139_v58  ;;  %v1805_v15 = vpop.f32.mrb[120].mxu0 }
 0x333   :  { %v6063_v29 = vadd.f32 %v1805_v15, %v5857_v46  ;;  %v1807_v34 = vpop.f32.mrb[121].mxu0  ;;  %v6065_v7 = vpack.c.bf16 %v2263_v62, %v2262_v55 }
 0x334   :  { %v5124_v25 = vpop.eup %5123  ;;  %5129 = vpow2.f32 %v2198_v13  ;;  %v4749_v10 = vadd.f32 %v1807_v34, %v5860_v50  ;;  %v1809_v19 = vpop.f32.mrb[122].mxu0  ;;  %v4451_v13 = vld [vmem:[#allocation5 + $0x70] sm:$0xff]   ;;  %v5059_v34 = vld [vmem:[#allocation11 + $0xc0] sm:$0xff]  }
 0x335   :  { %v6069_v32 = vadd.f32 %v1809_v19, %v5857_v46  ;;  %v1811_v47 = vpop.f32.mrb[123].mxu0  ;;  %2645 = vmatmul.mubr.bf16.gmra.mrb[108].mxu1 %v6065_v7  ;;  %v2232_v43 = vmul.f32 %v5124_v25, %v4344_v22  ;;  %v4352_v19 = vunpack.c.l.bf16 %v4451_v13  ;;  %4580 = vmatprep.subr.bf16.mxu1 %v5059_v34 }
 0x336   :  { %v5126_v45 = vpop.eup %5125  ;;  %v4258_v26 = vpack.c.bf16 %v4749_v10, %v6063_v29  ;;  %v2140_v60 = vmul.f32 0.5, %v4749_v10  ;;  %v4751_v6 = vadd.f32 %v1811_v47, %v5860_v50  ;;  %2654 = vmatprep.mubr.bf16.mxu1 %v5403_v0 }
 0x337   :  { %v2233_v14 = vmul.f32 %v5126_v45, %v4345_v27  ;;  %v2264_v16 = vadd.f32 %v6031_v51, %v2232_v43  ;;  %v4349_v51 = vunpack.c.h.bf16 %v4450_v8 }
 0x338   :  { %2044 = vst [vmem:[#allocation14 + $0xe0] sm:$0xff] %v4258_v26  ;;  %v2200_v24 = vmul.f32 1.442695, %v2140_v60  ;;  %v4259_v17 = vpack.c.bf16 %v4751_v6, %v6069_v32  ;;  %v2141_v18 = vmul.f32 0.5, %v4751_v6  ;;  %v4452_v26 = vld [vmem:[#allocation5 + $0x78] sm:$0xff]  }
 0x339   :  { %v2265_v39 = vadd.f32 %v6037_v40, %v2233_v14  ;;  %v4356_v8 = vunpack.c.l.bf16 %v4452_v26  ;;  %v4357_v14 = vunpack.c.h.bf16 %v4452_v26 }
 0x33a   :  { %5131 = vpow2.f32 %v2200_v24  ;;  %2045 = vst [vmem:[#allocation14 + $0xe8] sm:$0xff] %v4259_v17  ;;  %v2202_v33 = vmul.f32 1.442695, %v2141_v18  ;;  %v1815_v31 = vpop.f32.mrb[124].mxu0 }
 0x33b   :  { %v4752_v42 = vadd.f32 %v1815_v31, %v5857_v46  ;;  %v1817_v48 = vpop.f32.mrb[125].mxu0  ;;  %v6079_v38 = vpack.c.bf16 %v2265_v39, %v2264_v16  ;;  %v5062_v31 = vld [vmem:[#allocation11 + $0x88] sm:$0xff]  }
 0x33c   :  { %v5128_v49 = vpop.eup %5127  ;;  %5133 = vpow2.f32 %v2202_v33  ;;  %v4753_v54 = vadd.f32 %v1817_v48, %v5860_v50  ;;  %v1819_v55 = vpop.f32.mrb[126].mxu0  ;;  %v5063_v48 = vld [vmem:[#allocation11 + $0xd0] sm:$0xff]  }
 0x33d   :  { %v4754_v57 = vadd.f32 %v1819_v55, %v5857_v46  ;;  %v1821_v59 = vpop.f32.mrb[127].mxu0  ;;  %2655 = vmatmul.mubr.bf16.gmra.mrb[112].mxu1 %v6079_v38  ;;  %v2234_v40 = vmul.f32 %v5128_v49, %v4348_v9  ;;  %v5068_v49 = vld [vmem:[#allocation11 + $0xa0] sm:$0xff]   ;;  %v5074_v55 = vld [vmem:[#allocation11 + $0xb8] sm:$0xff]  }
 0x33e   :  { %v5130_v58 = vpop.eup %5129  ;;  %v4260_v62 = vpack.c.bf16 %v4753_v54, %v4752_v42  ;;  %v2142_v22 = vmul.f32 0.5, %v4753_v54  ;;  %v4755_v63 = vadd.f32 %v1821_v59, %v5860_v50  ;;  %2664 = vmatprep.mubr.bf16.mxu1 %v5403_v0  ;;  %v4353_v50 = vunpack.c.h.bf16 %v4451_v13 }
 0x33f   :  { %v2235_v15 = vmul.f32 %v5130_v58, %v4349_v51  ;;  %v2266_v4 = vadd.f32 %v6047_v11, %v2234_v40  ;;  %v5064_v51 = vld [vmem:[#allocation11 + $0x90] sm:$0xff]  }
 0x340   :  { %2046 = vst [vmem:[#allocation14 + $0xf0] sm:$0xff] %v4260_v62  ;;  %v2204_v27 = vmul.f32 1.442695, %v2142_v22  ;;  %v4261_v25 = vpack.c.bf16 %v4755_v63, %v4754_v57  ;;  %v2143_v46 = vmul.f32 0.5, %v4755_v63 }
 0x341   :  { %v2267_v10 = vadd.f32 %v6053_v52, %v2235_v15 }
 0x342   :  { %5135 = vpow2.f32 %v2204_v27  ;;  %2047 = vst [vmem:[#allocation14 + $0xf8] sm:$0xff] %v4261_v25  ;;  %v2206_v47 = vmul.f32 1.442695, %v2143_v46 }
 0x343   :  { %v6088_v43 = vpack.c.bf16 %v2267_v10, %v2266_v4 }
 0x344   :  { %v5132_v35 = vpop.eup %5131  ;;  %5137 = vpow2.f32 %v2206_v47 }
 0x345   :  { %2665 = vmatmul.mubr.bf16.gmra.mrb[116].mxu1 %v6088_v43  ;;  %v2236_v11 = vmul.f32 %v5132_v35, %v4352_v19 }
 0x346   :  { %v5134_v45 = vpop.eup %5133  ;;  %2674 = vmatprep.mubr.bf16.mxu1 %v5403_v0 }
 0x347   :  { %v2237_v60 = vmul.f32 %v5134_v45, %v4353_v50  ;;  %v2268_v52 = vadd.f32 %v6063_v29, %v2236_v11  ;;  %v5060_v29 = vld [vmem:[#allocation11 + $0x80] sm:$0xff]  }
 0x349   :  { %v2269_v6 = vadd.f32 %v6069_v32, %v2237_v60  ;;  %v5061_v32 = vld [vmem:[#allocation11 + $0xc8] sm:$0xff]  }
 0x34b   :  { %v6094_v30 = vpack.c.bf16 %v2269_v6, %v2268_v52 }
 0x34c   :  { %v5136_v16 = vpop.eup %5135 }
 0x34d   :  { %2675 = vmatmul.mubr.bf16.gmra.mrb[120].mxu1 %v6094_v30  ;;  %v2238_v24 = vmul.f32 %v5136_v16, %v4356_v8 }
 0x34e   :  { %v5138_v17 = vpop.eup %5137  ;;  %2684 = vmatprep.mubr.bf16.mxu1 %v5403_v0 }
 0x34f   :  { %v2239_v18 = vmul.f32 %v5138_v17, %v4357_v14  ;;  %v2270_v39 = vadd.f32 %v4752_v42, %v2238_v24  ;;  %v5065_v42 = vld [vmem:[#allocation11 + $0xd8] sm:$0xff]  }
 0x351   :  { %v2271_v9 = vadd.f32 %v4754_v57, %v2239_v18 }
 0x353   :  { %v6098_v33 = vpack.c.bf16 %v2271_v9, %v2270_v39 }
 0x355   :  { %2685 = vmatmul.mubr.bf16.gmra.mrb[124].mxu1 %v6098_v33 }
 0x356   :  { %2727 = vmatprep.mubr.bf16.mxu1 %v5403_v0 }
 0x35d   :  { %2728 = vmatmul.mubr.bf16.vlgmr.msra.gmra.mrb[128].mxu1 %v5889_v1  ;;  %v5066_v1 = vld [vmem:[#allocation11 + $0x98] sm:$0xff]  }
 0x35e   :  { %2737 = vmatprep.mubr.bf16.mxu1 %v5403_v0  ;;  %4581 = vmatpush3.bf16.msra.mxu1 %v5060_v29 }
 0x35f   :  { %4582 = vmatprep.subr.bf16.mxu1 %v5061_v32 }
 0x362   :  { %4583 = vmatpush3.bf16.msra.mxu1 %v5062_v31 }
 0x363   :  { %4584 = vmatprep.subr.bf16.mxu1 %v5063_v48 }
 0x365   :  { %2738 = vmatmul.mubr.bf16.gmra.mrb[132].mxu1 %v5905_v28  ;;  %v5067_v28 = vld [vmem:[#allocation11 + $0xe0] sm:$0xff]  }
 0x366   :  { %2747 = vmatprep.mubr.bf16.mxu1 %v5403_v0  ;;  %4585 = vmatpush3.bf16.msra.mxu1 %v5064_v51 }
 0x367   :  { %4586 = vmatprep.subr.bf16.mxu1 %v5065_v42 }
 0x36a   :  { %4587 = vmatpush3.bf16.msra.mxu1 %v5066_v1 }
 0x36b   :  { %4588 = vmatprep.subr.bf16.mxu1 %v5067_v28 }
 0x36d   :  { %2748 = vmatmul.mubr.bf16.gmra.mrb[136].mxu1 %v5921_v44  ;;  %v5069_v44 = vld [vmem:[#allocation11 + $0xe8] sm:$0xff]  }
 0x36e   :  { %2757 = vmatprep.mubr.bf16.mxu1 %v5403_v0  ;;  %4589 = vmatpush3.bf16.msra.mxu1 %v5068_v49 }
 0x36f   :  { %4590 = vmatprep.subr.bf16.mxu1 %v5069_v44 }
 0x375   :  { %2758 = vmatmul.mubr.bf16.gmra.mrb[140].mxu1 %v5937_v61  ;;  %v5070_v61 = vld [vmem:[#allocation11 + $0xa8] sm:$0xff]  }
 0x376   :  { %2767 = vmatprep.mubr.bf16.mxu1 %v5403_v0  ;;  %4591 = vmatpush3.bf16.msra.mxu1 %v5070_v61 }
 0x37d   :  { %2768 = vmatmul.mubr.bf16.gmra.mrb[144].mxu1 %v5953_v36  ;;  %v5071_v36 = vld [vmem:[#allocation11 + $0xf0] sm:$0xff]  }
 0x37e   :  { %2777 = vmatprep.mubr.bf16.mxu1 %v5403_v0  ;;  %4592 = vmatprep.subr.bf16.mxu1 %v5071_v36 }
 0x385   :  { %2778 = vmatmul.mubr.bf16.gmra.mrb[148].mxu1 %v5969_v37  ;;  %v5072_v37 = vld [vmem:[#allocation11 + $0xb0] sm:$0xff]  }
 0x386   :  { %2787 = vmatprep.mubr.bf16.mxu1 %v5403_v0  ;;  %4593 = vmatpush3.bf16.msra.mxu1 %v5072_v37 }
 0x38d   :  { %2788 = vmatmul.mubr.bf16.gmra.mrb[152].mxu1 %v5985_v3  ;;  %v6125_v3 = vld [vmem:[%s6454_s7] sm:$0xf] }
 0x38e   :  { %2797 = vmatprep.mubr.bf16.mxu1 %v5403_v0 }
 0x395   :  { %2798 = vmatmul.mubr.bf16.gmra.mrb[156].mxu1 %v6001_v41  ;;  %v6130_v41 = vrot.slane %v6125_v3, %v5611_v21 }
 0x396   :  { %2807 = vmatprep.mubr.bf16.mxu1 %v5403_v0 }
 0x39d   :  { %2808 = vmatmul.mubr.bf16.gmra.mrb[160].mxu1 %v6017_v56  ;;  %v6134_v56 = vrot.slane %v6125_v3, %v5619_v23 }
 0x39e   :  { %2817 = vmatprep.mubr.bf16.mxu1 %v5403_v0 }
 0x3a5   :  { %2818 = vmatmul.mubr.bf16.gmra.mrb[164].mxu1 %v6033_v53  ;;  %v5073_v53 = vld [vmem:[#allocation11 + $0xf8] sm:$0xff]  }
 0x3a6   :  { %2827 = vmatprep.mubr.bf16.mxu1 %v5403_v0  ;;  %4594 = vmatprep.subr.bf16.mxu1 %v5073_v53 }
 0x3a7   :  { %4595 = vmatpush3.bf16.msra.mxu1 %v5074_v55 }
 0x3ad   :  { %2828 = vmatmul.mubr.bf16.gmra.mrb[168].mxu1 %v6049_v12 }
 0x3ae   :  { %2837 = vmatprep.mubr.bf16.mxu1 %v5403_v0 }
 0x3b0   :  { %v2536_v54 = vpop.f32.mrb[64].mxu1 }
 0x3b1   :  { %v2537_v57 = vadd.f32 %v2536_v54, %v6130_v41  ;;  %v2538_v59 = vpop.f32.mrb[65].mxu1 }
 0x3b2   :  { %v2539_v40 = vadd.f32 %v2538_v59, %v6134_v56  ;;  %v2540_v12 = vpop.f32.mrb[66].mxu1 }
 0x3b3   :  { %v2541_v21 = vadd.f32 %v2540_v12, %v6130_v41  ;;  %v2542_v58 = vpop.f32.mrb[67].mxu1  ;;  %v2888_v23 = vmax.f32 %v2537_v57, 0.0 }
 0x3b4   :  { %v2543_v62 = vadd.f32 %v2542_v58, %v6134_v56  ;;  %v2889_v63 = vmax.f32 %v2539_v40, 0.0 }
 0x3b5   :  { %v2892_v22 = vmax.f32 %v2541_v21, 0.0  ;;  %2838 = vmatmul.mubr.bf16.gmra.mrb[172].mxu1 %v6065_v7 }
 0x3b6   :  { %v2893_v13 = vmax.f32 %v2543_v62, 0.0  ;;  %2847 = vmatprep.mubr.bf16.mxu1 %v5403_v0 }
 0x3b7   :  { %v3016_v15 = vpack.c.bf16 %v2892_v22, %v2888_v23 }
 0x3b8   :  { %v3017_v4 = vpack.c.bf16 %v2893_v13, %v2889_v63  ;;  %v2546_v34 = vpop.f32.mrb[68].mxu1 }
 0x3b9   :  { %v2547_v27 = vadd.f32 %v2546_v34, %v6130_v41  ;;  %v2548_v25 = vpop.f32.mrb[69].mxu1 }
 0x3ba   :  { %v2549_v46 = vadd.f32 %v2548_v25, %v6134_v56  ;;  %v2550_v10 = vpop.f32.mrb[70].mxu1  ;;  %3375 = vmatprep.mubr.bf16.mxu0 %v3017_v4 }
 0x3bb   :  { %v2551_v19 = vadd.f32 %v2550_v10, %v6130_v41  ;;  %v2552_v47 = vpop.f32.mrb[71].mxu1  ;;  %3376 = vmatmul.mubr.bf16.vlgmr.msra.gmra.mrb[128].mxu0 %v3016_v15  ;;  %v2896_v50 = vmax.f32 %v2547_v27, 0.0 }
 0x3bc   :  { %v2553_v7 = vadd.f32 %v2552_v47, %v6134_v56  ;;  %v2897_v11 = vmax.f32 %v2549_v46, 0.0 }
 0x3bd   :  { %v2900_v35 = vmax.f32 %v2551_v19, 0.0  ;;  %2848 = vmatmul.mubr.bf16.gmra.mrb[176].mxu1 %v6079_v38 }
 0x3be   :  { %v2901_v45 = vmax.f32 %v2553_v7, 0.0  ;;  %2857 = vmatprep.mubr.bf16.mxu1 %v5403_v0 }
 0x3bf   :  { %v3020_v26 = vpack.c.bf16 %v2900_v35, %v2896_v50 }
 0x3c0   :  { %v3021_v60 = vpack.c.bf16 %v2901_v45, %v2897_v11  ;;  %v2556_v52 = vpop.f32.mrb[72].mxu1 }
 0x3c1   :  { %v2557_v6 = vadd.f32 %v2556_v52, %v6130_v41  ;;  %v2558_v8 = vpop.f32.mrb[73].mxu1 }
 0x3c2   :  { %v2559_v14 = vadd.f32 %v2558_v8, %v6134_v56  ;;  %v2560_v16 = vpop.f32.mrb[74].mxu1  ;;  %3383 = vmatprep.mubr.bf16.mxu0 %v3021_v60 }
 0x3c3   :  { %v2561_v24 = vadd.f32 %v2560_v16, %v6130_v41  ;;  %v2562_v17 = vpop.f32.mrb[75].mxu1  ;;  %3384 = vmatmul.mubr.bf16.gmra.mrb[132].mxu0 %v3020_v26  ;;  %v2904_v18 = vmax.f32 %v2557_v6, 0.0 }
 0x3c4   :  { %v2563_v38 = vadd.f32 %v2562_v17, %v6134_v56  ;;  %v2905_v9 = vmax.f32 %v2559_v14, 0.0 }
 0x3c5   :  { %v2908_v39 = vmax.f32 %v2561_v24, 0.0  ;;  %2858 = vmatmul.mubr.bf16.gmra.mrb[180].mxu1 %v6088_v43 }
 0x3c6   :  { %v2909_v29 = vmax.f32 %v2563_v38, 0.0  ;;  %2867 = vmatprep.mubr.bf16.mxu1 %v5403_v0 }
 0x3c7   :  { %v3024_v32 = vpack.c.bf16 %v2908_v39, %v2904_v18 }
 0x3c8   :  { %v3025_v31 = vpack.c.bf16 %v2909_v29, %v2905_v9  ;;  %v2566_v48 = vpop.f32.mrb[76].mxu1 }
 0x3c9   :  { %v2567_v51 = vadd.f32 %v2566_v48, %v6130_v41  ;;  %v2568_v42 = vpop.f32.mrb[77].mxu1 }
 0x3ca   :  { %v2569_v1 = vadd.f32 %v2568_v42, %v6134_v56  ;;  %v2570_v28 = vpop.f32.mrb[78].mxu1  ;;  %3391 = vmatprep.mubr.bf16.mxu0 %v3025_v31 }
 0x3cb   :  { %v2571_v49 = vadd.f32 %v2570_v28, %v6130_v41  ;;  %v2572_v44 = vpop.f32.mrb[79].mxu1  ;;  %3392 = vmatmul.mubr.bf16.gmra.mrb[136].mxu0 %v3024_v32  ;;  %v2912_v61 = vmax.f32 %v2567_v51, 0.0 }
 0x3cc   :  { %v2573_v43 = vadd.f32 %v2572_v44, %v6134_v56  ;;  %v2913_v37 = vmax.f32 %v2569_v1, 0.0 }
 0x3cd   :  { %v2916_v36 = vmax.f32 %v2571_v49, 0.0  ;;  %2868 = vmatmul.mubr.bf16.gmra.mrb[184].mxu1 %v6094_v30 }
 0x3ce   :  { %v2917_v53 = vmax.f32 %v2573_v43, 0.0  ;;  %2877 = vmatprep.mubr.bf16.mxu1 %v5403_v0 }
 0x3cf   :  { %v3028_v54 = vpack.c.bf16 %v2916_v36, %v2912_v61 }
 0x3d0   :  { %v3029_v55 = vpack.c.bf16 %v2917_v53, %v2913_v37  ;;  %v2576_v57 = vpop.f32.mrb[80].mxu1 }
 0x3d1   :  { %v2577_v59 = vadd.f32 %v2576_v57, %v6130_v41  ;;  %v2578_v40 = vpop.f32.mrb[81].mxu1 }
 0x3d2   :  { %v2579_v12 = vadd.f32 %v2578_v40, %v6134_v56  ;;  %v2580_v21 = vpop.f32.mrb[82].mxu1  ;;  %3399 = vmatprep.mubr.bf16.mxu0 %v3029_v55 }
 0x3d3   :  { %v2581_v58 = vadd.f32 %v2580_v21, %v6130_v41  ;;  %v2582_v62 = vpop.f32.mrb[83].mxu1  ;;  %3400 = vmatmul.mubr.bf16.gmra.mrb[140].mxu0 %v3028_v54  ;;  %v2920_v23 = vmax.f32 %v2577_v59, 0.0 }
 0x3d4   :  { %v2583_v30 = vadd.f32 %v2582_v62, %v6134_v56  ;;  %v2921_v0 = vmax.f32 %v2579_v12, 0.0 }
 0x3d5   :  { %v2924_v22 = vmax.f32 %v2581_v58, 0.0  ;;  %2878 = vmatmul.mubr.bf16.gmra.mrb[188].mxu1 %v6098_v33 }
 0x3d6   :  { %v2925_v63 = vmax.f32 %v2583_v30, 0.0 }
 0x3d7   :  { %v3032_v13 = vpack.c.bf16 %v2924_v22, %v2920_v23 }
 0x3d8   :  { %v3033_v15 = vpack.c.bf16 %v2925_v63, %v2921_v0  ;;  %v2586_v4 = vpop.f32.mrb[84].mxu1 }
 0x3d9   :  { %v2587_v34 = vadd.f32 %v2586_v4, %v6130_v41  ;;  %v2588_v27 = vpop.f32.mrb[85].mxu1 }
 0x3da   :  { %v2589_v25 = vadd.f32 %v2588_v27, %v6134_v56  ;;  %v2590_v46 = vpop.f32.mrb[86].mxu1  ;;  %3407 = vmatprep.mubr.bf16.mxu0 %v3033_v15 }
 0x3db   :  { %v2591_v10 = vadd.f32 %v2590_v46, %v6130_v41  ;;  %v2592_v19 = vpop.f32.mrb[87].mxu1  ;;  %3408 = vmatmul.mubr.bf16.gmra.mrb[144].mxu0 %v3032_v13  ;;  %v2928_v7 = vmax.f32 %v2587_v34, 0.0 }
 0x3dc   :  { %v2593_v47 = vadd.f32 %v2592_v19, %v6134_v56  ;;  %v2929_v50 = vmax.f32 %v2589_v25, 0.0 }
 0x3dd   :  { %v2932_v33 = vmax.f32 %v2591_v10, 0.0 }
 0x3de   :  { %v2933_v35 = vmax.f32 %v2593_v47, 0.0 }
 0x3df   :  { %v3036_v11 = vpack.c.bf16 %v2932_v33, %v2928_v7 }
 0x3e0   :  { %v3037_v45 = vpack.c.bf16 %v2933_v35, %v2929_v50  ;;  %v2596_v26 = vpop.f32.mrb[88].mxu1 }
 0x3e1   :  { %v2597_v60 = vadd.f32 %v2596_v26, %v6130_v41  ;;  %v2598_v52 = vpop.f32.mrb[89].mxu1 }
 0x3e2   :  { %v2599_v6 = vadd.f32 %v2598_v52, %v6134_v56  ;;  %v2600_v8 = vpop.f32.mrb[90].mxu1  ;;  %3415 = vmatprep.mubr.bf16.mxu0 %v3037_v45 }
 0x3e3   :  { %v2601_v14 = vadd.f32 %v2600_v8, %v6130_v41  ;;  %v2602_v16 = vpop.f32.mrb[91].mxu1  ;;  %3416 = vmatmul.mubr.bf16.gmra.mrb[148].mxu0 %v3036_v11  ;;  %v2936_v17 = vmax.f32 %v2597_v60, 0.0 }
 0x3e4   :  { %v2603_v24 = vadd.f32 %v2602_v16, %v6134_v56  ;;  %v2937_v18 = vmax.f32 %v2599_v6, 0.0 }
 0x3e5   :  { %v2940_v38 = vmax.f32 %v2601_v14, 0.0 }
 0x3e6   :  { %v2941_v39 = vmax.f32 %v2603_v24, 0.0 }
 0x3e7   :  { %v3040_v9 = vpack.c.bf16 %v2940_v38, %v2936_v17 }
 0x3e8   :  { %v3041_v29 = vpack.c.bf16 %v2941_v39, %v2937_v18  ;;  %v2606_v32 = vpop.f32.mrb[92].mxu1 }
 0x3e9   :  { %v2607_v31 = vadd.f32 %v2606_v32, %v6130_v41  ;;  %v2608_v48 = vpop.f32.mrb[93].mxu1 }
 0x3ea   :  { %v2609_v51 = vadd.f32 %v2608_v48, %v6134_v56  ;;  %v2610_v42 = vpop.f32.mrb[94].mxu1  ;;  %3423 = vmatprep.mubr.bf16.mxu0 %v3041_v29 }
 0x3eb   :  { %v2611_v1 = vadd.f32 %v2610_v42, %v6130_v41  ;;  %v2612_v28 = vpop.f32.mrb[95].mxu1  ;;  %3424 = vmatmul.mubr.bf16.gmra.mrb[152].mxu0 %v3040_v9  ;;  %v2944_v44 = vmax.f32 %v2607_v31, 0.0 }
 0x3ec   :  { %v2613_v49 = vadd.f32 %v2612_v28, %v6134_v56  ;;  %v2945_v61 = vmax.f32 %v2609_v51, 0.0 }
 0x3ed   :  { %v2948_v43 = vmax.f32 %v2611_v1, 0.0 }
 0x3ee   :  { %v2949_v36 = vmax.f32 %v2613_v49, 0.0 }
 0x3ef   :  { %v3044_v37 = vpack.c.bf16 %v2948_v43, %v2944_v44 }
 0x3f0   :  { %v3045_v53 = vpack.c.bf16 %v2949_v36, %v2945_v61  ;;  %v2616_v54 = vpop.f32.mrb[96].mxu1 }
 0x3f1   :  { %v2617_v55 = vadd.f32 %v2616_v54, %v6130_v41  ;;  %v2618_v57 = vpop.f32.mrb[97].mxu1 }
 0x3f2   :  { %v2619_v59 = vadd.f32 %v2618_v57, %v6134_v56  ;;  %v2620_v40 = vpop.f32.mrb[98].mxu1  ;;  %3431 = vmatprep.mubr.bf16.mxu0 %v3045_v53 }
 0x3f3   :  { %v2621_v12 = vadd.f32 %v2620_v40, %v6130_v41  ;;  %v2622_v21 = vpop.f32.mrb[99].mxu1  ;;  %3432 = vmatmul.mubr.bf16.gmra.mrb[156].mxu0 %v3044_v37  ;;  %v2952_v62 = vmax.f32 %v2617_v55, 0.0 }
 0x3f4   :  { %v2623_v58 = vadd.f32 %v2622_v21, %v6134_v56  ;;  %v2953_v23 = vmax.f32 %v2619_v59, 0.0 }
 0x3f5   :  { %v2956_v30 = vmax.f32 %v2621_v12, 0.0 }
 0x3f6   :  { %v2957_v22 = vmax.f32 %v2623_v58, 0.0 }
 0x3f7   :  { %v3048_v0 = vpack.c.bf16 %v2956_v30, %v2952_v62 }
 0x3f8   :  { %v3049_v63 = vpack.c.bf16 %v2957_v22, %v2953_v23  ;;  %v2626_v13 = vpop.f32.mrb[100].mxu1 }
 0x3f9   :  { %v2627_v15 = vadd.f32 %v2626_v13, %v6130_v41  ;;  %v2628_v4 = vpop.f32.mrb[101].mxu1 }
 0x3fa   :  { %v2629_v34 = vadd.f32 %v2628_v4, %v6134_v56  ;;  %v2630_v27 = vpop.f32.mrb[102].mxu1  ;;  %3439 = vmatprep.mubr.bf16.mxu0 %v3049_v63 }
 0x3fb   :  { %v2631_v25 = vadd.f32 %v2630_v27, %v6130_v41  ;;  %v2632_v46 = vpop.f32.mrb[103].mxu1  ;;  %3440 = vmatmul.mubr.bf16.gmra.mrb[160].mxu0 %v3048_v0  ;;  %v2960_v19 = vmax.f32 %v2627_v15, 0.0 }
 0x3fc   :  { %v2633_v10 = vadd.f32 %v2632_v46, %v6134_v56  ;;  %v2961_v7 = vmax.f32 %v2629_v34, 0.0 }
 0x3fd   :  { %v2964_v47 = vmax.f32 %v2631_v25, 0.0 }
 0x3fe   :  { %v2965_v33 = vmax.f32 %v2633_v10, 0.0 }
 0x3ff   :  { %v3052_v50 = vpack.c.bf16 %v2964_v47, %v2960_v19 }
 0x400   :  { %v3053_v35 = vpack.c.bf16 %v2965_v33, %v2961_v7  ;;  %v2636_v11 = vpop.f32.mrb[104].mxu1 }
 0x401   :  { %v2637_v45 = vadd.f32 %v2636_v11, %v6130_v41  ;;  %v2638_v26 = vpop.f32.mrb[105].mxu1 }
 0x402   :  { %v2639_v60 = vadd.f32 %v2638_v26, %v6134_v56  ;;  %v2640_v52 = vpop.f32.mrb[106].mxu1  ;;  %3447 = vmatprep.mubr.bf16.mxu0 %v3053_v35 }
 0x403   :  { %v2641_v6 = vadd.f32 %v2640_v52, %v6130_v41  ;;  %v2642_v8 = vpop.f32.mrb[107].mxu1  ;;  %3448 = vmatmul.mubr.bf16.gmra.mrb[164].mxu0 %v3052_v50  ;;  %v2968_v16 = vmax.f32 %v2637_v45, 0.0 }
 0x404   :  { %v2643_v14 = vadd.f32 %v2642_v8, %v6134_v56  ;;  %v2969_v17 = vmax.f32 %v2639_v60, 0.0 }
 0x405   :  { %v2972_v24 = vmax.f32 %v2641_v6, 0.0 }
 0x406   :  { %v2973_v38 = vmax.f32 %v2643_v14, 0.0 }
 0x407   :  { %v3056_v18 = vpack.c.bf16 %v2972_v24, %v2968_v16 }
 0x408   :  { %v3057_v39 = vpack.c.bf16 %v2973_v38, %v2969_v17  ;;  %v2646_v9 = vpop.f32.mrb[108].mxu1 }
 0x409   :  { %v2647_v29 = vadd.f32 %v2646_v9, %v6130_v41  ;;  %v2648_v32 = vpop.f32.mrb[109].mxu1 }
 0x40a   :  { %v2649_v31 = vadd.f32 %v2648_v32, %v6134_v56  ;;  %v2650_v48 = vpop.f32.mrb[110].mxu1  ;;  %3455 = vmatprep.mubr.bf16.mxu0 %v3057_v39 }
 0x40b   :  { %v2651_v51 = vadd.f32 %v2650_v48, %v6130_v41  ;;  %v2652_v42 = vpop.f32.mrb[111].mxu1  ;;  %3456 = vmatmul.mubr.bf16.gmra.mrb[168].mxu0 %v3056_v18  ;;  %v2976_v28 = vmax.f32 %v2647_v29, 0.0 }
 0x40c   :  { %v2653_v1 = vadd.f32 %v2652_v42, %v6134_v56  ;;  %v2977_v44 = vmax.f32 %v2649_v31, 0.0 }
 0x40d   :  { %v2980_v49 = vmax.f32 %v2651_v51, 0.0 }
 0x40e   :  { %v2981_v43 = vmax.f32 %v2653_v1, 0.0 }
 0x40f   :  { %v3060_v61 = vpack.c.bf16 %v2980_v49, %v2976_v28  ;;  %v6213_v28 = vrot.slane %v6125_v3, %v198_v2 }
 0x410   :  { %v3061_v36 = vpack.c.bf16 %v2981_v43, %v2977_v44  ;;  %v2656_v37 = vpop.f32.mrb[112].mxu1  ;;  %v6218_v43 = vrot.slane %v6125_v3, %v202_v5 }
 0x411   :  { %v2657_v53 = vadd.f32 %v2656_v37, %v6130_v41  ;;  %v2658_v54 = vpop.f32.mrb[113].mxu1 }
 0x412   :  { %v2659_v55 = vadd.f32 %v2658_v54, %v6134_v56  ;;  %v2660_v57 = vpop.f32.mrb[114].mxu1  ;;  %3463 = vmatprep.mubr.bf16.mxu0 %v3061_v36 }
 0x413   :  { %v2661_v59 = vadd.f32 %v2660_v57, %v6130_v41  ;;  %v2662_v40 = vpop.f32.mrb[115].mxu1  ;;  %3464 = vmatmul.mubr.bf16.gmra.mrb[172].mxu0 %v3060_v61  ;;  %v2984_v21 = vmax.f32 %v2657_v53, 0.0 }
 0x414   :  { %v2663_v12 = vadd.f32 %v2662_v40, %v6134_v56  ;;  %v2985_v62 = vmax.f32 %v2659_v55, 0.0 }
 0x415   :  { %v2988_v58 = vmax.f32 %v2661_v59, 0.0 }
 0x416   :  { %v2989_v30 = vmax.f32 %v2663_v12, 0.0 }
 0x417   :  { %v3064_v23 = vpack.c.bf16 %v2988_v58, %v2984_v21 }
 0x418   :  { %v3065_v22 = vpack.c.bf16 %v2989_v30, %v2985_v62  ;;  %v2666_v0 = vpop.f32.mrb[116].mxu1 }
 0x419   :  { %v2667_v63 = vadd.f32 %v2666_v0, %v6130_v41  ;;  %v2668_v13 = vpop.f32.mrb[117].mxu1 }
 0x41a   :  { %v2669_v15 = vadd.f32 %v2668_v13, %v6134_v56  ;;  %v2670_v4 = vpop.f32.mrb[118].mxu1  ;;  %3471 = vmatprep.mubr.bf16.mxu0 %v3065_v22 }
 0x41b   :  { %v2671_v34 = vadd.f32 %v2670_v4, %v6130_v41  ;;  %v2672_v27 = vpop.f32.mrb[119].mxu1  ;;  %3472 = vmatmul.mubr.bf16.gmra.mrb[176].mxu0 %v3064_v23  ;;  %v2992_v46 = vmax.f32 %v2667_v63, 0.0 }
 0x41c   :  { %v2673_v25 = vadd.f32 %v2672_v27, %v6134_v56  ;;  %v2993_v19 = vmax.f32 %v2669_v15, 0.0 }
 0x41d   :  { %v2996_v10 = vmax.f32 %v2671_v34, 0.0 }
 0x41e   :  { %v2997_v47 = vmax.f32 %v2673_v25, 0.0 }
 0x41f   :  { %v3068_v7 = vpack.c.bf16 %v2996_v10, %v2992_v46 }
 0x420   :  { %v3069_v33 = vpack.c.bf16 %v2997_v47, %v2993_v19  ;;  %v2676_v50 = vpop.f32.mrb[120].mxu1 }
 0x421   :  { %v2677_v35 = vadd.f32 %v2676_v50, %v6130_v41  ;;  %v2678_v11 = vpop.f32.mrb[121].mxu1 }
 0x422   :  { %v2679_v45 = vadd.f32 %v2678_v11, %v6134_v56  ;;  %v2680_v26 = vpop.f32.mrb[122].mxu1  ;;  %3479 = vmatprep.mubr.bf16.mxu0 %v3069_v33 }
 0x423   :  { %v2681_v60 = vadd.f32 %v2680_v26, %v6130_v41  ;;  %v2682_v52 = vpop.f32.mrb[123].mxu1  ;;  %3480 = vmatmul.mubr.bf16.gmra.mrb[180].mxu0 %v3068_v7  ;;  %v3000_v8 = vmax.f32 %v2677_v35, 0.0 }
 0x424   :  { %v2683_v6 = vadd.f32 %v2682_v52, %v6134_v56  ;;  %v3001_v16 = vmax.f32 %v2679_v45, 0.0 }
 0x425   :  { %v3004_v14 = vmax.f32 %v2681_v60, 0.0 }
 0x426   :  { %v3005_v24 = vmax.f32 %v2683_v6, 0.0 }
 0x427   :  { %v3072_v17 = vpack.c.bf16 %v3004_v14, %v3000_v8 }
 0x428   :  { %v3073_v38 = vpack.c.bf16 %v3005_v24, %v3001_v16  ;;  %v2686_v18 = vpop.f32.mrb[124].mxu1 }
 0x429   :  { %v2687_v39 = vadd.f32 %v2686_v18, %v6130_v41  ;;  %v2688_v9 = vpop.f32.mrb[125].mxu1 }
 0x42a   :  { %v2689_v29 = vadd.f32 %v2688_v9, %v6134_v56  ;;  %v2690_v32 = vpop.f32.mrb[126].mxu1  ;;  %3487 = vmatprep.mubr.bf16.mxu0 %v3073_v38 }
 0x42b   :  { %v2691_v31 = vadd.f32 %v2690_v32, %v6130_v41  ;;  %v2692_v48 = vpop.f32.mrb[127].mxu1  ;;  %3488 = vmatmul.mubr.bf16.gmra.mrb[184].mxu0 %v3072_v17  ;;  %v3008_v42 = vmax.f32 %v2687_v39, 0.0 }
 0x42c   :  { %v2693_v51 = vadd.f32 %v2692_v48, %v6134_v56  ;;  %v3009_v49 = vmax.f32 %v2689_v29, 0.0 }
 0x42d   :  { %v3012_v1 = vmax.f32 %v2691_v31, 0.0 }
 0x42e   :  { %v3013_v44 = vmax.f32 %v2693_v51, 0.0 }
 0x42f   :  { %v3076_v61 = vpack.c.bf16 %v3012_v1, %v3008_v42 }
 0x430   :  { %v3077_v41 = vpack.c.bf16 %v3013_v44, %v3009_v49  ;;  %v2729_v36 = vpop.f32.mrb[128].mxu1 }
 0x431   :  { %v2730_v37 = vadd.f32 %v2729_v36, %v6213_v28  ;;  %v2731_v56 = vpop.f32.mrb[129].mxu1 }
 0x432   :  { %v2732_v53 = vadd.f32 %v2731_v56, %v6218_v43  ;;  %v2733_v54 = vpop.f32.mrb[130].mxu1  ;;  %3495 = vmatprep.mubr.bf16.mxu0 %v3077_v41 }
 0x433   :  { %v2734_v2 = vadd.f32 %v2733_v54, %v6213_v28  ;;  %v2735_v55 = vpop.f32.mrb[131].mxu1  ;;  %3496 = vmatmul.mubr.bf16.gmra.mrb[188].mxu0 %v3076_v61  ;;  %v2890_v20 = vmax.f32 %v2730_v37, 0.0 }
 0x434   :  { %v2736_v57 = vadd.f32 %v2735_v55, %v6218_v43  ;;  %v2891_v5 = vmax.f32 %v2732_v53, 0.0 }
 0x435   :  { %v2894_v59 = vmax.f32 %v2734_v2, 0.0 }
 0x436   :  { %v2895_v3 = vmax.f32 %v2736_v57, 0.0 }
 0x437   :  { %v3018_v40 = vpack.c.bf16 %v2894_v59, %v2890_v20 }
 0x438   :  { %v3019_v12 = vpack.c.bf16 %v2895_v3, %v2891_v5  ;;  %v2739_v21 = vpop.f32.mrb[132].mxu1 }
 0x439   :  { %v2740_v58 = vadd.f32 %v2739_v21, %v6213_v28  ;;  %v2741_v62 = vpop.f32.mrb[133].mxu1 }
 0x43a   :  { %v2742_v30 = vadd.f32 %v2741_v62, %v6218_v43  ;;  %v2743_v23 = vpop.f32.mrb[134].mxu1  ;;  %3536 = vmatprep.mubr.bf16.mxu1 %v3019_v12 }
 0x43b   :  { %v2744_v22 = vadd.f32 %v2743_v23, %v6213_v28  ;;  %v2745_v0 = vpop.f32.mrb[135].mxu1  ;;  %3537 = vmatmul.mubr.bf16.vlgmr.msra.gmra.mrb[192].mxu1 %v3018_v40  ;;  %v2898_v13 = vmax.f32 %v2740_v58, 0.0 }
 0x43c   :  { %v2746_v63 = vadd.f32 %v2745_v0, %v6218_v43  ;;  %v2899_v4 = vmax.f32 %v2742_v30, 0.0 }
 0x43d   :  { %v2902_v15 = vmax.f32 %v2744_v22, 0.0 }
 0x43e   :  { %v2903_v34 = vmax.f32 %v2746_v63, 0.0 }
 0x43f   :  { %v3022_v27 = vpack.c.bf16 %v2902_v15, %v2898_v13 }
 0x440   :  { %v3023_v25 = vpack.c.bf16 %v2903_v34, %v2899_v4  ;;  %v2749_v46 = vpop.f32.mrb[136].mxu1 }
 0x441   :  { %v2750_v10 = vadd.f32 %v2749_v46, %v6213_v28  ;;  %v2751_v19 = vpop.f32.mrb[137].mxu1 }
 0x442   :  { %v2752_v47 = vadd.f32 %v2751_v19, %v6218_v43  ;;  %v2753_v7 = vpop.f32.mrb[138].mxu1  ;;  %3544 = vmatprep.mubr.bf16.mxu1 %v3023_v25 }
 0x443   :  { %v2754_v33 = vadd.f32 %v2753_v7, %v6213_v28  ;;  %v2755_v50 = vpop.f32.mrb[139].mxu1  ;;  %3545 = vmatmul.mubr.bf16.gmra.mrb[196].mxu1 %v3022_v27  ;;  %v2906_v11 = vmax.f32 %v2750_v10, 0.0 }
 0x444   :  { %v2756_v35 = vadd.f32 %v2755_v50, %v6218_v43  ;;  %v2907_v26 = vmax.f32 %v2752_v47, 0.0 }
 0x445   :  { %v2910_v45 = vmax.f32 %v2754_v33, 0.0 }
 0x446   :  { %v2911_v60 = vmax.f32 %v2756_v35, 0.0 }
 0x447   :  { %v3026_v52 = vpack.c.bf16 %v2910_v45, %v2906_v11 }
 0x448   :  { %v3027_v6 = vpack.c.bf16 %v2911_v60, %v2907_v26  ;;  %v2759_v8 = vpop.f32.mrb[140].mxu1 }
 0x449   :  { %v2760_v14 = vadd.f32 %v2759_v8, %v6213_v28  ;;  %v2761_v16 = vpop.f32.mrb[141].mxu1 }
 0x44a   :  { %v2762_v24 = vadd.f32 %v2761_v16, %v6218_v43  ;;  %v2763_v17 = vpop.f32.mrb[142].mxu1  ;;  %3552 = vmatprep.mubr.bf16.mxu1 %v3027_v6 }
 0x44b   :  { %v2764_v38 = vadd.f32 %v2763_v17, %v6213_v28  ;;  %v2765_v18 = vpop.f32.mrb[143].mxu1  ;;  %3553 = vmatmul.mubr.bf16.gmra.mrb[200].mxu1 %v3026_v52  ;;  %v2914_v9 = vmax.f32 %v2760_v14, 0.0 }
 0x44c   :  { %v2766_v39 = vadd.f32 %v2765_v18, %v6218_v43  ;;  %v2915_v32 = vmax.f32 %v2762_v24, 0.0 }
 0x44d   :  { %v2918_v29 = vmax.f32 %v2764_v38, 0.0 }
 0x44e   :  { %v2919_v31 = vmax.f32 %v2766_v39, 0.0 }
 0x44f   :  { %v3030_v48 = vpack.c.bf16 %v2918_v29, %v2914_v9 }
 0x450   :  { %v3031_v51 = vpack.c.bf16 %v2919_v31, %v2915_v32  ;;  %v2769_v42 = vpop.f32.mrb[144].mxu1 }
 0x451   :  { %v2770_v1 = vadd.f32 %v2769_v42, %v6213_v28  ;;  %v2771_v49 = vpop.f32.mrb[145].mxu1 }
 0x452   :  { %v2772_v44 = vadd.f32 %v2771_v49, %v6218_v43  ;;  %v2773_v61 = vpop.f32.mrb[146].mxu1  ;;  %3560 = vmatprep.mubr.bf16.mxu1 %v3031_v51 }
 0x453   :  { %v2774_v41 = vadd.f32 %v2773_v61, %v6213_v28  ;;  %v2775_v36 = vpop.f32.mrb[147].mxu1  ;;  %3561 = vmatmul.mubr.bf16.gmra.mrb[204].mxu1 %v3030_v48  ;;  %v2922_v56 = vmax.f32 %v2770_v1, 0.0 }
 0x454   :  { %v2776_v37 = vadd.f32 %v2775_v36, %v6218_v43  ;;  %v2923_v54 = vmax.f32 %v2772_v44, 0.0 }
 0x455   :  { %v2926_v53 = vmax.f32 %v2774_v41, 0.0 }
 0x456   :  { %v2927_v2 = vmax.f32 %v2776_v37, 0.0 }
 0x457   :  { %v3034_v55 = vpack.c.bf16 %v2926_v53, %v2922_v56 }
 0x458   :  { %v3035_v57 = vpack.c.bf16 %v2927_v2, %v2923_v54  ;;  %v2779_v20 = vpop.f32.mrb[148].mxu1 }
 0x459   :  { %v2780_v59 = vadd.f32 %v2779_v20, %v6213_v28  ;;  %v2781_v5 = vpop.f32.mrb[149].mxu1 }
 0x45a   :  { %v2782_v3 = vadd.f32 %v2781_v5, %v6218_v43  ;;  %v2783_v40 = vpop.f32.mrb[150].mxu1  ;;  %3568 = vmatprep.mubr.bf16.mxu1 %v3035_v57 }
 0x45b   :  { %v2784_v12 = vadd.f32 %v2783_v40, %v6213_v28  ;;  %v2785_v21 = vpop.f32.mrb[151].mxu1  ;;  %3569 = vmatmul.mubr.bf16.gmra.mrb[208].mxu1 %v3034_v55  ;;  %v2930_v62 = vmax.f32 %v2780_v59, 0.0 }
 0x45c   :  { %v2786_v58 = vadd.f32 %v2785_v21, %v6218_v43  ;;  %v2931_v23 = vmax.f32 %v2782_v3, 0.0 }
 0x45d   :  { %v2934_v30 = vmax.f32 %v2784_v12, 0.0 }
 0x45e   :  { %v2935_v22 = vmax.f32 %v2786_v58, 0.0 }
 0x45f   :  { %v3038_v0 = vpack.c.bf16 %v2934_v30, %v2930_v62 }
 0x460   :  { %v3039_v63 = vpack.c.bf16 %v2935_v22, %v2931_v23  ;;  %v2789_v13 = vpop.f32.mrb[152].mxu1 }
 0x461   :  { %v2790_v15 = vadd.f32 %v2789_v13, %v6213_v28  ;;  %v2791_v4 = vpop.f32.mrb[153].mxu1 }
 0x462   :  { %v2792_v34 = vadd.f32 %v2791_v4, %v6218_v43  ;;  %v2793_v27 = vpop.f32.mrb[154].mxu1  ;;  %3576 = vmatprep.mubr.bf16.mxu1 %v3039_v63 }
 0x463   :  { %v2794_v25 = vadd.f32 %v2793_v27, %v6213_v28  ;;  %v2795_v46 = vpop.f32.mrb[155].mxu1  ;;  %3577 = vmatmul.mubr.bf16.gmra.mrb[212].mxu1 %v3038_v0  ;;  %v2938_v19 = vmax.f32 %v2790_v15, 0.0 }
 0x464   :  { %v2796_v10 = vadd.f32 %v2795_v46, %v6218_v43  ;;  %v2939_v7 = vmax.f32 %v2792_v34, 0.0 }
 0x465   :  { %v2942_v47 = vmax.f32 %v2794_v25, 0.0 }
 0x466   :  { %v2943_v33 = vmax.f32 %v2796_v10, 0.0 }
 0x467   :  { %v3042_v50 = vpack.c.bf16 %v2942_v47, %v2938_v19 }
 0x468   :  { %v3043_v35 = vpack.c.bf16 %v2943_v33, %v2939_v7  ;;  %v2799_v11 = vpop.f32.mrb[156].mxu1 }
 0x469   :  { %v2800_v45 = vadd.f32 %v2799_v11, %v6213_v28  ;;  %v2801_v26 = vpop.f32.mrb[157].mxu1 }
 0x46a   :  { %v2802_v60 = vadd.f32 %v2801_v26, %v6218_v43  ;;  %v2803_v52 = vpop.f32.mrb[158].mxu1  ;;  %3584 = vmatprep.mubr.bf16.mxu1 %v3043_v35 }
 0x46b   :  { %v2804_v6 = vadd.f32 %v2803_v52, %v6213_v28  ;;  %v2805_v8 = vpop.f32.mrb[159].mxu1  ;;  %3585 = vmatmul.mubr.bf16.gmra.mrb[216].mxu1 %v3042_v50  ;;  %v2946_v16 = vmax.f32 %v2800_v45, 0.0 }
 0x46c   :  { %v2806_v14 = vadd.f32 %v2805_v8, %v6218_v43  ;;  %v2947_v17 = vmax.f32 %v2802_v60, 0.0 }
 0x46d   :  { %v2950_v24 = vmax.f32 %v2804_v6, 0.0 }
 0x46e   :  { %v2951_v38 = vmax.f32 %v2806_v14, 0.0 }
 0x46f   :  { %v3046_v18 = vpack.c.bf16 %v2950_v24, %v2946_v16 }
 0x470   :  { %v3047_v39 = vpack.c.bf16 %v2951_v38, %v2947_v17  ;;  %v2809_v9 = vpop.f32.mrb[160].mxu1 }
 0x471   :  { %v2810_v29 = vadd.f32 %v2809_v9, %v6213_v28  ;;  %v2811_v32 = vpop.f32.mrb[161].mxu1 }
 0x472   :  { %v2812_v31 = vadd.f32 %v2811_v32, %v6218_v43  ;;  %v2813_v48 = vpop.f32.mrb[162].mxu1  ;;  %3592 = vmatprep.mubr.bf16.mxu1 %v3047_v39 }
 0x473   :  { %v2814_v51 = vadd.f32 %v2813_v48, %v6213_v28  ;;  %v2815_v42 = vpop.f32.mrb[163].mxu1  ;;  %3593 = vmatmul.mubr.bf16.gmra.mrb[220].mxu1 %v3046_v18  ;;  %v2954_v49 = vmax.f32 %v2810_v29, 0.0 }
 0x474   :  { %v2816_v1 = vadd.f32 %v2815_v42, %v6218_v43  ;;  %v2955_v61 = vmax.f32 %v2812_v31, 0.0 }
 0x475   :  { %v2958_v44 = vmax.f32 %v2814_v51, 0.0 }
 0x476   :  { %v2959_v41 = vmax.f32 %v2816_v1, 0.0 }
 0x477   :  { %v3050_v36 = vpack.c.bf16 %v2958_v44, %v2954_v49 }
 0x478   :  { %v3051_v37 = vpack.c.bf16 %v2959_v41, %v2955_v61  ;;  %v2819_v56 = vpop.f32.mrb[164].mxu1 }
 0x479   :  { %v2820_v53 = vadd.f32 %v2819_v56, %v6213_v28  ;;  %v2821_v54 = vpop.f32.mrb[165].mxu1 }
 0x47a   :  { %v2822_v2 = vadd.f32 %v2821_v54, %v6218_v43  ;;  %v2823_v55 = vpop.f32.mrb[166].mxu1  ;;  %3600 = vmatprep.mubr.bf16.mxu1 %v3051_v37 }
 0x47b   :  { %v2824_v57 = vadd.f32 %v2823_v55, %v6213_v28  ;;  %v2825_v20 = vpop.f32.mrb[167].mxu1  ;;  %3601 = vmatmul.mubr.bf16.gmra.mrb[224].mxu1 %v3050_v36  ;;  %v2962_v5 = vmax.f32 %v2820_v53, 0.0 }
 0x47c   :  { %v2826_v59 = vadd.f32 %v2825_v20, %v6218_v43  ;;  %v2963_v40 = vmax.f32 %v2822_v2, 0.0 }
 0x47d   :  { %v2966_v3 = vmax.f32 %v2824_v57, 0.0 }
 0x47e   :  { %v2967_v12 = vmax.f32 %v2826_v59, 0.0 }
 0x47f   :  { %v3054_v21 = vpack.c.bf16 %v2966_v3, %v2962_v5 }
 0x480   :  { %v3055_v58 = vpack.c.bf16 %v2967_v12, %v2963_v40  ;;  %v2829_v62 = vpop.f32.mrb[168].mxu1 }
 0x481   :  { %v2830_v30 = vadd.f32 %v2829_v62, %v6213_v28  ;;  %v2831_v23 = vpop.f32.mrb[169].mxu1 }
 0x482   :  { %v2832_v22 = vadd.f32 %v2831_v23, %v6218_v43  ;;  %v2833_v0 = vpop.f32.mrb[170].mxu1  ;;  %3608 = vmatprep.mubr.bf16.mxu1 %v3055_v58 }
 0x483   :  { %v2834_v63 = vadd.f32 %v2833_v0, %v6213_v28  ;;  %v2835_v13 = vpop.f32.mrb[171].mxu1  ;;  %3609 = vmatmul.mubr.bf16.gmra.mrb[228].mxu1 %v3054_v21  ;;  %v2970_v4 = vmax.f32 %v2830_v30, 0.0 }
 0x484   :  { %v2836_v15 = vadd.f32 %v2835_v13, %v6218_v43  ;;  %v2971_v27 = vmax.f32 %v2832_v22, 0.0 }
 0x485   :  { %v2974_v34 = vmax.f32 %v2834_v63, 0.0 }
 0x486   :  { %v2975_v25 = vmax.f32 %v2836_v15, 0.0 }
 0x487   :  { %v3058_v46 = vpack.c.bf16 %v2974_v34, %v2970_v4 }
 0x488   :  { %v3059_v10 = vpack.c.bf16 %v2975_v25, %v2971_v27  ;;  %v2839_v19 = vpop.f32.mrb[172].mxu1 }
 0x489   :  { %v2840_v47 = vadd.f32 %v2839_v19, %v6213_v28  ;;  %v2841_v7 = vpop.f32.mrb[173].mxu1 }
 0x48a   :  { %v2842_v33 = vadd.f32 %v2841_v7, %v6218_v43  ;;  %v2843_v50 = vpop.f32.mrb[174].mxu1  ;;  %3616 = vmatprep.mubr.bf16.mxu1 %v3059_v10 }
 0x48b   :  { %v2844_v35 = vadd.f32 %v2843_v50, %v6213_v28  ;;  %v2845_v11 = vpop.f32.mrb[175].mxu1  ;;  %3617 = vmatmul.mubr.bf16.gmra.mrb[232].mxu1 %v3058_v46  ;;  %v2978_v26 = vmax.f32 %v2840_v47, 0.0 }
 0x48c   :  { %v2846_v45 = vadd.f32 %v2845_v11, %v6218_v43  ;;  %v2979_v52 = vmax.f32 %v2842_v33, 0.0 }
 0x48d   :  { %v2982_v60 = vmax.f32 %v2844_v35, 0.0 }
 0x48e   :  { %v2983_v6 = vmax.f32 %v2846_v45, 0.0  ;;  %v4484_v8 = vpop.f32.mrb[128].mxu0 }
 0x48f   :  { %v3062_v14 = vpack.c.bf16 %v2982_v60, %v2978_v26  ;;  %v4485_v16 = vpop.f32.mrb[129].mxu0 }
 0x490   :  { %v3063_v24 = vpack.c.bf16 %v2983_v6, %v2979_v52  ;;  %v6268_v17 = vadd.f32 %v4485_v16, %v4484_v8  ;;  %v2849_v38 = vpop.f32.mrb[176].mxu1  ;;  %v4487_v18 = vpop.f32.mrb[130].mxu0 }
 0x491   :  { %v2850_v39 = vadd.f32 %v2849_v38, %v6213_v28  ;;  %v2851_v9 = vpop.f32.mrb[177].mxu1  ;;  %v4488_v29 = vpop.f32.mrb[131].mxu0 }
 0x492   :  { %v2852_v32 = vadd.f32 %v2851_v9, %v6218_v43  ;;  %v6272_v31 = vadd.f32 %v4488_v29, %v4487_v18  ;;  %v2853_v48 = vpop.f32.mrb[178].mxu1  ;;  %3624 = vmatprep.mubr.bf16.mxu1 %v3063_v24 }
 0x493   :  { %v2854_v51 = vadd.f32 %v2853_v48, %v6213_v28  ;;  %v2855_v42 = vpop.f32.mrb[179].mxu1  ;;  %3625 = vmatmul.mubr.bf16.gmra.mrb[236].mxu1 %v3062_v14  ;;  %v2986_v49 = vmax.f32 %v2850_v39, 0.0 }
 0x494   :  { %v2856_v1 = vadd.f32 %v2855_v42, %v6218_v43  ;;  %v2987_v61 = vmax.f32 %v2852_v32, 0.0 }
 0x495   :  { %v2990_v44 = vmax.f32 %v2854_v51, 0.0 }
 0x496   :  { %v2991_v41 = vmax.f32 %v2856_v1, 0.0  ;;  %v4490_v36 = vpop.f32.mrb[132].mxu0 }
 0x497   :  { %v3066_v37 = vpack.c.bf16 %v2990_v44, %v2986_v49  ;;  %v4491_v56 = vpop.f32.mrb[133].mxu0 }
 0x498   :  { %v3067_v53 = vpack.c.bf16 %v2991_v41, %v2987_v61  ;;  %v6276_v54 = vadd.f32 %v4491_v56, %v4490_v36  ;;  %v2859_v2 = vpop.f32.mrb[180].mxu1  ;;  %v4493_v55 = vpop.f32.mrb[134].mxu0 }
 0x499   :  { %v2860_v57 = vadd.f32 %v2859_v2, %v6213_v28  ;;  %v2861_v20 = vpop.f32.mrb[181].mxu1  ;;  %v4494_v59 = vpop.f32.mrb[135].mxu0 }
 0x49a   :  { %v2862_v5 = vadd.f32 %v2861_v20, %v6218_v43  ;;  %v6280_v3 = vadd.f32 %v4494_v59, %v4493_v55  ;;  %v2863_v40 = vpop.f32.mrb[182].mxu1  ;;  %3632 = vmatprep.mubr.bf16.mxu1 %v3067_v53 }
 0x49b   :  { %v2864_v12 = vadd.f32 %v2863_v40, %v6213_v28  ;;  %v2865_v21 = vpop.f32.mrb[183].mxu1  ;;  %3633 = vmatmul.mubr.bf16.gmra.mrb[240].mxu1 %v3066_v37  ;;  %v2994_v62 = vmax.f32 %v2860_v57, 0.0 }
 0x49c   :  { %v2866_v58 = vadd.f32 %v2865_v21, %v6218_v43  ;;  %v2995_v23 = vmax.f32 %v2862_v5, 0.0 }
 0x49d   :  { %v2998_v30 = vmax.f32 %v2864_v12, 0.0 }
 0x49e   :  { %v2999_v22 = vmax.f32 %v2866_v58, 0.0  ;;  %v4496_v0 = vpop.f32.mrb[136].mxu0 }
 0x49f   :  { %v3070_v63 = vpack.c.bf16 %v2998_v30, %v2994_v62  ;;  %v4497_v13 = vpop.f32.mrb[137].mxu0 }
 0x4a0   :  { %v3071_v15 = vpack.c.bf16 %v2999_v22, %v2995_v23  ;;  %v6284_v4 = vadd.f32 %v4497_v13, %v4496_v0  ;;  %v2869_v34 = vpop.f32.mrb[184].mxu1  ;;  %v4499_v27 = vpop.f32.mrb[138].mxu0 }
 0x4a1   :  { %v2870_v25 = vadd.f32 %v2869_v34, %v6213_v28  ;;  %v2871_v46 = vpop.f32.mrb[185].mxu1  ;;  %v4500_v10 = vpop.f32.mrb[139].mxu0 }
 0x4a2   :  { %v2872_v19 = vadd.f32 %v2871_v46, %v6218_v43  ;;  %v6288_v47 = vadd.f32 %v4500_v10, %v4499_v27  ;;  %v2873_v7 = vpop.f32.mrb[186].mxu1  ;;  %3640 = vmatprep.mubr.bf16.mxu1 %v3071_v15 }
 0x4a3   :  { %v2874_v33 = vadd.f32 %v2873_v7, %v6213_v28  ;;  %v2875_v50 = vpop.f32.mrb[187].mxu1  ;;  %3641 = vmatmul.mubr.bf16.gmra.mrb[244].mxu1 %v3070_v63  ;;  %v3002_v11 = vmax.f32 %v2870_v25, 0.0 }
 0x4a4   :  { %v2876_v35 = vadd.f32 %v2875_v50, %v6218_v43  ;;  %v3003_v26 = vmax.f32 %v2872_v19, 0.0 }
 0x4a5   :  { %v3006_v45 = vmax.f32 %v2874_v33, 0.0 }
 0x4a6   :  { %v3007_v60 = vmax.f32 %v2876_v35, 0.0  ;;  %v4502_v52 = vpop.f32.mrb[140].mxu0 }
 0x4a7   :  { %v3074_v6 = vpack.c.bf16 %v3006_v45, %v3002_v11  ;;  %v4503_v8 = vpop.f32.mrb[141].mxu0 }
 0x4a8   :  { %v3075_v14 = vpack.c.bf16 %v3007_v60, %v3003_v26  ;;  %v6292_v16 = vadd.f32 %v4503_v8, %v4502_v52  ;;  %v2879_v24 = vpop.f32.mrb[188].mxu1  ;;  %v4505_v38 = vpop.f32.mrb[142].mxu0 }
 0x4a9   :  { %v2880_v18 = vadd.f32 %v2879_v24, %v6213_v28  ;;  %v2881_v39 = vpop.f32.mrb[189].mxu1  ;;  %v4506_v9 = vpop.f32.mrb[143].mxu0 }
 0x4aa   :  { %v2882_v29 = vadd.f32 %v2881_v39, %v6218_v43  ;;  %v6296_v32 = vadd.f32 %v4506_v9, %v4505_v38  ;;  %v2883_v48 = vpop.f32.mrb[190].mxu1  ;;  %3648 = vmatprep.mubr.bf16.mxu1 %v3075_v14 }
 0x4ab   :  { %v2884_v51 = vadd.f32 %v2883_v48, %v6213_v28  ;;  %v2885_v42 = vpop.f32.mrb[191].mxu1  ;;  %3649 = vmatmul.mubr.bf16.gmra.mrb[248].mxu1 %v3074_v6  ;;  %v3010_v49 = vmax.f32 %v2880_v18, 0.0 }
 0x4ac   :  { %v2886_v1 = vadd.f32 %v2885_v42, %v6218_v43  ;;  %v3011_v61 = vmax.f32 %v2882_v29, 0.0 }
 0x4ad   :  { %v3014_v44 = vmax.f32 %v2884_v51, 0.0 }
 0x4ae   :  { %v3015_v41 = vmax.f32 %v2886_v1, 0.0  ;;  %v4508_v36 = vpop.f32.mrb[144].mxu0 }
 0x4af   :  { %v3078_v37 = vpack.c.bf16 %v3014_v44, %v3010_v49  ;;  %v4509_v56 = vpop.f32.mrb[145].mxu0 }
 0x4b0   :  { %v3079_v53 = vpack.c.bf16 %v3015_v41, %v3011_v61  ;;  %v6300_v2 = vadd.f32 %v4509_v56, %v4508_v36  ;;  %v4511_v55 = vpop.f32.mrb[146].mxu0 }
 0x4b1   :  { %v4512_v57 = vpop.f32.mrb[147].mxu0 }
 0x4b2   :  { %v6302_v20 = vadd.f32 %v4512_v57, %v4511_v55  ;;  %3656 = vmatprep.mubr.bf16.mxu1 %v3079_v53 }
 0x4b3   :  { %3657 = vmatmul.mubr.bf16.gmra.mrb[252].mxu1 %v3078_v37 }
 0x4b6   :  { %v4514_v28 = vpop.f32.mrb[148].mxu0 }
 0x4b7   :  { %v4515_v59 = vpop.f32.mrb[149].mxu0 }
 0x4b8   :  { %v6304_v5 = vadd.f32 %v4515_v59, %v4514_v28  ;;  %v4517_v43 = vpop.f32.mrb[150].mxu0 }
 0x4b9   :  { %v4518_v40 = vpop.f32.mrb[151].mxu0 }
 0x4ba   :  { %v6306_v12 = vadd.f32 %v4518_v40, %v4517_v43 }
 0x4be   :  { %v4520_v21 = vpop.f32.mrb[152].mxu0 }
 0x4bf   :  { %v4521_v58 = vpop.f32.mrb[153].mxu0 }
 0x4c0   :  { %v6308_v62 = vadd.f32 %v4521_v58, %v4520_v21  ;;  %v4523_v30 = vpop.f32.mrb[154].mxu0 }
 0x4c1   :  { %v4524_v23 = vpop.f32.mrb[155].mxu0 }
 0x4c2   :  { %v6310_v22 = vadd.f32 %v4524_v23, %v4523_v30 }
 0x4c6   :  { %v4526_v0 = vpop.f32.mrb[156].mxu0 }
 0x4c7   :  { %v4527_v63 = vpop.f32.mrb[157].mxu0 }
 0x4c8   :  { %v6312_v13 = vadd.f32 %v4527_v63, %v4526_v0  ;;  %v4529_v15 = vpop.f32.mrb[158].mxu0 }
 0x4c9   :  { %v4530_v34 = vpop.f32.mrb[159].mxu0 }
 0x4ca   :  { %v6314_v27 = vadd.f32 %v4530_v34, %v4529_v15 }
 0x4ce   :  { %v4532_v25 = vpop.f32.mrb[160].mxu0 }
 0x4cf   :  { %v4533_v46 = vpop.f32.mrb[161].mxu0 }
 0x4d0   :  { %v6316_v10 = vadd.f32 %v4533_v46, %v4532_v25  ;;  %v4535_v19 = vpop.f32.mrb[162].mxu0  ;;  %v6351_v25 = vld [vmem:[%s6456_s9] ss:$0 sm:$0xff]  ;;  %s5404_s9 = smov [#allocation14]  }
 0x4d1   :  { %v4536_v7 = vpop.f32.mrb[163].mxu0  ;;  %s3970_s26 = sshll.u32 %s5404_s9, 4  ;;  %s3971_s26 = int_to_ptr.vmem [resolvable:$true] %s3970_s26 }
 0x4d2   :  { %v6318_v33 = vadd.f32 %v4536_v7, %v4535_v19  ;;  %v3378_v7 = vadd.f32 %v6268_v17, %v6351_v25  ;;  %s5335_s28 = scalar_lea.vmem %s3971_s26, 4096  ;;  %p5340_p7 = scmp.lt.s32.totalorder %s3971_s26, %s3971_s26 }
 0x4d3   :  { %p5336_p6 = scmp.ne.s32.totalorder %s3971_s26, %s5335_s28  ;;  %p5341_p8 = scmp.lt.s32.totalorder %s5335_s28, %s5335_s28 }
 0x4d5   :  { %p5342_p9 = por %p5341_p8, %p5340_p7 }
 0x4d6   :  { %v4538_v50 = vpop.f32.mrb[164].mxu0 }
 0x4d7   :  { %v4539_v35 = vpop.f32.mrb[165].mxu0  ;;  %p5343_p10 = pnand %p5342_p9, %p5336_p6 }
 0x4d8   :  { %v6320_v11 = vadd.f32 %v4539_v35, %v4538_v50  ;;  %v4541_v45 = vpop.f32.mrb[166].mxu0 }
 0x4d9   :  { %v4542_v26 = vpop.f32.mrb[167].mxu0 }
 0x4da   :  { %v6322_v60 = vadd.f32 %v4542_v26, %v4541_v45  ;;  %v3381_v26 = vadd.f32 %v6272_v31, %v6351_v25 }
 0x4de   :  { %v4544_v52 = vpop.f32.mrb[168].mxu0 }
 0x4df   :  { %v4545_v6 = vpop.f32.mrb[169].mxu0 }
 0x4e0   :  { %v6324_v8 = vadd.f32 %v4545_v6, %v4544_v52  ;;  %v4547_v14 = vpop.f32.mrb[170].mxu0 }
 0x4e1   :  { %v4548_v24 = vpop.f32.mrb[171].mxu0 }
 0x4e2   :  { %v6326_v38 = vadd.f32 %v4548_v24, %v4547_v14 }
 0x4e6   :  { %v4550_v18 = vpop.f32.mrb[172].mxu0 }
 0x4e7   :  { %v4551_v39 = vpop.f32.mrb[173].mxu0 }
 0x4e8   :  { %v6328_v9 = vadd.f32 %v4551_v39, %v4550_v18  ;;  %v4553_v29 = vpop.f32.mrb[174].mxu0 }
 0x4e9   :  { %v4554_v48 = vpop.f32.mrb[175].mxu0 }
 0x4ea   :  { %v6330_v51 = vadd.f32 %v4554_v48, %v4553_v29  ;;  %v3386_v48 = vadd.f32 %v6276_v54, %v6351_v25 }
 0x4ee   :  { %v4556_v42 = vpop.f32.mrb[176].mxu0 }
 0x4ef   :  { %v4557_v1 = vpop.f32.mrb[177].mxu0 }
 0x4f0   :  { %v6332_v49 = vadd.f32 %v4557_v1, %v4556_v42  ;;  %v4559_v44 = vpop.f32.mrb[178].mxu0 }
 0x4f1   :  { %v4560_v61 = vpop.f32.mrb[179].mxu0 }
 0x4f2   :  { %v6334_v41 = vadd.f32 %v4560_v61, %v4559_v44  ;;  %v3389_v44 = vadd.f32 %v6280_v3, %v6351_v25 }
 0x4f6   :  { %v4562_v36 = vpop.f32.mrb[180].mxu0 }
 0x4f7   :  { %v4563_v37 = vpop.f32.mrb[181].mxu0 }
 0x4f8   :  { %v6336_v56 = vadd.f32 %v4563_v37, %v4562_v36  ;;  %v4565_v53 = vpop.f32.mrb[182].mxu0 }
 0x4f9   :  { %v4566_v55 = vpop.f32.mrb[183].mxu0 }
 0x4fa   :  { %v6338_v57 = vadd.f32 %v4566_v55, %v4565_v53 }
 0x4fe   :  { %v4568_v28 = vpop.f32.mrb[184].mxu0 }
 0x4ff   :  { %v4569_v59 = vpop.f32.mrb[185].mxu0 }
 0x500   :  { %v6340_v43 = vadd.f32 %v4569_v59, %v4568_v28  ;;  %v4571_v40 = vpop.f32.mrb[186].mxu0 }
 0x501   :  { %v4572_v21 = vpop.f32.mrb[187].mxu0 }
 0x502   :  { %v6342_v58 = vadd.f32 %v4572_v21, %v4571_v40  ;;  %v3394_v40 = vadd.f32 %v6284_v4, %v6351_v25 }
 0x506   :  { %v4574_v30 = vpop.f32.mrb[188].mxu0 }
 0x507   :  { %v4575_v23 = vpop.f32.mrb[189].mxu0 }
 0x508   :  { %v6344_v0 = vadd.f32 %v4575_v23, %v4574_v30  ;;  %v4577_v63 = vpop.f32.mrb[190].mxu0 }
 0x509   :  { %v4578_v15 = vpop.f32.mrb[191].mxu0 }
 0x50a   :  { %v6346_v34 = vadd.f32 %v4578_v15, %v4577_v63  ;;  %v3397_v63 = vadd.f32 %v6288_v47, %v6351_v25 }
 0x50e   :  { %v4596_v46 = vpop.f32.mrb[192].mxu1 }
 0x50f   :  { %v4597_v19 = vpop.f32.mrb[193].mxu1 }
 0x510   :  { %v4598_v50 = vadd.f32 %v4597_v19, %v4596_v46  ;;  %v4599_v35 = vpop.f32.mrb[194].mxu1 }
 0x511   :  { %v4600_v45 = vpop.f32.mrb[195].mxu1 }
 0x512   :  { %v3539_v52 = vadd.f32 %v4598_v50, %v3378_v7  ;;  %v4601_v6 = vadd.f32 %v4600_v45, %v4599_v35 }
 0x514   :  { %v3665_v14 = vmul.f32 0.5, %v3539_v52  ;;  %v3542_v24 = vadd.f32 %v4601_v6, %v3381_v26 }
 0x516   :  { %5139 = vtanh.f32 %v3665_v14  ;;  %v3666_v18 = vmul.f32 0.5, %v3542_v24  ;;  %v4602_v39 = vpop.f32.mrb[196].mxu1 }
 0x517   :  { %v4603_v29 = vpop.f32.mrb[197].mxu1 }
 0x518   :  { %5141 = vtanh.f32 %v3666_v18  ;;  %v4604_v42 = vadd.f32 %v4603_v29, %v4602_v39  ;;  %v4605_v17 = vpop.f32.mrb[198].mxu1 }
 0x519   :  { %v4606_v1 = vpop.f32.mrb[199].mxu1 }
 0x51a   :  { %v3547_v61 = vadd.f32 %v4604_v42, %v3386_v48  ;;  %v4607_v31 = vadd.f32 %v4606_v1, %v4605_v17 }
 0x51c   :  { %v3667_v36 = vmul.f32 0.5, %v3547_v61  ;;  %v3550_v37 = vadd.f32 %v4607_v31, %v3389_v44 }
 0x51e   :  { %5143 = vtanh.f32 %v3667_v36  ;;  %v3668_v53 = vmul.f32 0.5, %v3550_v37  ;;  %v4608_v55 = vpop.f32.mrb[200].mxu1 }
 0x51f   :  { %v4609_v28 = vpop.f32.mrb[201].mxu1 }
 0x520   :  { %v5140_v59 = vpop.eup %5139  ;;  %5145 = vtanh.f32 %v3668_v53  ;;  %v4610_v54 = vadd.f32 %v4609_v28, %v4608_v55  ;;  %v4611_v21 = vpop.f32.mrb[202].mxu1 }
 0x521   :  { %v3729_v30 = vmul.f32 0.5, %v5140_v59  ;;  %v4612_v23 = vpop.f32.mrb[203].mxu1 }
 0x522   :  { %v5142_v3 = vpop.eup %5141  ;;  %v3555_v15 = vadd.f32 %v4610_v54, %v3394_v40  ;;  %v4613_v46 = vadd.f32 %v4612_v23, %v4611_v21 }
 0x523   :  { %5346 = shalt.err (!%p5343_p10)
}
 0x524   :  { %s5347_s12 = scalar_lea.hbm %s6458_s11, 4096 }
 0x525   :  { %p5348_p11 = scmp.ne.s32.totalorder %s6458_s11, %s5347_s12  ;;  %p5351_p12 = scmp.lt.u32.totalorder %s5347_s12, %s6458_s11 }
 0x527   :  { %p5353_p13 = pnand %p5351_p12, %p5348_p11 }
 0x529   :  { %5356 = shalt.err (!%p5353_p13)
}
 0x52a   :  { %3976 = dma.vmem_to_hbm [thread:$0]  %s3971_s26, 4096, %s6458_s11, [#allocation15], %s5395_s1, %s5395_s1, %s5396_s18   ;;  %v3730_v4 = vmul.f32 0.5, %v5142_v3  ;;  %v3669_v47 = vmul.f32 0.5, %v3555_v15  ;;  %v3558_v19 = vadd.f32 %v4613_v46, %v3397_v63  ;;  %v3761_v7 = vadd.f32 0.5, %v3729_v30  ;;  %v4614_v45 = vpop.f32.mrb[204].mxu1  ;;  %v5144_v6 = vpop.eup %5143 }
 0x52b   :  { %v4615_v52 = vpop.f32.mrb[205].mxu1  ;;  %v3402_v14 = vadd.f32 %v6292_v16, %v6351_v25  ;;  %v3731_v39 = vmul.f32 0.5, %v5144_v6  ;;  %v5146_v48 = vpop.eup %5145  ;;  %v3405_v42 = vadd.f32 %v6296_v32, %v6351_v25  ;;  %v3410_v40 = vadd.f32 %v6300_v2, %v6351_v25  ;;  %s5405_s11 = smov [#allocation13]  }
 0x52c   :  { %v3762_v50 = vadd.f32 0.5, %v3730_v4  ;;  %5147 = vtanh.f32 %v3669_v47  ;;  %v3670_v35 = vmul.f32 0.5, %v3558_v19  ;;  %v4616_v24 = vadd.f32 %v4615_v52, %v4614_v45  ;;  %v4617_v18 = vpop.f32.mrb[206].mxu1  ;;  %s3958_s1 = sshll.u32 %s5405_s11, 4  ;;  %s3959_s1 = int_to_ptr.vmem [resolvable:$true] %s3958_s1 }
 0x52d   :  { %v4618_v29 = vpop.f32.mrb[207].mxu1  ;;  %v3732_v44 = vmul.f32 0.5, %v5146_v48  ;;  %v3763_v36 = vadd.f32 0.5, %v3731_v39  ;;  %v3413_v3 = vadd.f32 %v6302_v20, %v6351_v25  ;;  %v3418_v52 = vadd.f32 %v6304_v5, %v6351_v25  ;;  %s5357_s18 = scalar_lea.vmem %s3959_s1, 2048  ;;  %p5362_p1 = scmp.lt.s32.totalorder %s3959_s1, %s3959_s1 }
 0x52e   :  { %v4361_v26 = vpack.c.bf16 %v3762_v50, %v3761_v7  ;;  %5149 = vtanh.f32 %v3670_v35  ;;  %v3563_v17 = vadd.f32 %v4616_v24, %v3402_v14  ;;  %v4619_v1 = vadd.f32 %v4618_v29, %v4617_v18  ;;  %v4620_v16 = vpop.f32.mrb[208].mxu1  ;;  %p5358_p0 = scmp.ne.s32.totalorder %s3959_s1, %s5357_s18  ;;  %p5363_p2 = scmp.lt.s32.totalorder %s5357_s18, %s5357_s18 }
 0x52f   :  { %v3764_v37 = vadd.f32 0.5, %v3732_v44  ;;  %v4621_v28 = vpop.f32.mrb[209].mxu1  ;;  %v3421_v39 = vadd.f32 %v6306_v12, %v6351_v25 }
 0x530   :  { %4362 = vst [vmem:[#allocation13] sm:$0xff] %v4361_v26   ;;  %v3671_v61 = vmul.f32 0.5, %v3563_v17  ;;  %v3566_v31 = vadd.f32 %v4619_v1, %v3405_v42  ;;  %v4622_v54 = vadd.f32 %v4621_v28, %v4620_v16  ;;  %v4623_v21 = vpop.f32.mrb[210].mxu1  ;;  %v3426_v16 = vadd.f32 %v6308_v62, %v6351_v25  ;;  %p5364_p3 = por %p5363_p2, %p5362_p1 }
 0x531   :  { %v4366_v55 = vpack.c.bf16 %v3764_v37, %v3763_v36  ;;  %v4624_v30 = vpop.f32.mrb[211].mxu1 }
 0x532   :  { %5151 = vtanh.f32 %v3671_v61  ;;  %v3672_v53 = vmul.f32 0.5, %v3566_v31  ;;  %v3571_v63 = vadd.f32 %v4622_v54, %v3410_v40  ;;  %v4625_v15 = vadd.f32 %v4624_v30, %v4623_v21  ;;  %p5365_p4 = pnand %p5364_p3, %p5358_p0 }
 0x533   :  { %4453 = vst [vmem:[#allocation13 + $0x8] sm:$0xff] %v4366_v55   ;;  %v3429_v54 = vadd.f32 %v6310_v22, %v6351_v25 }
 0x534   :  { %5153 = vtanh.f32 %v3672_v53  ;;  %v3673_v4 = vmul.f32 0.5, %v3571_v63  ;;  %v3574_v47 = vadd.f32 %v4625_v15, %v3413_v3 }
 0x536   :  { %v5148_v59 = vpop.eup %5147  ;;  %5155 = vtanh.f32 %v3673_v4  ;;  %v3674_v50 = vmul.f32 0.5, %v3574_v47  ;;  %v4626_v2 = vpop.f32.mrb[212].mxu1 }
 0x537   :  { %v3733_v32 = vmul.f32 0.5, %v5148_v59  ;;  %v4627_v45 = vpop.f32.mrb[213].mxu1 }
 0x538   :  { %v5150_v23 = vpop.eup %5149  ;;  %5157 = vtanh.f32 %v3674_v50  ;;  %v4628_v6 = vadd.f32 %v4627_v45, %v4626_v2  ;;  %v4629_v14 = vpop.f32.mrb[214].mxu1 }
 0x539   :  { %v3734_v46 = vmul.f32 0.5, %v5150_v23  ;;  %v3765_v19 = vadd.f32 0.5, %v3733_v32  ;;  %v4630_v24 = vpop.f32.mrb[215].mxu1 }
 0x53a   :  { %v3579_v29 = vadd.f32 %v4628_v6, %v3418_v52  ;;  %v4631_v48 = vadd.f32 %v4630_v24, %v4629_v14 }
 0x53b   :  { %v3766_v7 = vadd.f32 0.5, %v3734_v46 }
 0x53c   :  { %v5152_v26 = vpop.eup %5151  ;;  %v3675_v17 = vmul.f32 0.5, %v3579_v29  ;;  %v3582_v1 = vadd.f32 %v4631_v48, %v3421_v39 }
 0x53d   :  { %v4371_v35 = vpack.c.bf16 %v3766_v7, %v3765_v19  ;;  %v3735_v20 = vmul.f32 0.5, %v5152_v26  ;;  %v3434_v7 = vadd.f32 %v6312_v13, %v6351_v25  ;;  %v3437_v26 = vadd.f32 %v6314_v27, %v6351_v25 }
 0x53e   :  { %v5154_v18 = vpop.eup %5153  ;;  %5159 = vtanh.f32 %v3675_v17  ;;  %v3676_v31 = vmul.f32 0.5, %v3582_v1  ;;  %v4632_v5 = vpop.f32.mrb[216].mxu1  ;;  %v3442_v1 = vadd.f32 %v6316_v10, %v6351_v25 }
 0x53f   :  { %4454 = vst [vmem:[#allocation13 + $0x10] sm:$0xff] %v4371_v35   ;;  %v3736_v42 = vmul.f32 0.5, %v5154_v18  ;;  %v3767_v44 = vadd.f32 0.5, %v3735_v20  ;;  %v4633_v37 = vpop.f32.mrb[217].mxu1 }
 0x540   :  { %v5156_v53 = vpop.eup %5155  ;;  %5161 = vtanh.f32 %v3676_v31  ;;  %v4634_v55 = vadd.f32 %v4633_v37, %v4632_v5  ;;  %v4635_v28 = vpop.f32.mrb[218].mxu1 }
 0x541   :  { %v3768_v61 = vadd.f32 0.5, %v3736_v42  ;;  %v3737_v12 = vmul.f32 0.5, %v5156_v53  ;;  %v4636_v59 = vpop.f32.mrb[219].mxu1 }
 0x542   :  { %v5158_v40 = vpop.eup %5157  ;;  %v3587_v21 = vadd.f32 %v4634_v55, %v3426_v16  ;;  %v4637_v32 = vadd.f32 %v4636_v59, %v4635_v28 }
 0x543   :  { %v4376_v36 = vpack.c.bf16 %v3768_v61, %v3767_v44  ;;  %v3738_v30 = vmul.f32 0.5, %v5158_v40  ;;  %v3769_v63 = vadd.f32 0.5, %v3737_v12 }
 0x544   :  { %v3677_v23 = vmul.f32 0.5, %v3587_v21  ;;  %v3590_v3 = vadd.f32 %v4637_v32, %v3429_v54 }
 0x545   :  { %4455 = vst [vmem:[#allocation13 + $0x18] sm:$0xff] %v4376_v36   ;;  %v3770_v15 = vadd.f32 0.5, %v3738_v30  ;;  %v3445_v36 = vadd.f32 %v6318_v33, %v6351_v25  ;;  %v3450_v30 = vadd.f32 %v6320_v11, %v6351_v25 }
 0x546   :  { %5163 = vtanh.f32 %v3677_v23  ;;  %v3678_v46 = vmul.f32 0.5, %v3590_v3  ;;  %v4638_v62 = vpop.f32.mrb[220].mxu1 }
 0x547   :  { %v4381_v4 = vpack.c.bf16 %v3770_v15, %v3769_v63  ;;  %v4639_v47 = vpop.f32.mrb[221].mxu1 }
 0x548   :  { %v5160_v19 = vpop.eup %5159  ;;  %5165 = vtanh.f32 %v3678_v46  ;;  %v4640_v50 = vadd.f32 %v4639_v47, %v4638_v62  ;;  %v4641_v2 = vpop.f32.mrb[222].mxu1  ;;  %v3453_v46 = vadd.f32 %v6322_v60, %v6351_v25 }
 0x549   :  { %4456 = vst [vmem:[#allocation13 + $0x20] sm:$0xff] %v4381_v4   ;;  %v3739_v22 = vmul.f32 0.5, %v5160_v19  ;;  %v4642_v35 = vpop.f32.mrb[223].mxu1 }
 0x54a   :  { %v5162_v45 = vpop.eup %5161  ;;  %v3595_v52 = vadd.f32 %v4640_v50, %v3434_v7  ;;  %v4643_v6 = vadd.f32 %v4642_v35, %v4641_v2 }
 0x54b   :  { %v3740_v14 = vmul.f32 0.5, %v5162_v45  ;;  %v3771_v18 = vadd.f32 0.5, %v3739_v22 }
 0x54c   :  { %v3679_v20 = vmul.f32 0.5, %v3595_v52  ;;  %v3598_v24 = vadd.f32 %v4643_v6, %v3437_v26  ;;  %v3458_v52 = vadd.f32 %v6324_v8, %v6351_v25 }
 0x54d   :  { %v3772_v39 = vadd.f32 0.5, %v3740_v14 }
 0x54e   :  { %5167 = vtanh.f32 %v3679_v20  ;;  %v3680_v29 = vmul.f32 0.5, %v3598_v24  ;;  %v4644_v13 = vpop.f32.mrb[224].mxu1 }
 0x54f   :  { %v4386_v48 = vpack.c.bf16 %v3772_v39, %v3771_v18  ;;  %v4645_v42 = vpop.f32.mrb[225].mxu1  ;;  %v3461_v18 = vadd.f32 %v6326_v38, %v6351_v25 }
 0x550   :  { %v5164_v17 = vpop.eup %5163  ;;  %5169 = vtanh.f32 %v3680_v29  ;;  %v4646_v44 = vadd.f32 %v4645_v42, %v4644_v13  ;;  %v4647_v61 = vpop.f32.mrb[226].mxu1 }
 0x551   :  { %4457 = vst [vmem:[#allocation13 + $0x28] sm:$0xff] %v4386_v48   ;;  %v3741_v27 = vmul.f32 0.5, %v5164_v17  ;;  %v4648_v31 = vpop.f32.mrb[227].mxu1 }
 0x552   :  { %v5166_v5 = vpop.eup %5165  ;;  %v3603_v37 = vadd.f32 %v4646_v44, %v3442_v1  ;;  %v4649_v53 = vadd.f32 %v4648_v31, %v4647_v61 }
 0x553   :  { %v3742_v16 = vmul.f32 0.5, %v5166_v5  ;;  %v3773_v12 = vadd.f32 0.5, %v3741_v27  ;;  %v3466_v5 = vadd.f32 %v6328_v9, %v6351_v25 }
 0x554   :  { %v3681_v55 = vmul.f32 0.5, %v3603_v37  ;;  %v3606_v28 = vadd.f32 %v4649_v53, %v3445_v36 }
 0x555   :  { %v3774_v59 = vadd.f32 0.5, %v3742_v16 }
 0x556   :  { %5171 = vtanh.f32 %v3681_v55  ;;  %v3682_v40 = vmul.f32 0.5, %v3606_v28  ;;  %v4650_v10 = vpop.f32.mrb[228].mxu1  ;;  %v3469_v55 = vadd.f32 %v6330_v51, %v6351_v25 }
 0x557   :  { %v4391_v54 = vpack.c.bf16 %v3774_v59, %v3773_v12  ;;  %v4651_v21 = vpop.f32.mrb[229].mxu1 }
 0x558   :  { %v5168_v32 = vpop.eup %5167  ;;  %5173 = vtanh.f32 %v3682_v40  ;;  %v4652_v23 = vadd.f32 %v4651_v21, %v4650_v10  ;;  %v4653_v3 = vpop.f32.mrb[230].mxu1 }
 0x559   :  { %4458 = vst [vmem:[#allocation13 + $0x30] sm:$0xff] %v4391_v54   ;;  %v3743_v33 = vmul.f32 0.5, %v5168_v32  ;;  %v4654_v63 = vpop.f32.mrb[231].mxu1 }
 0x55a   :  { %v5170_v15 = vpop.eup %5169  ;;  %v3611_v62 = vadd.f32 %v4652_v23, %v3450_v30  ;;  %v4655_v4 = vadd.f32 %v4654_v63, %v4653_v3 }
 0x55b   :  { %v3744_v47 = vmul.f32 0.5, %v5170_v15  ;;  %v3775_v50 = vadd.f32 0.5, %v3743_v33  ;;  %v3474_v33 = vadd.f32 %v6332_v49, %v6351_v25 }
 0x55c   :  { %v3683_v19 = vmul.f32 0.5, %v3611_v62  ;;  %v3614_v7 = vadd.f32 %v4655_v4, %v3453_v46  ;;  %v3477_v4 = vadd.f32 %v6334_v41, %v6351_v25 }
 0x55d   :  { %v3776_v2 = vadd.f32 0.5, %v3744_v47 }
 0x55e   :  { %5175 = vtanh.f32 %v3683_v19  ;;  %v3684_v22 = vmul.f32 0.5, %v3614_v7  ;;  %v4656_v11 = vpop.f32.mrb[232].mxu1 }
 0x55f   :  { %v4396_v35 = vpack.c.bf16 %v3776_v2, %v3775_v50  ;;  %v4657_v45 = vpop.f32.mrb[233].mxu1 }
 0x560   :  { %v5172_v26 = vpop.eup %5171  ;;  %5177 = vtanh.f32 %v3684_v22  ;;  %v4658_v6 = vadd.f32 %v4657_v45, %v4656_v11  ;;  %v4659_v14 = vpop.f32.mrb[234].mxu1 }
 0x561   :  { %4459 = vst [vmem:[#allocation13 + $0x38] sm:$0xff] %v4396_v35   ;;  %v3745_v60 = vmul.f32 0.5, %v5172_v26  ;;  %v4660_v20 = vpop.f32.mrb[235].mxu1 }
 0x562   :  { %v5174_v24 = vpop.eup %5173  ;;  %v3619_v39 = vadd.f32 %v4658_v6, %v3458_v52  ;;  %v4661_v29 = vadd.f32 %v4660_v20, %v4659_v14  ;;  %v3482_v6 = vadd.f32 %v6336_v56, %v6351_v25 }
 0x563   :  { %v3746_v13 = vmul.f32 0.5, %v5174_v24  ;;  %v3777_v17 = vadd.f32 0.5, %v3745_v60 }
 0x564   :  { %v3685_v48 = vmul.f32 0.5, %v3619_v39  ;;  %v3622_v42 = vadd.f32 %v4661_v29, %v3461_v18  ;;  %v3485_v18 = vadd.f32 %v6338_v57, %v6351_v25 }
 0x565   :  { %v3778_v1 = vadd.f32 0.5, %v3746_v13 }
 0x566   :  { %5179 = vtanh.f32 %v3685_v48  ;;  %v3686_v44 = vmul.f32 0.5, %v3622_v42  ;;  %v4662_v8 = vpop.f32.mrb[236].mxu1 }
 0x567   :  { %v4401_v61 = vpack.c.bf16 %v3778_v1, %v3777_v17  ;;  %v4663_v27 = vpop.f32.mrb[237].mxu1 }
 0x568   :  { %v5176_v31 = vpop.eup %5175  ;;  %5181 = vtanh.f32 %v3686_v44  ;;  %v4664_v36 = vadd.f32 %v4663_v27, %v4662_v8  ;;  %v4665_v37 = vpop.f32.mrb[238].mxu1 }
 0x569   :  { %4460 = vst [vmem:[#allocation13 + $0x40] sm:$0xff] %v4401_v61   ;;  %v3747_v38 = vmul.f32 0.5, %v5176_v31  ;;  %v4666_v53 = vpop.f32.mrb[239].mxu1  ;;  %v3490_v31 = vadd.f32 %v6340_v43, %v6351_v25 }
 0x56a   :  { %v5178_v16 = vpop.eup %5177  ;;  %v3627_v28 = vadd.f32 %v4664_v36, %v3466_v5  ;;  %v4667_v12 = vadd.f32 %v4666_v53, %v4665_v37  ;;  %v3493_v53 = vadd.f32 %v6342_v58, %v6351_v25 }
 0x56b   :  { %v3748_v59 = vmul.f32 0.5, %v5178_v16  ;;  %v3779_v54 = vadd.f32 0.5, %v3747_v38 }
 0x56c   :  { %v3687_v40 = vmul.f32 0.5, %v3627_v28  ;;  %v3630_v10 = vadd.f32 %v4667_v12, %v3469_v55 }
 0x56d   :  { %v3780_v21 = vadd.f32 0.5, %v3748_v59 }
 0x56e   :  { %5183 = vtanh.f32 %v3687_v40  ;;  %v3688_v32 = vmul.f32 0.5, %v3630_v10  ;;  %v4668_v9 = vpop.f32.mrb[240].mxu1 }
 0x56f   :  { %v4406_v30 = vpack.c.bf16 %v3780_v21, %v3779_v54  ;;  %v4669_v23 = vpop.f32.mrb[241].mxu1 }
 0x570   :  { %v5180_v3 = vpop.eup %5179  ;;  %5185 = vtanh.f32 %v3688_v32  ;;  %v4670_v63 = vadd.f32 %v4669_v23, %v4668_v9  ;;  %v4671_v15 = vpop.f32.mrb[242].mxu1 }
 0x571   :  { %4461 = vst [vmem:[#allocation13 + $0x48] sm:$0xff] %v4406_v30   ;;  %v3749_v51 = vmul.f32 0.5, %v5180_v3  ;;  %v4672_v46 = vpop.f32.mrb[243].mxu1  ;;  %v3498_v30 = vadd.f32 %v6344_v0, %v6351_v25 }
 0x572   :  { %v5182_v62 = vpop.eup %5181  ;;  %v3635_v47 = vadd.f32 %v4670_v63, %v3474_v33  ;;  %v4673_v19 = vadd.f32 %v4672_v46, %v4671_v15  ;;  %v3501_v15 = vadd.f32 %v6346_v34, %v6351_v25 }
 0x573   :  { %v3750_v7 = vmul.f32 0.5, %v5182_v62  ;;  %v3781_v22 = vadd.f32 0.5, %v3749_v51 }
 0x574   :  { %v3689_v50 = vmul.f32 0.5, %v3635_v47  ;;  %v3638_v2 = vadd.f32 %v4673_v19, %v3477_v4 }
 0x575   :  { %v3782_v11 = vadd.f32 0.5, %v3750_v7 }
 0x576   :  { %5187 = vtanh.f32 %v3689_v50  ;;  %v3690_v35 = vmul.f32 0.5, %v3638_v2  ;;  %v4674_v49 = vpop.f32.mrb[244].mxu1 }
 0x577   :  { %v4411_v45 = vpack.c.bf16 %v3782_v11, %v3781_v22  ;;  %v4675_v26 = vpop.f32.mrb[245].mxu1 }
 0x578   :  { %v5184_v52 = vpop.eup %5183  ;;  %5189 = vtanh.f32 %v3690_v35  ;;  %v4676_v14 = vadd.f32 %v4675_v26, %v4674_v49  ;;  %v4677_v60 = vpop.f32.mrb[246].mxu1 }
 0x579   :  { %4462 = vst [vmem:[#allocation13 + $0x50] sm:$0xff] %v4411_v45   ;;  %v3751_v41 = vmul.f32 0.5, %v5184_v52  ;;  %v4678_v20 = vpop.f32.mrb[247].mxu1 }
 0x57a   :  { %v5186_v24 = vpop.eup %5185  ;;  %v3643_v39 = vadd.f32 %v4676_v14, %v3482_v6  ;;  %v4679_v29 = vadd.f32 %v4678_v20, %v4677_v60 }
 0x57b   :  { %v3752_v13 = vmul.f32 0.5, %v5186_v24  ;;  %v3783_v17 = vadd.f32 0.5, %v3751_v41 }
 0x57c   :  { %v3691_v48 = vmul.f32 0.5, %v3643_v39  ;;  %v3646_v42 = vadd.f32 %v4679_v29, %v3485_v18 }
 0x57d   :  { %v3784_v1 = vadd.f32 0.5, %v3752_v13 }
 0x57e   :  { %5191 = vtanh.f32 %v3691_v48  ;;  %v3692_v44 = vmul.f32 0.5, %v3646_v42  ;;  %v4680_v56 = vpop.f32.mrb[248].mxu1 }
 0x57f   :  { %v4416_v8 = vpack.c.bf16 %v3784_v1, %v3783_v17  ;;  %v4681_v61 = vpop.f32.mrb[249].mxu1 }
 0x580   :  { %v5188_v27 = vpop.eup %5187  ;;  %5193 = vtanh.f32 %v3692_v44  ;;  %v4682_v5 = vadd.f32 %v4681_v61, %v4680_v56  ;;  %v4683_v36 = vpop.f32.mrb[250].mxu1 }
 0x581   :  { %4463 = vst [vmem:[#allocation13 + $0x58] sm:$0xff] %v4416_v8   ;;  %v3753_v57 = vmul.f32 0.5, %v5188_v27  ;;  %v4684_v37 = vpop.f32.mrb[251].mxu1 }
 0x582   :  { %v5190_v38 = vpop.eup %5189  ;;  %v3651_v16 = vadd.f32 %v4682_v5, %v3490_v31  ;;  %v4685_v55 = vadd.f32 %v4684_v37, %v4683_v36 }
 0x583   :  { %v3754_v28 = vmul.f32 0.5, %v5190_v38  ;;  %v3785_v40 = vadd.f32 0.5, %v3753_v57 }
 0x584   :  { %v3693_v12 = vmul.f32 0.5, %v3651_v16  ;;  %v3654_v59 = vadd.f32 %v4685_v55, %v3493_v53 }
 0x585   :  { %v3786_v10 = vadd.f32 0.5, %v3754_v28 }
 0x586   :  { %5195 = vtanh.f32 %v3693_v12  ;;  %v3694_v54 = vmul.f32 0.5, %v3654_v59  ;;  %v4686_v43 = vpop.f32.mrb[252].mxu1 }
 0x587   :  { %v4421_v21 = vpack.c.bf16 %v3786_v10, %v3785_v40  ;;  %v4687_v32 = vpop.f32.mrb[253].mxu1 }
 0x588   :  { %v5192_v9 = vpop.eup %5191  ;;  %5197 = vtanh.f32 %v3694_v54  ;;  %v4688_v23 = vadd.f32 %v4687_v32, %v4686_v43  ;;  %v4689_v3 = vpop.f32.mrb[254].mxu1 }
 0x589   :  { %4464 = vst [vmem:[#allocation13 + $0x60] sm:$0xff] %v4421_v21   ;;  %v3755_v58 = vmul.f32 0.5, %v5192_v9  ;;  %v4690_v33 = vpop.f32.mrb[255].mxu1 }
 0x58a   :  { %v5194_v63 = vpop.eup %5193  ;;  %v3659_v51 = vadd.f32 %v4688_v23, %v3498_v30  ;;  %v4691_v46 = vadd.f32 %v4690_v33, %v4689_v3 }
 0x58b   :  { %v3756_v62 = vmul.f32 0.5, %v5194_v63  ;;  %v3787_v19 = vadd.f32 0.5, %v3755_v58 }
 0x58c   :  { %v3695_v4 = vmul.f32 0.5, %v3659_v51  ;;  %v3662_v47 = vadd.f32 %v4691_v46, %v3501_v15 }
 0x58d   :  { %v3788_v7 = vadd.f32 0.5, %v3756_v62 }
 0x58e   :  { %5199 = vtanh.f32 %v3695_v4  ;;  %v3696_v50 = vmul.f32 0.5, %v3662_v47 }
 0x58f   :  { %v4426_v0 = vpack.c.bf16 %v3788_v7, %v3787_v19 }
 0x590   :  { %v5196_v2 = vpop.eup %5195  ;;  %5201 = vtanh.f32 %v3696_v50 }
 0x591   :  { %4465 = vst [vmem:[#allocation13 + $0x68] sm:$0xff] %v4426_v0   ;;  %v3757_v22 = vmul.f32 0.5, %v5196_v2 }
 0x592   :  { %v5198_v11 = vpop.eup %5197 }
 0x593   :  { %v3758_v35 = vmul.f32 0.5, %v5198_v11  ;;  %v3789_v49 = vadd.f32 0.5, %v3757_v22 }
 0x595   :  { %v3790_v45 = vadd.f32 0.5, %v3758_v35 }
 0x597   :  { %v4431_v26 = vpack.c.bf16 %v3790_v45, %v3789_v49 }
 0x598   :  { %v5200_v34 = vpop.eup %5199 }
 0x599   :  { %4466 = vst [vmem:[#allocation13 + $0x70] sm:$0xff] %v4431_v26   ;;  %v3759_v25 = vmul.f32 0.5, %v5200_v34 }
 0x59a   :  { %v5202_v52 = vpop.eup %5201 }
 0x59b   :  { %v3760_v6 = vmul.f32 0.5, %v5202_v52  ;;  %v3791_v14 = vadd.f32 0.5, %v3759_v25 }
 0x59d   :  { %v3792_v60 = vadd.f32 0.5, %v3760_v6 }
 0x59f   :  { %v4436_v41 = vpack.c.bf16 %v3792_v60, %v3791_v14 }
 0x5a1   :  { %4467 = vst [vmem:[#allocation13 + $0x78] sm:$0xff] %v4436_v41  }
 0x5a2   :  { %5368 = shalt.err (!%p5365_p4)
}
 0x5a3   :  { %s5369_s24 = scalar_lea.hbm %s6457_s10, 2048 }
 0x5a4   :  { %p5370_p5 = scmp.ne.s32.totalorder %s6457_s10, %s5369_s24  ;;  %p5373_p6 = scmp.lt.u32.totalorder %s5369_s24, %s6457_s10 }
 0x5a6   :  { %p5375_p7 = pnand %p5373_p6, %p5370_p5 }
 0x5a8   :  { %5378 = shalt.err (!%p5375_p7)
}
 0x5a9   :  { %3964 = dma.vmem_to_hbm [thread:$0]  %s3959_s1, 2048, %s6457_s10, [#allocation4], %s5393_s29, %s5393_s29, %s5394_s30  }
 0x5aa   :  { %5387 = dma.done.wait [#allocation4], 2048  }
 0x5ab   :  { %5388 = vsyncadd [#allocation4], 4294965248 }
 0x5ac   :  { %5389 = dma.done.wait [#allocation15], 4096  }
 0x5ad   :  { %5390 = vsyncadd [#allocation15], 4294963200 }
 0x5ae   :  { %3983 = vsyncpa [#allocation3], 1 }
 0x5af   :  { %3984 = vsyncpa [#allocation6], 1 }
 0x5b0   :  { %3985 = vsyncpa [#allocation9], 1 }
 0x5b1   :  { %3986 = vsyncpa [#allocation12], 1 }
 0x5b2   :  { %3987 = vsyncpa [#allocation4], 1 }
 0x5b3   :  { %3988 = vsyncpa [#allocation15], 1 }

</bundles_post_ra>
